<compile_context>
chip_gen: v6e
topology: v6e:2x2x1
jax: 0.10.0
libtpu: 0.0.40
codegen_flags: <defaults>
</compile_context>

<pallas_src>
import jax
import jax.numpy as jnp
from jax.experimental import pallas as pl
from jax.experimental.pallas import tpu as pltpu

C_IN = 512
C_OUT = 512
HID = 32
N_CLS = 2


def _pick_block_batch(n, hw, row_target=256):
    """Largest divisor b of n with b*hw <= row_target while keeping >= 2 grid steps."""
    cap = max(1, row_target // hw)
    best = 1
    for b in range(1, n + 1):
        if n % b == 0 and b <= cap and n // b >= 2:
            best = b
    return best


def corrector_forward(x_nchw, w_conv, b_conv, w1, b1, w2, b2):
    """x_nchw: (N, 512, H, W) float32.

    w_conv: (3, 3, Cin, Cout)   (HWIO, i.e. torch (Cout,Cin,3,3) transposed)
    b_conv: (Cout,)
    w1: (512, 32), b1: (32,)    (torch Linear weight transposed)
    w2: (32, 2),  b2: (2,)
    returns: (N*H*W, 2) float32
    """
    N, C, H, W = x_nchw.shape
    assert C == C_IN
    Hp = H + 2

    # ---- wrapper glue: layout + reflection pad + kx pre-shift (data movement only) ----
    x_nhwc = jnp.transpose(x_nchw, (0, 2, 3, 1))                        # (N,H,W,C)
    x_pad = jnp.pad(x_nhwc, ((0, 0), (1, 1), (1, 1), (0, 0)), mode="reflect")
    # Three width-shifted copies stacked along rows: rows [kx*Hp + y] hold
    # x_pad[:, y, kx:kx+W, :].  Shape (N, 3*Hp, W, C), cast to bf16 to halve DMA.
    x_sh = jnp.concatenate([x_pad[:, :, kx:kx + W, :] for kx in range(3)], axis=1)
    x_sh = x_sh.astype(jnp.bfloat16)

    w_conv_bf = w_conv.astype(jnp.bfloat16)                             # (3,3,Cin,Cout)
    b_conv2 = b_conv.reshape(1, C_OUT).astype(jnp.float32)

    # Fuse the two Linear layers (no nonlinearity between them).
    w12 = (w1.astype(jnp.float32) @ w2.astype(jnp.float32)).astype(jnp.bfloat16)  # (512,2)
    b12 = (b1.astype(jnp.float32) @ w2.astype(jnp.float32) + b2).reshape(1, N_CLS)
    b12 = b12.astype(jnp.float32)

    B = _pick_block_batch(N, H * W)     # images per grid step (fills MXU rows)
    M = B * H * W                       # matmul M per step

    def kernel(x_ref, wc_ref, bc_ref, w12_ref, b12_ref, out_ref, acc_ref):
        # x_ref: (B, 3*Hp, W, C) bf16.  All slices below are on leading dims ->
        # tile-aligned loads; the reshape is layout-preserving (W = sublane tile).
        for ky in range(3):
            for kx in range(3):
                base = kx * Hp + ky
                xs = x_ref[:, base:base + H, :, :].reshape(M, C_IN)
                part = jnp.dot(xs, wc_ref[ky, kx],
                               preferred_element_type=jnp.float32)
                if ky == 0 and kx == 0:
                    acc_ref[...] = part + bc_ref[...]        # init with conv bias
                else:
                    acc_ref[...] += part
        act = jnp.maximum(acc_ref[...], 0.0).astype(jnp.bfloat16)        # ReLU
        out = jnp.dot(act, w12_ref[...],
                      preferred_element_type=jnp.float32) + b12_ref[...]
        out_ref[...] = out.astype(out_ref.dtype)

    out = pl.pallas_call(
        kernel,
        out_shape=jax.ShapeDtypeStruct((N * H * W, N_CLS), jnp.float32),
        grid_spec=pltpu.PrefetchScalarGridSpec(
            num_scalar_prefetch=0,
            grid=(N // B,),
            in_specs=[
                pl.BlockSpec((B, 3 * Hp, W, C_IN), lambda n: (n, 0, 0, 0)),
                pl.BlockSpec((3, 3, C_IN, C_OUT), lambda n: (0, 0, 0, 0)),  # grid-invariant
                pl.BlockSpec((1, C_OUT), lambda n: (0, 0)),
                pl.BlockSpec((C_IN, N_CLS), lambda n: (0, 0)),
                pl.BlockSpec((1, N_CLS), lambda n: (0, 0)),
            ],
            out_specs=pl.BlockSpec((M, N_CLS), lambda n: (n, 0)),
            scratch_shapes=[pltpu.VMEM((M, C_OUT), jnp.float32)],
        ),
        compiler_params=pltpu.CompilerParams(
            dimension_semantics=("parallel",),
            vmem_limit_bytes=32 * 1024 * 1024,   # ~10 MiB actual; fits v7x's 64 MiB VMEM
        ),
    )(x_sh, w_conv_bf, b_conv2, w12, b12)

    return out


def reference_forward(x_nchw, w_conv, b_conv, w1, b1, w2, b2):
    """Pure-JAX f32 reference (conv via lax.conv_general_dilated) for validation."""
    N, C, H, W = x_nchw.shape
    x_nhwc = jnp.transpose(x_nchw, (0, 2, 3, 1))
    x_pad = jnp.pad(x_nhwc, ((0, 0), (1, 1), (1, 1), (0, 0)), mode="reflect")
    y = jax.lax.conv_general_dilated(
        x_pad, w_conv, window_strides=(1, 1), padding="VALID",
        dimension_numbers=("NHWC", "HWIO", "NHWC"))
    y = jnp.maximum(y + b_conv, 0.0)                                   # (N,H,W,Cout)
    flat = y.reshape(N * H * W, C_OUT)
    h1 = flat @ w1 + b1
    return h1 @ w2 + b2


if __name__ == "__main__":
    key = jax.random.PRNGKey(0)
    k_x, k_wc, k_bc, k_w1, k_b1, k_w2, k_b2 = jax.random.split(key, 7)

    N, H, W = 4, 8, 8   # channel dim is fixed at 512 by the module definition

    x = jax.random.normal(k_x, (N, C_IN, H, W), jnp.float32)

    # deterministic synthetic parameters (scaled small to keep values tame)
    w_conv = jax.random.normal(k_wc, (3, 3, C_IN, C_OUT), jnp.float32) * 0.02
    b_conv = jax.random.normal(k_bc, (C_OUT,), jnp.float32) * 0.02
    w1 = jax.random.normal(k_w1, (C_IN, HID), jnp.float32) * 0.05
    b1 = jax.random.normal(k_b1, (HID,), jnp.float32) * 0.05
    w2 = jax.random.normal(k_w2, (HID, N_CLS), jnp.float32) * 0.05
    b2 = jax.random.normal(k_b2, (N_CLS,), jnp.float32) * 0.05

    out = corrector_forward(x, w_conv, b_conv, w1, b1, w2, b2)
    out = jax.block_until_ready(out)

    ref = reference_forward(x, w_conv, b_conv, w1, b1, w2, b2)
    assert out.shape == (N * H * W, N_CLS)
    # bf16 matmul operands with f32 accumulation -> slightly looser tolerance.
    assert jnp.allclose(out, ref, atol=2e-2, rtol=2e-2)

    print("KERNEL_OK")
</pallas_src>

<mosaic_0001>
module attributes {stable_mosaic.version = 11 : i64} {
  func.func @kernel(%arg0: i32, %arg1: memref<2x30x8x512xbf16, #tpu.memory_space<vmem>>, %arg2: memref<3x3x512x512xbf16, #tpu.memory_space<vmem>>, %arg3: memref<1x512xf32, #tpu.memory_space<vmem>>, %arg4: memref<512x2xbf16, #tpu.memory_space<vmem>>, %arg5: memref<1x2xf32, #tpu.memory_space<vmem>>, %arg6: memref<128x2xf32, #tpu.memory_space<vmem>>, %arg7: memref<128x512xf32, #tpu.memory_space<vmem>>) attributes {dimension_semantics = [#tpu.dimension_semantics<parallel>], iteration_bounds = array<i64: 2>, scalar_prefetch = 0 : i64, scratch_operands = 1 : i64, tpu.core_type = #tpu.core_type<tc>, window_params = [{transform_indices = @transform_0, window_bounds = array<i64: 2, 30, 8, 512>}, {pipeline_mode = #tpu.pipeline_mode<synchronous>, transform_indices = @transform_1, window_bounds = array<i64: 3, 3, 512, 512>}, {pipeline_mode = #tpu.pipeline_mode<synchronous>, transform_indices = @transform_2, window_bounds = array<i64: 1, 512>}, {pipeline_mode = #tpu.pipeline_mode<synchronous>, transform_indices = @transform_3, window_bounds = array<i64: 512, 2>}, {pipeline_mode = #tpu.pipeline_mode<synchronous>, transform_indices = @transform_4, window_bounds = array<i64: 1, 2>}, {transform_indices = @transform_5, window_bounds = array<i64: 128, 2>}]} {
    %c0 = arith.constant 0 : index
    %c0_0 = arith.constant 0 : index
    %c0_1 = arith.constant 0 : index
    %c0_2 = arith.constant 0 : index
    %0 = vector.load %arg1[%c0, %c0_0, %c0_1, %c0_2] : memref<2x30x8x512xbf16, #tpu.memory_space<vmem>>, vector<2x8x8x512xbf16>
    %1 = vector.shape_cast %0 : vector<2x8x8x512xbf16> to vector<128x512xbf16>
    %c0_3 = arith.constant 0 : index
    %c0_4 = arith.constant 0 : index
    %c0_5 = arith.constant 0 : index
    %c0_6 = arith.constant 0 : index
    %2 = vector.load %arg2[%c0_3, %c0_4, %c0_5, %c0_6] : memref<3x3x512x512xbf16, #tpu.memory_space<vmem>>, vector<1x1x512x512xbf16>
    %3 = vector.shape_cast %2 : vector<1x1x512x512xbf16> to vector<512x512xbf16>
    %cst = arith.constant dense<0.000000e+00> : vector<128x512xf32>
    %4 = tpu.matmul %1, %3, %cst {dimension_numbers = #tpu.dot_dimension_numbers<[1], [0], [0], [1], [0, 0, 1, 1], [], []>} : vector<128x512xbf16>, vector<512x512xbf16>, vector<128x512xf32> -> vector<128x512xf32>
    %c0_7 = arith.constant 0 : index
    %c0_8 = arith.constant 0 : index
    %5 = vector.load %arg3[%c0_7, %c0_8] : memref<1x512xf32, #tpu.memory_space<vmem>>, vector<1x512xf32>
    %6 = vector.broadcast %5 : vector<1x512xf32> to vector<128x512xf32>
    %7 = arith.addf %4, %6 : vector<128x512xf32>
    %c0_9 = arith.constant 0 : index
    %c0_10 = arith.constant 0 : index
    %8 = vector.load %arg7[%c0_9, %c0_10] : memref<128x512xf32, #tpu.memory_space<vmem>>, vector<128x512xf32>
    tpu.vector_store %arg7[%c0_9, %c0_10], %7 {strides = array<i32>} : memref<128x512xf32, #tpu.memory_space<vmem>>, vector<128x512xf32>,
    %c0_11 = arith.constant 0 : index
    %c10 = arith.constant 10 : index
    %c0_12 = arith.constant 0 : index
    %c0_13 = arith.constant 0 : index
    %9 = vector.load %arg1[%c0_11, %c10, %c0_12, %c0_13] : memref<2x30x8x512xbf16, #tpu.memory_space<vmem>>, vector<2x8x8x512xbf16>
    %10 = vector.shape_cast %9 : vector<2x8x8x512xbf16> to vector<128x512xbf16>
    %c0_14 = arith.constant 0 : index
    %c1 = arith.constant 1 : index
    %c0_15 = arith.constant 0 : index
    %c0_16 = arith.constant 0 : index
    %11 = vector.load %arg2[%c0_14, %c1, %c0_15, %c0_16] : memref<3x3x512x512xbf16, #tpu.memory_space<vmem>>, vector<1x1x512x512xbf16>
    %12 = vector.shape_cast %11 : vector<1x1x512x512xbf16> to vector<512x512xbf16>
    %cst_17 = arith.constant dense<0.000000e+00> : vector<128x512xf32>
    %13 = tpu.matmul %10, %12, %cst_17 {dimension_numbers = #tpu.dot_dimension_numbers<[1], [0], [0], [1], [0, 0, 1, 1], [], []>} : vector<128x512xbf16>, vector<512x512xbf16>, vector<128x512xf32> -> vector<128x512xf32>
    %c0_18 = arith.constant 0 : index
    %c0_19 = arith.constant 0 : index
    %14 = vector.load %arg7[%c0_18, %c0_19] : memref<128x512xf32, #tpu.memory_space<vmem>>, vector<128x512xf32>
    %15 = arith.addf %14, %13 : vector<128x512xf32>
    %c0_20 = arith.constant 0 : index
    %c0_21 = arith.constant 0 : index
    %16 = vector.load %arg7[%c0_20, %c0_21] : memref<128x512xf32, #tpu.memory_space<vmem>>, vector<128x512xf32>
    tpu.vector_store %arg7[%c0_20, %c0_21], %15 {strides = array<i32>} : memref<128x512xf32, #tpu.memory_space<vmem>>, vector<128x512xf32>,
    %c0_22 = arith.constant 0 : index
    %c20 = arith.constant 20 : index
    %c0_23 = arith.constant 0 : index
    %c0_24 = arith.constant 0 : index
    %17 = vector.load %arg1[%c0_22, %c20, %c0_23, %c0_24] : memref<2x30x8x512xbf16, #tpu.memory_space<vmem>>, vector<2x8x8x512xbf16>
    %18 = vector.shape_cast %17 : vector<2x8x8x512xbf16> to vector<128x512xbf16>
    %c0_25 = arith.constant 0 : index
    %c2 = arith.constant 2 : index
    %c0_26 = arith.constant 0 : index
    %c0_27 = arith.constant 0 : index
    %19 = vector.load %arg2[%c0_25, %c2, %c0_26, %c0_27] : memref<3x3x512x512xbf16, #tpu.memory_space<vmem>>, vector<1x1x512x512xbf16>
    %20 = vector.shape_cast %19 : vector<1x1x512x512xbf16> to vector<512x512xbf16>
    %cst_28 = arith.constant dense<0.000000e+00> : vector<128x512xf32>
    %21 = tpu.matmul %18, %20, %cst_28 {dimension_numbers = #tpu.dot_dimension_numbers<[1], [0], [0], [1], [0, 0, 1, 1], [], []>} : vector<128x512xbf16>, vector<512x512xbf16>, vector<128x512xf32> -> vector<128x512xf32>
    %c0_29 = arith.constant 0 : index
    %c0_30 = arith.constant 0 : index
    %22 = vector.load %arg7[%c0_29, %c0_30] : memref<128x512xf32, #tpu.memory_space<vmem>>, vector<128x512xf32>
    %23 = arith.addf %22, %21 : vector<128x512xf32>
    %c0_31 = arith.constant 0 : index
    %c0_32 = arith.constant 0 : index
    %24 = vector.load %arg7[%c0_31, %c0_32] : memref<128x512xf32, #tpu.memory_space<vmem>>, vector<128x512xf32>
    tpu.vector_store %arg7[%c0_31, %c0_32], %23 {strides = array<i32>} : memref<128x512xf32, #tpu.memory_space<vmem>>, vector<128x512xf32>,
    %c0_33 = arith.constant 0 : index
    %c1_34 = arith.constant 1 : index
    %c0_35 = arith.constant 0 : index
    %c0_36 = arith.constant 0 : index
    %25 = vector.load %arg1[%c0_33, %c1_34, %c0_35, %c0_36] : memref<2x30x8x512xbf16, #tpu.memory_space<vmem>>, vector<2x8x8x512xbf16>
    %26 = vector.shape_cast %25 : vector<2x8x8x512xbf16> to vector<128x512xbf16>
    %c1_37 = arith.constant 1 : index
    %c0_38 = arith.constant 0 : index
    %c0_39 = arith.constant 0 : index
    %c0_40 = arith.constant 0 : index
    %27 = vector.load %arg2[%c1_37, %c0_38, %c0_39, %c0_40] : memref<3x3x512x512xbf16, #tpu.memory_space<vmem>>, vector<1x1x512x512xbf16>
    %28 = vector.shape_cast %27 : vector<1x1x512x512xbf16> to vector<512x512xbf16>
    %cst_41 = arith.constant dense<0.000000e+00> : vector<128x512xf32>
    %29 = tpu.matmul %26, %28, %cst_41 {dimension_numbers = #tpu.dot_dimension_numbers<[1], [0], [0], [1], [0, 0, 1, 1], [], []>} : vector<128x512xbf16>, vector<512x512xbf16>, vector<128x512xf32> -> vector<128x512xf32>
    %c0_42 = arith.constant 0 : index
    %c0_43 = arith.constant 0 : index
    %30 = vector.load %arg7[%c0_42, %c0_43] : memref<128x512xf32, #tpu.memory_space<vmem>>, vector<128x512xf32>
    %31 = arith.addf %30, %29 : vector<128x512xf32>
    %c0_44 = arith.constant 0 : index
    %c0_45 = arith.constant 0 : index
    %32 = vector.load %arg7[%c0_44, %c0_45] : memref<128x512xf32, #tpu.memory_space<vmem>>, vector<128x512xf32>
    tpu.vector_store %arg7[%c0_44, %c0_45], %31 {strides = array<i32>} : memref<128x512xf32, #tpu.memory_space<vmem>>, vector<128x512xf32>,
    %c0_46 = arith.constant 0 : index
    %c11 = arith.constant 11 : index
    %c0_47 = arith.constant 0 : index
    %c0_48 = arith.constant 0 : index
    %33 = vector.load %arg1[%c0_46, %c11, %c0_47, %c0_48] : memref<2x30x8x512xbf16, #tpu.memory_space<vmem>>, vector<2x8x8x512xbf16>
    %34 = vector.shape_cast %33 : vector<2x8x8x512xbf16> to vector<128x512xbf16>
    %c1_49 = arith.constant 1 : index
    %c1_50 = arith.constant 1 : index
    %c0_51 = arith.constant 0 : index
    %c0_52 = arith.constant 0 : index
    %35 = vector.load %arg2[%c1_49, %c1_50, %c0_51, %c0_52] : memref<3x3x512x512xbf16, #tpu.memory_space<vmem>>, vector<1x1x512x512xbf16>
    %36 = vector.shape_cast %35 : vector<1x1x512x512xbf16> to vector<512x512xbf16>
    %cst_53 = arith.constant dense<0.000000e+00> : vector<128x512xf32>
    %37 = tpu.matmul %34, %36, %cst_53 {dimension_numbers = #tpu.dot_dimension_numbers<[1], [0], [0], [1], [0, 0, 1, 1], [], []>} : vector<128x512xbf16>, vector<512x512xbf16>, vector<128x512xf32> -> vector<128x512xf32>
    %c0_54 = arith.constant 0 : index
    %c0_55 = arith.constant 0 : index
    %38 = vector.load %arg7[%c0_54, %c0_55] : memref<128x512xf32, #tpu.memory_space<vmem>>, vector<128x512xf32>
    %39 = arith.addf %38, %37 : vector<128x512xf32>
    %c0_56 = arith.constant 0 : index
    %c0_57 = arith.constant 0 : index
    %40 = vector.load %arg7[%c0_56, %c0_57] : memref<128x512xf32, #tpu.memory_space<vmem>>, vector<128x512xf32>
    tpu.vector_store %arg7[%c0_56, %c0_57], %39 {strides = array<i32>} : memref<128x512xf32, #tpu.memory_space<vmem>>, vector<128x512xf32>,
    %c0_58 = arith.constant 0 : index
    %c21 = arith.constant 21 : index
    %c0_59 = arith.constant 0 : index
    %c0_60 = arith.constant 0 : index
    %41 = vector.load %arg1[%c0_58, %c21, %c0_59, %c0_60] : memref<2x30x8x512xbf16, #tpu.memory_space<vmem>>, vector<2x8x8x512xbf16>
    %42 = vector.shape_cast %41 : vector<2x8x8x512xbf16> to vector<128x512xbf16>
    %c1_61 = arith.constant 1 : index
    %c2_62 = arith.constant 2 : index
    %c0_63 = arith.constant 0 : index
    %c0_64 = arith.constant 0 : index
    %43 = vector.load %arg2[%c1_61, %c2_62, %c0_63, %c0_64] : memref<3x3x512x512xbf16, #tpu.memory_space<vmem>>, vector<1x1x512x512xbf16>
    %44 = vector.shape_cast %43 : vector<1x1x512x512xbf16> to vector<512x512xbf16>
    %cst_65 = arith.constant dense<0.000000e+00> : vector<128x512xf32>
    %45 = tpu.matmul %42, %44, %cst_65 {dimension_numbers = #tpu.dot_dimension_numbers<[1], [0], [0], [1], [0, 0, 1, 1], [], []>} : vector<128x512xbf16>, vector<512x512xbf16>, vector<128x512xf32> -> vector<128x512xf32>
    %c0_66 = arith.constant 0 : index
    %c0_67 = arith.constant 0 : index
    %46 = vector.load %arg7[%c0_66, %c0_67] : memref<128x512xf32, #tpu.memory_space<vmem>>, vector<128x512xf32>
    %47 = arith.addf %46, %45 : vector<128x512xf32>
    %c0_68 = arith.constant 0 : index
    %c0_69 = arith.constant 0 : index
    %48 = vector.load %arg7[%c0_68, %c0_69] : memref<128x512xf32, #tpu.memory_space<vmem>>, vector<128x512xf32>
    tpu.vector_store %arg7[%c0_68, %c0_69], %47 {strides = array<i32>} : memref<128x512xf32, #tpu.memory_space<vmem>>, vector<128x512xf32>,
    %c0_70 = arith.constant 0 : index
    %c2_71 = arith.constant 2 : index
    %c0_72 = arith.constant 0 : index
    %c0_73 = arith.constant 0 : index
    %49 = vector.load %arg1[%c0_70, %c2_71, %c0_72, %c0_73] : memref<2x30x8x512xbf16, #tpu.memory_space<vmem>>, vector<2x8x8x512xbf16>
    %50 = vector.shape_cast %49 : vector<2x8x8x512xbf16> to vector<128x512xbf16>
    %c2_74 = arith.constant 2 : index
    %c0_75 = arith.constant 0 : index
    %c0_76 = arith.constant 0 : index
    %c0_77 = arith.constant 0 : index
    %51 = vector.load %arg2[%c2_74, %c0_75, %c0_76, %c0_77] : memref<3x3x512x512xbf16, #tpu.memory_space<vmem>>, vector<1x1x512x512xbf16>
    %52 = vector.shape_cast %51 : vector<1x1x512x512xbf16> to vector<512x512xbf16>
    %cst_78 = arith.constant dense<0.000000e+00> : vector<128x512xf32>
    %53 = tpu.matmul %50, %52, %cst_78 {dimension_numbers = #tpu.dot_dimension_numbers<[1], [0], [0], [1], [0, 0, 1, 1], [], []>} : vector<128x512xbf16>, vector<512x512xbf16>, vector<128x512xf32> -> vector<128x512xf32>
    %c0_79 = arith.constant 0 : index
    %c0_80 = arith.constant 0 : index
    %54 = vector.load %arg7[%c0_79, %c0_80] : memref<128x512xf32, #tpu.memory_space<vmem>>, vector<128x512xf32>
    %55 = arith.addf %54, %53 : vector<128x512xf32>
    %c0_81 = arith.constant 0 : index
    %c0_82 = arith.constant 0 : index
    %56 = vector.load %arg7[%c0_81, %c0_82] : memref<128x512xf32, #tpu.memory_space<vmem>>, vector<128x512xf32>
    tpu.vector_store %arg7[%c0_81, %c0_82], %55 {strides = array<i32>} : memref<128x512xf32, #tpu.memory_space<vmem>>, vector<128x512xf32>,
    %c0_83 = arith.constant 0 : index
    %c12 = arith.constant 12 : index
    %c0_84 = arith.constant 0 : index
    %c0_85 = arith.constant 0 : index
    %57 = vector.load %arg1[%c0_83, %c12, %c0_84, %c0_85] : memref<2x30x8x512xbf16, #tpu.memory_space<vmem>>, vector<2x8x8x512xbf16>
    %58 = vector.shape_cast %57 : vector<2x8x8x512xbf16> to vector<128x512xbf16>
    %c2_86 = arith.constant 2 : index
    %c1_87 = arith.constant 1 : index
    %c0_88 = arith.constant 0 : index
    %c0_89 = arith.constant 0 : index
    %59 = vector.load %arg2[%c2_86, %c1_87, %c0_88, %c0_89] : memref<3x3x512x512xbf16, #tpu.memory_space<vmem>>, vector<1x1x512x512xbf16>
    %60 = vector.shape_cast %59 : vector<1x1x512x512xbf16> to vector<512x512xbf16>
    %cst_90 = arith.constant dense<0.000000e+00> : vector<128x512xf32>
    %61 = tpu.matmul %58, %60, %cst_90 {dimension_numbers = #tpu.dot_dimension_numbers<[1], [0], [0], [1], [0, 0, 1, 1], [], []>} : vector<128x512xbf16>, vector<512x512xbf16>, vector<128x512xf32> -> vector<128x512xf32>
    %c0_91 = arith.constant 0 : index
    %c0_92 = arith.constant 0 : index
    %62 = vector.load %arg7[%c0_91, %c0_92] : memref<128x512xf32, #tpu.memory_space<vmem>>, vector<128x512xf32>
    %63 = arith.addf %62, %61 : vector<128x512xf32>
    %c0_93 = arith.constant 0 : index
    %c0_94 = arith.constant 0 : index
    %64 = vector.load %arg7[%c0_93, %c0_94] : memref<128x512xf32, #tpu.memory_space<vmem>>, vector<128x512xf32>
    tpu.vector_store %arg7[%c0_93, %c0_94], %63 {strides = array<i32>} : memref<128x512xf32, #tpu.memory_space<vmem>>, vector<128x512xf32>,
    %c0_95 = arith.constant 0 : index
    %c22 = arith.constant 22 : index
    %c0_96 = arith.constant 0 : index
    %c0_97 = arith.constant 0 : index
    %65 = vector.load %arg1[%c0_95, %c22, %c0_96, %c0_97] : memref<2x30x8x512xbf16, #tpu.memory_space<vmem>>, vector<2x8x8x512xbf16>
    %66 = vector.shape_cast %65 : vector<2x8x8x512xbf16> to vector<128x512xbf16>
    %c2_98 = arith.constant 2 : index
    %c2_99 = arith.constant 2 : index
    %c0_100 = arith.constant 0 : index
    %c0_101 = arith.constant 0 : index
    %67 = vector.load %arg2[%c2_98, %c2_99, %c0_100, %c0_101] : memref<3x3x512x512xbf16, #tpu.memory_space<vmem>>, vector<1x1x512x512xbf16>
    %68 = vector.shape_cast %67 : vector<1x1x512x512xbf16> to vector<512x512xbf16>
    %cst_102 = arith.constant dense<0.000000e+00> : vector<128x512xf32>
    %69 = tpu.matmul %66, %68, %cst_102 {dimension_numbers = #tpu.dot_dimension_numbers<[1], [0], [0], [1], [0, 0, 1, 1], [], []>} : vector<128x512xbf16>, vector<512x512xbf16>, vector<128x512xf32> -> vector<128x512xf32>
    %c0_103 = arith.constant 0 : index
    %c0_104 = arith.constant 0 : index
    %70 = vector.load %arg7[%c0_103, %c0_104] : memref<128x512xf32, #tpu.memory_space<vmem>>, vector<128x512xf32>
    %71 = arith.addf %70, %69 : vector<128x512xf32>
    %c0_105 = arith.constant 0 : index
    %c0_106 = arith.constant 0 : index
    %72 = vector.load %arg7[%c0_105, %c0_106] : memref<128x512xf32, #tpu.memory_space<vmem>>, vector<128x512xf32>
    tpu.vector_store %arg7[%c0_105, %c0_106], %71 {strides = array<i32>} : memref<128x512xf32, #tpu.memory_space<vmem>>, vector<128x512xf32>,
    %c0_107 = arith.constant 0 : index
    %c0_108 = arith.constant 0 : index
    %73 = vector.load %arg7[%c0_107, %c0_108] : memref<128x512xf32, #tpu.memory_space<vmem>>, vector<128x512xf32>
    %cst_109 = arith.constant 0.000000e+00 : f32
    %74 = vector.broadcast %cst_109 : f32 to vector<128x512xf32>
    %75 = arith.maximumf %73, %74 : vector<128x512xf32>
    %76 = arith.truncf %75 : vector<128x512xf32> to vector<128x512xbf16>
    %c0_110 = arith.constant 0 : index
    %c0_111 = arith.constant 0 : index
    %77 = vector.load %arg4[%c0_110, %c0_111] : memref<512x2xbf16, #tpu.memory_space<vmem>>, vector<512x2xbf16>
    %cst_112 = arith.constant dense<0.000000e+00> : vector<128x2xf32>
    %78 = tpu.matmul %76, %77, %cst_112 {dimension_numbers = #tpu.dot_dimension_numbers<[1], [0], [0], [1], [0, 0, 1, 1], [], []>} : vector<128x512xbf16>, vector<512x2xbf16>, vector<128x2xf32> -> vector<128x2xf32>
    %c0_113 = arith.constant 0 : index
    %c0_114 = arith.constant 0 : index
    %79 = vector.load %arg5[%c0_113, %c0_114] : memref<1x2xf32, #tpu.memory_space<vmem>>, vector<1x2xf32>
    %80 = vector.broadcast %79 : vector<1x2xf32> to vector<128x2xf32>
    %81 = arith.addf %78, %80 : vector<128x2xf32>
    %c0_115 = arith.constant 0 : index
    %c0_116 = arith.constant 0 : index
    %82 = vector.load %arg6[%c0_115, %c0_116] : memref<128x2xf32, #tpu.memory_space<vmem>>, vector<128x2xf32>
    tpu.vector_store %arg6[%c0_115, %c0_116], %81 {strides = array<i32>} : memref<128x2xf32, #tpu.memory_space<vmem>>, vector<128x2xf32>,
    return
  }
  func.func @transform_0(%arg0: i32) -> (i32, i32, i32, i32) {
    %c0_i32 = arith.constant 0 : i32
    %c0_i32_0 = arith.constant 0 : i32
    %c0_i32_1 = arith.constant 0 : i32
    %c0_i32_2 = arith.constant 0 : i32
    return %arg0, %c0_i32, %c0_i32_0, %c0_i32_1 : i32, i32, i32, i32
  }
  func.func @transform_1(%arg0: i32) -> (i32, i32, i32, i32) {
    %c0_i32 = arith.constant 0 : i32
    %c0_i32_0 = arith.constant 0 : i32
    %c0_i32_1 = arith.constant 0 : i32
    %c0_i32_2 = arith.constant 0 : i32
    %c0_i32_3 = arith.constant 0 : i32
    return %c0_i32, %c0_i32_0, %c0_i32_1, %c0_i32_2 : i32, i32, i32, i32
  }
  func.func @transform_2(%arg0: i32) -> (i32, i32) {
    %c0_i32 = arith.constant 0 : i32
    %c0_i32_0 = arith.constant 0 : i32
    %c0_i32_1 = arith.constant 0 : i32
    return %c0_i32, %c0_i32_0 : i32, i32
  }
  func.func @transform_3(%arg0: i32) -> (i32, i32) {
    %c0_i32 = arith.constant 0 : i32
    %c0_i32_0 = arith.constant 0 : i32
    %c0_i32_1 = arith.constant 0 : i32
    return %c0_i32, %c0_i32_0 : i32, i32
  }
  func.func @transform_4(%arg0: i32) -> (i32, i32) {
    %c0_i32 = arith.constant 0 : i32
    %c0_i32_0 = arith.constant 0 : i32
    %c0_i32_1 = arith.constant 0 : i32
    return %c0_i32, %c0_i32_0 : i32, i32
  }
  func.func @transform_5(%arg0: i32) -> (i32, i32) {
    %c0_i32 = arith.constant 0 : i32
    %c0_i32_0 = arith.constant 0 : i32
    return %arg0, %c0_i32 : i32, i32
  }
}

</mosaic_0001>

<bundles_post_ra>
// kernel: tpu_custom_call.1
= control target key start
LH: loop header
LB: loop body
LE: loop exit
PB: predicated region body
PF: predicated region fallthrough
CT: control target
= control target key end

     0   :  { %10 = vsyncpa [#allocation4], 0  ;;  %s23091_s0 = inlined_call_operand.hbm [shape: bf16[4,30,8,512], index: 0, kind: input, shape index: {}]   ;;  %s23092_s1 = inlined_call_operand.hbm [shape: bf16[3,3,512,512], index: 1, kind: input, shape index: {}]   ;;  %s23093_s2 = inlined_call_operand.hbm [shape: f32[1,512], index: 2, kind: input, shape index: {}]   ;;  %s23094_s3 = inlined_call_operand.vmem [shape: bf16[512,2], index: 3, kind: input, shape index: {}]   ;;  %s23095_s4 = inlined_call_operand.hbm [shape: f32[1,2], index: 4, kind: input, shape index: {}]   ;;  %s23096_s5 = inlined_call_operand.vmem [shape: f32[256,2], index: 5, kind: output, shape index: {}]  }
   0x1   :  { %12 = vsyncpa [#allocation4 + $0x1], 0 }
   0x2   :  { %13 = vsyncpa [#allocation6], 0 }
   0x3   :  { %14 = vsyncpa [#allocation9], 0  ;;  %s19693_s18 = smov 0   ;;  %s19695_s19 = smov 0  }
   0x4   :  { %s19697_s20 = smov 0   ;;  %s19699_s21 = smov 0  }
   0x5 LB: > { %s15365_s22 = sadd.s32 4294967295, %s19655_s21   ;;  %p40_p0 = scmp.ne.s32.totalorder %s19647_s19, %s19643_s18  ;;  %s19655_s21 = sphi %s19699_s21, %s23943_s21   ;;  %s19651_s20 = sphi %s19697_s20, %s23942_s20   ;;  %s19647_s19 = sphi %s19695_s19, %s23941_s19   ;;  %s19643_s18 = sphi %s19693_s18, %s23940_s18  }
   0x6   : > { %p19715_p1 = scmp.eq.s32.totalorder %s15365_s22, 0  ;;  %p15367_p2 = scmp.ge.s32.totalorder %s19655_s21, 1 }
   0x7   : > { %p161_p3 = scmp.lt.s32.totalorder %s19655_s21, 3  ;;  %s19657_s26 = smov [#allocation5]  }
   0x8   : > { %s23164_s23 = scalar_select %p19715_p1, 1, 0 }
   0x9   : > { %p19723_p4 = por %p19715_p1, %p40_p0  ;;  %p19727_p5 = pnand %p15367_p2, %p161_p3 }
   0xa   : > { %s173_s27 = sshll.u32 %s19657_s26, 4  ;;  %s19658_s29 = smov [#allocation7]   ;;  %s174_s27 = int_to_ptr.vmem [resolvable:$true] %s173_s27 }
   0xb   : > { %s23165_s24 = scalar_select %p19723_p4, 1, 0 }
   0xc   : > { %s23166_s25 = scalar_select %p19727_p5, 1, 0 }
   0xd   : > { %p17257_p6 = pneg %p19727_p5  ;;  %s187_s30 = sshll.u32 %s19658_s29, 4  ;;  %s188_s30 = int_to_ptr.vmem [resolvable:$true] %s187_s30 }
   0xe   : > { %s19659_s6 = smov [#allocation8]   ;;  %s19518_s8 = scalar_lea.vmem %s174_s27, 147456 }
   0xf   : > { %p19735_p7 = pnand %p17257_p6, %p19715_p1  ;;  %s201_s7 = sshll.u32 %s19659_s6, 4  ;;  %s202_s7 = int_to_ptr.vmem [resolvable:$true] %s201_s7 }
  0x10   : > { %p19519_p9 = scmp.ne.s32.totalorder %s174_s27, %s19518_s8  ;;  %p19526_p12 = scmp.lt.s32.totalorder %s174_s27, %s174_s27 }
  0x11   : > { %p19509_p8 = pneg %p19735_p7  ;;  %p19527_p13 = scmp.lt.s32.totalorder %s19518_s8, %s19518_s8 }
  0x13   : > { %p19521_p10 = pnand %p19519_p9, %p19509_p8  ;;  %p19528_p0 = por %p19527_p13, %p19526_p12 }
  0x15   : > { %p19522_p11 = pneg %p19521_p10 }
  0x17   : > { %p19529_p2 = pnand %p19528_p0, %p19522_p11 }
  0x19   : > { %19532 = shalt.err (!%p19529_p2)
}
  0x1a   : > { %s19660_s9 = smov 256   ;;  %s19661_s10 = smov 16  }
  0x1b   : > { %17260 = dma.hbm_to_vmem [thread:$0]  (!%p19735_p7), %s23092_s1, 147456, %s174_s27, [#allocation6], %s19660_s9, %s19660_s9, %s19661_s10  }
  0x1c   : > { %s19544_s13 = scalar_lea.vmem %s188_s30, 64  ;;  %p19552_p10 = scmp.lt.s32.totalorder %s188_s30, %s188_s30 }
  0x1d   : > { %p19545_p3 = scmp.ne.s32.totalorder %s188_s30, %s19544_s13  ;;  %p19553_p11 = scmp.lt.s32.totalorder %s19544_s13, %s19544_s13 }
  0x1f   : > { %p19547_p6 = pnand %p19545_p3, %p19509_p8  ;;  %p19554_p12 = por %p19553_p11, %p19552_p10 }
  0x21   : > { %p19548_p9 = pneg %p19547_p6 }
  0x23   : > { %p19555_p13 = pnand %p19554_p12, %p19548_p9 }
  0x25   : > { %19558 = shalt.err (!%p19555_p13)
}
  0x26   : > { %17263 = dma.hbm_to_vmem [thread:$0]  (!%p19735_p7), %s23093_s2, 64, %s188_s30, [#allocation6]  }
  0x27   : > { %s19570_s16 = scalar_lea.vmem %s202_s7, 16  ;;  %s19577_s17 = scalar_lea.vmem %s202_s7, 32 }
  0x28   : > { %p19571_p0 = scmp.ne.s32.totalorder %s202_s7, %s19570_s16  ;;  %p19578_p6 = scmp.lt.s32.totalorder %s202_s7, %s202_s7 }
  0x29   : > { %p19579_p1 = scmp.lt.s32.totalorder %s19577_s17, %s19570_s16 }
  0x2a   : > { %p19573_p2 = pnand %p19571_p0, %p19509_p8 }
  0x2b   : > { %p19580_p10 = por %p19579_p1, %p19578_p6 }
  0x2c   : > { %p19574_p3 = pneg %p19573_p2 }
  0x2e   : > { %p19581_p9 = pnand %p19580_p10, %p19574_p3 }
  0x30   : > { %19584 = shalt.err (!%p19581_p9)
}
  0x31   : > { %17266 = dma.hbm_to_vmem [thread:$0]  (!%p19735_p7), %s23095_s4, 16, %s202_s7, [#allocation9]  }
  0x32   : > { %s19769_s27 = sadd.s32 1, %s19655_s21   ;;  %s27_s30 = sadd.s32 1, %s19651_s20 }
  0x33   : > { %s24_s29 = ssub.s32 %s19655_s21, %s19769_s27  ;;  %p34_p8 = scmp.ne.s32.totalorder %s19651_s20, %s19647_s19 }
  0x34   : > { %p25_p1 = scmp.eq.s32.totalorder %s24_s29, 0  ;;  %p35_p11 = scmp.eq.s32.totalorder %s19655_s21, 0 }
  0x35   : > { %p17274_p12 = scmp.lt.s32.totalorder %s19655_s21, 2  ;;  %s212_s6 = sand.u32 1, %s19651_s20  }
  0x36   : > { %s19779_s28 = scalar_select %p25_p1, %s19651_s20, %s27_s30  }
  0x37   : > { %p36_p13 = por %p35_p11, %p34_p8  ;;  %s17240_s8 = smul.u32 960, %s212_s6 }
  0x38   : > { %s17241_s11 = smul.u32 15360, %s19655_s21  ;;  %s19794_s17 = scalar_lea.sflag [#allocation4], %s212_s6 }
  0x39   : > { %p19783_p0 = pnand %p17274_p12, %p36_p13  ;;  %s216_s15 = scalar_lea.vmem [#allocation3], %s17240_s8 }
  0x3a   : > { %s19790_s14 = scalar_lea.hbm %s23091_s0, %s17241_s11  ;;  %s224_s16 = sshll.u32 %s216_s15, 4  ;;  %s19792_s16 = int_to_ptr.vmem [resolvable:$true] %s224_s16 }
  0x3b   : > { %s19585_s18 = scalar_lea.hbm %s19790_s14, 15360  ;;  %p19587_p2 = pneg %p19783_p0 }
  0x3c   : > { %p19586_p7 = scmp.ne.s32.totalorder %s19790_s14, %s19585_s18  ;;  %s19590_s30 = scalar_lea.hbm %s23091_s0, 30720 }
  0x3d   : > { %p19591_p10 = scmp.lt.s32.totalorder %s19790_s14, %s23091_s0  ;;  %p19592_p9 = scmp.lt.s32.totalorder %s19590_s30, %s19585_s18 }
  0x3e   : > { %p19588_p3 = pnand %p19587_p2, %p19586_p7 }
  0x3f   : > { %p19593_p1 = por %p19592_p9, %p19591_p10 }
  0x40   : > { %p19589_p6 = pneg %p19588_p3 }
  0x42   : > { %p19594_p8 = pnand %p19593_p1, %p19589_p6 }
  0x44   : > { %19597 = shalt.err (!%p19594_p8)
}
  0x45   : > { %s19598_s6 = scalar_lea.vmem %s19792_s16, 15360  ;;  %s19662_s8 = smov [#allocation3]  }
  0x46   : > { %p19599_p11 = scmp.ne.s32.totalorder %s19792_s16, %s19598_s6  ;;  %s19603_s13 = sshll.u32 %s19662_s8, 4  ;;  %s19604_s13 = int_to_ptr.vmem [resolvable:$false] %s19603_s13 }
  0x47   : > { %s19605_s15 = scalar_lea.vmem %s19604_s13, 30720  ;;  %p19606_p7 = scmp.lt.s32.totalorder %s19792_s16, %s19604_s13 }
  0x48   : > { %p19601_p12 = pnand %p19599_p11, %p19587_p2  ;;  %p19607_p3 = scmp.lt.s32.totalorder %s19605_s15, %s19598_s6 }
  0x4a   : > { %p19602_p13 = pneg %p19601_p12  ;;  %p19608_p4 = por %p19607_p3, %p19606_p7 }
  0x4c   : > { %p19609_p5 = pnand %p19608_p4, %p19602_p13 }
  0x4e   : > { %19612 = shalt.err (!%p19609_p5)
}
  0x4f   : > { %17270 = dma.hbm_to_vmem [thread:$0]  (!%p19783_p0), %s19790_s14, 15360, %s19792_s16, %s19794_s17, %s19660_s9, %s19660_s9, %s19661_s10  }
  0x50   : > { %p23169_p2 = scmp.ne.s32.totalorder %s23166_s25, 0 }
  0x52   : > { %236 = sbr.rel (%p23169_p2) target bundleno = 1719 (0x6b7), region = 40 }
  0x57   : > { %s238_s18 = sand.u32 1, %s19647_s19   ;;  %p23170_p4 = scmp.ne.s32.totalorder %s23165_s24, 0 }
  0x58   : > { %s17242_s26 = smul.u32 960, %s238_s18  ;;  %s239_s29 = scalar_lea.sflag [#allocation4], %s238_s18 }
  0x5a   : > { %s19821_s30 = scalar_lea.vmem [#allocation3], %s17242_s26 }
  0x5b   : > { %19630 = dma.done.wait (%p23170_p4), %s239_s29, 15360  }
  0x5c   : > { %19632 = vsyncadd (%p23170_p4), %s239_s29, 4294951936  ;;  %p23171_p5 = scmp.ne.s32.totalorder %s23164_s23, 0 }
  0x5e   : > { %19634 = dma.done.wait (%p23171_p5), [#allocation6], 147520  }
  0x5f   : > { %19636 = vsyncadd (%p23171_p5), [#allocation6], 4294819776 }
  0x60   : > { %19638 = dma.done.wait (%p23171_p5), [#allocation9], 16  }
  0x61   : > { %19640 = vsyncadd (%p23171_p5), [#allocation9], 4294967280  ;;  %v17315_v0 = vld [vmem:[#allocation5 + $0xe4] ss:$16 sps:$4 sm:$0xff]   ;;  %v17319_v2 = vld [vmem:[#allocation5 + $0xe0] ss:$16 sps:$4 sm:$0xff]  }
  0x62   : > { %v17317_v1 = vld [vmem:[#allocation5 + $0x2e4] ss:$16 sps:$4 sm:$0xff]   ;;  %1271 = vmatprep.subr.bf16.mxu0 %v17315_v0  ;;  %v17320_v3 = vld [vmem:[#allocation5 + $0x2e0] ss:$16 sps:$4 sm:$0xff]   ;;  %v19839_v51 = vld [vmem:[%s19821_s30 + $0xc] ss:$16 sps:$4 sm:$0xff]  }
  0x63   : > { %1384 = vmatprep.subr.bf16.mxu1 %v17317_v1  ;;  %v17321_v4 = vld [vmem:[#allocation5 + $0xc4] ss:$16 sps:$4 sm:$0xff]   ;;  %1272 = vmatpush1.bf16.msra.mxu0 %v17319_v2  ;;  %v17325_v6 = vld [vmem:[#allocation5 + $0xc0] ss:$16 sps:$4 sm:$0xff]   ;;  %v17419_v2 = vld [vmem:[#allocation5 + $0xec] ss:$16 sps:$4 sm:$0xff]  }
  0x64   : > { %1385 = vmatpush1.bf16.msra.mxu1 %v17320_v3  ;;  %v17323_v5 = vld [vmem:[#allocation5 + $0x2c4] ss:$16 sps:$4 sm:$0xff]   ;;  %1273 = vmatprep.subr.bf16.mxu0 %v17321_v4  ;;  %v17326_v7 = vld [vmem:[#allocation5 + $0x2c0] ss:$16 sps:$4 sm:$0xff]   ;;  %v17422_v3 = vld [vmem:[#allocation5 + $0x2ec] ss:$16 sps:$4 sm:$0xff]  }
  0x65   : > { %1386 = vmatprep.subr.bf16.mxu1 %v17323_v5  ;;  %v17327_v8 = vld [vmem:[#allocation5 + $0xa4] ss:$16 sps:$4 sm:$0xff]   ;;  %v17331_v10 = vld [vmem:[#allocation5 + $0xa0] ss:$16 sps:$4 sm:$0xff]   ;;  %1416 = vmatprep.mubr.bf16.mxu1 %v19839_v51  ;;  %v19847_v5 = vld [vmem:[%s19821_s30 + $0x8] ss:$16 sps:$4 sm:$0xff]  }
  0x66   : > { %v17329_v9 = vld [vmem:[#allocation5 + $0x2a4] ss:$16 sps:$4 sm:$0xff]   ;;  %v17332_v11 = vld [vmem:[#allocation5 + $0x2a0] ss:$16 sps:$4 sm:$0xff]   ;;  %s15379_s16 = sshll.u32 %s15365_s22, 4  ;;  %vm15252_vm0 = vcmask 15360  }
  0x67   : > { %1274 = vmatpush1.bf16.msra.mxu0 %v17325_v6  ;;  %v17333_v12 = vld [vmem:[#allocation5 + $0x84] ss:$16 sps:$4 sm:$0xff]   ;;  %v17337_v14 = vld [vmem:[#allocation5 + $0x80] ss:$16 sps:$4 sm:$0xff]   ;;  %v17417_v6 = vld [vmem:[#allocation5 + $0xe8] ss:$16 sps:$4 sm:$0xff]  }
  0x68   : > { %1387 = vmatpush1.bf16.msra.mxu1 %v17326_v7  ;;  %1275 = vmatprep.subr.bf16.mxu0 %v17327_v8  ;;  %v17335_v13 = vld [vmem:[#allocation5 + $0x284] ss:$16 sps:$4 sm:$0xff]   ;;  %v17338_v15 = vld [vmem:[#allocation5 + $0x280] ss:$16 sps:$4 sm:$0xff]   ;;  %v17420_v7 = vld [vmem:[#allocation5 + $0x2e8] ss:$16 sps:$4 sm:$0xff]  }
  0x69   : > { %1388 = vmatprep.subr.bf16.mxu1 %v17329_v9  ;;  %v17339_v16 = vld [vmem:[#allocation5 + $0x64] ss:$16 sps:$4 sm:$0xff]   ;;  %v17343_v18 = vld [vmem:[#allocation5 + $0x60] ss:$16 sps:$4 sm:$0xff]   ;;  %v17425_v8 = vld [vmem:[#allocation5 + $0xcc] ss:$16 sps:$4 sm:$0xff]  }
  0x6a   : > { %v17341_v17 = vld [vmem:[#allocation5 + $0x264] ss:$16 sps:$4 sm:$0xff]   ;;  %v17344_v19 = vld [vmem:[#allocation5 + $0x260] ss:$16 sps:$4 sm:$0xff]   ;;  %v17428_v9 = vld [vmem:[#allocation5 + $0x2cc] ss:$16 sps:$4 sm:$0xff]  }
  0x6b   : > { %1276 = vmatpush1.bf16.msra.mxu0 %v17331_v10  ;;  %v17345_v20 = vld [vmem:[#allocation5 + $0x44] ss:$16 sps:$4 sm:$0xff]   ;;  %v17349_v22 = vld [vmem:[#allocation5 + $0x40] ss:$16 sps:$4 sm:$0xff]   ;;  %p283_p0 = scmp.lt.s32.totalorder %s15379_s16, 31 }
  0x6c   : > { %1389 = vmatpush1.bf16.msra.mxu1 %v17332_v11  ;;  %1277 = vmatprep.subr.bf16.mxu0 %v17333_v12  ;;  %v17347_v21 = vld [vmem:[#allocation5 + $0x244] ss:$16 sps:$4 sm:$0xff]   ;;  %v17350_v23 = vld [vmem:[#allocation5 + $0x240] ss:$16 sps:$4 sm:$0xff]   ;;  %v19853_v11 = vld [vmem:[%s19821_s30 + $0x2c] ss:$16 sps:$4 sm:$0xff]  }
  0x6d   : > { %1390 = vmatprep.subr.bf16.mxu1 %v17335_v13  ;;  %v17351_v24 = vld [vmem:[#allocation5 + $0x24] ss:$16 sps:$4 sm:$0xff]   ;;  %v17355_v26 = vld [vmem:[#allocation5 + $0x20] ss:$16 sps:$4 sm:$0xff]   ;;  %v17423_v12 = vld [vmem:[#allocation5 + $0xc8] ss:$16 sps:$4 sm:$0xff]  }
  0x6e   : > { %v17353_v25 = vld [vmem:[#allocation5 + $0x224] ss:$16 sps:$4 sm:$0xff]   ;;  %v17356_v27 = vld [vmem:[#allocation5 + $0x220] ss:$16 sps:$4 sm:$0xff]   ;;  %v17426_v13 = vld [vmem:[#allocation5 + $0x2c8] ss:$16 sps:$4 sm:$0xff]  }
  0x6f   : > { %1278 = vmatpush1.bf16.msra.mxu0 %v17337_v14  ;;  %v17357_v28 = vld [vmem:[#allocation5 + $0x4] ss:$16 sps:$4 sm:$0xff]   ;;  %v17361_v30 = vld [vmem:[#allocation5] ss:$16 sps:$4 sm:$0xff]   ;;  %v17437_v14 = vld [vmem:[#allocation5 + $0xac] ss:$16 sps:$4 sm:$0xff]  }
  0x70   : > { %1391 = vmatpush1.bf16.msra.mxu1 %v17338_v15  ;;  %1279 = vmatprep.subr.bf16.mxu0 %v17339_v16  ;;  %v17359_v29 = vld [vmem:[#allocation5 + $0x204] ss:$16 sps:$4 sm:$0xff]   ;;  %v17362_v31 = vld [vmem:[#allocation5 + $0x200] ss:$16 sps:$4 sm:$0xff]   ;;  %v17440_v15 = vld [vmem:[#allocation5 + $0x2ac] ss:$16 sps:$4 sm:$0xff]  }
  0x71   : > { %1392 = vmatprep.subr.bf16.mxu1 %v17341_v17  ;;  %v17363_v32 = vld [vmem:[#allocation5 + $0x1e4] ss:$16 sps:$4 sm:$0xff]   ;;  %v17367_v34 = vld [vmem:[#allocation5 + $0x1e0] ss:$16 sps:$4 sm:$0xff]   ;;  %v19863_v17 = vld [vmem:[%s19821_s30 + $0x28] ss:$16 sps:$4 sm:$0xff]  }
  0x72   : > { %v17365_v33 = vld [vmem:[#allocation5 + $0x3e4] ss:$16 sps:$4 sm:$0xff]   ;;  %v17368_v35 = vld [vmem:[#allocation5 + $0x3e0] ss:$16 sps:$4 sm:$0xff]   ;;  %s23945_s16 = smov (!%p283_p0, %s15379_s16), 31 }
  0x73   : > { %1280 = vmatpush1.bf16.msra.mxu0 %v17343_v18  ;;  %v17369_v36 = vld [vmem:[#allocation5 + $0x1c4] ss:$16 sps:$4 sm:$0xff]   ;;  %v17373_v38 = vld [vmem:[#allocation5 + $0x1c0] ss:$16 sps:$4 sm:$0xff]   ;;  %v17435_v18 = vld [vmem:[#allocation5 + $0xa8] ss:$16 sps:$4 sm:$0xff]  }
  0x74   : > { %1393 = vmatpush1.bf16.msra.mxu1 %v17344_v19  ;;  %1281 = vmatprep.subr.bf16.mxu0 %v17345_v20  ;;  %v17371_v37 = vld [vmem:[#allocation5 + $0x3c4] ss:$16 sps:$4 sm:$0xff]   ;;  %v17374_v39 = vld [vmem:[#allocation5 + $0x3c0] ss:$16 sps:$4 sm:$0xff]   ;;  %v17438_v19 = vld [vmem:[#allocation5 + $0x2a8] ss:$16 sps:$4 sm:$0xff]  }
  0x75   : > { %1394 = vmatprep.subr.bf16.mxu1 %v17347_v21  ;;  %v17375_v40 = vld [vmem:[#allocation5 + $0x1a4] ss:$16 sps:$4 sm:$0xff]   ;;  %v17379_v42 = vld [vmem:[#allocation5 + $0x1a0] ss:$16 sps:$4 sm:$0xff]   ;;  %v17443_v20 = vld [vmem:[#allocation5 + $0x8c] ss:$16 sps:$4 sm:$0xff]  }
  0x76   : > { %v17377_v41 = vld [vmem:[#allocation5 + $0x3a4] ss:$16 sps:$4 sm:$0xff]   ;;  %v17380_v43 = vld [vmem:[#allocation5 + $0x3a0] ss:$16 sps:$4 sm:$0xff]   ;;  %v17446_v21 = vld [vmem:[#allocation5 + $0x28c] ss:$16 sps:$4 sm:$0xff]  }
  0x77   : > { %1282 = vmatpush1.bf16.msra.mxu0 %v17349_v22  ;;  %v17381_v44 = vld [vmem:[#allocation5 + $0x184] ss:$16 sps:$4 sm:$0xff]   ;;  %v17385_v46 = vld [vmem:[#allocation5 + $0x180] ss:$16 sps:$4 sm:$0xff]   ;;  %s15380_s17 = sshll.u32 %s23945_s16, 3 }
  0x78   : > { %1395 = vmatpush1.bf16.msra.mxu1 %v17350_v23  ;;  %1283 = vmatprep.subr.bf16.mxu0 %v17351_v24  ;;  %v17383_v45 = vld [vmem:[#allocation5 + $0x384] ss:$16 sps:$4 sm:$0xff]   ;;  %v17386_v47 = vld [vmem:[#allocation5 + $0x380] ss:$16 sps:$4 sm:$0xff]   ;;  %v19869_v23 = vld [vmem:[%s19821_s30 + $0x4c] ss:$16 sps:$4 sm:$0xff]   ;;  %s23027_s11 = scalar_lea.vmem %s23096_s5, %s15380_s17 }
  0x79   : > { %1396 = vmatprep.subr.bf16.mxu1 %v17353_v25  ;;  %v17387_v48 = vld [vmem:[#allocation5 + $0x164] ss:$16 sps:$4 sm:$0xff]   ;;  %v17391_v52 = vld [vmem:[#allocation5 + $0x160] ss:$16 sps:$4 sm:$0xff]   ;;  %v17441_v24 = vld [vmem:[#allocation5 + $0x88] ss:$16 sps:$4 sm:$0xff]  }
  0x7a   : > { %v19836_v49 = vld [vmem:[%s19821_s30 + $0x4] ss:$16 sps:$4 sm:$0xff]   ;;  %v17392_v53 = vld [vmem:[#allocation5 + $0x360] ss:$16 sps:$4 sm:$0xff]   ;;  %v17444_v25 = vld [vmem:[#allocation5 + $0x288] ss:$16 sps:$4 sm:$0xff]  }
  0x7b   : > { %1284 = vmatpush1.bf16.msra.mxu0 %v17355_v26  ;;  %v17389_v50 = vld [vmem:[#allocation5 + $0x364] ss:$16 sps:$4 sm:$0xff]   ;;  %1303 = vmatprep.mubr.bf16.mxu0 %v19836_v49  ;;  %v17397_v56 = vld [vmem:[#allocation5 + $0x140] ss:$16 sps:$4 sm:$0xff]   ;;  %v17455_v26 = vld [vmem:[#allocation5 + $0x6c] ss:$16 sps:$4 sm:$0xff]  }
  0x7c   : > { %1397 = vmatpush1.bf16.msra.mxu1 %v17356_v27  ;;  %1285 = vmatprep.subr.bf16.mxu0 %v17357_v28  ;;  %v17393_v54 = vld [vmem:[#allocation5 + $0x144] ss:$16 sps:$4 sm:$0xff]   ;;  %v17398_v57 = vld [vmem:[#allocation5 + $0x340] ss:$16 sps:$4 sm:$0xff]   ;;  %v17458_v27 = vld [vmem:[#allocation5 + $0x26c] ss:$16 sps:$4 sm:$0xff]  }
  0x7d   : > { %1398 = vmatprep.subr.bf16.mxu1 %v17359_v29  ;;  %v17395_v55 = vld [vmem:[#allocation5 + $0x344] ss:$16 sps:$4 sm:$0xff]   ;;  %v17403_v60 = vld [vmem:[#allocation5 + $0x120] ss:$16 sps:$4 sm:$0xff]   ;;  %v19879_v29 = vld [vmem:[%s19821_s30 + $0x48] ss:$16 sps:$4 sm:$0xff]  }
  0x7e   : > { %v17399_v58 = vld [vmem:[#allocation5 + $0x124] ss:$16 sps:$4 sm:$0xff]   ;;  %v17404_v61 = vld [vmem:[#allocation5 + $0x320] ss:$16 sps:$4 sm:$0xff]  }
  0x7f   : > { %1286 = vmatpush1.bf16.msra.mxu0 %v17361_v30  ;;  %v17401_v59 = vld [vmem:[#allocation5 + $0x324] ss:$16 sps:$4 sm:$0xff]   ;;  %v17409_v0 = vld [vmem:[#allocation5 + $0x100] ss:$16 sps:$4 sm:$0xff]   ;;  %v17453_v30 = vld [vmem:[#allocation5 + $0x68] ss:$16 sps:$4 sm:$0xff]  }
  0x80   : > { %1399 = vmatpush1.bf16.msra.mxu1 %v17362_v31  ;;  %1287 = vmatprep.subr.bf16.mxu0 %v17363_v32  ;;  %v17405_v62 = vld [vmem:[#allocation5 + $0x104] ss:$16 sps:$4 sm:$0xff]   ;;  %v17410_v1 = vld [vmem:[#allocation5 + $0x300] ss:$16 sps:$4 sm:$0xff]   ;;  %v17456_v31 = vld [vmem:[#allocation5 + $0x268] ss:$16 sps:$4 sm:$0xff]  }
  0x81   : > { %1400 = vmatprep.subr.bf16.mxu1 %v17365_v33  ;;  %v17407_v63 = vld [vmem:[#allocation5 + $0x304] ss:$16 sps:$4 sm:$0xff]   ;;  %v19844_v4 = vld [vmem:[%s19821_s30] ss:$16 sps:$4 sm:$0xff]   ;;  %v17461_v32 = vld [vmem:[#allocation5 + $0x4c] ss:$16 sps:$4 sm:$0xff]  }
  0x82   : > { %v19850_v10 = vld [vmem:[%s19821_s30 + $0x24] ss:$16 sps:$4 sm:$0xff]   ;;  %v19860_v16 = vld [vmem:[%s19821_s30 + $0x20] ss:$16 sps:$4 sm:$0xff]   ;;  %v17464_v33 = vld [vmem:[#allocation5 + $0x24c] ss:$16 sps:$4 sm:$0xff]  }
  0x83   : > { %1288 = vmatpush2.bf16.msra.mxu0 %v17367_v34  ;;  %v19866_v22 = vld [vmem:[%s19821_s30 + $0x44] ss:$16 sps:$4 sm:$0xff]   ;;  %v19876_v28 = vld [vmem:[%s19821_s30 + $0x40] ss:$16 sps:$4 sm:$0xff]  }
  0x84   : > { %1401 = vmatpush2.bf16.msra.mxu1 %v17368_v35  ;;  %1289 = vmatprep.subr.bf16.mxu0 %v17369_v36  ;;  %v19882_v34 = vld [vmem:[%s19821_s30 + $0x64] ss:$16 sps:$4 sm:$0xff]   ;;  %v19885_v35 = vld [vmem:[%s19821_s30 + $0x6c] ss:$16 sps:$4 sm:$0xff]   ;;  %v17459_v36 = vld [vmem:[#allocation5 + $0x48] ss:$16 sps:$4 sm:$0xff]  }
  0x85   : > { %1402 = vmatprep.subr.bf16.mxu1 %v17371_v37  ;;  %v17462_v37 = vld [vmem:[#allocation5 + $0x248] ss:$16 sps:$4 sm:$0xff]  }
  0x87   : > { %1290 = vmatpush2.bf16.msra.mxu0 %v17373_v38  ;;  %v17473_v38 = vld [vmem:[#allocation5 + $0x2c] ss:$16 sps:$4 sm:$0xff]  }
  0x88   : > { %1403 = vmatpush2.bf16.msra.mxu1 %v17374_v39  ;;  %1291 = vmatprep.subr.bf16.mxu0 %v17375_v40  ;;  %v17476_v39 = vld [vmem:[#allocation5 + $0x22c] ss:$16 sps:$4 sm:$0xff]   ;;  %v19892_v40 = vld [vmem:[%s19821_s30 + $0x60] ss:$16 sps:$4 sm:$0xff]  }
  0x89   : > { %1404 = vmatprep.subr.bf16.mxu1 %v17377_v41  ;;  %v19895_v41 = vld [vmem:[%s19821_s30 + $0x68] ss:$16 sps:$4 sm:$0xff]  }
  0x8b   : > { %1292 = vmatpush2.bf16.msra.mxu0 %v17379_v42  ;;  %v17471_v42 = vld [vmem:[#allocation5 + $0x28] ss:$16 sps:$4 sm:$0xff]  }
  0x8c   : > { %1405 = vmatpush2.bf16.msra.mxu1 %v17380_v43  ;;  %1293 = vmatprep.subr.bf16.mxu0 %v17381_v44  ;;  %v17474_v43 = vld [vmem:[#allocation5 + $0x228] ss:$16 sps:$4 sm:$0xff]   ;;  %v17479_v44 = vld [vmem:[#allocation5 + $0xc] ss:$16 sps:$4 sm:$0xff]  }
  0x8d   : > { %1406 = vmatprep.subr.bf16.mxu1 %v17383_v45  ;;  %v17482_v45 = vld [vmem:[#allocation5 + $0x20c] ss:$16 sps:$4 sm:$0xff]  }
  0x8f   : > { %1294 = vmatpush2.bf16.msra.mxu0 %v17385_v46  ;;  %v19898_v46 = vld [vmem:[%s19821_s30 + $0x1e4] ss:$16 sps:$4 sm:$0xff]  }
  0x90   : > { %1407 = vmatpush2.bf16.msra.mxu1 %v17386_v47  ;;  %1295 = vmatprep.subr.bf16.mxu0 %v17387_v48  ;;  %v19901_v47 = vld [vmem:[%s19821_s30 + $0x1ec] ss:$16 sps:$4 sm:$0xff]   ;;  %v17477_v48 = vld [vmem:[#allocation5 + $0x8] ss:$16 sps:$4 sm:$0xff]  }
  0x91   : > { %1408 = vmatprep.subr.bf16.mxu1 %v17389_v50  ;;  %v17480_v50 = vld [vmem:[#allocation5 + $0x208] ss:$16 sps:$4 sm:$0xff]  }
  0x93   : > { %1296 = vmatpush2.bf16.msra.mxu0 %v17391_v52  ;;  %v17491_v52 = vld [vmem:[#allocation5 + $0x1ec] ss:$16 sps:$4 sm:$0xff]  }
  0x94   : > { %1409 = vmatpush2.bf16.msra.mxu1 %v17392_v53  ;;  %1297 = vmatprep.subr.bf16.mxu0 %v17393_v54  ;;  %v17494_v53 = vld [vmem:[#allocation5 + $0x3ec] ss:$16 sps:$4 sm:$0xff]   ;;  %v19908_v54 = vld [vmem:[%s19821_s30 + $0x1e0] ss:$16 sps:$4 sm:$0xff]  }
  0x95   : > { %1410 = vmatprep.subr.bf16.mxu1 %v17395_v55  ;;  %v19911_v55 = vld [vmem:[%s19821_s30 + $0x1e8] ss:$16 sps:$4 sm:$0xff]  }
  0x97   : > { %1298 = vmatpush2.bf16.msra.mxu0 %v17397_v56  ;;  %v17489_v56 = vld [vmem:[#allocation5 + $0x1e8] ss:$16 sps:$4 sm:$0xff]  }
  0x98   : > { %1411 = vmatpush2.bf16.msra.mxu1 %v17398_v57  ;;  %1299 = vmatprep.subr.bf16.mxu0 %v17399_v58  ;;  %v17492_v57 = vld [vmem:[#allocation5 + $0x3e8] ss:$16 sps:$4 sm:$0xff]   ;;  %v17497_v58 = vld [vmem:[#allocation5 + $0x1cc] ss:$16 sps:$4 sm:$0xff]  }
  0x99   : > { %1412 = vmatprep.subr.bf16.mxu1 %v17401_v59  ;;  %v17500_v59 = vld [vmem:[#allocation5 + $0x3cc] ss:$16 sps:$4 sm:$0xff]  }
  0x9b   : > { %1300 = vmatpush2.bf16.msra.mxu0 %v17403_v60  ;;  %v19914_v60 = vld [vmem:[%s19821_s30 + $0x204] ss:$16 sps:$4 sm:$0xff]  }
  0x9c   : > { %1413 = vmatpush2.bf16.msra.mxu1 %v17404_v61  ;;  %1301 = vmatprep.subr.bf16.mxu0 %v17405_v62  ;;  %v19917_v61 = vld [vmem:[%s19821_s30 + $0x20c] ss:$16 sps:$4 sm:$0xff]   ;;  %v17495_v62 = vld [vmem:[#allocation5 + $0x1c8] ss:$16 sps:$4 sm:$0xff]  }
  0x9d   : > { %1414 = vmatprep.subr.bf16.mxu1 %v17407_v63  ;;  %v17498_v63 = vld [vmem:[#allocation5 + $0x3c8] ss:$16 sps:$4 sm:$0xff]  }
  0x9f   : > { %1302 = vmatpush2.bf16.msra.mxu0 %v17409_v0  ;;  %v17509_v0 = vld [vmem:[#allocation5 + $0x1ac] ss:$16 sps:$4 sm:$0xff]  }
  0xa0   : > { %1415 = vmatpush2.bf16.msra.mxu1 %v17410_v1  ;;  %1497 = vmatprep.subr.bf16.mxu0 %v17419_v2  ;;  %v17512_v1 = vld [vmem:[#allocation5 + $0x3ac] ss:$16 sps:$4 sm:$0xff]   ;;  %v19924_v2 = vld [vmem:[%s19821_s30 + $0x200] ss:$16 sps:$4 sm:$0xff]  }
  0xa1   : > { %1610 = vmatprep.subr.bf16.mxu1 %v17422_v3  ;;  %v19927_v3 = vld [vmem:[%s19821_s30 + $0x208] ss:$16 sps:$4 sm:$0xff]  }
  0xa2   : > { %1304 = vmatmul.mubr.bf16.vlgmr.msra.gmra.mxu0 %v19844_v4 }
  0xa3   : > { %1417 = vmatmul.mubr.bf16.vlgmr.msra.gmra.mxu1 %v19847_v5  ;;  %1498 = vmatpush1.bf16.msra.mxu0 %v17417_v6  ;;  %v17507_v6 = vld [vmem:[#allocation5 + $0x1a8] ss:$16 sps:$4 sm:$0xff]  }
  0xa4   : > { %1611 = vmatpush1.bf16.msra.mxu1 %v17420_v7  ;;  %1499 = vmatprep.subr.bf16.mxu0 %v17425_v8  ;;  %v17510_v7 = vld [vmem:[#allocation5 + $0x3a8] ss:$16 sps:$4 sm:$0xff]   ;;  %v17515_v8 = vld [vmem:[#allocation5 + $0x18c] ss:$16 sps:$4 sm:$0xff]  }
  0xa5   : > { %1612 = vmatprep.subr.bf16.mxu1 %v17428_v9  ;;  %1313 = vmatprep.mubr.bf16.mxu0 %v19850_v10  ;;  %v17518_v9 = vld [vmem:[#allocation5 + $0x38c] ss:$16 sps:$4 sm:$0xff]  }
  0xa6   : > { %1426 = vmatprep.mubr.bf16.mxu1 %v19853_v11 }
  0xa7   : > { %1500 = vmatpush1.bf16.msra.mxu0 %v17423_v12  ;;  %v19930_v12 = vld [vmem:[%s19821_s30 + $0x224] ss:$16 sps:$4 sm:$0xff]  }
  0xa8   : > { %1613 = vmatpush1.bf16.msra.mxu1 %v17426_v13  ;;  %1501 = vmatprep.subr.bf16.mxu0 %v17437_v14  ;;  %v19933_v13 = vld [vmem:[%s19821_s30 + $0x22c] ss:$16 sps:$4 sm:$0xff]   ;;  %v17513_v14 = vld [vmem:[#allocation5 + $0x188] ss:$16 sps:$4 sm:$0xff]  }
  0xa9   : > { %1614 = vmatprep.subr.bf16.mxu1 %v17440_v15  ;;  %v17516_v15 = vld [vmem:[#allocation5 + $0x388] ss:$16 sps:$4 sm:$0xff]  }
  0xaa   : > { %1314 = vmatmul.mubr.bf16.gmra.mxu0 %v19860_v16 }
  0xab   : > { %1427 = vmatmul.mubr.bf16.gmra.mxu1 %v19863_v17  ;;  %1502 = vmatpush1.bf16.msra.mxu0 %v17435_v18  ;;  %v17527_v18 = vld [vmem:[#allocation5 + $0x16c] ss:$16 sps:$4 sm:$0xff]  }
  0xac   : > { %1615 = vmatpush1.bf16.msra.mxu1 %v17438_v19  ;;  %1503 = vmatprep.subr.bf16.mxu0 %v17443_v20  ;;  %v17530_v19 = vld [vmem:[#allocation5 + $0x36c] ss:$16 sps:$4 sm:$0xff]   ;;  %v19940_v20 = vld [vmem:[%s19821_s30 + $0x220] ss:$16 sps:$4 sm:$0xff]  }
  0xad   : > { %1616 = vmatprep.subr.bf16.mxu1 %v17446_v21  ;;  %1323 = vmatprep.mubr.bf16.mxu0 %v19866_v22  ;;  %v19943_v21 = vld [vmem:[%s19821_s30 + $0x228] ss:$16 sps:$4 sm:$0xff]  }
  0xae   : > { %1436 = vmatprep.mubr.bf16.mxu1 %v19869_v23 }
  0xaf   : > { %1504 = vmatpush1.bf16.msra.mxu0 %v17441_v24  ;;  %v17525_v24 = vld [vmem:[#allocation5 + $0x168] ss:$16 sps:$4 sm:$0xff]  }
  0xb0   : > { %1617 = vmatpush1.bf16.msra.mxu1 %v17444_v25  ;;  %1505 = vmatprep.subr.bf16.mxu0 %v17455_v26  ;;  %v17528_v25 = vld [vmem:[#allocation5 + $0x368] ss:$16 sps:$4 sm:$0xff]   ;;  %v17533_v26 = vld [vmem:[#allocation5 + $0x14c] ss:$16 sps:$4 sm:$0xff]  }
  0xb1   : > { %1618 = vmatprep.subr.bf16.mxu1 %v17458_v27  ;;  %v17536_v27 = vld [vmem:[#allocation5 + $0x34c] ss:$16 sps:$4 sm:$0xff]  }
  0xb2   : > { %1324 = vmatmul.mubr.bf16.gmra.mxu0 %v19876_v28 }
  0xb3   : > { %1437 = vmatmul.mubr.bf16.gmra.mxu1 %v19879_v29  ;;  %1506 = vmatpush1.bf16.msra.mxu0 %v17453_v30  ;;  %v19946_v30 = vld [vmem:[%s19821_s30 + $0x244] ss:$16 sps:$4 sm:$0xff]  }
  0xb4   : > { %1619 = vmatpush1.bf16.msra.mxu1 %v17456_v31  ;;  %1507 = vmatprep.subr.bf16.mxu0 %v17461_v32  ;;  %v19949_v31 = vld [vmem:[%s19821_s30 + $0x24c] ss:$16 sps:$4 sm:$0xff]   ;;  %v17531_v32 = vld [vmem:[#allocation5 + $0x148] ss:$16 sps:$4 sm:$0xff]  }
  0xb5   : > { %1620 = vmatprep.subr.bf16.mxu1 %v17464_v33  ;;  %1333 = vmatprep.mubr.bf16.mxu0 %v19882_v34  ;;  %v17534_v33 = vld [vmem:[#allocation5 + $0x348] ss:$16 sps:$4 sm:$0xff]  }
  0xb6   : > { %1446 = vmatprep.mubr.bf16.mxu1 %v19885_v35 }
  0xb7   : > { %1508 = vmatpush1.bf16.msra.mxu0 %v17459_v36  ;;  %v17545_v36 = vld [vmem:[#allocation5 + $0x12c] ss:$16 sps:$4 sm:$0xff]  }
  0xb8   : > { %1621 = vmatpush1.bf16.msra.mxu1 %v17462_v37  ;;  %1509 = vmatprep.subr.bf16.mxu0 %v17473_v38  ;;  %v17548_v37 = vld [vmem:[#allocation5 + $0x32c] ss:$16 sps:$4 sm:$0xff]   ;;  %v19956_v38 = vld [vmem:[%s19821_s30 + $0x240] ss:$16 sps:$4 sm:$0xff]  }
  0xb9   : > { %1622 = vmatprep.subr.bf16.mxu1 %v17476_v39  ;;  %v19959_v39 = vld [vmem:[%s19821_s30 + $0x248] ss:$16 sps:$4 sm:$0xff]  }
  0xba   : > { %1334 = vmatmul.mubr.bf16.gmra.mxu0 %v19892_v40 }
  0xbb   : > { %1447 = vmatmul.mubr.bf16.gmra.mxu1 %v19895_v41  ;;  %1510 = vmatpush1.bf16.msra.mxu0 %v17471_v42  ;;  %v17543_v42 = vld [vmem:[#allocation5 + $0x128] ss:$16 sps:$4 sm:$0xff]  }
  0xbc   : > { %1623 = vmatpush1.bf16.msra.mxu1 %v17474_v43  ;;  %1511 = vmatprep.subr.bf16.mxu0 %v17479_v44  ;;  %v17546_v43 = vld [vmem:[#allocation5 + $0x328] ss:$16 sps:$4 sm:$0xff]   ;;  %v17551_v44 = vld [vmem:[#allocation5 + $0x10c] ss:$16 sps:$4 sm:$0xff]  }
  0xbd   : > { %1624 = vmatprep.subr.bf16.mxu1 %v17482_v45  ;;  %1343 = vmatprep.mubr.bf16.mxu0 %v19898_v46  ;;  %v17554_v45 = vld [vmem:[#allocation5 + $0x30c] ss:$16 sps:$4 sm:$0xff]  }
  0xbe   : > { %1456 = vmatprep.mubr.bf16.mxu1 %v19901_v47 }
  0xbf   : > { %1512 = vmatpush1.bf16.msra.mxu0 %v17477_v48  ;;  %v17549_v48 = vld [vmem:[#allocation5 + $0x108] ss:$16 sps:$4 sm:$0xff]  }
  0xc0   : > { %1625 = vmatpush1.bf16.msra.mxu1 %v17480_v50  ;;  %1513 = vmatprep.subr.bf16.mxu0 %v17491_v52  ;;  %v17552_v50 = vld [vmem:[#allocation5 + $0x308] ss:$16 sps:$4 sm:$0xff]   ;;  %v17557_v52 = vld [vmem:[#allocation5 + $0x4e4] ss:$16 sps:$4 sm:$0xff]  }
  0xc1   : > { %1626 = vmatprep.subr.bf16.mxu1 %v17494_v53  ;;  %v17560_v53 = vld [vmem:[#allocation5 + $0x6e4] ss:$16 sps:$4 sm:$0xff]  }
  0xc2   : > { %1344 = vmatmul.mubr.bf16.gmra.mxu0 %v19908_v54 }
  0xc3   : > { %1457 = vmatmul.mubr.bf16.gmra.mxu1 %v19911_v55  ;;  %1514 = vmatpush2.bf16.msra.mxu0 %v17489_v56  ;;  %v17555_v56 = vld [vmem:[#allocation5 + $0x4e0] ss:$16 sps:$4 sm:$0xff]  }
  0xc4   : > { %1627 = vmatpush2.bf16.msra.mxu1 %v17492_v57  ;;  %1515 = vmatprep.subr.bf16.mxu0 %v17497_v58  ;;  %v17558_v57 = vld [vmem:[#allocation5 + $0x6e0] ss:$16 sps:$4 sm:$0xff]   ;;  %v17563_v58 = vld [vmem:[#allocation5 + $0x4c4] ss:$16 sps:$4 sm:$0xff]  }
  0xc5   : > { %1628 = vmatprep.subr.bf16.mxu1 %v17500_v59  ;;  %1353 = vmatprep.mubr.bf16.mxu0 %v19914_v60  ;;  %v17566_v59 = vld [vmem:[#allocation5 + $0x6c4] ss:$16 sps:$4 sm:$0xff]  }
  0xc6   : > { %1466 = vmatprep.mubr.bf16.mxu1 %v19917_v61 }
  0xc7   : > { %1516 = vmatpush2.bf16.msra.mxu0 %v17495_v62  ;;  %v17561_v62 = vld [vmem:[#allocation5 + $0x4c0] ss:$16 sps:$4 sm:$0xff]  }
  0xc8   : > { %1629 = vmatpush2.bf16.msra.mxu1 %v17498_v63  ;;  %1517 = vmatprep.subr.bf16.mxu0 %v17509_v0  ;;  %v17564_v63 = vld [vmem:[#allocation5 + $0x6c0] ss:$16 sps:$4 sm:$0xff]   ;;  %v17569_v0 = vld [vmem:[#allocation5 + $0x4a4] ss:$16 sps:$4 sm:$0xff]  }
  0xc9   : > { %1630 = vmatprep.subr.bf16.mxu1 %v17512_v1  ;;  %v17570_v1 = vld [vmem:[#allocation5 + $0x6a0] ss:$16 sps:$4 sm:$0xff]  }
  0xca   : > { %1354 = vmatmul.mubr.bf16.gmra.mxu0 %v19924_v2 }
  0xcb   : > { %1467 = vmatmul.mubr.bf16.gmra.mxu1 %v19927_v3  ;;  %1518 = vmatpush2.bf16.msra.mxu0 %v17507_v6  ;;  %v17575_v6 = vld [vmem:[#allocation5 + $0x484] ss:$16 sps:$4 sm:$0xff]  }
  0xcc   : > { %1631 = vmatpush2.bf16.msra.mxu1 %v17510_v7  ;;  %1519 = vmatprep.subr.bf16.mxu0 %v17515_v8  ;;  %v17576_v7 = vld [vmem:[#allocation5 + $0x680] ss:$16 sps:$4 sm:$0xff]   ;;  %v17581_v8 = vld [vmem:[#allocation5 + $0x464] ss:$16 sps:$4 sm:$0xff]  }
  0xcd   : > { %1632 = vmatprep.subr.bf16.mxu1 %v17518_v9  ;;  %1363 = vmatprep.mubr.bf16.mxu0 %v19930_v12  ;;  %v17582_v9 = vld [vmem:[#allocation5 + $0x660] ss:$16 sps:$4 sm:$0xff]  }
  0xce   : > { %1476 = vmatprep.mubr.bf16.mxu1 %v19933_v13 }
  0xcf   : > { %1520 = vmatpush2.bf16.msra.mxu0 %v17513_v14  ;;  %v17587_v14 = vld [vmem:[#allocation5 + $0x444] ss:$16 sps:$4 sm:$0xff]  }
  0xd0   : > { %1633 = vmatpush2.bf16.msra.mxu1 %v17516_v15  ;;  %1521 = vmatprep.subr.bf16.mxu0 %v17527_v18  ;;  %v17588_v15 = vld [vmem:[#allocation5 + $0x640] ss:$16 sps:$4 sm:$0xff]   ;;  %v17593_v18 = vld [vmem:[#allocation5 + $0x424] ss:$16 sps:$4 sm:$0xff]  }
  0xd1   : > { %1634 = vmatprep.subr.bf16.mxu1 %v17530_v19  ;;  %v17594_v19 = vld [vmem:[#allocation5 + $0x620] ss:$16 sps:$4 sm:$0xff]  }
  0xd2   : > { %1364 = vmatmul.mubr.bf16.gmra.mxu0 %v19940_v20 }
  0xd3   : > { %1477 = vmatmul.mubr.bf16.gmra.mxu1 %v19943_v21  ;;  %1522 = vmatpush2.bf16.msra.mxu0 %v17525_v24  ;;  %v17599_v24 = vld [vmem:[#allocation5 + $0x404] ss:$16 sps:$4 sm:$0xff]  }
  0xd4   : > { %1635 = vmatpush2.bf16.msra.mxu1 %v17528_v25  ;;  %1523 = vmatprep.subr.bf16.mxu0 %v17533_v26  ;;  %v17600_v25 = vld [vmem:[#allocation5 + $0x600] ss:$16 sps:$4 sm:$0xff]   ;;  %v17605_v26 = vld [vmem:[#allocation5 + $0x5e4] ss:$16 sps:$4 sm:$0xff]  }
  0xd5   : > { %1636 = vmatprep.subr.bf16.mxu1 %v17536_v27  ;;  %1373 = vmatprep.mubr.bf16.mxu0 %v19946_v30  ;;  %v17606_v27 = vld [vmem:[#allocation5 + $0x7e0] ss:$16 sps:$4 sm:$0xff]  }
  0xd6   : > { %1486 = vmatprep.mubr.bf16.mxu1 %v19949_v31 }
  0xd7   : > { %1524 = vmatpush2.bf16.msra.mxu0 %v17531_v32  ;;  %v17611_v32 = vld [vmem:[#allocation5 + $0x5c4] ss:$16 sps:$4 sm:$0xff]  }
  0xd8   : > { %1637 = vmatpush2.bf16.msra.mxu1 %v17534_v33  ;;  %1525 = vmatprep.subr.bf16.mxu0 %v17545_v36  ;;  %v17612_v33 = vld [vmem:[#allocation5 + $0x7c0] ss:$16 sps:$4 sm:$0xff]   ;;  %v17617_v36 = vld [vmem:[#allocation5 + $0x5a4] ss:$16 sps:$4 sm:$0xff]  }
  0xd9   : > { %1638 = vmatprep.subr.bf16.mxu1 %v17548_v37  ;;  %v17618_v37 = vld [vmem:[#allocation5 + $0x7a0] ss:$16 sps:$4 sm:$0xff]  }
  0xda   : > { %1374 = vmatmul.mubr.bf16.gmra.mxu0 %v19956_v38 }
  0xdb   : > { %1487 = vmatmul.mubr.bf16.gmra.mxu1 %v19959_v39  ;;  %1526 = vmatpush2.bf16.msra.mxu0 %v17543_v42  ;;  %v17623_v42 = vld [vmem:[#allocation5 + $0x584] ss:$16 sps:$4 sm:$0xff]  }
  0xdc   : > { %1639 = vmatpush2.bf16.msra.mxu1 %v17546_v43  ;;  %1527 = vmatprep.subr.bf16.mxu0 %v17551_v44  ;;  %v17624_v43 = vld [vmem:[#allocation5 + $0x780] ss:$16 sps:$4 sm:$0xff]   ;;  %v17629_v44 = vld [vmem:[#allocation5 + $0x564] ss:$16 sps:$4 sm:$0xff]  }
  0xdd   : > { %1640 = vmatprep.subr.bf16.mxu1 %v17554_v45  ;;  %1529 = vmatprep.mubr.bf16.mxu0 %v19836_v49  ;;  %v17572_v49 = vld [vmem:[#allocation5 + $0x6a4] ss:$16 sps:$4 sm:$0xff]   ;;  %v17630_v45 = vld [vmem:[#allocation5 + $0x760] ss:$16 sps:$4 sm:$0xff]  }
  0xde   : > { %1642 = vmatprep.mubr.bf16.mxu1 %v19839_v51  ;;  %v17567_v51 = vld [vmem:[#allocation5 + $0x4a0] ss:$16 sps:$4 sm:$0xff]  }
  0xdf   : > { %1528 = vmatpush2.bf16.msra.mxu0 %v17549_v48  ;;  %v17635_v48 = vld [vmem:[#allocation5 + $0x544] ss:$16 sps:$4 sm:$0xff]  }
  0xe0   : > { %1641 = vmatpush2.bf16.msra.mxu1 %v17552_v50  ;;  %2749 = vmatprep.subr.bf16.mxu0 %v17557_v52  ;;  %v17636_v50 = vld [vmem:[#allocation5 + $0x740] ss:$16 sps:$4 sm:$0xff]  }
  0xe1   : > { %2862 = vmatprep.subr.bf16.mxu1 %v17560_v53  ;;  %v17639_v52 = vld [vmem:[#allocation5 + $0x520] ss:$16 sps:$4 sm:$0xff]  }
  0xe2   : > { %1530 = vmatmul.mubr.bf16.vlgmr.msra.gmra.mxu0 %v19844_v4  ;;  %v17578_v4 = vld [vmem:[#allocation5 + $0x684] ss:$16 sps:$4 sm:$0xff]   ;;  %v17642_v53 = vld [vmem:[#allocation5 + $0x720] ss:$16 sps:$4 sm:$0xff]  }
  0xe3   : > { %1643 = vmatmul.mubr.bf16.vlgmr.msra.gmra.mxu1 %v19847_v5  ;;  %2750 = vmatpush1.bf16.msra.mxu0 %v17555_v56  ;;  %v17573_v5 = vld [vmem:[#allocation5 + $0x480] ss:$16 sps:$4 sm:$0xff]   ;;  %v19994_v56 = vld [vmem:[%s19821_s30 + $0xa4] ss:$16 sps:$4 sm:$0xff]  }
  0xe4   : > { %2863 = vmatpush1.bf16.msra.mxu1 %v17558_v57  ;;  %2751 = vmatprep.subr.bf16.mxu0 %v17563_v58  ;;  %v19997_v57 = vld [vmem:[%s19821_s30 + $0xac] ss:$16 sps:$4 sm:$0xff]  }
  0xe5   : > { %2864 = vmatprep.subr.bf16.mxu1 %v17566_v59  ;;  %1539 = vmatprep.mubr.bf16.mxu0 %v19850_v10  ;;  %v17584_v10 = vld [vmem:[#allocation5 + $0x664] ss:$16 sps:$4 sm:$0xff]   ;;  %v17659_v58 = vld [vmem:[#allocation5 + $0x4ec] ss:$16 sps:$4 sm:$0xff]  }
  0xe6   : > { %1652 = vmatprep.mubr.bf16.mxu1 %v19853_v11  ;;  %v17579_v11 = vld [vmem:[#allocation5 + $0x460] ss:$16 sps:$4 sm:$0xff]   ;;  %v17662_v59 = vld [vmem:[#allocation5 + $0x6ec] ss:$16 sps:$4 sm:$0xff]  }
  0xe7   : > { %2752 = vmatpush1.bf16.msra.mxu0 %v17561_v62  ;;  %v20002_v62 = vld [vmem:[%s19821_s30 + $0xa0] ss:$16 sps:$4 sm:$0xff]  }
  0xe8   : > { %2865 = vmatpush1.bf16.msra.mxu1 %v17564_v63  ;;  %2753 = vmatprep.subr.bf16.mxu0 %v17569_v0  ;;  %v20007_v63 = vld [vmem:[%s19821_s30 + $0xa8] ss:$16 sps:$4 sm:$0xff]   ;;  %v17665_v0 = vld [vmem:[#allocation5 + $0x4cc] ss:$16 sps:$4 sm:$0xff]  }
  0xe9   : > { %2866 = vmatprep.subr.bf16.mxu1 %v17572_v49  ;;  %v17668_v49 = vld [vmem:[#allocation5 + $0x6cc] ss:$16 sps:$4 sm:$0xff]  }
  0xea   : > { %1540 = vmatmul.mubr.bf16.gmra.mxu0 %v19860_v16  ;;  %v17590_v16 = vld [vmem:[#allocation5 + $0x644] ss:$16 sps:$4 sm:$0xff]  }
  0xeb   : > { %1653 = vmatmul.mubr.bf16.gmra.mxu1 %v19863_v17  ;;  %2754 = vmatpush1.bf16.msra.mxu0 %v17567_v51  ;;  %v17585_v17 = vld [vmem:[#allocation5 + $0x440] ss:$16 sps:$4 sm:$0xff]   ;;  %v20010_v51 = vld [vmem:[%s19821_s30 + $0xc4] ss:$16 sps:$4 sm:$0xff]  }
  0xec   : > { %2867 = vmatpush1.bf16.msra.mxu1 %v17570_v1  ;;  %2755 = vmatprep.subr.bf16.mxu0 %v17575_v6  ;;  %v20013_v1 = vld [vmem:[%s19821_s30 + $0xcc] ss:$16 sps:$4 sm:$0xff]   ;;  %v17663_v6 = vld [vmem:[#allocation5 + $0x4c8] ss:$16 sps:$4 sm:$0xff]  }
  0xed   : > { %2868 = vmatprep.subr.bf16.mxu1 %v17578_v4  ;;  %1549 = vmatprep.mubr.bf16.mxu0 %v19866_v22  ;;  %v17596_v22 = vld [vmem:[#allocation5 + $0x624] ss:$16 sps:$4 sm:$0xff]   ;;  %v17666_v4 = vld [vmem:[#allocation5 + $0x6c8] ss:$16 sps:$4 sm:$0xff]  }
  0xee   : > { %1662 = vmatprep.mubr.bf16.mxu1 %v19869_v23  ;;  %v17591_v23 = vld [vmem:[#allocation5 + $0x420] ss:$16 sps:$4 sm:$0xff]  }
  0xef   : > { %2756 = vmatpush1.bf16.msra.mxu0 %v17573_v5  ;;  %v17677_v5 = vld [vmem:[#allocation5 + $0x4ac] ss:$16 sps:$4 sm:$0xff]  }
  0xf0   : > { %2869 = vmatpush1.bf16.msra.mxu1 %v17576_v7  ;;  %2757 = vmatprep.subr.bf16.mxu0 %v17581_v8  ;;  %v17680_v7 = vld [vmem:[#allocation5 + $0x6ac] ss:$16 sps:$4 sm:$0xff]   ;;  %v20020_v8 = vld [vmem:[%s19821_s30 + $0xc0] ss:$16 sps:$4 sm:$0xff]  }
  0xf1   : > { %2870 = vmatprep.subr.bf16.mxu1 %v17584_v10  ;;  %v20023_v10 = vld [vmem:[%s19821_s30 + $0xc8] ss:$16 sps:$4 sm:$0xff]  }
  0xf2   : > { %1550 = vmatmul.mubr.bf16.gmra.mxu0 %v19876_v28  ;;  %v17602_v28 = vld [vmem:[#allocation5 + $0x604] ss:$16 sps:$4 sm:$0xff]  }
  0xf3   : > { %1663 = vmatmul.mubr.bf16.gmra.mxu1 %v19879_v29  ;;  %2758 = vmatpush1.bf16.msra.mxu0 %v17579_v11  ;;  %v17597_v29 = vld [vmem:[#allocation5 + $0x400] ss:$16 sps:$4 sm:$0xff]   ;;  %v17675_v11 = vld [vmem:[#allocation5 + $0x4a8] ss:$16 sps:$4 sm:$0xff]  }
  0xf4   : > { %2871 = vmatpush1.bf16.msra.mxu1 %v17582_v9  ;;  %2759 = vmatprep.subr.bf16.mxu0 %v17587_v14  ;;  %v17678_v9 = vld [vmem:[#allocation5 + $0x6a8] ss:$16 sps:$4 sm:$0xff]   ;;  %v17683_v14 = vld [vmem:[#allocation5 + $0x48c] ss:$16 sps:$4 sm:$0xff]  }
  0xf5   : > { %2872 = vmatprep.subr.bf16.mxu1 %v17590_v16  ;;  %1559 = vmatprep.mubr.bf16.mxu0 %v19882_v34  ;;  %v17608_v34 = vld [vmem:[#allocation5 + $0x7e4] ss:$16 sps:$4 sm:$0xff]   ;;  %v17686_v16 = vld [vmem:[#allocation5 + $0x68c] ss:$16 sps:$4 sm:$0xff]  }
  0xf6   : > { %1672 = vmatprep.mubr.bf16.mxu1 %v19885_v35  ;;  %v17603_v35 = vld [vmem:[#allocation5 + $0x5e0] ss:$16 sps:$4 sm:$0xff]  }
  0xf7   : > { %2760 = vmatpush1.bf16.msra.mxu0 %v17585_v17  ;;  %v20026_v17 = vld [vmem:[%s19821_s30 + $0xe4] ss:$16 sps:$4 sm:$0xff]  }
  0xf8   : > { %2873 = vmatpush1.bf16.msra.mxu1 %v17588_v15  ;;  %2761 = vmatprep.subr.bf16.mxu0 %v17593_v18  ;;  %v20029_v15 = vld [vmem:[%s19821_s30 + $0xec] ss:$16 sps:$4 sm:$0xff]   ;;  %v17681_v18 = vld [vmem:[#allocation5 + $0x488] ss:$16 sps:$4 sm:$0xff]  }
  0xf9   : > { %2874 = vmatprep.subr.bf16.mxu1 %v17596_v22  ;;  %v17684_v22 = vld [vmem:[#allocation5 + $0x688] ss:$16 sps:$4 sm:$0xff]  }
  0xfa   : > { %1560 = vmatmul.mubr.bf16.gmra.mxu0 %v19892_v40  ;;  %v17614_v40 = vld [vmem:[#allocation5 + $0x7c4] ss:$16 sps:$4 sm:$0xff]  }
  0xfb   : > { %1673 = vmatmul.mubr.bf16.gmra.mxu1 %v19895_v41  ;;  %2762 = vmatpush1.bf16.msra.mxu0 %v17591_v23  ;;  %v17609_v41 = vld [vmem:[#allocation5 + $0x5c0] ss:$16 sps:$4 sm:$0xff]   ;;  %v17695_v23 = vld [vmem:[#allocation5 + $0x46c] ss:$16 sps:$4 sm:$0xff]  }
  0xfc   : > { %2875 = vmatpush1.bf16.msra.mxu1 %v17594_v19  ;;  %2763 = vmatprep.subr.bf16.mxu0 %v17599_v24  ;;  %v17698_v19 = vld [vmem:[#allocation5 + $0x66c] ss:$16 sps:$4 sm:$0xff]   ;;  %v20036_v24 = vld [vmem:[%s19821_s30 + $0xe0] ss:$16 sps:$4 sm:$0xff]  }
  0xfd   : > { %2876 = vmatprep.subr.bf16.mxu1 %v17602_v28  ;;  %1569 = vmatprep.mubr.bf16.mxu0 %v19898_v46  ;;  %v17620_v46 = vld [vmem:[#allocation5 + $0x7a4] ss:$16 sps:$4 sm:$0xff]   ;;  %v20039_v28 = vld [vmem:[%s19821_s30 + $0xe8] ss:$16 sps:$4 sm:$0xff]  }
  0xfe   : > { %1682 = vmatprep.mubr.bf16.mxu1 %v19901_v47  ;;  %v17615_v47 = vld [vmem:[#allocation5 + $0x5a0] ss:$16 sps:$4 sm:$0xff]  }
  0xff   : > { %2764 = vmatpush1.bf16.msra.mxu0 %v17597_v29  ;;  %v17693_v29 = vld [vmem:[#allocation5 + $0x468] ss:$16 sps:$4 sm:$0xff]  }
 0x100   : > { %2877 = vmatpush1.bf16.msra.mxu1 %v17600_v25  ;;  %2765 = vmatprep.subr.bf16.mxu0 %v17605_v26  ;;  %v17696_v25 = vld [vmem:[#allocation5 + $0x668] ss:$16 sps:$4 sm:$0xff]   ;;  %v17701_v26 = vld [vmem:[#allocation5 + $0x44c] ss:$16 sps:$4 sm:$0xff]  }
 0x101   : > { %2878 = vmatprep.subr.bf16.mxu1 %v17608_v34  ;;  %v17704_v34 = vld [vmem:[#allocation5 + $0x64c] ss:$16 sps:$4 sm:$0xff]  }
 0x102   : > { %1570 = vmatmul.mubr.bf16.gmra.mxu0 %v19908_v54  ;;  %v17626_v54 = vld [vmem:[#allocation5 + $0x784] ss:$16 sps:$4 sm:$0xff]  }
 0x103   : > { %1683 = vmatmul.mubr.bf16.gmra.mxu1 %v19911_v55  ;;  %2766 = vmatpush2.bf16.msra.mxu0 %v17603_v35  ;;  %v17621_v55 = vld [vmem:[#allocation5 + $0x580] ss:$16 sps:$4 sm:$0xff]   ;;  %v20042_v35 = vld [vmem:[%s19821_s30 + $0x104] ss:$16 sps:$4 sm:$0xff]  }
 0x104   : > { %2879 = vmatpush2.bf16.msra.mxu1 %v17606_v27  ;;  %2767 = vmatprep.subr.bf16.mxu0 %v17611_v32  ;;  %v20045_v27 = vld [vmem:[%s19821_s30 + $0x10c] ss:$16 sps:$4 sm:$0xff]   ;;  %v17699_v32 = vld [vmem:[#allocation5 + $0x448] ss:$16 sps:$4 sm:$0xff]  }
 0x105   : > { %2880 = vmatprep.subr.bf16.mxu1 %v17614_v40  ;;  %1579 = vmatprep.mubr.bf16.mxu0 %v19914_v60  ;;  %v17632_v60 = vld [vmem:[#allocation5 + $0x764] ss:$16 sps:$4 sm:$0xff]   ;;  %v17702_v40 = vld [vmem:[#allocation5 + $0x648] ss:$16 sps:$4 sm:$0xff]  }
 0x106   : > { %1692 = vmatprep.mubr.bf16.mxu1 %v19917_v61  ;;  %v17627_v61 = vld [vmem:[#allocation5 + $0x560] ss:$16 sps:$4 sm:$0xff]  }
 0x107   : > { %2768 = vmatpush2.bf16.msra.mxu0 %v17609_v41  ;;  %v17713_v41 = vld [vmem:[#allocation5 + $0x42c] ss:$16 sps:$4 sm:$0xff]  }
 0x108   : > { %2881 = vmatpush2.bf16.msra.mxu1 %v17612_v33  ;;  %2769 = vmatprep.subr.bf16.mxu0 %v17617_v36  ;;  %v17716_v33 = vld [vmem:[#allocation5 + $0x62c] ss:$16 sps:$4 sm:$0xff]   ;;  %v20052_v36 = vld [vmem:[%s19821_s30 + $0x100] ss:$16 sps:$4 sm:$0xff]  }
 0x109   : > { %2882 = vmatprep.subr.bf16.mxu1 %v17620_v46  ;;  %v20055_v46 = vld [vmem:[%s19821_s30 + $0x108] ss:$16 sps:$4 sm:$0xff]  }
 0x10a   : > { %1580 = vmatmul.mubr.bf16.gmra.mxu0 %v19924_v2  ;;  %v17638_v2 = vld [vmem:[#allocation5 + $0x744] ss:$16 sps:$4 sm:$0xff]  }
 0x10b   : > { %1693 = vmatmul.mubr.bf16.gmra.mxu1 %v19927_v3  ;;  %2770 = vmatpush2.bf16.msra.mxu0 %v17615_v47  ;;  %v17633_v3 = vld [vmem:[#allocation5 + $0x540] ss:$16 sps:$4 sm:$0xff]   ;;  %v17711_v47 = vld [vmem:[#allocation5 + $0x428] ss:$16 sps:$4 sm:$0xff]  }
 0x10c   : > { %2883 = vmatpush2.bf16.msra.mxu1 %v17618_v37  ;;  %2771 = vmatprep.subr.bf16.mxu0 %v17623_v42  ;;  %v17714_v37 = vld [vmem:[#allocation5 + $0x628] ss:$16 sps:$4 sm:$0xff]   ;;  %v17719_v42 = vld [vmem:[#allocation5 + $0x40c] ss:$16 sps:$4 sm:$0xff]  }
 0x10d   : > { %2884 = vmatprep.subr.bf16.mxu1 %v17626_v54  ;;  %1589 = vmatprep.mubr.bf16.mxu0 %v19930_v12  ;;  %v17641_v12 = vld [vmem:[#allocation5 + $0x524] ss:$16 sps:$4 sm:$0xff]   ;;  %v17722_v54 = vld [vmem:[#allocation5 + $0x60c] ss:$16 sps:$4 sm:$0xff]  }
 0x10e   : > { %1702 = vmatprep.mubr.bf16.mxu1 %v19933_v13  ;;  %v17644_v13 = vld [vmem:[#allocation5 + $0x724] ss:$16 sps:$4 sm:$0xff]  }
 0x10f   : > { %2772 = vmatpush2.bf16.msra.mxu0 %v17621_v55  ;;  %v20058_v55 = vld [vmem:[%s19821_s30 + $0x284] ss:$16 sps:$4 sm:$0xff]  }
 0x110   : > { %2885 = vmatpush2.bf16.msra.mxu1 %v17624_v43  ;;  %2773 = vmatprep.subr.bf16.mxu0 %v17629_v44  ;;  %v20061_v43 = vld [vmem:[%s19821_s30 + $0x28c] ss:$16 sps:$4 sm:$0xff]   ;;  %v17717_v44 = vld [vmem:[#allocation5 + $0x408] ss:$16 sps:$4 sm:$0xff]  }
 0x111   : > { %2886 = vmatprep.subr.bf16.mxu1 %v17632_v60  ;;  %v17720_v60 = vld [vmem:[#allocation5 + $0x608] ss:$16 sps:$4 sm:$0xff]  }
 0x112   : > { %1590 = vmatmul.mubr.bf16.gmra.mxu0 %v19940_v20  ;;  %v17647_v20 = vld [vmem:[#allocation5 + $0x504] ss:$16 sps:$4 sm:$0xff]  }
 0x113   : > { %1703 = vmatmul.mubr.bf16.gmra.mxu1 %v19943_v21  ;;  %2774 = vmatpush2.bf16.msra.mxu0 %v17627_v61  ;;  %v17650_v21 = vld [vmem:[#allocation5 + $0x704] ss:$16 sps:$4 sm:$0xff]   ;;  %v17731_v61 = vld [vmem:[#allocation5 + $0x5ec] ss:$16 sps:$4 sm:$0xff]  }
 0x114   : > { %2887 = vmatpush2.bf16.msra.mxu1 %v17630_v45  ;;  %2775 = vmatprep.subr.bf16.mxu0 %v17635_v48  ;;  %v17734_v45 = vld [vmem:[#allocation5 + $0x7ec] ss:$16 sps:$4 sm:$0xff]   ;;  %v20068_v48 = vld [vmem:[%s19821_s30 + $0x280] ss:$16 sps:$4 sm:$0xff]  }
 0x115   : > { %2888 = vmatprep.subr.bf16.mxu1 %v17638_v2  ;;  %1599 = vmatprep.mubr.bf16.mxu0 %v19946_v30  ;;  %v17645_v30 = vld [vmem:[#allocation5 + $0x500] ss:$16 sps:$4 sm:$0xff]   ;;  %v20071_v2 = vld [vmem:[%s19821_s30 + $0x288] ss:$16 sps:$4 sm:$0xff]  }
 0x116   : > { %1712 = vmatprep.mubr.bf16.mxu1 %v19949_v31  ;;  %v17648_v31 = vld [vmem:[#allocation5 + $0x700] ss:$16 sps:$4 sm:$0xff]  }
 0x117   : > { %2776 = vmatpush2.bf16.msra.mxu0 %v17633_v3  ;;  %v17729_v3 = vld [vmem:[#allocation5 + $0x5e8] ss:$16 sps:$4 sm:$0xff]  }
 0x118   : > { %2889 = vmatpush2.bf16.msra.mxu1 %v17636_v50  ;;  %2777 = vmatprep.subr.bf16.mxu0 %v17641_v12  ;;  %v17732_v50 = vld [vmem:[#allocation5 + $0x7e8] ss:$16 sps:$4 sm:$0xff]   ;;  %v17737_v12 = vld [vmem:[#allocation5 + $0x5cc] ss:$16 sps:$4 sm:$0xff]  }
 0x119   : > { %2890 = vmatprep.subr.bf16.mxu1 %v17644_v13  ;;  %v17740_v13 = vld [vmem:[#allocation5 + $0x7cc] ss:$16 sps:$4 sm:$0xff]  }
 0x11a   : > { %1600 = vmatmul.mubr.bf16.gmra.mxu0 %v19956_v38  ;;  %v17657_v38 = vld [vmem:[#allocation5 + $0x4e8] ss:$16 sps:$4 sm:$0xff]  }
 0x11b   : > { %1713 = vmatmul.mubr.bf16.gmra.mxu1 %v19959_v39  ;;  %2778 = vmatpush2.bf16.msra.mxu0 %v17639_v52  ;;  %v17660_v39 = vld [vmem:[#allocation5 + $0x6e8] ss:$16 sps:$4 sm:$0xff]   ;;  %v20074_v52 = vld [vmem:[%s19821_s30 + $0x2a4] ss:$16 sps:$4 sm:$0xff]  }
 0x11c   : > { %2891 = vmatpush2.bf16.msra.mxu1 %v17642_v53  ;;  %2779 = vmatprep.subr.bf16.mxu0 %v17647_v20  ;;  %v20077_v53 = vld [vmem:[%s19821_s30 + $0x2ac] ss:$16 sps:$4 sm:$0xff]   ;;  %v17735_v20 = vld [vmem:[#allocation5 + $0x5c8] ss:$16 sps:$4 sm:$0xff]  }
 0x11d   : > { %2892 = vmatprep.subr.bf16.mxu1 %v17650_v21  ;;  %2781 = vmatprep.mubr.bf16.mxu0 %v19994_v56  ;;  %v17738_v21 = vld [vmem:[#allocation5 + $0x7c8] ss:$16 sps:$4 sm:$0xff]  }
 0x11e   : > { %2894 = vmatprep.mubr.bf16.mxu1 %v19997_v57 }
 0x11f   : > { %2780 = vmatpush2.bf16.msra.mxu0 %v17645_v30  ;;  %v17749_v30 = vld [vmem:[#allocation5 + $0x5ac] ss:$16 sps:$4 sm:$0xff]  }
 0x120   : > { %2893 = vmatpush2.bf16.msra.mxu1 %v17648_v31  ;;  %2975 = vmatprep.subr.bf16.mxu0 %v17659_v58  ;;  %v17752_v31 = vld [vmem:[#allocation5 + $0x7ac] ss:$16 sps:$4 sm:$0xff]   ;;  %v20084_v58 = vld [vmem:[%s19821_s30 + $0x2a0] ss:$16 sps:$4 sm:$0xff]  }
 0x121   : > { %3088 = vmatprep.subr.bf16.mxu1 %v17662_v59  ;;  %v20087_v59 = vld [vmem:[%s19821_s30 + $0x2a8] ss:$16 sps:$4 sm:$0xff]  }
 0x122   : > { %2782 = vmatmul.mubr.bf16.vlgmr.msra.gmra.mxu0 %v20002_v62 }
 0x123   : > { %2895 = vmatmul.mubr.bf16.vlgmr.msra.gmra.mxu1 %v20007_v63  ;;  %2976 = vmatpush1.bf16.msra.mxu0 %v17657_v38  ;;  %v17747_v38 = vld [vmem:[#allocation5 + $0x5a8] ss:$16 sps:$4 sm:$0xff]  }
 0x124   : > { %3089 = vmatpush1.bf16.msra.mxu1 %v17660_v39  ;;  %2977 = vmatprep.subr.bf16.mxu0 %v17665_v0  ;;  %v17750_v39 = vld [vmem:[#allocation5 + $0x7a8] ss:$16 sps:$4 sm:$0xff]   ;;  %v17755_v0 = vld [vmem:[#allocation5 + $0x58c] ss:$16 sps:$4 sm:$0xff]  }
 0x125   : > { %3090 = vmatprep.subr.bf16.mxu1 %v17668_v49  ;;  %2791 = vmatprep.mubr.bf16.mxu0 %v20010_v51  ;;  %v17758_v49 = vld [vmem:[#allocation5 + $0x78c] ss:$16 sps:$4 sm:$0xff]  }
 0x126   : > { %2904 = vmatprep.mubr.bf16.mxu1 %v20013_v1 }
 0x127   : > { %2978 = vmatpush1.bf16.msra.mxu0 %v17663_v6  ;;  %v20090_v6 = vld [vmem:[%s19821_s30 + $0x2c4] ss:$16 sps:$4 sm:$0xff]  }
 0x128   : > { %3091 = vmatpush1.bf16.msra.mxu1 %v17666_v4  ;;  %2979 = vmatprep.subr.bf16.mxu0 %v17677_v5  ;;  %v20093_v4 = vld [vmem:[%s19821_s30 + $0x2cc] ss:$16 sps:$4 sm:$0xff]   ;;  %v17753_v5 = vld [vmem:[#allocation5 + $0x588] ss:$16 sps:$4 sm:$0xff]  }
 0x129   : > { %3092 = vmatprep.subr.bf16.mxu1 %v17680_v7  ;;  %v17756_v7 = vld [vmem:[#allocation5 + $0x788] ss:$16 sps:$4 sm:$0xff]  }
 0x12a   : > { %2792 = vmatmul.mubr.bf16.gmra.mxu0 %v20020_v8 }
 0x12b   : > { %2905 = vmatmul.mubr.bf16.gmra.mxu1 %v20023_v10  ;;  %2980 = vmatpush1.bf16.msra.mxu0 %v17675_v11  ;;  %v17767_v11 = vld [vmem:[#allocation5 + $0x56c] ss:$16 sps:$4 sm:$0xff]  }
 0x12c   : > { %3093 = vmatpush1.bf16.msra.mxu1 %v17678_v9  ;;  %2981 = vmatprep.subr.bf16.mxu0 %v17683_v14  ;;  %v17770_v9 = vld [vmem:[#allocation5 + $0x76c] ss:$16 sps:$4 sm:$0xff]   ;;  %v20100_v14 = vld [vmem:[%s19821_s30 + $0x2c0] ss:$16 sps:$4 sm:$0xff]  }
 0x12d   : > { %3094 = vmatprep.subr.bf16.mxu1 %v17686_v16  ;;  %2801 = vmatprep.mubr.bf16.mxu0 %v20026_v17  ;;  %v20103_v16 = vld [vmem:[%s19821_s30 + $0x2c8] ss:$16 sps:$4 sm:$0xff]  }
 0x12e   : > { %2914 = vmatprep.mubr.bf16.mxu1 %v20029_v15 }
 0x12f   : > { %2982 = vmatpush1.bf16.msra.mxu0 %v17681_v18  ;;  %v17765_v18 = vld [vmem:[#allocation5 + $0x568] ss:$16 sps:$4 sm:$0xff]  }
 0x130   : > { %3095 = vmatpush1.bf16.msra.mxu1 %v17684_v22  ;;  %2983 = vmatprep.subr.bf16.mxu0 %v17695_v23  ;;  %v17768_v22 = vld [vmem:[#allocation5 + $0x768] ss:$16 sps:$4 sm:$0xff]   ;;  %v17773_v23 = vld [vmem:[#allocation5 + $0x54c] ss:$16 sps:$4 sm:$0xff]  }
 0x131   : > { %3096 = vmatprep.subr.bf16.mxu1 %v17698_v19  ;;  %v17776_v19 = vld [vmem:[#allocation5 + $0x74c] ss:$16 sps:$4 sm:$0xff]  }
 0x132   : > { %2802 = vmatmul.mubr.bf16.gmra.mxu0 %v20036_v24 }
 0x133   : > { %2915 = vmatmul.mubr.bf16.gmra.mxu1 %v20039_v28  ;;  %2984 = vmatpush1.bf16.msra.mxu0 %v17693_v29  ;;  %v20106_v29 = vld [vmem:[%s19821_s30 + $0x2e4] ss:$16 sps:$4 sm:$0xff]  }
 0x134   : > { %3097 = vmatpush1.bf16.msra.mxu1 %v17696_v25  ;;  %2985 = vmatprep.subr.bf16.mxu0 %v17701_v26  ;;  %v20109_v25 = vld [vmem:[%s19821_s30 + $0x2ec] ss:$16 sps:$4 sm:$0xff]   ;;  %v17771_v26 = vld [vmem:[#allocation5 + $0x548] ss:$16 sps:$4 sm:$0xff]  }
 0x135   : > { %3098 = vmatprep.subr.bf16.mxu1 %v17704_v34  ;;  %2811 = vmatprep.mubr.bf16.mxu0 %v20042_v35  ;;  %v17774_v34 = vld [vmem:[#allocation5 + $0x748] ss:$16 sps:$4 sm:$0xff]  }
 0x136   : > { %2924 = vmatprep.mubr.bf16.mxu1 %v20045_v27 }
 0x137   : > { %2986 = vmatpush1.bf16.msra.mxu0 %v17699_v32  ;;  %v451_v32 = vlaneseq }
 0x138   : > { %3099 = vmatpush1.bf16.msra.mxu1 %v17702_v40  ;;  %2987 = vmatprep.subr.bf16.mxu0 %v17713_v41  ;;  %v17785_v40 = vld [vmem:[#allocation5 + $0x52c] ss:$16 sps:$4 sm:$0xff]  }
 0x139   : > { %3100 = vmatprep.subr.bf16.mxu1 %v17716_v33  ;;  %v17788_v41 = vld [vmem:[#allocation5 + $0x72c] ss:$16 sps:$4 sm:$0xff]   ;;  %v20116_v33 = vld [vmem:[%s19821_s30 + $0x2e0] ss:$16 sps:$4 sm:$0xff]  }
 0x13a   : > { %2812 = vmatmul.mubr.bf16.gmra.mxu0 %v20052_v36 }
 0x13b   : > { %2925 = vmatmul.mubr.bf16.gmra.mxu1 %v20055_v46  ;;  %2988 = vmatpush1.bf16.msra.mxu0 %v17711_v47  ;;  %v20119_v47 = vld [vmem:[%s19821_s30 + $0x2e8] ss:$16 sps:$4 sm:$0xff]  }
 0x13c   : > { %3101 = vmatpush1.bf16.msra.mxu1 %v17714_v37  ;;  %2989 = vmatprep.subr.bf16.mxu0 %v17719_v42  ;;  %v17783_v37 = vld [vmem:[#allocation5 + $0x528] ss:$16 sps:$4 sm:$0xff]  }
 0x13d   : > { %3102 = vmatprep.subr.bf16.mxu1 %v17722_v54  ;;  %2821 = vmatprep.mubr.bf16.mxu0 %v20058_v55  ;;  %v17786_v42 = vld [vmem:[#allocation5 + $0x728] ss:$16 sps:$4 sm:$0xff]   ;;  %v20121_v54 = vshrl.u32 %v451_v32, 7 }
 0x13e   : > { %2934 = vmatprep.mubr.bf16.mxu1 %v20061_v43 }
 0x13f   : > { %2990 = vmatpush1.bf16.msra.mxu0 %v17717_v44  ;;  %v17791_v44 = vld [vmem:[#allocation5 + $0x50c] ss:$16 sps:$4 sm:$0xff]  }
 0x140   : > { %3103 = vmatpush1.bf16.msra.mxu1 %v17720_v60  ;;  %2991 = vmatprep.subr.bf16.mxu0 %v17731_v61  ;;  %v17794_v60 = vld [vmem:[#allocation5 + $0x70c] ss:$16 sps:$4 sm:$0xff]   ;;  %v17789_v61 = vld [vmem:[#allocation5 + $0x508] ss:$16 sps:$4 sm:$0xff]  }
 0x141   : > { %3104 = vmatprep.subr.bf16.mxu1 %v17734_v45  ;;  %v17792_v45 = vld [vmem:[#allocation5 + $0x708] ss:$16 sps:$4 sm:$0xff]  }
 0x142   : > { %2822 = vmatmul.mubr.bf16.gmra.mxu0 %v20068_v48 }
 0x143   : > { %2935 = vmatmul.mubr.bf16.gmra.mxu1 %v20071_v2  ;;  %2992 = vmatpush2.bf16.msra.mxu0 %v17729_v3  ;;  %v20125_v3 = vld [vmem:[#allocation7] sm:$0xf] }
 0x144   : > { %3105 = vmatpush2.bf16.msra.mxu1 %v17732_v50  ;;  %2993 = vmatprep.subr.bf16.mxu0 %v17737_v12  ;;  %v453_v50 = vsub.s32 0, %v20121_v54  ;;  %v17797_v12 = vld [vmem:[#allocation5 + $0x8e4] ss:$16 sps:$4 sm:$0xff]  }
 0x145   : > { %3106 = vmatprep.subr.bf16.mxu1 %v17740_v13  ;;  %2831 = vmatprep.mubr.bf16.mxu0 %v20074_v52  ;;  %v17800_v13 = vld [vmem:[#allocation5 + $0xae4] ss:$16 sps:$4 sm:$0xff]  }
 0x146   : > { %2944 = vmatprep.mubr.bf16.mxu1 %v20077_v53 }
 0x147   : > { %2994 = vmatpush2.bf16.msra.mxu0 %v17735_v20  ;;  %v457_v20 = vsub.s32 1, %v20121_v54 }
 0x148   : > { %3107 = vmatpush2.bf16.msra.mxu1 %v17738_v21  ;;  %2995 = vmatprep.subr.bf16.mxu0 %v17749_v30  ;;  %v17795_v21 = vld [vmem:[#allocation5 + $0x8e0] ss:$16 sps:$4 sm:$0xff]   ;;  %v20132_v30 = vrot.slane %v20125_v3, %v453_v50 }
 0x149   : > { %3108 = vmatprep.subr.bf16.mxu1 %v17752_v31  ;;  %v17798_v31 = vld [vmem:[#allocation5 + $0xae0] ss:$16 sps:$4 sm:$0xff]  }
 0x14a   : > { %2832 = vmatmul.mubr.bf16.gmra.mxu0 %v20084_v58 }
 0x14b   : > { %2945 = vmatmul.mubr.bf16.gmra.mxu1 %v20087_v59  ;;  %2996 = vmatpush2.bf16.msra.mxu0 %v17747_v38  ;;  %v17803_v38 = vld [vmem:[#allocation5 + $0x8c4] ss:$16 sps:$4 sm:$0xff]  }
 0x14c   : > { %3109 = vmatpush2.bf16.msra.mxu1 %v17750_v39  ;;  %2997 = vmatprep.subr.bf16.mxu0 %v17755_v0  ;;  %v17806_v39 = vld [vmem:[#allocation5 + $0xac4] ss:$16 sps:$4 sm:$0xff]   ;;  %v20135_v0 = vrot.slane %v20125_v3, %v457_v20 }
 0x14d   : > { %3110 = vmatprep.subr.bf16.mxu1 %v17758_v49  ;;  %2841 = vmatprep.mubr.bf16.mxu0 %v20090_v6 }
 0x14e   : > { %2954 = vmatprep.mubr.bf16.mxu1 %v20093_v4 }
 0x14f   : > { %2998 = vmatpush2.bf16.msra.mxu0 %v17753_v5 }
 0x150   : > { %3111 = vmatpush2.bf16.msra.mxu1 %v17756_v7  ;;  %2999 = vmatprep.subr.bf16.mxu0 %v17767_v11  ;;  %v17804_v7 = vld [vmem:[#allocation5 + $0xac0] ss:$16 sps:$4 sm:$0xff]  }
 0x151   : > { %3112 = vmatprep.subr.bf16.mxu1 %v17770_v9 }
 0x152   : > { %2842 = vmatmul.mubr.bf16.gmra.mxu0 %v20100_v14 }
 0x153   : > { %2955 = vmatmul.mubr.bf16.gmra.mxu1 %v20103_v16  ;;  %3000 = vmatpush2.bf16.msra.mxu0 %v17765_v18  ;;  %v17809_v18 = vld [vmem:[#allocation5 + $0x8a4] ss:$16 sps:$4 sm:$0xff]  }
 0x154   : > { %3113 = vmatpush2.bf16.msra.mxu1 %v17768_v22  ;;  %3001 = vmatprep.subr.bf16.mxu0 %v17773_v23  ;;  %v17812_v22 = vld [vmem:[#allocation5 + $0xaa4] ss:$16 sps:$4 sm:$0xff]  }
 0x155   : > { %3114 = vmatprep.subr.bf16.mxu1 %v17776_v19  ;;  %2851 = vmatprep.mubr.bf16.mxu0 %v20106_v29 }
 0x156   : > { %2964 = vmatprep.mubr.bf16.mxu1 %v20109_v25 }
 0x157   : > { %3002 = vmatpush2.bf16.msra.mxu0 %v17771_v26  ;;  %v17807_v26 = vld [vmem:[#allocation5 + $0x8a0] ss:$16 sps:$4 sm:$0xff]  }
 0x158   : > { %3115 = vmatpush2.bf16.msra.mxu1 %v17774_v34  ;;  %3003 = vmatprep.subr.bf16.mxu0 %v17785_v40  ;;  %v17810_v40 = vld [vmem:[#allocation5 + $0xaa0] ss:$16 sps:$4 sm:$0xff]  }
 0x159   : > { %3116 = vmatprep.subr.bf16.mxu1 %v17788_v41 }
 0x15a   : > { %2852 = vmatmul.mubr.bf16.gmra.mxu0 %v20116_v33 }
 0x15b   : > { %2965 = vmatmul.mubr.bf16.gmra.mxu1 %v20119_v47  ;;  %3004 = vmatpush2.bf16.msra.mxu0 %v17783_v37 }
 0x15c   : > { %3117 = vmatpush2.bf16.msra.mxu1 %v17786_v42  ;;  %3005 = vmatprep.subr.bf16.mxu0 %v17791_v44  ;;  %v17815_v42 = vld [vmem:[#allocation5 + $0x884] ss:$16 sps:$4 sm:$0xff]  }
 0x15d   : > { %3118 = vmatprep.subr.bf16.mxu1 %v17794_v60  ;;  %3007 = vmatprep.mubr.bf16.mxu0 %v19994_v56  ;;  %v17818_v44 = vld [vmem:[#allocation5 + $0xa84] ss:$16 sps:$4 sm:$0xff]  }
 0x15e   : > { %3120 = vmatprep.mubr.bf16.mxu1 %v19997_v57  ;;  %v17801_v57 = vld [vmem:[#allocation5 + $0x8c0] ss:$16 sps:$4 sm:$0xff]  }
 0x15f   : > { %3006 = vmatpush2.bf16.msra.mxu0 %v17789_v61 }
 0x160   : > { %3119 = vmatpush2.bf16.msra.mxu1 %v17792_v45  ;;  %4355 = vmatprep.subr.bf16.mxu0 %v17797_v12  ;;  %v17813_v45 = vld [vmem:[#allocation5 + $0x880] ss:$16 sps:$4 sm:$0xff]  }
 0x161   : > { %4468 = vmatprep.subr.bf16.mxu1 %v17800_v13  ;;  %v17816_v13 = vld [vmem:[#allocation5 + $0xa80] ss:$16 sps:$4 sm:$0xff]  }
 0x162   : > { %v1305_v49 = vpop.f32.mrf.mxu0  ;;  %3008 = vmatmul.mubr.bf16.vlgmr.msra.gmra.mxu0 %v20002_v62 }
 0x163   : > { %v1418_v56 = vpop.f32.mrf.mxu1  ;;  %3121 = vmatmul.mubr.bf16.vlgmr.msra.gmra.mxu1 %v20007_v63  ;;  %v1306_v5 = vadd.f32 %v1305_v49, %v20132_v30  ;;  %4356 = vmatpush1.bf16.msra.mxu0 %v17795_v21 }
 0x164   : > { %4469 = vmatpush1.bf16.msra.mxu1 %v17798_v31  ;;  %v1307_v11 = vpop.f32.mrf.mxu0  ;;  %4357 = vmatprep.subr.bf16.mxu0 %v17803_v38  ;;  %v17821_v31 = vld [vmem:[#allocation5 + $0x864] ss:$16 sps:$4 sm:$0xff]  }
 0x165   : > { %v1420_v9 = vpop.f32.mrf.mxu1  ;;  %4470 = vmatprep.subr.bf16.mxu1 %v17806_v39  ;;  %v20140_v23 = vadd.f32 %v1418_v56, %v1306_v5  ;;  %v1308_v19 = vadd.f32 %v1307_v11, %v20135_v0  ;;  %3017 = vmatprep.mubr.bf16.mxu0 %v20010_v51  ;;  %v17824_v38 = vld [vmem:[#allocation5 + $0xa64] ss:$16 sps:$4 sm:$0xff]   ;;  %v17819_v56 = vld [vmem:[#allocation5 + $0x860] ss:$16 sps:$4 sm:$0xff]  }
 0x166   : > { %3130 = vmatprep.mubr.bf16.mxu1 %v20013_v1  ;;  %v1309_v62 = vpop.f32.mrf.mxu0 }
 0x167   : > { %v1422_v63 = vpop.f32.mrf.mxu1  ;;  %v20145_v34 = vadd.f32 %v1420_v9, %v1308_v19  ;;  %v1310_v32 = vadd.f32 %v1309_v62, %v20132_v30  ;;  %4358 = vmatpush1.bf16.msra.mxu0 %v17801_v57 }
 0x168   : > { %4471 = vmatpush1.bf16.msra.mxu1 %v17804_v7  ;;  %v1311_v41 = vpop.f32.mrf.mxu0  ;;  %4359 = vmatprep.subr.bf16.mxu0 %v17809_v18  ;;  %v17822_v7 = vld [vmem:[#allocation5 + $0xa60] ss:$16 sps:$4 sm:$0xff]   ;;  %v17827_v18 = vld [vmem:[#allocation5 + $0x844] ss:$16 sps:$4 sm:$0xff]  }
 0x169   : > { %v1424_v37 = vpop.f32.mrf.mxu1  ;;  %4472 = vmatprep.subr.bf16.mxu1 %v17812_v22  ;;  %v20148_v60 = vadd.f32 %v1422_v63, %v1310_v32  ;;  %v1312_v51 = vadd.f32 %v1311_v41, %v20135_v0  ;;  %v17830_v22 = vld [vmem:[#allocation5 + $0xa44] ss:$16 sps:$4 sm:$0xff]   ;;  %v17825_v63 = vld [vmem:[#allocation5 + $0x840] ss:$16 sps:$4 sm:$0xff]  }
 0x16a   : > { %v1315_v1 = vpop.f32.mrf.mxu0  ;;  %3018 = vmatmul.mubr.bf16.gmra.mxu0 %v20020_v8 }
 0x16b   : > { %v1428_v61 = vpop.f32.mrf.mxu1  ;;  %3131 = vmatmul.mubr.bf16.gmra.mxu1 %v20023_v10  ;;  %v20153_v50 = vadd.f32 %v1424_v37, %v1312_v51  ;;  %v1316_v12 = vadd.f32 %v1315_v1, %v20132_v30  ;;  %4360 = vmatpush1.bf16.msra.mxu0 %v17807_v26 }
 0x16c   : > { %4473 = vmatpush1.bf16.msra.mxu1 %v17810_v40  ;;  %v1317_v20 = vpop.f32.mrf.mxu0  ;;  %4361 = vmatprep.subr.bf16.mxu0 %v17815_v42  ;;  %v17828_v40 = vld [vmem:[#allocation5 + $0xa40] ss:$16 sps:$4 sm:$0xff]   ;;  %v17833_v42 = vld [vmem:[#allocation5 + $0x824] ss:$16 sps:$4 sm:$0xff]  }
 0x16d   : > { %v1430_v21 = vpop.f32.mrf.mxu1  ;;  %4474 = vmatprep.subr.bf16.mxu1 %v17818_v44  ;;  %v20156_v39 = vadd.f32 %v1428_v61, %v1316_v12  ;;  %v1318_v8 = vadd.f32 %v1317_v20, %v20135_v0  ;;  %3027 = vmatprep.mubr.bf16.mxu0 %v20026_v17  ;;  %v17836_v44 = vld [vmem:[#allocation5 + $0xa24] ss:$16 sps:$4 sm:$0xff]   ;;  %v17831_v61 = vld [vmem:[#allocation5 + $0x820] ss:$16 sps:$4 sm:$0xff]  }
 0x16e   : > { %3140 = vmatprep.mubr.bf16.mxu1 %v20029_v15  ;;  %v1319_v10 = vpop.f32.mrf.mxu0 }
 0x16f   : > { %v1432_v49 = vpop.f32.mrf.mxu1  ;;  %v20161_v57 = vadd.f32 %v1430_v21, %v1318_v8  ;;  %v1320_v5 = vadd.f32 %v1319_v10, %v20132_v30  ;;  %4362 = vmatpush1.bf16.msra.mxu0 %v17813_v45 }
 0x170   : > { %4475 = vmatpush1.bf16.msra.mxu1 %v17816_v13  ;;  %v1321_v11 = vpop.f32.mrf.mxu0  ;;  %4363 = vmatprep.subr.bf16.mxu0 %v17821_v31  ;;  %v17834_v13 = vld [vmem:[#allocation5 + $0xa20] ss:$16 sps:$4 sm:$0xff]   ;;  %v17839_v31 = vld [vmem:[#allocation5 + $0x804] ss:$16 sps:$4 sm:$0xff]  }
 0x171   : > { %v1434_v9 = vpop.f32.mrf.mxu1  ;;  %4476 = vmatprep.subr.bf16.mxu1 %v17824_v38  ;;  %v20164_v19 = vadd.f32 %v1432_v49, %v1320_v5  ;;  %v1322_v17 = vadd.f32 %v1321_v11, %v20135_v0  ;;  %v17842_v38 = vld [vmem:[#allocation5 + $0xa04] ss:$16 sps:$4 sm:$0xff]   ;;  %v17837_v49 = vld [vmem:[#allocation5 + $0x800] ss:$16 sps:$4 sm:$0xff]  }
 0x172   : > { %v1325_v15 = vpop.f32.mrf.mxu0  ;;  %3028 = vmatmul.mubr.bf16.gmra.mxu0 %v20036_v24 }
 0x173   : > { %v1438_v62 = vpop.f32.mrf.mxu1  ;;  %3141 = vmatmul.mubr.bf16.gmra.mxu1 %v20039_v28  ;;  %v20169_v26 = vadd.f32 %v1434_v9, %v1322_v17  ;;  %v1326_v32 = vadd.f32 %v1325_v15, %v20132_v30  ;;  %4364 = vmatpush1.bf16.msra.mxu0 %v17819_v56 }
 0x174   : > { %4477 = vmatpush1.bf16.msra.mxu1 %v17822_v7  ;;  %v1327_v41 = vpop.f32.mrf.mxu0  ;;  %4365 = vmatprep.subr.bf16.mxu0 %v17827_v18  ;;  %v17840_v7 = vld [vmem:[#allocation5 + $0xa00] ss:$16 sps:$4 sm:$0xff]   ;;  %v17845_v18 = vld [vmem:[#allocation5 + $0x9e4] ss:$16 sps:$4 sm:$0xff]  }
 0x175   : > { %v1440_v37 = vpop.f32.mrf.mxu1  ;;  %4478 = vmatprep.subr.bf16.mxu1 %v17830_v22  ;;  %v20172_v51 = vadd.f32 %v1438_v62, %v1326_v32  ;;  %v1328_v24 = vadd.f32 %v1327_v41, %v20135_v0  ;;  %3037 = vmatprep.mubr.bf16.mxu0 %v20042_v35  ;;  %v17848_v22 = vld [vmem:[#allocation5 + $0xbe4] ss:$16 sps:$4 sm:$0xff]   ;;  %v17843_v62 = vld [vmem:[#allocation5 + $0x9e0] ss:$16 sps:$4 sm:$0xff]  }
 0x176   : > { %3150 = vmatprep.mubr.bf16.mxu1 %v20045_v27  ;;  %v1329_v28 = vpop.f32.mrf.mxu0 }
 0x177   : > { %v1442_v1 = vpop.f32.mrf.mxu1  ;;  %v20177_v45 = vadd.f32 %v1440_v37, %v1328_v24  ;;  %v1330_v12 = vadd.f32 %v1329_v28, %v20132_v30  ;;  %4366 = vmatpush1.bf16.msra.mxu0 %v17825_v63 }
 0x178   : > { %4479 = vmatpush1.bf16.msra.mxu1 %v17828_v40  ;;  %v1331_v20 = vpop.f32.mrf.mxu0  ;;  %4367 = vmatprep.subr.bf16.mxu0 %v17833_v42  ;;  %v17846_v40 = vld [vmem:[#allocation5 + $0xbe0] ss:$16 sps:$4 sm:$0xff]   ;;  %v17851_v42 = vld [vmem:[#allocation5 + $0x9c4] ss:$16 sps:$4 sm:$0xff]  }
 0x179   : > { %v1444_v21 = vpop.f32.mrf.mxu1  ;;  %4480 = vmatprep.subr.bf16.mxu1 %v17836_v44  ;;  %v20180_v8 = vadd.f32 %v1442_v1, %v1330_v12  ;;  %v1332_v35 = vadd.f32 %v1331_v20, %v20135_v0  ;;  %v17854_v44 = vld [vmem:[#allocation5 + $0xbc4] ss:$16 sps:$4 sm:$0xff]   ;;  %v17849_v1 = vld [vmem:[#allocation5 + $0x9c0] ss:$16 sps:$4 sm:$0xff]  }
 0x17a   : > { %v1335_v27 = vpop.f32.mrf.mxu0  ;;  %3038 = vmatmul.mubr.bf16.gmra.mxu0 %v20052_v36 }
 0x17b   : > { %v1448_v10 = vpop.f32.mrf.mxu1  ;;  %3151 = vmatmul.mubr.bf16.gmra.mxu1 %v20055_v46  ;;  %v20185_v56 = vadd.f32 %v1444_v21, %v1332_v35  ;;  %v1336_v5 = vadd.f32 %v1335_v27, %v20132_v30  ;;  %4368 = vmatpush1.bf16.msra.mxu0 %v17831_v61 }
 0x17c   : > { %4481 = vmatpush1.bf16.msra.mxu1 %v17834_v13  ;;  %v1337_v11 = vpop.f32.mrf.mxu0  ;;  %4369 = vmatprep.subr.bf16.mxu0 %v17839_v31  ;;  %v17852_v13 = vld [vmem:[#allocation5 + $0xbc0] ss:$16 sps:$4 sm:$0xff]   ;;  %v17857_v31 = vld [vmem:[#allocation5 + $0x9a4] ss:$16 sps:$4 sm:$0xff]  }
 0x17d   : > { %v1450_v9 = vpop.f32.mrf.mxu1  ;;  %4482 = vmatprep.subr.bf16.mxu1 %v17842_v38  ;;  %v20188_v17 = vadd.f32 %v1448_v10, %v1336_v5  ;;  %v1338_v36 = vadd.f32 %v1337_v11, %v20135_v0  ;;  %3047 = vmatprep.mubr.bf16.mxu0 %v20058_v55  ;;  %v17860_v38 = vld [vmem:[#allocation5 + $0xba4] ss:$16 sps:$4 sm:$0xff]   ;;  %v17855_v10 = vld [vmem:[#allocation5 + $0x9a0] ss:$16 sps:$4 sm:$0xff]  }
 0x17e   : > { %3160 = vmatprep.mubr.bf16.mxu1 %v20061_v43  ;;  %v1339_v46 = vpop.f32.mrf.mxu0 }
 0x17f   : > { %v1452_v15 = vpop.f32.mrf.mxu1  ;;  %v20193_v63 = vadd.f32 %v1450_v9, %v1338_v36  ;;  %v1340_v32 = vadd.f32 %v1339_v46, %v20132_v30  ;;  %4370 = vmatpush1.bf16.msra.mxu0 %v17837_v49 }
 0x180   : > { %4483 = vmatpush1.bf16.msra.mxu1 %v17840_v7  ;;  %v1341_v41 = vpop.f32.mrf.mxu0  ;;  %4371 = vmatprep.subr.bf16.mxu0 %v17845_v18  ;;  %v17858_v7 = vld [vmem:[#allocation5 + $0xba0] ss:$16 sps:$4 sm:$0xff]   ;;  %v17863_v18 = vld [vmem:[#allocation5 + $0x984] ss:$16 sps:$4 sm:$0xff]  }
 0x181   : > { %v1454_v37 = vpop.f32.mrf.mxu1  ;;  %4484 = vmatprep.subr.bf16.mxu1 %v17848_v22  ;;  %v20196_v24 = vadd.f32 %v1452_v15, %v1340_v32  ;;  %v1342_v55 = vadd.f32 %v1341_v41, %v20135_v0  ;;  %v17866_v22 = vld [vmem:[#allocation5 + $0xb84] ss:$16 sps:$4 sm:$0xff]   ;;  %v17861_v15 = vld [vmem:[#allocation5 + $0x980] ss:$16 sps:$4 sm:$0xff]  }
 0x182   : > { %v1345_v43 = vpop.f32.mrf.mxu0  ;;  %3048 = vmatmul.mubr.bf16.gmra.mxu0 %v20068_v48 }
 0x183   : > { %v1458_v28 = vpop.f32.mrf.mxu1  ;;  %3161 = vmatmul.mubr.bf16.gmra.mxu1 %v20071_v2  ;;  %v20201_v61 = vadd.f32 %v1454_v37, %v1342_v55  ;;  %v1346_v12 = vadd.f32 %v1345_v43, %v20132_v30  ;;  %4372 = vmatpush2.bf16.msra.mxu0 %v17843_v62 }
 0x184   : > { %4485 = vmatpush2.bf16.msra.mxu1 %v17846_v40  ;;  %v1347_v20 = vpop.f32.mrf.mxu0  ;;  %4373 = vmatprep.subr.bf16.mxu0 %v17851_v42  ;;  %v17864_v40 = vld [vmem:[#allocation5 + $0xb80] ss:$16 sps:$4 sm:$0xff]   ;;  %v17869_v42 = vld [vmem:[#allocation5 + $0x964] ss:$16 sps:$4 sm:$0xff]  }
 0x185   : > { %v1460_v21 = vpop.f32.mrf.mxu1  ;;  %4486 = vmatprep.subr.bf16.mxu1 %v17854_v44  ;;  %v20204_v35 = vadd.f32 %v1458_v28, %v1346_v12  ;;  %v1348_v48 = vadd.f32 %v1347_v20, %v20135_v0  ;;  %3057 = vmatprep.mubr.bf16.mxu0 %v20074_v52  ;;  %v17872_v44 = vld [vmem:[#allocation5 + $0xb64] ss:$16 sps:$4 sm:$0xff]   ;;  %v17867_v28 = vld [vmem:[#allocation5 + $0x960] ss:$16 sps:$4 sm:$0xff]  }
 0x186   : > { %3170 = vmatprep.mubr.bf16.mxu1 %v20077_v53  ;;  %v1349_v2 = vpop.f32.mrf.mxu0 }
 0x187   : > { %v1462_v27 = vpop.f32.mrf.mxu1  ;;  %v20209_v49 = vadd.f32 %v1460_v21, %v1348_v48  ;;  %v1350_v5 = vadd.f32 %v1349_v2, %v20132_v30  ;;  %4374 = vmatpush2.bf16.msra.mxu0 %v17849_v1 }
 0x188   : > { %4487 = vmatpush2.bf16.msra.mxu1 %v17852_v13  ;;  %v1351_v11 = vpop.f32.mrf.mxu0  ;;  %4375 = vmatprep.subr.bf16.mxu0 %v17857_v31  ;;  %v17870_v13 = vld [vmem:[#allocation5 + $0xb60] ss:$16 sps:$4 sm:$0xff]   ;;  %v17875_v31 = vld [vmem:[#allocation5 + $0x944] ss:$16 sps:$4 sm:$0xff]  }
 0x189   : > { %v1464_v9 = vpop.f32.mrf.mxu1  ;;  %4488 = vmatprep.subr.bf16.mxu1 %v17860_v38  ;;  %v20212_v36 = vadd.f32 %v1462_v27, %v1350_v5  ;;  %v1352_v52 = vadd.f32 %v1351_v11, %v20135_v0  ;;  %v17878_v38 = vld [vmem:[#allocation5 + $0xb44] ss:$16 sps:$4 sm:$0xff]   ;;  %v17873_v27 = vld [vmem:[#allocation5 + $0x940] ss:$16 sps:$4 sm:$0xff]  }
 0x18a   : > { %v1355_v53 = vpop.f32.mrf.mxu0  ;;  %3058 = vmatmul.mubr.bf16.gmra.mxu0 %v20084_v58 }
 0x18b   : > { %23172 = vst [vmem:[#allocation13_spill] sm:$0xff] %v20212_v36  ;;  %v1468_v46 = vpop.f32.mrf.mxu1  ;;  %3171 = vmatmul.mubr.bf16.gmra.mxu1 %v20087_v59  ;;  %v20217_v62 = vadd.f32 %v1464_v9, %v1352_v52  ;;  %v1356_v32 = vadd.f32 %v1355_v53, %v20132_v30  ;;  %4376 = vmatpush2.bf16.msra.mxu0 %v17855_v10  ;;  %v20427_v36 = vld [vmem:[%s19821_s30 + $0x36c] ss:$16 sps:$4 sm:$0xff]  }
 0x18c   : > { %4489 = vmatpush2.bf16.msra.mxu1 %v17858_v7  ;;  %v1357_v41 = vpop.f32.mrf.mxu0  ;;  %4377 = vmatprep.subr.bf16.mxu0 %v17863_v18  ;;  %v17876_v7 = vld [vmem:[#allocation5 + $0xb40] ss:$16 sps:$4 sm:$0xff]   ;;  %v17881_v18 = vld [vmem:[#allocation5 + $0x924] ss:$16 sps:$4 sm:$0xff]   ;;  %23208 = vst [vmem:[#allocation49_spill] sm:$0xff] %v20427_v36 }
 0x18d   : > { %23173 = vst [vmem:[#allocation14_spill] sm:$0xff] %v20217_v62  ;;  %v1470_v37 = vpop.f32.mrf.mxu1  ;;  %4490 = vmatprep.subr.bf16.mxu1 %v17866_v22  ;;  %v20220_v55 = vadd.f32 %v1468_v46, %v1356_v32  ;;  %v1358_v58 = vadd.f32 %v1357_v41, %v20135_v0  ;;  %3067 = vmatprep.mubr.bf16.mxu0 %v20090_v6  ;;  %v17884_v22 = vld [vmem:[#allocation5 + $0xb24] ss:$16 sps:$4 sm:$0xff]   ;;  %v17879_v46 = vld [vmem:[#allocation5 + $0x920] ss:$16 sps:$4 sm:$0xff]  }
 0x18e   : > { %3180 = vmatprep.mubr.bf16.mxu1 %v20093_v4  ;;  %v1359_v59 = vpop.f32.mrf.mxu0  ;;  %v20424_v62 = vld [vmem:[%s19821_s30 + $0x364] ss:$16 sps:$4 sm:$0xff]  }
 0x18f   : > { %23174 = vst [vmem:[#allocation15_spill] sm:$0xff] %v20220_v55  ;;  %v1472_v43 = vpop.f32.mrf.mxu1  ;;  %v20225_v1 = vadd.f32 %v1470_v37, %v1358_v58  ;;  %v1360_v12 = vadd.f32 %v1359_v59, %v20132_v30  ;;  %4378 = vmatpush2.bf16.msra.mxu0 %v17861_v15  ;;  %v20248_v58 = vld [vmem:[%s19821_s30 + $0x144] ss:$16 sps:$4 sm:$0xff]   ;;  %v20251_v59 = vld [vmem:[%s19821_s30 + $0x14c] ss:$16 sps:$4 sm:$0xff]   ;;  %23207 = vst [vmem:[#allocation48_spill] sm:$0xff] %v20424_v62 }
 0x190   : > { %4491 = vmatpush2.bf16.msra.mxu1 %v17864_v40  ;;  %v1361_v20 = vpop.f32.mrf.mxu0  ;;  %4379 = vmatprep.subr.bf16.mxu0 %v17869_v42  ;;  %v17882_v40 = vld [vmem:[#allocation5 + $0xb20] ss:$16 sps:$4 sm:$0xff]   ;;  %v17887_v42 = vld [vmem:[#allocation5 + $0x904] ss:$16 sps:$4 sm:$0xff]  }
 0x191   : > { %23175 = vst [vmem:[#allocation16_spill] sm:$0xff] %v20225_v1  ;;  %v1474_v21 = vpop.f32.mrf.mxu1  ;;  %4492 = vmatprep.subr.bf16.mxu1 %v17872_v44  ;;  %v20228_v48 = vadd.f32 %v1472_v43, %v1360_v12  ;;  %v1362_v6 = vadd.f32 %v1361_v20, %v20135_v0  ;;  %v17885_v12 = vld [vmem:[#allocation5 + $0x900] ss:$16 sps:$4 sm:$0xff]  }
 0x192   : > { %v1365_v4 = vpop.f32.mrf.mxu0  ;;  %3068 = vmatmul.mubr.bf16.gmra.mxu0 %v20100_v14  ;;  %v20410_v1 = vld [vmem:[%s19821_s30 + $0x340] ss:$16 sps:$4 sm:$0xff]  }
 0x193   : > { %23176 = vst [vmem:[#allocation17_spill] sm:$0xff] %v20228_v48  ;;  %v1478_v2 = vpop.f32.mrf.mxu1  ;;  %3181 = vmatmul.mubr.bf16.gmra.mxu1 %v20103_v16  ;;  %v20233_v10 = vadd.f32 %v1474_v21, %v1362_v6  ;;  %v1366_v5 = vadd.f32 %v1365_v4, %v20132_v30  ;;  %4380 = vmatpush2.bf16.msra.mxu0 %v17867_v28  ;;  %v17888_v21 = vld [vmem:[#allocation5 + $0xb00] ss:$16 sps:$4 sm:$0xff]   ;;  %v17899_v4 = vld [vmem:[#allocation5 + $0x8ec] ss:$16 sps:$4 sm:$0xff]   ;;  %23203 = vst [vmem:[#allocation44_spill] sm:$0xff] %v20410_v1 }
 0x194   : > { %4493 = vmatpush2.bf16.msra.mxu1 %v17870_v13  ;;  %v1367_v11 = vpop.f32.mrf.mxu0  ;;  %4381 = vmatprep.subr.bf16.mxu0 %v17875_v31  ;;  %v461_v31 = vsub.s32 2, %v20121_v54  ;;  %v20399_v48 = vld [vmem:[%s19821_s30 + $0x34c] ss:$16 sps:$4 sm:$0xff]  }
 0x195   : > { %23177 = vst [vmem:[#allocation18_spill] sm:$0xff] %v20233_v10  ;;  %v1480_v9 = vpop.f32.mrf.mxu1  ;;  %4494 = vmatprep.subr.bf16.mxu1 %v17878_v38  ;;  %v20236_v52 = vadd.f32 %v1478_v2, %v1366_v5  ;;  %v1368_v14 = vadd.f32 %v1367_v11, %v20135_v0  ;;  %3077 = vmatprep.mubr.bf16.mxu0 %v20106_v29  ;;  %v17890_v29 = vld [vmem:[#allocation5 + $0xb04] ss:$16 sps:$4 sm:$0xff]   ;;  %v20267_v5 = vld [vmem:[%s19821_s30 + $0x148] ss:$16 sps:$4 sm:$0xff]  }
 0x196   : > { %3190 = vmatprep.mubr.bf16.mxu1 %v20109_v25  ;;  %v1369_v16 = vpop.f32.mrf.mxu0  ;;  %v20396_v10 = vld [vmem:[%s19821_s30 + $0x344] ss:$16 sps:$4 sm:$0xff]  }
 0x197   : > { %23178 = vst [vmem:[#allocation19_spill] sm:$0xff] %v20236_v52  ;;  %v1482_v53 = vpop.f32.mrf.mxu1  ;;  %v20241_v15 = vadd.f32 %v1480_v9, %v1368_v14  ;;  %v1370_v32 = vadd.f32 %v1369_v16, %v20132_v30  ;;  %4382 = vmatpush2.bf16.msra.mxu0 %v17873_v27  ;;  %v20263_v27 = vld [vmem:[%s19821_s30 + $0x140] ss:$16 sps:$4 sm:$0xff]   ;;  %v20275_v16 = vrot.slane %v20125_v3, %v461_v31  ;;  %v17917_v31 = vld [vmem:[#allocation5 + $0x8ac] ss:$16 sps:$4 sm:$0xff]  }
 0x198   : > { %4495 = vmatpush2.bf16.msra.mxu1 %v17876_v7  ;;  %v1371_v41 = vpop.f32.mrf.mxu0  ;;  %4383 = vmatprep.subr.bf16.mxu0 %v17881_v18  ;;  %v465_v7 = vsub.s32 3, %v20121_v54  ;;  %v17897_v18 = vld [vmem:[#allocation5 + $0x8e8] ss:$16 sps:$4 sm:$0xff]   ;;  %v17905_v54 = vld [vmem:[#allocation5 + $0x8cc] ss:$16 sps:$4 sm:$0xff]  }
 0x199   : > { %23179 = vst [vmem:[#allocation20_spill] sm:$0xff] %v20241_v15  ;;  %v1484_v37 = vpop.f32.mrf.mxu1  ;;  %4496 = vmatprep.subr.bf16.mxu1 %v17884_v22  ;;  %v20244_v44 = vadd.f32 %v1482_v53, %v1370_v32  ;;  %v1372_v25 = vadd.f32 %v1371_v41, %v20135_v0  ;;  %v17900_v53 = vld [vmem:[#allocation5 + $0xae8] ss:$16 sps:$4 sm:$0xff]   ;;  %v20382_v15 = vld [vmem:[%s19821_s30 + $0x320] ss:$16 sps:$4 sm:$0xff]  }
 0x19a   : > { %v1375_v43 = vpop.f32.mrf.mxu0  ;;  %3078 = vmatmul.mubr.bf16.gmra.mxu0 %v20116_v33  ;;  %v17902_v33 = vld [vmem:[#allocation5 + $0xaec] ss:$16 sps:$4 sm:$0xff]  }
 0x19b   : > { %23180 = vst [vmem:[#allocation21_spill] sm:$0xff] %v20244_v44  ;;  %v1488_v28 = vpop.f32.mrf.mxu1  ;;  %3191 = vmatmul.mubr.bf16.gmra.mxu1 %v20119_v47  ;;  %v20255_v13 = vadd.f32 %v1484_v37, %v1372_v25  ;;  %v1376_v20 = vadd.f32 %v1375_v43, %v20132_v30  ;;  %4384 = vmatpush2.bf16.msra.mxu0 %v17879_v46  ;;  %v20371_v44 = vld [vmem:[%s19821_s30 + $0x32c] ss:$16 sps:$4 sm:$0xff]  }
 0x19c   : > { %4497 = vmatpush2.bf16.msra.mxu1 %v17882_v40  ;;  %v1377_v38 = vpop.f32.mrf.mxu0  ;;  %4385 = vmatprep.subr.bf16.mxu0 %v17887_v42  ;;  %v17908_v40 = vld [vmem:[#allocation5 + $0xacc] ss:$16 sps:$4 sm:$0xff]   ;;  %v20281_v42 = vrot.slane %v20125_v3, %v465_v7  ;;  %v17906_v3 = vld [vmem:[#allocation5 + $0xac8] ss:$16 sps:$4 sm:$0xff]  }
 0x19d   : > { %23181 = vst [vmem:[#allocation22_spill] sm:$0xff] %v20255_v13  ;;  %v1490_v6 = vpop.f32.mrf.mxu1  ;;  %4498 = vmatprep.subr.bf16.mxu1 %v17890_v29  ;;  %v20259_v2 = vadd.f32 %v1488_v28, %v1376_v20  ;;  %v1378_v47 = vadd.f32 %v1377_v38, %v20135_v0  ;;  %4387 = vmatprep.mubr.bf16.mxu0 %v20248_v58  ;;  %v20287_v29 = vld [vmem:[%s19821_s30 + $0x16c] ss:$16 sps:$4 sm:$0xff]   ;;  %v17903_v28 = vld [vmem:[#allocation5 + $0x8c8] ss:$16 sps:$4 sm:$0xff]  }
 0x19e   : > { %4500 = vmatprep.mubr.bf16.mxu1 %v20251_v59  ;;  %v1379_v11 = vpop.f32.mrf.mxu0  ;;  %v17920_v38 = vld [vmem:[#allocation5 + $0xaac] ss:$16 sps:$4 sm:$0xff]   ;;  %v20368_v13 = vld [vmem:[%s19821_s30 + $0x324] ss:$16 sps:$4 sm:$0xff]  }
 0x19f   : > { %23182 = vst [vmem:[#allocation23_spill] sm:$0xff] %v20259_v2  ;;  %v1492_v9 = vpop.f32.mrf.mxu1  ;;  %v20271_v22 = vadd.f32 %v1490_v6, %v1378_v47  ;;  %v1380_v14 = vadd.f32 %v1379_v11, %v20132_v30  ;;  %4386 = vmatpush2.bf16.msra.mxu0 %v17885_v12  ;;  %v20284_v30 = vld [vmem:[%s19821_s30 + $0x164] ss:$16 sps:$4 sm:$0xff]   ;;  %v20302_v47 = vld [vmem:[%s19821_s30 + $0x168] ss:$16 sps:$4 sm:$0xff]  }
 0x1a0   : > { %4499 = vmatpush2.bf16.msra.mxu1 %v17888_v21  ;;  %v1381_v46 = vpop.f32.mrf.mxu0  ;;  %4581 = vmatprep.subr.bf16.mxu0 %v17899_v4 }
 0x1a1   : > { %23183 = vst [vmem:[#allocation24_spill] sm:$0xff] %v20271_v22  ;;  %v1494_v32 = vpop.f32.mrf.mxu1  ;;  %4694 = vmatprep.subr.bf16.mxu1 %v17902_v33  ;;  %v20277_v41 = vadd.f32 %v1492_v9, %v1380_v14  ;;  %v1382_v37 = vadd.f32 %v1381_v46, %v20135_v0  ;;  %v20298_v33 = vld [vmem:[%s19821_s30 + $0x160] ss:$16 sps:$4 sm:$0xff]   ;;  %v17915_v9 = vld [vmem:[#allocation5 + $0x8a8] ss:$16 sps:$4 sm:$0xff]  }
 0x1a2   : > { %v1531_v25 = vpop.f32.mrf.mxu0  ;;  %4388 = vmatmul.mubr.bf16.vlgmr.msra.gmra.mxu0 %v20263_v27  ;;  %v20354_v22 = vld [vmem:[%s19821_s30 + $0x1a0] ss:$16 sps:$4 sm:$0xff]  }
 0x1a3   : > { %23184 = vst [vmem:[#allocation25_spill] sm:$0xff] %v20277_v41  ;;  %v1644_v43 = vpop.f32.mrf.mxu1  ;;  %4501 = vmatmul.mubr.bf16.vlgmr.msra.gmra.mxu1 %v20267_v5  ;;  %v20291_v12 = vadd.f32 %v1494_v32, %v1382_v37  ;;  %v1532_v0 = vadd.f32 %v1531_v25, %v20275_v16  ;;  %4582 = vmatpush1.bf16.msra.mxu0 %v17897_v18  ;;  %v20343_v41 = vld [vmem:[%s19821_s30 + $0x1ac] ss:$16 sps:$4 sm:$0xff]  }
 0x1a4   : > { %4695 = vmatpush1.bf16.msra.mxu1 %v17900_v53  ;;  %v1533_v20 = vpop.f32.mrf.mxu0  ;;  %4583 = vmatprep.subr.bf16.mxu0 %v17905_v54  ;;  %v17918_v53 = vld [vmem:[#allocation5 + $0xaa8] ss:$16 sps:$4 sm:$0xff]   ;;  %v17923_v54 = vld [vmem:[#allocation5 + $0x88c] ss:$16 sps:$4 sm:$0xff]  }
 0x1a5   : > { %23185 = vst [vmem:[#allocation26_spill] sm:$0xff] %v20291_v12  ;;  %v1646_v21 = vpop.f32.mrf.mxu1  ;;  %4696 = vmatprep.subr.bf16.mxu1 %v17908_v40  ;;  %v20294_v6 = vadd.f32 %v1644_v43, %v1532_v0  ;;  %v1534_v4 = vadd.f32 %v1533_v20, %v20281_v42  ;;  %4397 = vmatprep.mubr.bf16.mxu0 %v20284_v30  ;;  %v17926_v40 = vld [vmem:[#allocation5 + $0xa8c] ss:$16 sps:$4 sm:$0xff]   ;;  %v20312_v43 = vld [vmem:[%s19821_s30 + $0x184] ss:$16 sps:$4 sm:$0xff]  }
 0x1a6   : > { %4510 = vmatprep.mubr.bf16.mxu1 %v20287_v29  ;;  %v1535_v7 = vpop.f32.mrf.mxu0  ;;  %v20315_v0 = vld [vmem:[%s19821_s30 + $0x18c] ss:$16 sps:$4 sm:$0xff]   ;;  %v20340_v12 = vld [vmem:[%s19821_s30 + $0x1a4] ss:$16 sps:$4 sm:$0xff]  }
 0x1a7   : > { %23186 = vst [vmem:[#allocation27_spill] sm:$0xff] %v20294_v6  ;;  %v1648_v11 = vpop.f32.mrf.mxu1  ;;  %v20305_v18 = vadd.f32 %v1646_v21, %v1534_v4  ;;  %v1536_v14 = vadd.f32 %v1535_v7, %v20275_v16  ;;  %4584 = vmatpush1.bf16.msra.mxu0 %v17903_v28  ;;  %v17921_v28 = vld [vmem:[#allocation5 + $0x888] ss:$16 sps:$4 sm:$0xff]  }
 0x1a8   : > { %4697 = vmatpush1.bf16.msra.mxu1 %v17906_v3  ;;  %v1537_v46 = vpop.f32.mrf.mxu0  ;;  %4585 = vmatprep.subr.bf16.mxu0 %v17917_v31 }
 0x1a9   : > { %23187 = vst [vmem:[#allocation28_spill] sm:$0xff] %v20305_v18  ;;  %v1650_v32 = vpop.f32.mrf.mxu1  ;;  %4698 = vmatprep.subr.bf16.mxu1 %v17920_v38  ;;  %v20308_v37 = vadd.f32 %v1648_v11, %v1536_v14  ;;  %v1538_v25 = vadd.f32 %v1537_v46, %v20281_v42  ;;  %v17924_v38 = vld [vmem:[#allocation5 + $0xa88] ss:$16 sps:$4 sm:$0xff]   ;;  %v17935_v11 = vld [vmem:[#allocation5 + $0x86c] ss:$16 sps:$4 sm:$0xff]  }
 0x1aa   : > { %v1541_v20 = vpop.f32.mrf.mxu0  ;;  %4398 = vmatmul.mubr.bf16.gmra.mxu0 %v20298_v33  ;;  %v17938_v14 = vld [vmem:[#allocation5 + $0xa6c] ss:$16 sps:$4 sm:$0xff]   ;;  %v20326_v18 = vld [vmem:[%s19821_s30 + $0x180] ss:$16 sps:$4 sm:$0xff]  }
 0x1ab   : > { %23188 = vst [vmem:[#allocation29_spill] sm:$0xff] %v20308_v37  ;;  %v1654_v21 = vpop.f32.mrf.mxu1  ;;  %4511 = vmatmul.mubr.bf16.gmra.mxu1 %v20302_v47  ;;  %v20319_v3 = vadd.f32 %v1650_v32, %v1538_v25  ;;  %v1542_v31 = vadd.f32 %v1541_v20, %v20275_v16  ;;  %4586 = vmatpush1.bf16.msra.mxu0 %v17915_v9  ;;  %v20330_v32 = vld [vmem:[%s19821_s30 + $0x188] ss:$16 sps:$4 sm:$0xff]  }
 0x1ac   : > { %4699 = vmatpush1.bf16.msra.mxu1 %v17918_v53  ;;  %v1543_v4 = vpop.f32.mrf.mxu0  ;;  %4587 = vmatprep.subr.bf16.mxu0 %v17923_v54  ;;  %v17933_v54 = vld [vmem:[#allocation5 + $0x868] ss:$16 sps:$4 sm:$0xff]  }
 0x1ad   : > { %23189 = vst [vmem:[#allocation30_spill] sm:$0xff] %v20319_v3  ;;  %v1656_v7 = vpop.f32.mrf.mxu1  ;;  %4700 = vmatprep.subr.bf16.mxu1 %v17926_v40  ;;  %v20322_v46 = vadd.f32 %v1654_v21, %v1542_v31  ;;  %v1544_v37 = vadd.f32 %v1543_v4, %v20281_v42  ;;  %4407 = vmatprep.mubr.bf16.mxu0 %v20312_v43  ;;  %v17936_v20 = vld [vmem:[#allocation5 + $0xa68] ss:$16 sps:$4 sm:$0xff]   ;;  %v17941_v4 = vld [vmem:[#allocation5 + $0x84c] ss:$16 sps:$4 sm:$0xff]  }
 0x1ae   : > { %4520 = vmatprep.mubr.bf16.mxu1 %v20315_v0  ;;  %v1545_v9 = vpop.f32.mrf.mxu0 }
 0x1af   : > { %23190 = vst [vmem:[#allocation31_spill] sm:$0xff] %v20322_v46  ;;  %v1658_v53 = vpop.f32.mrf.mxu1  ;;  %v20333_v40 = vadd.f32 %v1656_v7, %v1544_v37  ;;  %v1546_v25 = vadd.f32 %v1545_v9, %v20275_v16  ;;  %4588 = vmatpush1.bf16.msra.mxu0 %v17921_v28  ;;  %v17944_v46 = vld [vmem:[#allocation5 + $0xa4c] ss:$16 sps:$4 sm:$0xff]   ;;  %v17939_v28 = vld [vmem:[#allocation5 + $0x848] ss:$16 sps:$4 sm:$0xff]  }
 0x1b0   : > { %4701 = vmatpush1.bf16.msra.mxu1 %v17924_v38  ;;  %v1547_v21 = vpop.f32.mrf.mxu0  ;;  %4589 = vmatprep.subr.bf16.mxu0 %v17935_v11 }
 0x1b1   : > { %23191 = vst [vmem:[#allocation32_spill] sm:$0xff] %v20333_v40  ;;  %v1660_v31 = vpop.f32.mrf.mxu1  ;;  %4702 = vmatprep.subr.bf16.mxu1 %v17938_v14  ;;  %v20336_v3 = vadd.f32 %v1658_v53, %v1546_v25  ;;  %v1548_v6 = vadd.f32 %v1547_v21, %v20281_v42  ;;  %v17942_v14 = vld [vmem:[#allocation5 + $0xa48] ss:$16 sps:$4 sm:$0xff]   ;;  %v17953_v25 = vld [vmem:[#allocation5 + $0x82c] ss:$16 sps:$4 sm:$0xff]  }
 0x1b2   : > { %v1551_v37 = vpop.f32.mrf.mxu0  ;;  %4408 = vmatmul.mubr.bf16.gmra.mxu0 %v20326_v18  ;;  %v17956_v21 = vld [vmem:[#allocation5 + $0xa2c] ss:$16 sps:$4 sm:$0xff]  }
 0x1b3   : > { %23192 = vst [vmem:[#allocation33_spill] sm:$0xff] %v20336_v3  ;;  %v1664_v7 = vpop.f32.mrf.mxu1  ;;  %4521 = vmatmul.mubr.bf16.gmra.mxu1 %v20330_v32  ;;  %v20347_v38 = vadd.f32 %v1660_v31, %v1548_v6  ;;  %v1552_v11 = vadd.f32 %v1551_v37, %v20275_v16  ;;  %4590 = vmatpush1.bf16.msra.mxu0 %v17933_v54  ;;  %v20358_v6 = vld [vmem:[%s19821_s30 + $0x1a8] ss:$16 sps:$4 sm:$0xff]  }
 0x1b4   : > { %4703 = vmatpush1.bf16.msra.mxu1 %v17936_v20  ;;  %v1553_v9 = vpop.f32.mrf.mxu0  ;;  %4591 = vmatprep.subr.bf16.mxu0 %v17941_v4  ;;  %v17951_v31 = vld [vmem:[#allocation5 + $0x828] ss:$16 sps:$4 sm:$0xff]  }
 0x1b5   : > { %23193 = vst [vmem:[#allocation34_spill] sm:$0xff] %v20347_v38  ;;  %v1666_v53 = vpop.f32.mrf.mxu1  ;;  %4704 = vmatprep.subr.bf16.mxu1 %v17944_v46  ;;  %v20350_v3 = vadd.f32 %v1664_v7, %v1552_v11  ;;  %v1554_v40 = vadd.f32 %v1553_v9, %v20281_v42  ;;  %4417 = vmatprep.mubr.bf16.mxu0 %v20340_v12  ;;  %v17954_v37 = vld [vmem:[#allocation5 + $0xa28] ss:$16 sps:$4 sm:$0xff]   ;;  %v17959_v9 = vld [vmem:[#allocation5 + $0x80c] ss:$16 sps:$4 sm:$0xff]  }
 0x1b6   : > { %4530 = vmatprep.mubr.bf16.mxu1 %v20343_v41  ;;  %v1555_v54 = vpop.f32.mrf.mxu0 }
 0x1b7   : > { %23194 = vst [vmem:[#allocation35_spill] sm:$0xff] %v20350_v3  ;;  %v1668_v20 = vpop.f32.mrf.mxu1  ;;  %v20361_v46 = vadd.f32 %v1666_v53, %v1554_v40  ;;  %v1556_v4 = vadd.f32 %v1555_v54, %v20275_v16  ;;  %4592 = vmatpush1.bf16.msra.mxu0 %v17939_v28  ;;  %v17962_v3 = vld [vmem:[#allocation5 + $0xa0c] ss:$16 sps:$4 sm:$0xff]   ;;  %v17957_v28 = vld [vmem:[#allocation5 + $0x808] ss:$16 sps:$4 sm:$0xff]  }
 0x1b8   : > { %4705 = vmatpush1.bf16.msra.mxu1 %v17942_v14  ;;  %v1557_v7 = vpop.f32.mrf.mxu0  ;;  %4593 = vmatprep.subr.bf16.mxu0 %v17953_v25 }
 0x1b9   : > { %23195 = vst [vmem:[#allocation36_spill] sm:$0xff] %v20361_v46  ;;  %v1670_v11 = vpop.f32.mrf.mxu1  ;;  %4706 = vmatprep.subr.bf16.mxu1 %v17956_v21  ;;  %v20364_v38 = vadd.f32 %v1668_v20, %v1556_v4  ;;  %v1558_v2 = vadd.f32 %v1557_v7, %v20281_v42  ;;  %v17960_v21 = vld [vmem:[#allocation5 + $0xa08] ss:$16 sps:$4 sm:$0xff]   ;;  %v17971_v4 = vld [vmem:[#allocation5 + $0x9ec] ss:$16 sps:$4 sm:$0xff]  }
 0x1ba   : > { %v1561_v40 = vpop.f32.mrf.mxu0  ;;  %4418 = vmatmul.mubr.bf16.gmra.mxu0 %v20354_v22  ;;  %v17974_v7 = vld [vmem:[#allocation5 + $0xbec] ss:$16 sps:$4 sm:$0xff]  }
 0x1bb   : > { %23196 = vst [vmem:[#allocation37_spill] sm:$0xff] %v20364_v38  ;;  %v1674_v53 = vpop.f32.mrf.mxu1  ;;  %4531 = vmatmul.mubr.bf16.gmra.mxu1 %v20358_v6  ;;  %v20375_v14 = vadd.f32 %v1670_v11, %v1558_v2  ;;  %v1562_v25 = vadd.f32 %v1561_v40, %v20275_v16  ;;  %4594 = vmatpush1.bf16.msra.mxu0 %v17951_v31  ;;  %v20386_v2 = vld [vmem:[%s19821_s30 + $0x328] ss:$16 sps:$4 sm:$0xff]  }
 0x1bc   : > { %4707 = vmatpush1.bf16.msra.mxu1 %v17954_v37  ;;  %v1563_v54 = vpop.f32.mrf.mxu0  ;;  %4595 = vmatprep.subr.bf16.mxu0 %v17959_v9  ;;  %v17969_v11 = vld [vmem:[#allocation5 + $0x9e8] ss:$16 sps:$4 sm:$0xff]  }
 0x1bd   : > { %23197 = vst [vmem:[#allocation38_spill] sm:$0xff] %v20375_v14  ;;  %v1676_v20 = vpop.f32.mrf.mxu1  ;;  %4708 = vmatprep.subr.bf16.mxu1 %v17962_v3  ;;  %v20378_v38 = vadd.f32 %v1674_v53, %v1562_v25  ;;  %v1564_v46 = vadd.f32 %v1563_v54, %v20281_v42  ;;  %4427 = vmatprep.mubr.bf16.mxu0 %v20368_v13  ;;  %v17972_v40 = vld [vmem:[#allocation5 + $0xbe8] ss:$16 sps:$4 sm:$0xff]   ;;  %v17977_v54 = vld [vmem:[#allocation5 + $0x9cc] ss:$16 sps:$4 sm:$0xff]  }
 0x1be   : > { %4540 = vmatprep.mubr.bf16.mxu1 %v20371_v44  ;;  %v1565_v31 = vpop.f32.mrf.mxu0 }
 0x1bf   : > { %23198 = vst [vmem:[#allocation39_spill] sm:$0xff] %v20378_v38  ;;  %v1678_v37 = vpop.f32.mrf.mxu1  ;;  %v20389_v3 = vadd.f32 %v1676_v20, %v1564_v46  ;;  %v1566_v9 = vadd.f32 %v1565_v31, %v20275_v16  ;;  %4596 = vmatpush1.bf16.msra.mxu0 %v17957_v28  ;;  %v17980_v38 = vld [vmem:[#allocation5 + $0xbcc] ss:$16 sps:$4 sm:$0xff]   ;;  %v17975_v28 = vld [vmem:[#allocation5 + $0x9c8] ss:$16 sps:$4 sm:$0xff]  }
 0x1c0   : > { %4709 = vmatpush1.bf16.msra.mxu1 %v17960_v21  ;;  %v1567_v53 = vpop.f32.mrf.mxu0  ;;  %4597 = vmatprep.subr.bf16.mxu0 %v17971_v4 }
 0x1c1   : > { %23199 = vst [vmem:[#allocation40_spill] sm:$0xff] %v20389_v3  ;;  %v1680_v25 = vpop.f32.mrf.mxu1  ;;  %4710 = vmatprep.subr.bf16.mxu1 %v17974_v7  ;;  %v20392_v14 = vadd.f32 %v1678_v37, %v1566_v9  ;;  %v1568_v52 = vadd.f32 %v1567_v53, %v20281_v42  ;;  %v17978_v7 = vld [vmem:[#allocation5 + $0xbc8] ss:$16 sps:$4 sm:$0xff]   ;;  %v17989_v9 = vld [vmem:[#allocation5 + $0x9ac] ss:$16 sps:$4 sm:$0xff]  }
 0x1c2   : > { %v1571_v46 = vpop.f32.mrf.mxu0  ;;  %4428 = vmatmul.mubr.bf16.gmra.mxu0 %v20382_v15  ;;  %v17992_v53 = vld [vmem:[#allocation5 + $0xbac] ss:$16 sps:$4 sm:$0xff]  }
 0x1c3   : > { %23200 = vst [vmem:[#allocation41_spill] sm:$0xff] %v20392_v14  ;;  %v1684_v20 = vpop.f32.mrf.mxu1  ;;  %4541 = vmatmul.mubr.bf16.gmra.mxu1 %v20386_v2  ;;  %v20403_v21 = vadd.f32 %v1680_v25, %v1568_v52  ;;  %v1572_v4 = vadd.f32 %v1571_v46, %v20275_v16  ;;  %4598 = vmatpush2.bf16.msra.mxu0 %v17969_v11  ;;  %v20414_v52 = vld [vmem:[%s19821_s30 + $0x348] ss:$16 sps:$4 sm:$0xff]  }
 0x1c4   : > { %4711 = vmatpush2.bf16.msra.mxu1 %v17972_v40  ;;  %v1573_v31 = vpop.f32.mrf.mxu0  ;;  %4599 = vmatprep.subr.bf16.mxu0 %v17977_v54  ;;  %23204 = vst [vmem:[#allocation45_spill] sm:$0xff] %v20414_v52  ;;  %v17987_v25 = vld [vmem:[#allocation5 + $0x9a8] ss:$16 sps:$4 sm:$0xff]  }
 0x1c5   : > { %23201 = vst [vmem:[#allocation42_spill] sm:$0xff] %v20403_v21  ;;  %v1686_v37 = vpop.f32.mrf.mxu1  ;;  %4712 = vmatprep.subr.bf16.mxu1 %v17980_v38  ;;  %v20406_v14 = vadd.f32 %v1684_v20, %v1572_v4  ;;  %v1574_v3 = vadd.f32 %v1573_v31, %v20281_v42  ;;  %4437 = vmatprep.mubr.bf16.mxu0 %v20396_v10  ;;  %v17990_v46 = vld [vmem:[#allocation5 + $0xba8] ss:$16 sps:$4 sm:$0xff]   ;;  %v17995_v31 = vld [vmem:[#allocation5 + $0x98c] ss:$16 sps:$4 sm:$0xff]  }
 0x1c6   : > { %4550 = vmatprep.mubr.bf16.mxu1 %v20399_v48  ;;  %v1575_v11 = vpop.f32.mrf.mxu0 }
 0x1c7   : > { %23202 = vst [vmem:[#allocation43_spill] sm:$0xff] %v20406_v14  ;;  %v1688_v40 = vpop.f32.mrf.mxu1  ;;  %v20417_v38 = vadd.f32 %v1686_v37, %v1574_v3  ;;  %v1576_v54 = vadd.f32 %v1575_v11, %v20275_v16  ;;  %4600 = vmatpush2.bf16.msra.mxu0 %v17975_v28  ;;  %v17998_v14 = vld [vmem:[#allocation5 + $0xb8c] ss:$16 sps:$4 sm:$0xff]   ;;  %v17993_v28 = vld [vmem:[#allocation5 + $0x988] ss:$16 sps:$4 sm:$0xff]  }
 0x1c8   : > { %4713 = vmatpush2.bf16.msra.mxu1 %v17978_v7  ;;  %v1577_v20 = vpop.f32.mrf.mxu0  ;;  %4601 = vmatprep.subr.bf16.mxu0 %v17989_v9 }
 0x1c9   : > { %23205 = vst [vmem:[#allocation46_spill] sm:$0xff] %v20417_v38  ;;  %v1690_v4 = vpop.f32.mrf.mxu1  ;;  %4714 = vmatprep.subr.bf16.mxu1 %v17992_v53  ;;  %v20420_v21 = vadd.f32 %v1688_v40, %v1576_v54  ;;  %v1578_v55 = vadd.f32 %v1577_v20, %v20281_v42  ;;  %v17996_v53 = vld [vmem:[#allocation5 + $0xb88] ss:$16 sps:$4 sm:$0xff]   ;;  %v18007_v54 = vld [vmem:[#allocation5 + $0x96c] ss:$16 sps:$4 sm:$0xff]  }
 0x1ca   : > { %v1581_v3 = vpop.f32.mrf.mxu0  ;;  %4438 = vmatmul.mubr.bf16.gmra.mxu0 %v20410_v1  ;;  %v18010_v20 = vld [vmem:[#allocation5 + $0xb6c] ss:$16 sps:$4 sm:$0xff]  }
 0x1cb   : > { %23206 = vst [vmem:[#allocation47_spill] sm:$0xff] %v20420_v21  ;;  %v1694_v37 = vpop.f32.mrf.mxu1  ;;  %4551 = vmatmul.mubr.bf16.gmra.mxu1 %v20414_v52  ;;  %v20431_v7 = vadd.f32 %v1690_v4, %v1578_v55  ;;  %v1582_v9 = vadd.f32 %v1581_v3, %v20275_v16  ;;  %4602 = vmatpush2.bf16.msra.mxu0 %v17987_v25  ;;  %v20438_v52 = vld [vmem:[%s19821_s30 + $0x360] ss:$16 sps:$4 sm:$0xff]   ;;  %v20442_v55 = vld [vmem:[%s19821_s30 + $0x368] ss:$16 sps:$4 sm:$0xff]  }
 0x1cc   : > { %4715 = vmatpush2.bf16.msra.mxu1 %v17990_v46  ;;  %v1583_v11 = vpop.f32.mrf.mxu0  ;;  %4603 = vmatprep.subr.bf16.mxu0 %v17995_v31  ;;  %23211 = vst [vmem:[#allocation52_spill] sm:$0xff] %v20438_v52  ;;  %23212 = vst [vmem:[#allocation53_spill] sm:$0xff] %v20442_v55  ;;  %v18005_v4 = vld [vmem:[#allocation5 + $0x968] ss:$16 sps:$4 sm:$0xff]   ;;  %v20455_v1 = vld [vmem:[%s19821_s30 + $0x38c] ss:$16 sps:$4 sm:$0xff]  }
 0x1cd   : > { %23209 = vst [vmem:[#allocation50_spill] sm:$0xff] %v20431_v7  ;;  %v1696_v40 = vpop.f32.mrf.mxu1  ;;  %4716 = vmatprep.subr.bf16.mxu1 %v17998_v14  ;;  %v20434_v21 = vadd.f32 %v1694_v37, %v1582_v9  ;;  %v1584_v38 = vadd.f32 %v1583_v11, %v20281_v42  ;;  %4447 = vmatprep.mubr.bf16.mxu0 %v20424_v62  ;;  %v18008_v3 = vld [vmem:[#allocation5 + $0xb68] ss:$16 sps:$4 sm:$0xff]   ;;  %v18013_v11 = vld [vmem:[#allocation5 + $0x94c] ss:$16 sps:$4 sm:$0xff]   ;;  %23216 = vst [vmem:[#allocation57_spill] sm:$0xff] %v20455_v1 }
 0x1ce   : > { %4560 = vmatprep.mubr.bf16.mxu1 %v20427_v36  ;;  %v1585_v25 = vpop.f32.mrf.mxu0  ;;  %v20452_v62 = vld [vmem:[%s19821_s30 + $0x384] ss:$16 sps:$4 sm:$0xff]  }
 0x1cf   : > { %23210 = vst [vmem:[#allocation51_spill] sm:$0xff] %v20434_v21  ;;  %v1698_v46 = vpop.f32.mrf.mxu1  ;;  %v20445_v14 = vadd.f32 %v1696_v40, %v1584_v38  ;;  %v1586_v31 = vadd.f32 %v1585_v25, %v20275_v16  ;;  %4604 = vmatpush2.bf16.msra.mxu0 %v17993_v28  ;;  %v18016_v21 = vld [vmem:[#allocation5 + $0xb4c] ss:$16 sps:$4 sm:$0xff]   ;;  %23215 = vst [vmem:[#allocation56_spill] sm:$0xff] %v20452_v62  ;;  %v18011_v28 = vld [vmem:[#allocation5 + $0x948] ss:$16 sps:$4 sm:$0xff]  }
 0x1d0   : > { %4717 = vmatpush2.bf16.msra.mxu1 %v17996_v53  ;;  %v1587_v37 = vpop.f32.mrf.mxu0  ;;  %4605 = vmatprep.subr.bf16.mxu0 %v18007_v54 }
 0x1d1   : > { %23213 = vst [vmem:[#allocation54_spill] sm:$0xff] %v20445_v14  ;;  %v1700_v9 = vpop.f32.mrf.mxu1  ;;  %4718 = vmatprep.subr.bf16.mxu1 %v18010_v20  ;;  %v20448_v7 = vadd.f32 %v1698_v46, %v1586_v31  ;;  %v1588_v36 = vadd.f32 %v1587_v37, %v20281_v42  ;;  %v18014_v20 = vld [vmem:[#allocation5 + $0xb48] ss:$16 sps:$4 sm:$0xff]   ;;  %v18025_v31 = vld [vmem:[#allocation5 + $0x92c] ss:$16 sps:$4 sm:$0xff]  }
 0x1d2   : > { %v1591_v38 = vpop.f32.mrf.mxu0  ;;  %4448 = vmatmul.mubr.bf16.gmra.mxu0 %v20438_v52  ;;  %v18028_v37 = vld [vmem:[#allocation5 + $0xb2c] ss:$16 sps:$4 sm:$0xff]  }
 0x1d3   : > { %23214 = vst [vmem:[#allocation55_spill] sm:$0xff] %v20448_v7  ;;  %v1704_v40 = vpop.f32.mrf.mxu1  ;;  %4561 = vmatmul.mubr.bf16.gmra.mxu1 %v20442_v55  ;;  %v20459_v53 = vadd.f32 %v1700_v9, %v1588_v36  ;;  %v1592_v54 = vadd.f32 %v1591_v38, %v20275_v16  ;;  %4606 = vmatpush2.bf16.msra.mxu0 %v18005_v4  ;;  %v20466_v55 = vld [vmem:[%s19821_s30 + $0x380] ss:$16 sps:$4 sm:$0xff]   ;;  %v20470_v36 = vld [vmem:[%s19821_s30 + $0x388] ss:$16 sps:$4 sm:$0xff]  }
 0x1d4   : > { %4719 = vmatpush2.bf16.msra.mxu1 %v18008_v3  ;;  %v1593_v25 = vpop.f32.mrf.mxu0  ;;  %4607 = vmatprep.subr.bf16.mxu0 %v18013_v11  ;;  %v18023_v9 = vld [vmem:[#allocation5 + $0x928] ss:$16 sps:$4 sm:$0xff]  }
 0x1d5   : > { %23217 = vst [vmem:[#allocation58_spill] sm:$0xff] %v20459_v53  ;;  %v1706_v46 = vpop.f32.mrf.mxu1  ;;  %4720 = vmatprep.subr.bf16.mxu1 %v18016_v21  ;;  %v20462_v7 = vadd.f32 %v1704_v40, %v1592_v54  ;;  %v1594_v14 = vadd.f32 %v1593_v25, %v20281_v42  ;;  %4457 = vmatprep.mubr.bf16.mxu0 %v20452_v62  ;;  %v18026_v11 = vld [vmem:[#allocation5 + $0xb28] ss:$16 sps:$4 sm:$0xff]   ;;  %v18031_v25 = vld [vmem:[#allocation5 + $0x90c] ss:$16 sps:$4 sm:$0xff]  }
 0x1d6   : > { %4570 = vmatprep.mubr.bf16.mxu1 %v20455_v1  ;;  %v1595_v4 = vpop.f32.mrf.mxu0 }
 0x1d7   : > { %23218 = vst [vmem:[#allocation59_spill] sm:$0xff] %v20462_v7  ;;  %v1708_v3 = vpop.f32.mrf.mxu1  ;;  %v20473_v38 = vadd.f32 %v1706_v46, %v1594_v14  ;;  %v1596_v21 = vadd.f32 %v1595_v4, %v20275_v16  ;;  %4608 = vmatpush2.bf16.msra.mxu0 %v18011_v28  ;;  %v18034_v7 = vld [vmem:[#allocation5 + $0xb0c] ss:$16 sps:$4 sm:$0xff]   ;;  %v18029_v14 = vld [vmem:[#allocation5 + $0x908] ss:$16 sps:$4 sm:$0xff]  }
 0x1d8   : > { %4721 = vmatpush2.bf16.msra.mxu1 %v18014_v20  ;;  %v1597_v40 = vpop.f32.mrf.mxu0  ;;  %4609 = vmatprep.subr.bf16.mxu0 %v18025_v31  ;;  %v18032_v46 = vld [vmem:[#allocation5 + $0xb08] ss:$16 sps:$4 sm:$0xff]   ;;  %v18037_v4 = vld [vmem:[#allocation5 + $0xce4] ss:$16 sps:$4 sm:$0xff]  }
 0x1d9   : > { %v1710_v54 = vpop.f32.mrf.mxu1  ;;  %4722 = vmatprep.subr.bf16.mxu1 %v18028_v37  ;;  %v20476_v53 = vadd.f32 %v1708_v3, %v1596_v21  ;;  %v1598_v1 = vadd.f32 %v1597_v40, %v20281_v42  ;;  %v18040_v3 = vld [vmem:[#allocation5 + $0xee4] ss:$16 sps:$4 sm:$0xff]  }
 0x1da   : > { %v1601_v62 = vpop.f32.mrf.mxu0  ;;  %4458 = vmatmul.mubr.bf16.gmra.mxu0 %v20466_v55 }
 0x1db   : > { %v1714_v52 = vpop.f32.mrf.mxu1  ;;  %4571 = vmatmul.mubr.bf16.gmra.mxu1 %v20470_v36  ;;  %v20481_v28 = vadd.f32 %v1710_v54, %v1598_v1  ;;  %v1602_v20 = vadd.f32 %v1601_v62, %v20275_v16  ;;  %4610 = vmatpush2.bf16.msra.mxu0 %v18023_v9  ;;  %v18035_v62 = vld [vmem:[#allocation5 + $0xce0] ss:$16 sps:$4 sm:$0xff]  }
 0x1dc   : > { %4723 = vmatpush2.bf16.msra.mxu1 %v18026_v11  ;;  %v1603_v31 = vpop.f32.mrf.mxu0  ;;  %4611 = vmatprep.subr.bf16.mxu0 %v18031_v25 }
 0x1dd   : > { %23219 = vst [vmem:[#allocation60_spill] sm:$0xff] %v20481_v28  ;;  %v1716_v37 = vpop.f32.mrf.mxu1  ;;  %4724 = vmatprep.subr.bf16.mxu1 %v18034_v7  ;;  %v20484_v21 = vadd.f32 %v1714_v52, %v1602_v20  ;;  %v1604_v40 = vadd.f32 %v1603_v31, %v20281_v42  ;;  %4613 = vmatprep.mubr.bf16.mxu0 %v20248_v58  ;;  %v18038_v7 = vld [vmem:[#allocation5 + $0xee0] ss:$16 sps:$4 sm:$0xff]   ;;  %v18043_v52 = vld [vmem:[#allocation5 + $0xcc4] ss:$16 sps:$4 sm:$0xff]  }
 0x1de   : > { %4726 = vmatprep.mubr.bf16.mxu1 %v20251_v59  ;;  %v1605_v1 = vpop.f32.mrf.mxu0  ;;  %v18046_v20 = vld [vmem:[#allocation5 + $0xec4] ss:$16 sps:$4 sm:$0xff]  }
 0x1df   : > { %23220 = vst [vmem:[#allocation61_spill] sm:$0xff] %v20484_v21  ;;  %v1718_v54 = vpop.f32.mrf.mxu1  ;;  %v20489_v9 = vadd.f32 %v1716_v37, %v1604_v40  ;;  %v1606_v11 = vadd.f32 %v1605_v1, %v20275_v16  ;;  %4612 = vmatpush2.bf16.msra.mxu0 %v18029_v14  ;;  %v18041_v16 = vld [vmem:[#allocation5 + $0xcc0] ss:$16 sps:$4 sm:$0xff]   ;;  %v18049_v40 = vld [vmem:[#allocation5 + $0xca4] ss:$16 sps:$4 sm:$0xff]  }
 0x1e0   : > { %4725 = vmatpush2.bf16.msra.mxu1 %v18032_v46  ;;  %v1607_v25 = vpop.f32.mrf.mxu0  ;;  %5961 = vmatprep.subr.bf16.mxu0 %v18037_v4  ;;  %v18044_v37 = vld [vmem:[#allocation5 + $0xec0] ss:$16 sps:$4 sm:$0xff]   ;;  %v18052_v1 = vld [vmem:[#allocation5 + $0xea4] ss:$16 sps:$4 sm:$0xff]  }
 0x1e1   : > { %v1720_v28 = vpop.f32.mrf.mxu1  ;;  %6074 = vmatprep.subr.bf16.mxu1 %v18040_v3  ;;  %v20492_v31 = vadd.f32 %v1718_v54, %v1606_v11  ;;  %v1608_v58 = vadd.f32 %v1607_v25, %v20281_v42  ;;  %v18050_v11 = vld [vmem:[#allocation5 + $0xea0] ss:$16 sps:$4 sm:$0xff]  }
 0x1e2   : > { %v2783_v59 = vpop.f32.mrf.mxu0  ;;  %4614 = vmatmul.mubr.bf16.vlgmr.msra.gmra.mxu0 %v20263_v27 }
 0x1e3   : > { %v2896_v21 = vpop.f32.mrf.mxu1  ;;  %4727 = vmatmul.mubr.bf16.vlgmr.msra.gmra.mxu1 %v20267_v5  ;;  %v20497_v14 = vadd.f32 %v1720_v28, %v1608_v58  ;;  %5962 = vmatpush1.bf16.msra.mxu0 %v18035_v62  ;;  %v18047_v28 = vld [vmem:[#allocation5 + $0xca0] ss:$16 sps:$4 sm:$0xff]  }
 0x1e4   : > { %v2897_v46 = vadd.f32 %v2896_v21, %v2783_v59  ;;  %6075 = vmatpush1.bf16.msra.mxu1 %v18038_v7  ;;  %v2785_v4 = vpop.f32.mrf.mxu0  ;;  %5963 = vmatprep.subr.bf16.mxu0 %v18043_v52  ;;  %v18058_v52 = vld [vmem:[#allocation5 + $0xe84] ss:$16 sps:$4 sm:$0xff]  }
 0x1e5   : > { %v2898_v3 = vpop.f32.mrf.mxu1  ;;  %6076 = vmatprep.subr.bf16.mxu1 %v18046_v20  ;;  %4623 = vmatprep.mubr.bf16.mxu0 %v20284_v30 }
 0x1e6   : > { %v20500_v42 = vadd.f32 %v2897_v46, %v20140_v23  ;;  %v2899_v54 = vadd.f32 %v2898_v3, %v2785_v4  ;;  %4736 = vmatprep.mubr.bf16.mxu1 %v20287_v29  ;;  %v2787_v27 = vpop.f32.mrf.mxu0  ;;  %v18055_v23 = vld [vmem:[#allocation5 + $0xc84] ss:$16 sps:$4 sm:$0xff]   ;;  %v18056_v46 = vld [vmem:[#allocation5 + $0xe80] ss:$16 sps:$4 sm:$0xff]  }
 0x1e7   : > { %v2900_v5 = vpop.f32.mrf.mxu1  ;;  %5964 = vmatpush1.bf16.msra.mxu0 %v18041_v16  ;;  %v18064_v3 = vld [vmem:[#allocation5 + $0xe64] ss:$16 sps:$4 sm:$0xff]  }
 0x1e8   : > { %v20505_v21 = vadd.f32 %v2899_v54, %v20145_v34  ;;  %v2901_v62 = vadd.f32 %v2900_v5, %v2787_v27  ;;  %6077 = vmatpush1.bf16.msra.mxu1 %v18044_v37  ;;  %v2789_v7 = vpop.f32.mrf.mxu0  ;;  %5965 = vmatprep.subr.bf16.mxu0 %v18049_v40  ;;  %v18053_v34 = vld [vmem:[#allocation5 + $0xc80] ss:$16 sps:$4 sm:$0xff]  }
 0x1e9   : > { %v2902_v25 = vpop.f32.mrf.mxu1  ;;  %6078 = vmatprep.subr.bf16.mxu1 %v18052_v1  ;;  %v18059_v1 = vld [vmem:[#allocation5 + $0xc60] ss:$16 sps:$4 sm:$0xff]  }
 0x1ea   : > { %v20508_v30 = vadd.f32 %v2901_v62, %v20148_v60  ;;  %v2903_v29 = vadd.f32 %v2902_v25, %v2789_v7  ;;  %v2793_v20 = vpop.f32.mrf.mxu0  ;;  %4624 = vmatmul.mubr.bf16.gmra.mxu0 %v20298_v33  ;;  %v18061_v60 = vld [vmem:[#allocation5 + $0xc64] ss:$16 sps:$4 sm:$0xff]   ;;  %v18062_v5 = vld [vmem:[#allocation5 + $0xe60] ss:$16 sps:$4 sm:$0xff]  }
 0x1eb   : > { %v2906_v58 = vpop.f32.mrf.mxu1  ;;  %4737 = vmatmul.mubr.bf16.gmra.mxu1 %v20302_v47  ;;  %5966 = vmatpush1.bf16.msra.mxu0 %v18047_v28 }
 0x1ec   : > { %v20513_v59 = vadd.f32 %v2903_v29, %v20153_v50  ;;  %v2907_v16 = vadd.f32 %v2906_v58, %v2793_v20  ;;  %6079 = vmatpush1.bf16.msra.mxu1 %v18050_v11  ;;  %v2795_v37 = vpop.f32.mrf.mxu0  ;;  %5967 = vmatprep.subr.bf16.mxu0 %v18055_v23  ;;  %v18070_v11 = vld [vmem:[#allocation5 + $0xe44] ss:$16 sps:$4 sm:$0xff]   ;;  %v18068_v29 = vld [vmem:[#allocation5 + $0xe40] ss:$16 sps:$4 sm:$0xff]  }
 0x1ed   : > { %v2908_v4 = vpop.f32.mrf.mxu1  ;;  %6080 = vmatprep.subr.bf16.mxu1 %v18058_v52  ;;  %4633 = vmatprep.mubr.bf16.mxu0 %v20312_v43 }
 0x1ee   : > { %v20516_v40 = vadd.f32 %v2907_v16, %v20156_v39  ;;  %v2909_v33 = vadd.f32 %v2908_v4, %v2795_v37  ;;  %4746 = vmatprep.mubr.bf16.mxu1 %v20315_v0  ;;  %v2797_v50 = vpop.f32.mrf.mxu0  ;;  %v18067_v39 = vld [vmem:[#allocation5 + $0xc44] ss:$16 sps:$4 sm:$0xff]  }
 0x1ef   : > { %v2910_v47 = vpop.f32.mrf.mxu1  ;;  %5968 = vmatpush1.bf16.msra.mxu0 %v18053_v34  ;;  %v18076_v34 = vld [vmem:[#allocation5 + $0xe24] ss:$16 sps:$4 sm:$0xff]  }
 0x1f0   : > { %v20521_v54 = vadd.f32 %v2909_v33, %v20161_v57  ;;  %v2911_v27 = vadd.f32 %v2910_v47, %v2797_v50  ;;  %6081 = vmatpush1.bf16.msra.mxu1 %v18056_v46  ;;  %v2799_v28 = vpop.f32.mrf.mxu0  ;;  %5969 = vmatprep.subr.bf16.mxu0 %v18061_v60  ;;  %v18065_v57 = vld [vmem:[#allocation5 + $0xc40] ss:$16 sps:$4 sm:$0xff]   ;;  %v18082_v50 = vld [vmem:[#allocation5 + $0xe04] ss:$16 sps:$4 sm:$0xff]  }
 0x1f1   : > { %v2912_v62 = vpop.f32.mrf.mxu1  ;;  %6082 = vmatprep.subr.bf16.mxu1 %v18064_v3  ;;  %v18071_v46 = vld [vmem:[#allocation5 + $0xc20] ss:$16 sps:$4 sm:$0xff]  }
 0x1f2   : > { %v20524_v43 = vadd.f32 %v2911_v27, %v20164_v19  ;;  %v2913_v0 = vadd.f32 %v2912_v62, %v2799_v28  ;;  %v2803_v7 = vpop.f32.mrf.mxu0  ;;  %4634 = vmatmul.mubr.bf16.gmra.mxu0 %v20326_v18  ;;  %v18073_v19 = vld [vmem:[#allocation5 + $0xc24] ss:$16 sps:$4 sm:$0xff]   ;;  %v18074_v60 = vld [vmem:[#allocation5 + $0xe20] ss:$16 sps:$4 sm:$0xff]  }
 0x1f3   : > { %v2916_v25 = vpop.f32.mrf.mxu1  ;;  %4747 = vmatmul.mubr.bf16.gmra.mxu1 %v20330_v32  ;;  %5970 = vmatpush1.bf16.msra.mxu0 %v18059_v1  ;;  %v18080_v28 = vld [vmem:[#allocation5 + $0xe00] ss:$16 sps:$4 sm:$0xff]  }
 0x1f4   : > { %v20529_v23 = vadd.f32 %v2913_v0, %v20169_v26  ;;  %v2917_v52 = vadd.f32 %v2916_v25, %v2803_v7  ;;  %6083 = vmatpush1.bf16.msra.mxu1 %v18062_v5  ;;  %v2805_v20 = vpop.f32.mrf.mxu0  ;;  %5971 = vmatprep.subr.bf16.mxu0 %v18067_v39  ;;  %v18083_v7 = vld [vmem:[#allocation5 + $0xde0] ss:$16 sps:$4 sm:$0xff]  }
 0x1f5   : > { %v2918_v58 = vpop.f32.mrf.mxu1  ;;  %6084 = vmatprep.subr.bf16.mxu1 %v18070_v11  ;;  %4643 = vmatprep.mubr.bf16.mxu0 %v20340_v12  ;;  %v18088_v11 = vld [vmem:[#allocation5 + $0xfe4] ss:$16 sps:$4 sm:$0xff]  }
 0x1f6   : > { %v20532_v16 = vadd.f32 %v2917_v52, %v20172_v51  ;;  %v2919_v18 = vadd.f32 %v2918_v58, %v2805_v20  ;;  %4756 = vmatprep.mubr.bf16.mxu1 %v20343_v41  ;;  %v2807_v26 = vpop.f32.mrf.mxu0  ;;  %v18079_v51 = vld [vmem:[#allocation5 + $0xc04] ss:$16 sps:$4 sm:$0xff]   ;;  %v18086_v52 = vld [vmem:[#allocation5 + $0xfe0] ss:$16 sps:$4 sm:$0xff]  }
 0x1f7   : > { %v2920_v32 = vpop.f32.mrf.mxu1  ;;  %5972 = vmatpush1.bf16.msra.mxu0 %v18065_v57  ;;  %v18094_v58 = vld [vmem:[#allocation5 + $0xfc4] ss:$16 sps:$4 sm:$0xff]  }
 0x1f8   : > { %v20537_v37 = vadd.f32 %v2919_v18, %v20177_v45  ;;  %v2921_v4 = vadd.f32 %v2920_v32, %v2807_v26  ;;  %6085 = vmatpush1.bf16.msra.mxu1 %v18068_v29  ;;  %v2809_v3 = vpop.f32.mrf.mxu0  ;;  %5973 = vmatprep.subr.bf16.mxu0 %v18073_v19  ;;  %v18077_v45 = vld [vmem:[#allocation5 + $0xc00] ss:$16 sps:$4 sm:$0xff]  }
 0x1f9   : > { %v2922_v33 = vpop.f32.mrf.mxu1  ;;  %6086 = vmatprep.subr.bf16.mxu1 %v18076_v34  ;;  %v18092_v32 = vld [vmem:[#allocation5 + $0xfc0] ss:$16 sps:$4 sm:$0xff]  }
 0x1fa   : > { %v20540_v12 = vadd.f32 %v2921_v4, %v20180_v8  ;;  %v2923_v41 = vadd.f32 %v2922_v33, %v2809_v3  ;;  %v2813_v47 = vpop.f32.mrf.mxu0  ;;  %4644 = vmatmul.mubr.bf16.gmra.mxu0 %v20354_v22  ;;  %v18085_v8 = vld [vmem:[#allocation5 + $0xde4] ss:$16 sps:$4 sm:$0xff]   ;;  %v18095_v33 = vld [vmem:[#allocation5 + $0xda0] ss:$16 sps:$4 sm:$0xff]  }
 0x1fb   : > { %v2926_v1 = vpop.f32.mrf.mxu1  ;;  %4757 = vmatmul.mubr.bf16.gmra.mxu1 %v20358_v6  ;;  %5974 = vmatpush1.bf16.msra.mxu0 %v18071_v46 }
 0x1fc   : > { %v20545_v27 = vadd.f32 %v2923_v41, %v20185_v56  ;;  %v2927_v5 = vadd.f32 %v2926_v1, %v2813_v47  ;;  %6087 = vmatpush1.bf16.msra.mxu1 %v18074_v60  ;;  %v2815_v62 = vpop.f32.mrf.mxu0  ;;  %5975 = vmatprep.subr.bf16.mxu0 %v18079_v51  ;;  %v18100_v60 = vld [vmem:[#allocation5 + $0xfa4] ss:$16 sps:$4 sm:$0xff]   ;;  %v18098_v41 = vld [vmem:[#allocation5 + $0xfa0] ss:$16 sps:$4 sm:$0xff]  }
 0x1fd   : > { %v2928_v39 = vpop.f32.mrf.mxu1  ;;  %6088 = vmatprep.subr.bf16.mxu1 %v18082_v50  ;;  %4653 = vmatprep.mubr.bf16.mxu0 %v20368_v13 }
 0x1fe   : > { %v20548_v0 = vadd.f32 %v2927_v5, %v20188_v17  ;;  %v2929_v22 = vadd.f32 %v2928_v39, %v2815_v62  ;;  %4766 = vmatprep.mubr.bf16.mxu1 %v20371_v44  ;;  %v2817_v56 = vpop.f32.mrf.mxu0  ;;  %v18091_v17 = vld [vmem:[#allocation5 + $0xdc4] ss:$16 sps:$4 sm:$0xff]  }
 0x1ff   : > { %v2930_v6 = vpop.f32.mrf.mxu1  ;;  %5976 = vmatpush1.bf16.msra.mxu0 %v18077_v45  ;;  %v18106_v45 = vld [vmem:[#allocation5 + $0xf84] ss:$16 sps:$4 sm:$0xff]  }
 0x200   : > { %v20553_v25 = vadd.f32 %v2929_v22, %v20193_v63  ;;  %v2931_v57 = vadd.f32 %v2930_v6, %v2817_v56  ;;  %6089 = vmatpush1.bf16.msra.mxu1 %v18080_v28  ;;  %v2819_v29 = vpop.f32.mrf.mxu0  ;;  %5977 = vmatprep.subr.bf16.mxu0 %v18085_v8  ;;  %v18089_v63 = vld [vmem:[#allocation5 + $0xdc0] ss:$16 sps:$4 sm:$0xff]   ;;  %v23223_v5 = vld [vmem:[#allocation13_spill] sm:$0xff] }
 0x201   : > { %v2932_v20 = vpop.f32.mrf.mxu1  ;;  %6090 = vmatprep.subr.bf16.mxu1 %v18088_v11  ;;  %v23225_v39 = vld [vmem:[#allocation44_spill] sm:$0xff]  ;;  %v23227_v11 = vld [vmem:[#allocation14_spill] sm:$0xff] }
 0x202   : > { %v20556_v13 = vadd.f32 %v2931_v57, %v20196_v24  ;;  %v2933_v44 = vadd.f32 %v2932_v20, %v2819_v29  ;;  %v2823_v19 = vpop.f32.mrf.mxu0  ;;  %4654 = vmatmul.mubr.bf16.gmra.mxu0 %v20382_v15  ;;  %v18097_v24 = vld [vmem:[#allocation5 + $0xda4] ss:$16 sps:$4 sm:$0xff]   ;;  %v18101_v8 = vld [vmem:[#allocation5 + $0xd80] ss:$16 sps:$4 sm:$0xff]  }
 0x203   : > { %v2936_v34 = vpop.f32.mrf.mxu1  ;;  %4767 = vmatmul.mubr.bf16.gmra.mxu1 %v20386_v2  ;;  %5978 = vmatpush2.bf16.msra.mxu0 %v18083_v7  ;;  %v18104_v6 = vld [vmem:[#allocation5 + $0xf80] ss:$16 sps:$4 sm:$0xff]   ;;  %v18112_v29 = vld [vmem:[#allocation5 + $0xf64] ss:$16 sps:$4 sm:$0xff]  }
 0x204   : > { %v20561_v18 = vadd.f32 %v2933_v44, %v20201_v61  ;;  %v2937_v26 = vadd.f32 %v2936_v34, %v2823_v19  ;;  %6091 = vmatpush2.bf16.msra.mxu1 %v18086_v52  ;;  %v2825_v46 = vpop.f32.mrf.mxu0  ;;  %5979 = vmatprep.subr.bf16.mxu0 %v18091_v17  ;;  %v18109_v52 = vld [vmem:[#allocation5 + $0xd64] ss:$16 sps:$4 sm:$0xff]  }
 0x205   : > { %v2938_v4 = vpop.f32.mrf.mxu1  ;;  %6092 = vmatprep.subr.bf16.mxu1 %v18094_v58  ;;  %4663 = vmatprep.mubr.bf16.mxu0 %v20396_v10  ;;  %v23229_v20 = vld [vmem:[#allocation15_spill] sm:$0xff]  ;;  %v23231_v44 = vld [vmem:[#allocation48_spill] sm:$0xff]  ;;  %v23232_v19 = vld [vmem:[#allocation49_spill] sm:$0xff] }
 0x206   : > { %v20564_v3 = vadd.f32 %v2937_v26, %v20204_v35  ;;  %v2939_v15 = vadd.f32 %v2938_v4, %v2825_v46  ;;  %4776 = vmatprep.mubr.bf16.mxu1 %v20399_v48  ;;  %v2827_v61 = vpop.f32.mrf.mxu0  ;;  %v18103_v35 = vld [vmem:[#allocation5 + $0xd84] ss:$16 sps:$4 sm:$0xff]   ;;  %v18107_v26 = vld [vmem:[#allocation5 + $0xd60] ss:$16 sps:$4 sm:$0xff]  }
 0x207   : > { %v2940_v2 = vpop.f32.mrf.mxu1  ;;  %5980 = vmatpush2.bf16.msra.mxu0 %v18089_v63 }
 0x208   : > { %23221 = vst [vmem:[#allocation62_spill] sm:$0xff] %v20564_v3  ;;  %v20569_v51 = vadd.f32 %v2939_v15, %v20209_v49  ;;  %v2941_v50 = vadd.f32 %v2940_v2, %v2827_v61  ;;  %6093 = vmatpush2.bf16.msra.mxu1 %v18092_v32  ;;  %v2829_v47 = vpop.f32.mrf.mxu0  ;;  %5981 = vmatprep.subr.bf16.mxu0 %v18097_v24  ;;  %v23226_v49 = vld [vmem:[#allocation45_spill] sm:$0xff]  ;;  %v23233_v32 = vld [vmem:[#allocation16_spill] sm:$0xff] }
 0x209   : > { %v2942_v1 = vpop.f32.mrf.mxu1  ;;  %6094 = vmatprep.subr.bf16.mxu1 %v18100_v60  ;;  %v18110_v24 = vld [vmem:[#allocation5 + $0xf60] ss:$16 sps:$4 sm:$0xff]   ;;  %v18115_v61 = vld [vmem:[#allocation5 + $0xd44] ss:$16 sps:$4 sm:$0xff]   ;;  %v20778_v3 = vld [vmem:[%s19821_s30 + $0x23c] ss:$16 sps:$4 sm:$0xff]  }
 0x20a   : > { %23222 = vst [vmem:[#allocation63_spill] sm:$0xff] %v20569_v51  ;;  %v20572_v10 = vadd.f32 %v2941_v50, %v23223_v5  ;;  %v2943_v48 = vadd.f32 %v2942_v1, %v2829_v47  ;;  %v2833_v28 = vpop.f32.mrf.mxu0  ;;  %4664 = vmatmul.mubr.bf16.gmra.mxu0 %v23225_v39  ;;  %v18118_v2 = vld [vmem:[#allocation5 + $0xf44] ss:$16 sps:$4 sm:$0xff]   ;;  %v18113_v5 = vld [vmem:[#allocation5 + $0xd40] ss:$16 sps:$4 sm:$0xff]  }
 0x20b   : > { %v2946_v62 = vpop.f32.mrf.mxu1  ;;  %4777 = vmatmul.mubr.bf16.gmra.mxu1 %v23226_v49  ;;  %5982 = vmatpush2.bf16.msra.mxu0 %v18095_v33  ;;  %v23235_v33 = vld [vmem:[#allocation17_spill] sm:$0xff]  ;;  %v18116_v39 = vld [vmem:[#allocation5 + $0xf40] ss:$16 sps:$4 sm:$0xff]  }
 0x20c   : > { %23224 = vst [vmem:[#allocation13_spill] sm:$0xff] %v20572_v10  ;;  %v20577_v22 = vadd.f32 %v2943_v48, %v23227_v11  ;;  %v2947_v56 = vadd.f32 %v2946_v62, %v2833_v28  ;;  %6095 = vmatpush2.bf16.msra.mxu1 %v18098_v41  ;;  %v2835_v7 = vpop.f32.mrf.mxu0  ;;  %5983 = vmatprep.subr.bf16.mxu0 %v18103_v35  ;;  %v23237_v35 = vld [vmem:[#allocation52_spill] sm:$0xff]  ;;  %v23239_v48 = vld [vmem:[#allocation18_spill] sm:$0xff] }
 0x20d   : > { %v2948_v57 = vpop.f32.mrf.mxu1  ;;  %6096 = vmatprep.subr.bf16.mxu1 %v18106_v45  ;;  %4673 = vmatprep.mubr.bf16.mxu0 %v23231_v44  ;;  %v23238_v45 = vld [vmem:[#allocation53_spill] sm:$0xff]  ;;  %v18119_v44 = vld [vmem:[#allocation5 + $0xd20] ss:$16 sps:$4 sm:$0xff]  }
 0x20e   : > { %23228 = vst [vmem:[#allocation44_spill] sm:$0xff] %v20577_v22  ;;  %v20580_v17 = vadd.f32 %v2947_v56, %v23229_v20  ;;  %v2949_v58 = vadd.f32 %v2948_v57, %v2835_v7  ;;  %4786 = vmatprep.mubr.bf16.mxu1 %v23232_v19  ;;  %v2837_v34 = vpop.f32.mrf.mxu0  ;;  %v18121_v11 = vld [vmem:[#allocation5 + $0xd24] ss:$16 sps:$4 sm:$0xff]   ;;  %v20750_v10 = vld [vmem:[%s19821_s30 + $0x21c] ss:$16 sps:$4 sm:$0xff]  }
 0x20f   : > { %v2950_v63 = vpop.f32.mrf.mxu1  ;;  %5984 = vmatpush2.bf16.msra.mxu0 %v18101_v8  ;;  %v18124_v56 = vld [vmem:[#allocation5 + $0xf24] ss:$16 sps:$4 sm:$0xff]   ;;  %v20761_v51 = vld [vmem:[%s19821_s30 + $0x210] ss:$16 sps:$4 sm:$0xff]  }
 0x210   : > { %23230 = vst [vmem:[#allocation45_spill] sm:$0xff] %v20580_v17  ;;  %v20585_v46 = vadd.f32 %v2949_v58, %v23233_v32  ;;  %v2951_v4 = vadd.f32 %v2950_v63, %v2837_v34  ;;  %6097 = vmatpush2.bf16.msra.mxu1 %v18104_v6  ;;  %v2839_v60 = vpop.f32.mrf.mxu0  ;;  %5985 = vmatprep.subr.bf16.mxu0 %v18109_v52  ;;  %v23241_v6 = vld [vmem:[#allocation19_spill] sm:$0xff]  ;;  %v23243_v52 = vld [vmem:[#allocation56_spill] sm:$0xff] }
 0x211   : > { %v2952_v15 = vpop.f32.mrf.mxu1  ;;  %6098 = vmatprep.subr.bf16.mxu1 %v18112_v29  ;;  %v23244_v29 = vld [vmem:[#allocation57_spill] sm:$0xff]  ;;  %v23245_v19 = vld [vmem:[#allocation20_spill] sm:$0xff] }
 0x212   : > { %23234 = vst [vmem:[#allocation14_spill] sm:$0xff] %v20585_v46  ;;  %v20588_v50 = vadd.f32 %v2951_v4, %v23235_v33  ;;  %v2953_v41 = vadd.f32 %v2952_v15, %v2839_v60  ;;  %v2843_v47 = vpop.f32.mrf.mxu0  ;;  %4674 = vmatmul.mubr.bf16.gmra.mxu0 %v23237_v35  ;;  %v18130_v60 = vld [vmem:[#allocation5 + $0xf04] ss:$16 sps:$4 sm:$0xff]   ;;  %v18125_v35 = vld [vmem:[#allocation5 + $0xd00] ss:$16 sps:$4 sm:$0xff]  }
 0x213   : > { %v2956_v1 = vpop.f32.mrf.mxu1  ;;  %4787 = vmatmul.mubr.bf16.gmra.mxu1 %v23238_v45  ;;  %5986 = vmatpush2.bf16.msra.mxu0 %v18107_v26  ;;  %v18122_v26 = vld [vmem:[#allocation5 + $0xf20] ss:$16 sps:$4 sm:$0xff]   ;;  %v23247_v15 = vld [vmem:[#allocation21_spill] sm:$0xff] }
 0x214   : > { %23236 = vst [vmem:[#allocation15_spill] sm:$0xff] %v20588_v50  ;;  %v20593_v28 = vadd.f32 %v2953_v41, %v23239_v48  ;;  %v2957_v62 = vadd.f32 %v2956_v1, %v2843_v47  ;;  %6099 = vmatpush2.bf16.msra.mxu1 %v18110_v24  ;;  %v2845_v49 = vpop.f32.mrf.mxu0  ;;  %5987 = vmatprep.subr.bf16.mxu0 %v18115_v61  ;;  %v18127_v24 = vld [vmem:[#allocation5 + $0xd04] ss:$16 sps:$4 sm:$0xff]   ;;  %v20610_v41 = vld [vmem:[%s19821_s30 + $0x1c] ss:$16 sps:$4 sm:$0xff]  }
 0x215   : > { %v2958_v8 = vpop.f32.mrf.mxu1  ;;  %6100 = vmatprep.subr.bf16.mxu1 %v18118_v2  ;;  %4683 = vmatprep.mubr.bf16.mxu0 %v23243_v52  ;;  %v20607_v33 = vld [vmem:[%s19821_s30 + $0x14] ss:$16 sps:$4 sm:$0xff]   ;;  %v20722_v50 = vld [vmem:[%s19821_s30 + $0x1fc] ss:$16 sps:$4 sm:$0xff]   ;;  %v20733_v46 = vld [vmem:[%s19821_s30 + $0x1f0] ss:$16 sps:$4 sm:$0xff]  }
 0x216   : > { %23240 = vst [vmem:[#allocation48_spill] sm:$0xff] %v20593_v28  ;;  %v20596_v7 = vadd.f32 %v2957_v62, %v23241_v6  ;;  %v2959_v57 = vadd.f32 %v2958_v8, %v2845_v49  ;;  %4796 = vmatprep.mubr.bf16.mxu1 %v23244_v29  ;;  %v2847_v20 = vpop.f32.mrf.mxu0  ;;  %v23249_v45 = vld [vmem:[#allocation22_spill] sm:$0xff] }
 0x217   : > { %v2960_v58 = vpop.f32.mrf.mxu1  ;;  %5988 = vmatpush2.bf16.msra.mxu0 %v18113_v5  ;;  %v18128_v62 = vld [vmem:[#allocation5 + $0xf00] ss:$16 sps:$4 sm:$0xff]   ;;  %v18139_v8 = vld [vmem:[#allocation5 + $0xcec] ss:$16 sps:$4 sm:$0xff]   ;;  %v20719_v28 = vld [vmem:[%s19821_s30 + $0x1f4] ss:$16 sps:$4 sm:$0xff]  }
 0x218   : > { %23242 = vst [vmem:[#allocation49_spill] sm:$0xff] %v20596_v7  ;;  %v20601_v34 = vadd.f32 %v2959_v57, %v23245_v19  ;;  %v2961_v63 = vadd.f32 %v2960_v58, %v2847_v20  ;;  %6101 = vmatpush2.bf16.msra.mxu1 %v18116_v39  ;;  %v2849_v32 = vpop.f32.mrf.mxu0  ;;  %5989 = vmatprep.subr.bf16.mxu0 %v18121_v11  ;;  %v18142_v11 = vld [vmem:[#allocation5 + $0xeec] ss:$16 sps:$4 sm:$0xff]   ;;  %v20625_v57 = vld [vmem:[%s19821_s30 + $0x18] ss:$16 sps:$4 sm:$0xff]  }
 0x219   : > { %v2962_v4 = vpop.f32.mrf.mxu1  ;;  %6102 = vmatprep.subr.bf16.mxu1 %v18124_v56  ;;  %v23251_v56 = vld [vmem:[#allocation23_spill] sm:$0xff]  ;;  %v23253_v58 = vld [vmem:[#allocation24_spill] sm:$0xff] }
 0x21a   : > { %23246 = vst [vmem:[#allocation16_spill] sm:$0xff] %v20601_v34  ;;  %v20604_v61 = vadd.f32 %v2961_v63, %v23247_v15  ;;  %v2963_v2 = vadd.f32 %v2962_v4, %v2849_v32  ;;  %v2853_v47 = vpop.f32.mrf.mxu0  ;;  %4684 = vmatmul.mubr.bf16.gmra.mxu0 %v20466_v55  ;;  %v18137_v20 = vld [vmem:[#allocation5 + $0xce8] ss:$16 sps:$4 sm:$0xff]   ;;  %v18145_v4 = vld [vmem:[#allocation5 + $0xccc] ss:$16 sps:$4 sm:$0xff]  }
 0x21b   : > { %v2966_v1 = vpop.f32.mrf.mxu1  ;;  %4797 = vmatmul.mubr.bf16.gmra.mxu1 %v20470_v36  ;;  %5990 = vmatpush2.bf16.msra.mxu0 %v18119_v44  ;;  %v20621_v36 = vld [vmem:[%s19821_s30 + $0x10] ss:$16 sps:$4 sm:$0xff]   ;;  %v18140_v63 = vld [vmem:[#allocation5 + $0xee8] ss:$16 sps:$4 sm:$0xff]   ;;  %v20747_v22 = vld [vmem:[%s19821_s30 + $0x214] ss:$16 sps:$4 sm:$0xff]  }
 0x21c   : > { %23248 = vst [vmem:[#allocation17_spill] sm:$0xff] %v20604_v61  ;;  %v20615_v5 = vadd.f32 %v2963_v2, %v23249_v45  ;;  %v2967_v48 = vadd.f32 %v2966_v1, %v2853_v47  ;;  %6103 = vmatpush2.bf16.msra.mxu1 %v18122_v26  ;;  %v2855_v39 = vpop.f32.mrf.mxu0  ;;  %5991 = vmatprep.subr.bf16.mxu0 %v18127_v24  ;;  %v18148_v24 = vld [vmem:[#allocation5 + $0xecc] ss:$16 sps:$4 sm:$0xff]   ;;  %v20635_v47 = vld [vmem:[%s19821_s30 + $0x34] ss:$16 sps:$4 sm:$0xff]  }
 0x21d   : > { %v2968_v49 = vpop.f32.mrf.mxu1  ;;  %6104 = vmatprep.subr.bf16.mxu1 %v18130_v60  ;;  %5993 = vmatprep.mubr.bf16.mxu0 %v20607_v33  ;;  %v23255_v60 = vld [vmem:[#allocation25_spill] sm:$0xff]  ;;  %v20705_v34 = vld [vmem:[%s19821_s30 + $0x70] ss:$16 sps:$4 sm:$0xff]  }
 0x21e   : > { %23250 = vst [vmem:[#allocation52_spill] sm:$0xff] %v20615_v5  ;;  %v20618_v55 = vadd.f32 %v2967_v48, %v23251_v56  ;;  %v2969_v6 = vadd.f32 %v2968_v49, %v2855_v39  ;;  %6106 = vmatprep.mubr.bf16.mxu1 %v20610_v41  ;;  %v2857_v52 = vpop.f32.mrf.mxu0  ;;  %v20638_v1 = vld [vmem:[%s19821_s30 + $0x3c] ss:$16 sps:$4 sm:$0xff]   ;;  %v20691_v5 = vld [vmem:[%s19821_s30 + $0x74] ss:$16 sps:$4 sm:$0xff]  }
 0x21f   : > { %v2970_v29 = vpop.f32.mrf.mxu1  ;;  %5992 = vmatpush2.bf16.msra.mxu0 %v18125_v35  ;;  %v18143_v35 = vld [vmem:[#allocation5 + $0xcc8] ss:$16 sps:$4 sm:$0xff]   ;;  %v20694_v61 = vld [vmem:[%s19821_s30 + $0x7c] ss:$16 sps:$4 sm:$0xff]  }
 0x220   : > { %23252 = vst [vmem:[#allocation53_spill] sm:$0xff] %v20618_v55  ;;  %v20629_v44 = vadd.f32 %v2969_v6, %v23253_v58  ;;  %v2971_v19 = vadd.f32 %v2970_v29, %v2857_v52  ;;  %6105 = vmatpush2.bf16.msra.mxu1 %v18128_v62  ;;  %v2859_v26 = vpop.f32.mrf.mxu0  ;;  %6187 = vmatprep.subr.bf16.mxu0 %v18139_v8  ;;  %v23257_v62 = vld [vmem:[#allocation26_spill] sm:$0xff]  ;;  %v18146_v8 = vld [vmem:[#allocation5 + $0xec8] ss:$16 sps:$4 sm:$0xff]  }
 0x221   : > { %v2972_v32 = vpop.f32.mrf.mxu1  ;;  %6300 = vmatprep.subr.bf16.mxu1 %v18142_v11  ;;  %v18157_v6 = vld [vmem:[#allocation5 + $0xcac] ss:$16 sps:$4 sm:$0xff]  }
 0x222   : > { %23254 = vst [vmem:[#allocation18_spill] sm:$0xff] %v20629_v44  ;;  %v20632_v15 = vadd.f32 %v2971_v19, %v23255_v60  ;;  %v2973_v2 = vadd.f32 %v2972_v32, %v2859_v26  ;;  %v3009_v45 = vpop.f32.mrf.mxu0  ;;  %5994 = vmatmul.mubr.bf16.vlgmr.msra.gmra.mxu0 %v20621_v36  ;;  %v18160_v52 = vld [vmem:[#allocation5 + $0xeac] ss:$16 sps:$4 sm:$0xff]   ;;  %v20649_v26 = vld [vmem:[%s19821_s30 + $0x30] ss:$16 sps:$4 sm:$0xff]  }
 0x223   : > { %v3122_v48 = vpop.f32.mrf.mxu1  ;;  %6107 = vmatmul.mubr.bf16.vlgmr.msra.gmra.mxu1 %v20625_v57  ;;  %6188 = vmatpush1.bf16.msra.mxu0 %v18137_v20  ;;  %v23259_v29 = vld [vmem:[#allocation27_spill] sm:$0xff]  ;;  %v20677_v44 = vld [vmem:[%s19821_s30 + $0x50] ss:$16 sps:$4 sm:$0xff]  }
 0x224   : > { %23256 = vst [vmem:[#allocation19_spill] sm:$0xff] %v20632_v15  ;;  %v20643_v39 = vadd.f32 %v2973_v2, %v23257_v62  ;;  %v3123_v49 = vadd.f32 %v3122_v48, %v3009_v45  ;;  %6301 = vmatpush1.bf16.msra.mxu1 %v18140_v63  ;;  %v3011_v11 = vpop.f32.mrf.mxu0  ;;  %6189 = vmatprep.subr.bf16.mxu0 %v18145_v4  ;;  %v20653_v32 = vld [vmem:[%s19821_s30 + $0x38] ss:$16 sps:$4 sm:$0xff]   ;;  %v20666_v15 = vld [vmem:[%s19821_s30 + $0x5c] ss:$16 sps:$4 sm:$0xff]  }
 0x225   : > { %v3124_v56 = vpop.f32.mrf.mxu1  ;;  %6302 = vmatprep.subr.bf16.mxu1 %v18148_v24  ;;  %6003 = vmatprep.mubr.bf16.mxu0 %v20635_v47  ;;  %v18155_v4 = vld [vmem:[#allocation5 + $0xca8] ss:$16 sps:$4 sm:$0xff]   ;;  %v23261_v24 = vld [vmem:[#allocation28_spill] sm:$0xff] }
 0x226   : > { %23258 = vst [vmem:[#allocation56_spill] sm:$0xff] %v20643_v39  ;;  %v20646_v58 = vadd.f32 %v3123_v49, %v23259_v29  ;;  %v3125_v19 = vadd.f32 %v3124_v56, %v3011_v11  ;;  %6116 = vmatprep.mubr.bf16.mxu1 %v20638_v1  ;;  %v3013_v20 = vpop.f32.mrf.mxu0  ;;  %v18158_v45 = vld [vmem:[#allocation5 + $0xea8] ss:$16 sps:$4 sm:$0xff]   ;;  %v18163_v49 = vld [vmem:[#allocation5 + $0xc8c] ss:$16 sps:$4 sm:$0xff]  }
 0x227   : > { %v3126_v63 = vpop.f32.mrf.mxu1  ;;  %6190 = vmatpush1.bf16.msra.mxu0 %v18143_v35  ;;  %v18166_v11 = vld [vmem:[#allocation5 + $0xe8c] ss:$16 sps:$4 sm:$0xff]   ;;  %v20663_v39 = vld [vmem:[%s19821_s30 + $0x54] ss:$16 sps:$4 sm:$0xff]   ;;  %v18161_v35 = vld [vmem:[#allocation5 + $0xc88] ss:$16 sps:$4 sm:$0xff]  }
 0x228   : > { %23260 = vst [vmem:[#allocation57_spill] sm:$0xff] %v20646_v58  ;;  %v20657_v60 = vadd.f32 %v3125_v19, %v23261_v24  ;;  %v3127_v2 = vadd.f32 %v3126_v63, %v3013_v20  ;;  %6303 = vmatpush1.bf16.msra.mxu1 %v18146_v8  ;;  %v3015_v48 = vpop.f32.mrf.mxu0  ;;  %6191 = vmatprep.subr.bf16.mxu0 %v18157_v6  ;;  %v23263_v56 = vld [vmem:[#allocation29_spill] sm:$0xff]  ;;  %v23265_v8 = vld [vmem:[#allocation30_spill] sm:$0xff] }
 0x229   : > { %v3128_v62 = vpop.f32.mrf.mxu1  ;;  %6304 = vmatprep.subr.bf16.mxu1 %v18160_v52  ;;  %v18164_v20 = vld [vmem:[#allocation5 + $0xe88] ss:$16 sps:$4 sm:$0xff]  }
 0x22a   : > { %23262 = vst [vmem:[#allocation20_spill] sm:$0xff] %v20657_v60  ;;  %v20660_v29 = vadd.f32 %v3127_v2, %v23263_v56  ;;  %v3129_v58 = vadd.f32 %v3128_v62, %v3015_v48  ;;  %v3019_v19 = vpop.f32.mrf.mxu0  ;;  %6004 = vmatmul.mubr.bf16.gmra.mxu0 %v20649_v26  ;;  %v18175_v48 = vld [vmem:[#allocation5 + $0xc6c] ss:$16 sps:$4 sm:$0xff]  }
 0x22b   : > { %v3132_v24 = vpop.f32.mrf.mxu1  ;;  %6117 = vmatmul.mubr.bf16.gmra.mxu1 %v20653_v32  ;;  %6192 = vmatpush1.bf16.msra.mxu0 %v18155_v4  ;;  %v18178_v62 = vld [vmem:[#allocation5 + $0xe6c] ss:$16 sps:$4 sm:$0xff]  }
 0x22c   : > { %23264 = vst [vmem:[#allocation21_spill] sm:$0xff] %v20660_v29  ;;  %v20671_v6 = vadd.f32 %v3129_v58, %v23265_v8  ;;  %v3133_v52 = vadd.f32 %v3132_v24, %v3019_v19  ;;  %6305 = vmatpush1.bf16.msra.mxu1 %v18158_v45  ;;  %v3021_v63 = vpop.f32.mrf.mxu0  ;;  %6193 = vmatprep.subr.bf16.mxu0 %v18163_v49  ;;  %v23267_v56 = vld [vmem:[#allocation31_spill] sm:$0xff] }
 0x22d   : > { %v3134_v2 = vpop.f32.mrf.mxu1  ;;  %6306 = vmatprep.subr.bf16.mxu1 %v18166_v11  ;;  %6013 = vmatprep.mubr.bf16.mxu0 %v20663_v39  ;;  %v20681_v58 = vld [vmem:[%s19821_s30 + $0x58] ss:$16 sps:$4 sm:$0xff]   ;;  %v23269_v11 = vld [vmem:[#allocation32_spill] sm:$0xff] }
 0x22e   : > { %23266 = vst [vmem:[#allocation22_spill] sm:$0xff] %v20671_v6  ;;  %v20674_v29 = vadd.f32 %v3133_v52, %v23267_v56  ;;  %v3135_v60 = vadd.f32 %v3134_v2, %v3021_v63  ;;  %6126 = vmatprep.mubr.bf16.mxu1 %v20666_v15  ;;  %v3023_v4 = vpop.f32.mrf.mxu0  ;;  %v18173_v49 = vld [vmem:[#allocation5 + $0xc68] ss:$16 sps:$4 sm:$0xff]   ;;  %v18181_v2 = vld [vmem:[#allocation5 + $0xc4c] ss:$16 sps:$4 sm:$0xff]  }
 0x22f   : > { %v3136_v45 = vpop.f32.mrf.mxu1  ;;  %6194 = vmatpush1.bf16.msra.mxu0 %v18161_v35  ;;  %v18176_v8 = vld [vmem:[#allocation5 + $0xe68] ss:$16 sps:$4 sm:$0xff]   ;;  %v18184_v56 = vld [vmem:[#allocation5 + $0xe4c] ss:$16 sps:$4 sm:$0xff]  }
 0x230   : > { %23268 = vst [vmem:[#allocation23_spill] sm:$0xff] %v20674_v29  ;;  %v20685_v19 = vadd.f32 %v3135_v60, %v23269_v11  ;;  %v3137_v24 = vadd.f32 %v3136_v45, %v3023_v4  ;;  %6307 = vmatpush1.bf16.msra.mxu1 %v18164_v20  ;;  %v3025_v52 = vpop.f32.mrf.mxu0  ;;  %6195 = vmatprep.subr.bf16.mxu0 %v18175_v48  ;;  %v23271_v29 = vld [vmem:[#allocation33_spill] sm:$0xff]  ;;  %v23273_v20 = vld [vmem:[#allocation34_spill] sm:$0xff] }
 0x231   : > { %v3138_v63 = vpop.f32.mrf.mxu1  ;;  %6308 = vmatprep.subr.bf16.mxu1 %v18178_v62  ;;  %v18179_v35 = vld [vmem:[#allocation5 + $0xc48] ss:$16 sps:$4 sm:$0xff]   ;;  %23289 = vst [vmem:[#allocation34_spill] sm:$0xff] %v20747_v22 }
 0x232   : > { %23270 = vst [vmem:[#allocation24_spill] sm:$0xff] %v20685_v19  ;;  %v20688_v6 = vadd.f32 %v3137_v24, %v23271_v29  ;;  %v3139_v55 = vadd.f32 %v3138_v63, %v3025_v52  ;;  %v3029_v60 = vpop.f32.mrf.mxu0  ;;  %6014 = vmatmul.mubr.bf16.gmra.mxu0 %v20677_v44  ;;  %v18182_v29 = vld [vmem:[#allocation5 + $0xe48] ss:$16 sps:$4 sm:$0xff]   ;;  %v18193_v24 = vld [vmem:[#allocation5 + $0xc2c] ss:$16 sps:$4 sm:$0xff]  }
 0x233   : > { %v3142_v11 = vpop.f32.mrf.mxu1  ;;  %6127 = vmatmul.mubr.bf16.gmra.mxu1 %v20681_v58  ;;  %6196 = vmatpush1.bf16.msra.mxu0 %v18173_v49  ;;  %v18196_v52 = vld [vmem:[#allocation5 + $0xe2c] ss:$16 sps:$4 sm:$0xff]  }
 0x234   : > { %23272 = vst [vmem:[#allocation25_spill] sm:$0xff] %v20688_v6  ;;  %v20699_v48 = vadd.f32 %v3139_v55, %v23273_v20  ;;  %v3143_v62 = vadd.f32 %v3142_v11, %v3029_v60  ;;  %6309 = vmatpush1.bf16.msra.mxu1 %v18176_v8  ;;  %v3031_v4 = vpop.f32.mrf.mxu0  ;;  %6197 = vmatprep.subr.bf16.mxu0 %v18181_v2  ;;  %v23275_v63 = vld [vmem:[#allocation35_spill] sm:$0xff] }
 0x235   : > { %v3144_v45 = vpop.f32.mrf.mxu1  ;;  %6310 = vmatprep.subr.bf16.mxu1 %v18184_v56  ;;  %6023 = vmatprep.mubr.bf16.mxu0 %v20691_v5  ;;  %v20709_v55 = vld [vmem:[%s19821_s30 + $0x78] ss:$16 sps:$4 sm:$0xff]   ;;  %v23277_v56 = vld [vmem:[#allocation36_spill] sm:$0xff]  ;;  %23290 = vst [vmem:[#allocation35_spill] sm:$0xff] %v20750_v10 }
 0x236   : > { %23274 = vst [vmem:[#allocation26_spill] sm:$0xff] %v20699_v48  ;;  %v20702_v6 = vadd.f32 %v3143_v62, %v23275_v63  ;;  %v3145_v19 = vadd.f32 %v3144_v45, %v3031_v4  ;;  %6136 = vmatprep.mubr.bf16.mxu1 %v20694_v61  ;;  %v3033_v49 = vpop.f32.mrf.mxu0  ;;  %v18191_v2 = vld [vmem:[#allocation5 + $0xc28] ss:$16 sps:$4 sm:$0xff]   ;;  %v18199_v45 = vld [vmem:[#allocation5 + $0xc0c] ss:$16 sps:$4 sm:$0xff]  }
 0x237   : > { %v3146_v8 = vpop.f32.mrf.mxu1  ;;  %6198 = vmatpush1.bf16.msra.mxu0 %v18179_v35  ;;  %v18194_v20 = vld [vmem:[#allocation5 + $0xe28] ss:$16 sps:$4 sm:$0xff]   ;;  %v18202_v63 = vld [vmem:[#allocation5 + $0xe0c] ss:$16 sps:$4 sm:$0xff]  }
 0x238   : > { %23276 = vst [vmem:[#allocation27_spill] sm:$0xff] %v20702_v6  ;;  %v20713_v60 = vadd.f32 %v3145_v19, %v23277_v56  ;;  %v3147_v11 = vadd.f32 %v3146_v8, %v3033_v49  ;;  %6311 = vmatpush1.bf16.msra.mxu1 %v18182_v29  ;;  %v3035_v62 = vpop.f32.mrf.mxu0  ;;  %6199 = vmatprep.subr.bf16.mxu0 %v18193_v24  ;;  %v23279_v6 = vld [vmem:[#allocation37_spill] sm:$0xff]  ;;  %v23281_v29 = vld [vmem:[#allocation38_spill] sm:$0xff] }
 0x239   : > { %v3148_v4 = vpop.f32.mrf.mxu1  ;;  %6312 = vmatprep.subr.bf16.mxu1 %v18196_v52  ;;  %v18197_v35 = vld [vmem:[#allocation5 + $0xc08] ss:$16 sps:$4 sm:$0xff]   ;;  %23295 = vst [vmem:[#allocation38_spill] sm:$0xff] %v20761_v51 }
 0x23a   : > { %23278 = vst [vmem:[#allocation28_spill] sm:$0xff] %v20713_v60  ;;  %v20716_v48 = vadd.f32 %v3147_v11, %v23279_v6  ;;  %v3149_v7 = vadd.f32 %v3148_v4, %v3035_v62  ;;  %v3039_v19 = vpop.f32.mrf.mxu0  ;;  %6024 = vmatmul.mubr.bf16.gmra.mxu0 %v20705_v34  ;;  %v18200_v6 = vld [vmem:[#allocation5 + $0xe08] ss:$16 sps:$4 sm:$0xff]   ;;  %v18211_v11 = vld [vmem:[#allocation5 + $0xdec] ss:$16 sps:$4 sm:$0xff]  }
 0x23b   : > { %v3152_v56 = vpop.f32.mrf.mxu1  ;;  %6137 = vmatmul.mubr.bf16.gmra.mxu1 %v20709_v55  ;;  %6200 = vmatpush1.bf16.msra.mxu0 %v18191_v2  ;;  %v18214_v62 = vld [vmem:[#allocation5 + $0xfec] ss:$16 sps:$4 sm:$0xff]  }
 0x23c   : > { %23280 = vst [vmem:[#allocation29_spill] sm:$0xff] %v20716_v48  ;;  %v20727_v24 = vadd.f32 %v3149_v7, %v23281_v29  ;;  %v3153_v52 = vadd.f32 %v3152_v56, %v3039_v19  ;;  %6313 = vmatpush1.bf16.msra.mxu1 %v18194_v20  ;;  %v3041_v49 = vpop.f32.mrf.mxu0  ;;  %6201 = vmatprep.subr.bf16.mxu0 %v18199_v45  ;;  %v23283_v4 = vld [vmem:[#allocation39_spill] sm:$0xff] }
 0x23d   : > { %v3154_v8 = vpop.f32.mrf.mxu1  ;;  %6314 = vmatprep.subr.bf16.mxu1 %v18202_v63  ;;  %6033 = vmatprep.mubr.bf16.mxu0 %v20719_v28  ;;  %v20737_v7 = vld [vmem:[%s19821_s30 + $0x1f8] ss:$16 sps:$4 sm:$0xff]   ;;  %v23285_v63 = vld [vmem:[#allocation40_spill] sm:$0xff] }
 0x23e   : > { %23282 = vst [vmem:[#allocation30_spill] sm:$0xff] %v20727_v24  ;;  %v20730_v48 = vadd.f32 %v3153_v52, %v23283_v4  ;;  %v3155_v60 = vadd.f32 %v3154_v8, %v3041_v49  ;;  %6146 = vmatprep.mubr.bf16.mxu1 %v20722_v50  ;;  %v3043_v2 = vpop.f32.mrf.mxu0  ;;  %v18209_v45 = vld [vmem:[#allocation5 + $0xde8] ss:$16 sps:$4 sm:$0xff]   ;;  %v18217_v8 = vld [vmem:[#allocation5 + $0xdcc] ss:$16 sps:$4 sm:$0xff]  }
 0x23f   : > { %v3156_v20 = vpop.f32.mrf.mxu1  ;;  %6202 = vmatpush1.bf16.msra.mxu0 %v18197_v35  ;;  %v18212_v29 = vld [vmem:[#allocation5 + $0xfe8] ss:$16 sps:$4 sm:$0xff]   ;;  %v18220_v4 = vld [vmem:[#allocation5 + $0xfcc] ss:$16 sps:$4 sm:$0xff]  }
 0x240   : > { %23284 = vst [vmem:[#allocation31_spill] sm:$0xff] %v20730_v48  ;;  %v20741_v19 = vadd.f32 %v3155_v60, %v23285_v63  ;;  %v3157_v56 = vadd.f32 %v3156_v20, %v3043_v2  ;;  %6315 = vmatpush1.bf16.msra.mxu1 %v18200_v6  ;;  %v3045_v52 = vpop.f32.mrf.mxu0  ;;  %6203 = vmatprep.subr.bf16.mxu0 %v18211_v11  ;;  %v23287_v48 = vld [vmem:[#allocation41_spill] sm:$0xff]  ;;  %v23291_v6 = vld [vmem:[#allocation42_spill] sm:$0xff] }
 0x241   : > { %v3158_v49 = vpop.f32.mrf.mxu1  ;;  %6316 = vmatprep.subr.bf16.mxu1 %v18214_v62  ;;  %v18215_v35 = vld [vmem:[#allocation5 + $0xdc8] ss:$16 sps:$4 sm:$0xff]  }
 0x242   : > { %23286 = vst [vmem:[#allocation32_spill] sm:$0xff] %v20741_v19  ;;  %v20744_v24 = vadd.f32 %v3157_v56, %v23287_v48  ;;  %v3159_v17 = vadd.f32 %v3158_v49, %v3045_v52  ;;  %v3049_v60 = vpop.f32.mrf.mxu0  ;;  %6034 = vmatmul.mubr.bf16.gmra.mxu0 %v20733_v46  ;;  %v18218_v48 = vld [vmem:[#allocation5 + $0xfc8] ss:$16 sps:$4 sm:$0xff]   ;;  %v18229_v56 = vld [vmem:[#allocation5 + $0xdac] ss:$16 sps:$4 sm:$0xff]  }
 0x243   : > { %v3162_v63 = vpop.f32.mrf.mxu1  ;;  %6147 = vmatmul.mubr.bf16.gmra.mxu1 %v20737_v7  ;;  %6204 = vmatpush2.bf16.msra.mxu0 %v18209_v45  ;;  %v18232_v52 = vld [vmem:[#allocation5 + $0xfac] ss:$16 sps:$4 sm:$0xff]  }
 0x244   : > { %23288 = vst [vmem:[#allocation33_spill] sm:$0xff] %v20744_v24  ;;  %v20755_v11 = vadd.f32 %v3159_v17, %v23291_v6  ;;  %v3163_v62 = vadd.f32 %v3162_v63, %v3049_v60  ;;  %6317 = vmatpush2.bf16.msra.mxu1 %v18212_v29  ;;  %v3051_v2 = vpop.f32.mrf.mxu0  ;;  %6205 = vmatprep.subr.bf16.mxu0 %v18217_v8  ;;  %v23293_v49 = vld [vmem:[#allocation43_spill] sm:$0xff] }
 0x245   : > { %v3164_v20 = vpop.f32.mrf.mxu1  ;;  %6318 = vmatprep.subr.bf16.mxu1 %v18220_v4  ;;  %6043 = vmatprep.mubr.bf16.mxu0 %v20747_v22  ;;  %v20765_v17 = vld [vmem:[%s19821_s30 + $0x218] ss:$16 sps:$4 sm:$0xff]   ;;  %v23297_v4 = vld [vmem:[#allocation46_spill] sm:$0xff]  ;;  %23302 = vst [vmem:[#allocation43_spill] sm:$0xff] %v20778_v3 }
 0x246   : > { %23292 = vst [vmem:[#allocation36_spill] sm:$0xff] %v20755_v11  ;;  %v20758_v24 = vadd.f32 %v3163_v62, %v23293_v49  ;;  %v3165_v19 = vadd.f32 %v3164_v20, %v3051_v2  ;;  %23296 = vst [vmem:[#allocation39_spill] sm:$0xff] %v20765_v17  ;;  %6156 = vmatprep.mubr.bf16.mxu1 %v20750_v10  ;;  %v3053_v45 = vpop.f32.mrf.mxu0  ;;  %v18227_v8 = vld [vmem:[#allocation5 + $0xda8] ss:$16 sps:$4 sm:$0xff]   ;;  %v18235_v20 = vld [vmem:[#allocation5 + $0xd8c] ss:$16 sps:$4 sm:$0xff]  }
 0x247   : > { %v3166_v29 = vpop.f32.mrf.mxu1  ;;  %6206 = vmatpush2.bf16.msra.mxu0 %v18215_v35  ;;  %v18230_v6 = vld [vmem:[#allocation5 + $0xfa8] ss:$16 sps:$4 sm:$0xff]   ;;  %v18238_v49 = vld [vmem:[#allocation5 + $0xf8c] ss:$16 sps:$4 sm:$0xff]   ;;  %v20775_v22 = vld [vmem:[%s19821_s30 + $0x234] ss:$16 sps:$4 sm:$0xff]  }
 0x248   : > { %23294 = vst [vmem:[#allocation37_spill] sm:$0xff] %v20758_v24  ;;  %v20769_v60 = vadd.f32 %v3165_v19, %v23297_v4  ;;  %v3167_v63 = vadd.f32 %v3166_v29, %v3053_v45  ;;  %6319 = vmatpush2.bf16.msra.mxu1 %v18218_v48  ;;  %v3055_v62 = vpop.f32.mrf.mxu0  ;;  %6207 = vmatprep.subr.bf16.mxu0 %v18229_v56  ;;  %v23299_v24 = vld [vmem:[#allocation47_spill] sm:$0xff]  ;;  %23301 = vst [vmem:[#allocation42_spill] sm:$0xff] %v20775_v22  ;;  %v23303_v48 = vld [vmem:[#allocation50_spill] sm:$0xff] }
 0x249   : > { %v3168_v2 = vpop.f32.mrf.mxu1  ;;  %6320 = vmatprep.subr.bf16.mxu1 %v18232_v52  ;;  %v18233_v35 = vld [vmem:[#allocation5 + $0xd88] ss:$16 sps:$4 sm:$0xff]  }
 0x24a   : > { %23298 = vst [vmem:[#allocation40_spill] sm:$0xff] %v20769_v60  ;;  %v20772_v11 = vadd.f32 %v3167_v63, %v23299_v24  ;;  %v3169_v10 = vadd.f32 %v3168_v2, %v3055_v62  ;;  %v3059_v19 = vpop.f32.mrf.mxu0  ;;  %6044 = vmatmul.mubr.bf16.gmra.mxu0 %v20761_v51  ;;  %v18236_v24 = vld [vmem:[#allocation5 + $0xf88] ss:$16 sps:$4 sm:$0xff]   ;;  %v18247_v63 = vld [vmem:[#allocation5 + $0xd6c] ss:$16 sps:$4 sm:$0xff]  }
 0x24b   : > { %v3172_v4 = vpop.f32.mrf.mxu1  ;;  %6157 = vmatmul.mubr.bf16.gmra.mxu1 %v20765_v17  ;;  %6208 = vmatpush2.bf16.msra.mxu0 %v18227_v8  ;;  %v18250_v62 = vld [vmem:[#allocation5 + $0xf6c] ss:$16 sps:$4 sm:$0xff]   ;;  %v20789_v17 = vld [vmem:[%s19821_s30 + $0x230] ss:$16 sps:$4 sm:$0xff]  }
 0x24c   : > { %23300 = vst [vmem:[#allocation41_spill] sm:$0xff] %v20772_v11  ;;  %v20783_v56 = vadd.f32 %v3169_v10, %v23303_v48  ;;  %v3173_v52 = vadd.f32 %v3172_v4, %v3059_v19  ;;  %6321 = vmatpush2.bf16.msra.mxu1 %v18230_v6  ;;  %v3061_v45 = vpop.f32.mrf.mxu0  ;;  %6209 = vmatprep.subr.bf16.mxu0 %v18235_v20  ;;  %v23305_v2 = vld [vmem:[#allocation51_spill] sm:$0xff] }
 0x24d   : > { %v3174_v29 = vpop.f32.mrf.mxu1  ;;  %6322 = vmatprep.subr.bf16.mxu1 %v18238_v49  ;;  %6053 = vmatprep.mubr.bf16.mxu0 %v20775_v22  ;;  %v20793_v10 = vld [vmem:[%s19821_s30 + $0x238] ss:$16 sps:$4 sm:$0xff]   ;;  %v23308_v49 = vld [vmem:[#allocation54_spill] sm:$0xff] }
 0x24e   : > { %23304 = vst [vmem:[#allocation46_spill] sm:$0xff] %v20783_v56  ;;  %v20786_v11 = vadd.f32 %v3173_v52, %v23305_v2  ;;  %v3175_v60 = vadd.f32 %v3174_v29, %v3061_v45  ;;  %23307 = vst [vmem:[#allocation50_spill] sm:$0xff] %v20793_v10  ;;  %6166 = vmatprep.mubr.bf16.mxu1 %v20778_v3  ;;  %v3063_v8 = vpop.f32.mrf.mxu0  ;;  %v18245_v20 = vld [vmem:[#allocation5 + $0xd68] ss:$16 sps:$4 sm:$0xff]   ;;  %v18253_v29 = vld [vmem:[#allocation5 + $0xd4c] ss:$16 sps:$4 sm:$0xff]  }
 0x24f   : > { %v3176_v6 = vpop.f32.mrf.mxu1  ;;  %6210 = vmatpush2.bf16.msra.mxu0 %v18233_v35  ;;  %v18248_v48 = vld [vmem:[#allocation5 + $0xf68] ss:$16 sps:$4 sm:$0xff]   ;;  %v18256_v2 = vld [vmem:[#allocation5 + $0xf4c] ss:$16 sps:$4 sm:$0xff]   ;;  %v20803_v22 = vld [vmem:[%s19821_s30 + $0x254] ss:$16 sps:$4 sm:$0xff]  }
 0x250   : > { %23306 = vst [vmem:[#allocation47_spill] sm:$0xff] %v20786_v11  ;;  %v20797_v19 = vadd.f32 %v3175_v60, %v23308_v49  ;;  %v3177_v4 = vadd.f32 %v3176_v6, %v3063_v8  ;;  %6323 = vmatpush2.bf16.msra.mxu1 %v18236_v24  ;;  %v3065_v52 = vpop.f32.mrf.mxu0  ;;  %6211 = vmatprep.subr.bf16.mxu0 %v18247_v63  ;;  %v23310_v11 = vld [vmem:[#allocation55_spill] sm:$0xff]  ;;  %v23313_v24 = vld [vmem:[#allocation58_spill] sm:$0xff] }
 0x251   : > { %v3178_v45 = vpop.f32.mrf.mxu1  ;;  %6324 = vmatprep.subr.bf16.mxu1 %v18250_v62  ;;  %v20806_v51 = vld [vmem:[%s19821_s30 + $0x25c] ss:$16 sps:$4 sm:$0xff]   ;;  %v18251_v35 = vld [vmem:[#allocation5 + $0xd48] ss:$16 sps:$4 sm:$0xff]  }
 0x252   : > { %23309 = vst [vmem:[#allocation51_spill] sm:$0xff] %v20797_v19  ;;  %v20800_v56 = vadd.f32 %v3177_v4, %v23310_v11  ;;  %v3179_v3 = vadd.f32 %v3178_v45, %v3065_v52  ;;  %23312 = vst [vmem:[#allocation55_spill] sm:$0xff] %v20806_v51  ;;  %v3069_v60 = vpop.f32.mrf.mxu0  ;;  %6054 = vmatmul.mubr.bf16.gmra.mxu0 %v20789_v17  ;;  %v18254_v11 = vld [vmem:[#allocation5 + $0xf48] ss:$16 sps:$4 sm:$0xff]   ;;  %v18265_v4 = vld [vmem:[#allocation5 + $0xd2c] ss:$16 sps:$4 sm:$0xff]  }
 0x253   : > { %v3182_v49 = vpop.f32.mrf.mxu1  ;;  %6167 = vmatmul.mubr.bf16.gmra.mxu1 %v20793_v10  ;;  %6212 = vmatpush2.bf16.msra.mxu0 %v18245_v20  ;;  %v18268_v52 = vld [vmem:[#allocation5 + $0xf2c] ss:$16 sps:$4 sm:$0xff]   ;;  %v20817_v10 = vld [vmem:[%s19821_s30 + $0x250] ss:$16 sps:$4 sm:$0xff]  }
 0x254   : > { %23311 = vst [vmem:[#allocation54_spill] sm:$0xff] %v20800_v56  ;;  %v20811_v63 = vadd.f32 %v3179_v3, %v23313_v24  ;;  %v3183_v62 = vadd.f32 %v3182_v49, %v3069_v60  ;;  %6325 = vmatpush2.bf16.msra.mxu1 %v18248_v48  ;;  %v3071_v8 = vpop.f32.mrf.mxu0  ;;  %6213 = vmatprep.subr.bf16.mxu0 %v18253_v29  ;;  %v23315_v45 = vld [vmem:[#allocation59_spill] sm:$0xff] }
 0x255   : > { %v3184_v6 = vpop.f32.mrf.mxu1  ;;  %6326 = vmatprep.subr.bf16.mxu1 %v18256_v2  ;;  %6063 = vmatprep.mubr.bf16.mxu0 %v20803_v22  ;;  %v20821_v3 = vld [vmem:[%s19821_s30 + $0x258] ss:$16 sps:$4 sm:$0xff]  }
 0x256   : > { %23314 = vst [vmem:[#allocation58_spill] sm:$0xff] %v20811_v63  ;;  %v20814_v56 = vadd.f32 %v3183_v62, %v23315_v45  ;;  %v3185_v19 = vadd.f32 %v3184_v6, %v3071_v8  ;;  %6176 = vmatprep.mubr.bf16.mxu1 %v20806_v51  ;;  %v3073_v20 = vpop.f32.mrf.mxu0  ;;  %v18263_v60 = vld [vmem:[#allocation5 + $0xd28] ss:$16 sps:$4 sm:$0xff]   ;;  %v18271_v8 = vld [vmem:[#allocation5 + $0xd0c] ss:$16 sps:$4 sm:$0xff]  }
 0x257   : > { %v3186_v48 = vpop.f32.mrf.mxu1  ;;  %6214 = vmatpush2.bf16.msra.mxu0 %v18251_v35  ;;  %v18266_v49 = vld [vmem:[#allocation5 + $0xf28] ss:$16 sps:$4 sm:$0xff]   ;;  %v18274_v6 = vld [vmem:[#allocation5 + $0xf0c] ss:$16 sps:$4 sm:$0xff]  }
 0x258   : > { %23316 = vst [vmem:[#allocation59_spill] sm:$0xff] %v20814_v56  ;;  %v20825_v29 = vadd.f32 %v3185_v19, %v20473_v38  ;;  %v3187_v2 = vadd.f32 %v3186_v48, %v3073_v20  ;;  %6327 = vmatpush2.bf16.msra.mxu1 %v18254_v11  ;;  %v3075_v24 = vpop.f32.mrf.mxu0  ;;  %6215 = vmatprep.subr.bf16.mxu0 %v18265_v4  ;;  %v18269_v38 = vld [vmem:[#allocation5 + $0xd08] ss:$16 sps:$4 sm:$0xff]   ;;  %v23317_v19 = vld [vmem:[#allocation60_spill] sm:$0xff] }
 0x259   : > { %v3188_v62 = vpop.f32.mrf.mxu1  ;;  %6328 = vmatprep.subr.bf16.mxu1 %v18268_v52  ;;  %v18272_v4 = vld [vmem:[#allocation5 + $0xf08] ss:$16 sps:$4 sm:$0xff]   ;;  %v18280_v48 = vld [vmem:[#allocation5 + $0x12e4] ss:$16 sps:$4 sm:$0xff]  }
 0x25a   : > { %v20828_v45 = vadd.f32 %v3187_v2, %v20476_v53  ;;  %v3189_v56 = vadd.f32 %v3188_v62, %v3075_v24  ;;  %v3079_v63 = vpop.f32.mrf.mxu0  ;;  %6064 = vmatmul.mubr.bf16.gmra.mxu0 %v20817_v10  ;;  %v18277_v53 = vld [vmem:[#allocation5 + $0x10e4] ss:$16 sps:$4 sm:$0xff]  }
 0x25b   : > { %v3192_v51 = vpop.f32.mrf.mxu1  ;;  %6177 = vmatmul.mubr.bf16.gmra.mxu1 %v20821_v3  ;;  %6216 = vmatpush2.bf16.msra.mxu0 %v18263_v60  ;;  %v23318_v2 = vld [vmem:[#allocation61_spill] sm:$0xff] }
 0x25c   : > { %v20833_v35 = vadd.f32 %v3189_v56, %v23317_v19  ;;  %v3193_v11 = vadd.f32 %v3192_v51, %v3079_v63  ;;  %6329 = vmatpush2.bf16.msra.mxu1 %v18266_v49  ;;  %v3081_v52 = vpop.f32.mrf.mxu0  ;;  %6217 = vmatprep.subr.bf16.mxu0 %v18271_v8  ;;  %v18275_v51 = vld [vmem:[#allocation5 + $0x10e0] ss:$16 sps:$4 sm:$0xff]  }
 0x25d   : > { %v3194_v20 = vpop.f32.mrf.mxu1  ;;  %6330 = vmatprep.subr.bf16.mxu1 %v18274_v6  ;;  %6219 = vmatprep.mubr.bf16.mxu0 %v20607_v33  ;;  %v18278_v49 = vld [vmem:[#allocation5 + $0x12e0] ss:$16 sps:$4 sm:$0xff]  }
 0x25e   : > { %v20836_v24 = vadd.f32 %v3193_v11, %v23318_v2  ;;  %v3195_v62 = vadd.f32 %v3194_v20, %v3081_v52  ;;  %6332 = vmatprep.mubr.bf16.mxu1 %v20610_v41  ;;  %v3083_v56 = vpop.f32.mrf.mxu0  ;;  %v18283_v11 = vld [vmem:[#allocation5 + $0x10c4] ss:$16 sps:$4 sm:$0xff]  }
 0x25f   : > { %v3196_v19 = vpop.f32.mrf.mxu1  ;;  %6218 = vmatpush2.bf16.msra.mxu0 %v18269_v38  ;;  %v18286_v52 = vld [vmem:[#allocation5 + $0x12c4] ss:$16 sps:$4 sm:$0xff]  }
 0x260   : > { %v20841_v63 = vadd.f32 %v3195_v62, %v20489_v9  ;;  %v3197_v60 = vadd.f32 %v3196_v19, %v3083_v56  ;;  %6331 = vmatpush2.bf16.msra.mxu1 %v18272_v4  ;;  %v3085_v8 = vpop.f32.mrf.mxu0  ;;  %7567 = vmatprep.subr.bf16.mxu0 %v18277_v53  ;;  %v18281_v9 = vld [vmem:[#allocation5 + $0x10c0] ss:$16 sps:$4 sm:$0xff]   ;;  %v18292_v56 = vld [vmem:[#allocation5 + $0x12a4] ss:$16 sps:$4 sm:$0xff]  }
 0x261   : > { %v3198_v6 = vpop.f32.mrf.mxu1  ;;  %7680 = vmatprep.subr.bf16.mxu1 %v18280_v48  ;;  %v18284_v53 = vld [vmem:[#allocation5 + $0x12c0] ss:$16 sps:$4 sm:$0xff]  }
 0x262   : > { %v20844_v33 = vadd.f32 %v3197_v60, %v20492_v31  ;;  %v3199_v41 = vadd.f32 %v3198_v6, %v3085_v8  ;;  %v4389_v20 = vpop.f32.mrf.mxu0  ;;  %6220 = vmatmul.mubr.bf16.vlgmr.msra.gmra.mxu0 %v20621_v36  ;;  %v18289_v31 = vld [vmem:[#allocation5 + $0x10a4] ss:$16 sps:$4 sm:$0xff]   ;;  %v18287_v60 = vld [vmem:[#allocation5 + $0x10a0] ss:$16 sps:$4 sm:$0xff]  }
 0x263   : > { %v4502_v2 = vpop.f32.mrf.mxu1  ;;  %6333 = vmatmul.mubr.bf16.vlgmr.msra.gmra.mxu1 %v20625_v57  ;;  %7568 = vmatpush1.bf16.msra.mxu0 %v18275_v51  ;;  %v18290_v8 = vld [vmem:[#allocation5 + $0x12a0] ss:$16 sps:$4 sm:$0xff]  }
 0x264   : > { %v20849_v38 = vadd.f32 %v3199_v41, %v20497_v14  ;;  %v4503_v4 = vadd.f32 %v4502_v2, %v4389_v20  ;;  %7681 = vmatpush1.bf16.msra.mxu1 %v18278_v49  ;;  %v4391_v48 = vpop.f32.mrf.mxu0  ;;  %7569 = vmatprep.subr.bf16.mxu0 %v18283_v11 }
 0x265   : > { %v4504_v62 = vpop.f32.mrf.mxu1  ;;  %7682 = vmatprep.subr.bf16.mxu1 %v18286_v52  ;;  %6229 = vmatprep.mubr.bf16.mxu0 %v20635_v47  ;;  %v18298_v52 = vld [vmem:[#allocation5 + $0x1284] ss:$16 sps:$4 sm:$0xff]  }
 0x266   : > { %v20852_v19 = vadd.f32 %v4503_v4, %v20500_v42  ;;  %v4505_v36 = vadd.f32 %v4504_v62, %v4391_v48  ;;  %6342 = vmatprep.mubr.bf16.mxu1 %v20638_v1  ;;  %v4393_v14 = vpop.f32.mrf.mxu0  ;;  %v18295_v42 = vld [vmem:[#allocation5 + $0x1084] ss:$16 sps:$4 sm:$0xff]   ;;  %v18296_v4 = vld [vmem:[#allocation5 + $0x1280] ss:$16 sps:$4 sm:$0xff]  }
 0x267   : > { %v4506_v57 = vpop.f32.mrf.mxu1  ;;  %7570 = vmatpush1.bf16.msra.mxu0 %v18281_v9  ;;  %v18304_v62 = vld [vmem:[#allocation5 + $0x1264] ss:$16 sps:$4 sm:$0xff]  }
 0x268   : > { %v20857_v51 = vadd.f32 %v4505_v36, %v20505_v21  ;;  %v4507_v49 = vadd.f32 %v4506_v57, %v4393_v14  ;;  %7683 = vmatpush1.bf16.msra.mxu1 %v18284_v53  ;;  %v4395_v6 = vpop.f32.mrf.mxu0  ;;  %7571 = vmatprep.subr.bf16.mxu0 %v18289_v31  ;;  %v18293_v21 = vld [vmem:[#allocation5 + $0x1080] ss:$16 sps:$4 sm:$0xff]  }
 0x269   : > { %v4508_v11 = vpop.f32.mrf.mxu1  ;;  %7684 = vmatprep.subr.bf16.mxu1 %v18292_v56  ;;  %v18299_v56 = vld [vmem:[#allocation5 + $0x1060] ss:$16 sps:$4 sm:$0xff]  }
 0x26a   : > { %v20860_v47 = vadd.f32 %v4507_v49, %v20508_v30  ;;  %v4509_v1 = vadd.f32 %v4508_v11, %v4395_v6  ;;  %v4399_v41 = vpop.f32.mrf.mxu0  ;;  %6230 = vmatmul.mubr.bf16.gmra.mxu0 %v20649_v26  ;;  %v18301_v30 = vld [vmem:[#allocation5 + $0x1064] ss:$16 sps:$4 sm:$0xff]   ;;  %v18302_v57 = vld [vmem:[#allocation5 + $0x1260] ss:$16 sps:$4 sm:$0xff]  }
 0x26b   : > { %v4512_v20 = vpop.f32.mrf.mxu1  ;;  %6343 = vmatmul.mubr.bf16.gmra.mxu1 %v20653_v32  ;;  %7572 = vmatpush1.bf16.msra.mxu0 %v18287_v60 }
 0x26c   : > { %v20865_v2 = vadd.f32 %v4509_v1, %v20513_v59  ;;  %v4513_v9 = vadd.f32 %v4512_v20, %v4399_v41  ;;  %7685 = vmatpush1.bf16.msra.mxu1 %v18290_v8  ;;  %v4401_v53 = vpop.f32.mrf.mxu0  ;;  %7573 = vmatprep.subr.bf16.mxu0 %v18295_v42  ;;  %v18310_v8 = vld [vmem:[#allocation5 + $0x1244] ss:$16 sps:$4 sm:$0xff]   ;;  %v18308_v1 = vld [vmem:[#allocation5 + $0x1240] ss:$16 sps:$4 sm:$0xff]  }
 0x26d   : > { %v4514_v48 = vpop.f32.mrf.mxu1  ;;  %7686 = vmatprep.subr.bf16.mxu1 %v18298_v52  ;;  %6239 = vmatprep.mubr.bf16.mxu0 %v20663_v39 }
 0x26e   : > { %v20868_v31 = vadd.f32 %v4513_v9, %v20516_v40  ;;  %v4515_v26 = vadd.f32 %v4514_v48, %v4401_v53  ;;  %6352 = vmatprep.mubr.bf16.mxu1 %v20666_v15  ;;  %v4403_v59 = vpop.f32.mrf.mxu0  ;;  %v18307_v40 = vld [vmem:[#allocation5 + $0x1044] ss:$16 sps:$4 sm:$0xff]  }
 0x26f   : > { %v4516_v32 = vpop.f32.mrf.mxu1  ;;  %7574 = vmatpush1.bf16.msra.mxu0 %v18293_v21  ;;  %v18316_v21 = vld [vmem:[#allocation5 + $0x1224] ss:$16 sps:$4 sm:$0xff]  }
 0x270   : > { %v20873_v36 = vadd.f32 %v4515_v26, %v20521_v54  ;;  %v4517_v14 = vadd.f32 %v4516_v32, %v4403_v59  ;;  %7687 = vmatpush1.bf16.msra.mxu1 %v18296_v4  ;;  %v4405_v60 = vpop.f32.mrf.mxu0  ;;  %7575 = vmatprep.subr.bf16.mxu0 %v18301_v30  ;;  %v18305_v54 = vld [vmem:[#allocation5 + $0x1040] ss:$16 sps:$4 sm:$0xff]   ;;  %v18322_v59 = vld [vmem:[#allocation5 + $0x1204] ss:$16 sps:$4 sm:$0xff]  }
 0x271   : > { %v4518_v49 = vpop.f32.mrf.mxu1  ;;  %7688 = vmatprep.subr.bf16.mxu1 %v18304_v62  ;;  %v18311_v4 = vld [vmem:[#allocation5 + $0x1020] ss:$16 sps:$4 sm:$0xff]  }
 0x272   : > { %v20876_v39 = vadd.f32 %v4517_v14, %v20524_v43  ;;  %v4519_v15 = vadd.f32 %v4518_v49, %v4405_v60  ;;  %v4409_v6 = vpop.f32.mrf.mxu0  ;;  %6240 = vmatmul.mubr.bf16.gmra.mxu0 %v20677_v44  ;;  %v18313_v43 = vld [vmem:[#allocation5 + $0x1024] ss:$16 sps:$4 sm:$0xff]   ;;  %v18314_v30 = vld [vmem:[#allocation5 + $0x1220] ss:$16 sps:$4 sm:$0xff]  }
 0x273   : > { %v4522_v11 = vpop.f32.mrf.mxu1  ;;  %6353 = vmatmul.mubr.bf16.gmra.mxu1 %v20681_v58  ;;  %7576 = vmatpush1.bf16.msra.mxu0 %v18299_v56  ;;  %v18320_v60 = vld [vmem:[#allocation5 + $0x1200] ss:$16 sps:$4 sm:$0xff]  }
 0x274   : > { %v20881_v42 = vadd.f32 %v4519_v15, %v20529_v23  ;;  %v4523_v52 = vadd.f32 %v4522_v11, %v4409_v6  ;;  %7689 = vmatpush1.bf16.msra.mxu1 %v18302_v57  ;;  %v4411_v41 = vpop.f32.mrf.mxu0  ;;  %7577 = vmatprep.subr.bf16.mxu0 %v18307_v40  ;;  %v18323_v6 = vld [vmem:[#allocation5 + $0x11e0] ss:$16 sps:$4 sm:$0xff]  }
 0x275   : > { %v4524_v20 = vpop.f32.mrf.mxu1  ;;  %7690 = vmatprep.subr.bf16.mxu1 %v18310_v8  ;;  %6249 = vmatprep.mubr.bf16.mxu0 %v20691_v5  ;;  %v18328_v8 = vld [vmem:[#allocation5 + $0x13e4] ss:$16 sps:$4 sm:$0xff]  }
 0x276   : > { %v20884_v9 = vadd.f32 %v4523_v52, %v20532_v16  ;;  %v4525_v44 = vadd.f32 %v4524_v20, %v4411_v41  ;;  %6362 = vmatprep.mubr.bf16.mxu1 %v20694_v61  ;;  %v4413_v23 = vpop.f32.mrf.mxu0  ;;  %v18319_v16 = vld [vmem:[#allocation5 + $0x1004] ss:$16 sps:$4 sm:$0xff]   ;;  %v18326_v52 = vld [vmem:[#allocation5 + $0x13e0] ss:$16 sps:$4 sm:$0xff]  }
 0x277   : > { %v4526_v58 = vpop.f32.mrf.mxu1  ;;  %7578 = vmatpush1.bf16.msra.mxu0 %v18305_v54  ;;  %v18334_v20 = vld [vmem:[#allocation5 + $0x13c4] ss:$16 sps:$4 sm:$0xff]  }
 0x278   : > { %v20889_v53 = vadd.f32 %v4525_v44, %v20537_v37  ;;  %v4527_v48 = vadd.f32 %v4526_v58, %v4413_v23  ;;  %7691 = vmatpush1.bf16.msra.mxu1 %v18308_v1  ;;  %v4415_v62 = vpop.f32.mrf.mxu0  ;;  %7579 = vmatprep.subr.bf16.mxu0 %v18313_v43  ;;  %v18317_v37 = vld [vmem:[#allocation5 + $0x1000] ss:$16 sps:$4 sm:$0xff]  }
 0x279   : > { %v4528_v26 = vpop.f32.mrf.mxu1  ;;  %7692 = vmatprep.subr.bf16.mxu1 %v18316_v21  ;;  %v18332_v58 = vld [vmem:[#allocation5 + $0x13c0] ss:$16 sps:$4 sm:$0xff]  }
 0x27a   : > { %v20892_v5 = vadd.f32 %v4527_v48, %v20540_v12  ;;  %v4529_v61 = vadd.f32 %v4528_v26, %v4415_v62  ;;  %v4419_v32 = vpop.f32.mrf.mxu0  ;;  %6250 = vmatmul.mubr.bf16.gmra.mxu0 %v20705_v34  ;;  %v18325_v12 = vld [vmem:[#allocation5 + $0x11e4] ss:$16 sps:$4 sm:$0xff]  }
 0x27b   : > { %v4532_v56 = vpop.f32.mrf.mxu1  ;;  %6363 = vmatmul.mubr.bf16.gmra.mxu1 %v20709_v55  ;;  %7580 = vmatpush1.bf16.msra.mxu0 %v18311_v4  ;;  %v23320_v62 = vld [vmem:[#allocation62_spill] sm:$0xff] }
 0x27c   : > { %v20897_v14 = vadd.f32 %v4529_v61, %v20545_v27  ;;  %v4533_v57 = vadd.f32 %v4532_v56, %v4419_v32  ;;  %7693 = vmatpush1.bf16.msra.mxu1 %v18314_v30  ;;  %v4421_v49 = vpop.f32.mrf.mxu0  ;;  %7581 = vmatprep.subr.bf16.mxu0 %v18319_v16  ;;  %v18340_v30 = vld [vmem:[#allocation5 + $0x13a4] ss:$16 sps:$4 sm:$0xff]   ;;  %v18335_v61 = vld [vmem:[#allocation5 + $0x11a0] ss:$16 sps:$4 sm:$0xff]  }
 0x27d   : > { %v4534_v40 = vpop.f32.mrf.mxu1  ;;  %7694 = vmatprep.subr.bf16.mxu1 %v18322_v59  ;;  %6259 = vmatprep.mubr.bf16.mxu0 %v20719_v28  ;;  %v23322_v16 = vld [vmem:[#allocation34_spill] sm:$0xff]  ;;  %v23324_v32 = vld [vmem:[#allocation63_spill] sm:$0xff] }
 0x27e   : > { %v20900_v15 = vadd.f32 %v4533_v57, %v20548_v0  ;;  %v4535_v34 = vadd.f32 %v4534_v40, %v4421_v49  ;;  %6372 = vmatprep.mubr.bf16.mxu1 %v20722_v50  ;;  %v4423_v27 = vpop.f32.mrf.mxu0  ;;  %v18331_v0 = vld [vmem:[#allocation5 + $0x11c4] ss:$16 sps:$4 sm:$0xff]   ;;  %v18338_v57 = vld [vmem:[#allocation5 + $0x13a0] ss:$16 sps:$4 sm:$0xff]  }
 0x27f   : > { %v4536_v55 = vpop.f32.mrf.mxu1  ;;  %7582 = vmatpush1.bf16.msra.mxu0 %v18317_v37  ;;  %v18343_v40 = vld [vmem:[#allocation5 + $0x1184] ss:$16 sps:$4 sm:$0xff]  }
 0x280   : > { %v20905_v11 = vadd.f32 %v4535_v34, %v20553_v25  ;;  %v4537_v54 = vadd.f32 %v4536_v55, %v4423_v27  ;;  %7695 = vmatpush1.bf16.msra.mxu1 %v18320_v60  ;;  %v4425_v1 = vpop.f32.mrf.mxu0  ;;  %7583 = vmatprep.subr.bf16.mxu0 %v18325_v12  ;;  %v18329_v25 = vld [vmem:[#allocation5 + $0x11c0] ss:$16 sps:$4 sm:$0xff]   ;;  %v18346_v12 = vld [vmem:[#allocation5 + $0x1384] ss:$16 sps:$4 sm:$0xff]  }
 0x281   : > { %v4538_v41 = vpop.f32.mrf.mxu1  ;;  %7696 = vmatprep.subr.bf16.mxu1 %v18328_v8  ;;  %v23326_v8 = vld [vmem:[#allocation13_spill] sm:$0xff] }
 0x282   : > { %v20908_v28 = vadd.f32 %v4537_v54, %v20556_v13  ;;  %v4539_v50 = vadd.f32 %v4538_v41, %v4425_v1  ;;  %v4429_v43 = vpop.f32.mrf.mxu0  ;;  %6260 = vmatmul.mubr.bf16.gmra.mxu0 %v20733_v46  ;;  %v18337_v13 = vld [vmem:[#allocation5 + $0x11a4] ss:$16 sps:$4 sm:$0xff]   ;;  %v18341_v1 = vld [vmem:[#allocation5 + $0x1180] ss:$16 sps:$4 sm:$0xff]  }
 0x283   : > { %v4542_v21 = vpop.f32.mrf.mxu1  ;;  %6373 = vmatmul.mubr.bf16.gmra.mxu1 %v20737_v7  ;;  %7584 = vmatpush2.bf16.msra.mxu0 %v18323_v6  ;;  %v23323_v7 = vld [vmem:[#allocation35_spill] sm:$0xff]  ;;  %v23328_v54 = vld [vmem:[#allocation38_spill] sm:$0xff]  ;;  %v23330_v41 = vld [vmem:[#allocation44_spill] sm:$0xff] }
 0x284   : > { %v20913_v44 = vadd.f32 %v4539_v50, %v20561_v18  ;;  %v4543_v23 = vadd.f32 %v4542_v21, %v4429_v43  ;;  %7697 = vmatpush2.bf16.msra.mxu1 %v18326_v52  ;;  %v4431_v4 = vpop.f32.mrf.mxu0  ;;  %7585 = vmatprep.subr.bf16.mxu0 %v18331_v0  ;;  %v23329_v52 = vld [vmem:[#allocation39_spill] sm:$0xff]  ;;  %v18344_v50 = vld [vmem:[#allocation5 + $0x1380] ss:$16 sps:$4 sm:$0xff]  }
 0x285   : > { %v4544_v48 = vpop.f32.mrf.mxu1  ;;  %7698 = vmatprep.subr.bf16.mxu1 %v18334_v20  ;;  %6269 = vmatprep.mubr.bf16.mxu0 %v23322_v16  ;;  %v18347_v16 = vld [vmem:[#allocation5 + $0x1160] ss:$16 sps:$4 sm:$0xff]  }
 0x286   : > { %23319 = vst [vmem:[#allocation60_spill] sm:$0xff] %v20913_v44  ;;  %v20916_v26 = vadd.f32 %v4543_v23, %v23320_v62  ;;  %v4545_v46 = vadd.f32 %v4544_v48, %v4431_v4  ;;  %6382 = vmatprep.mubr.bf16.mxu1 %v23323_v7  ;;  %v4433_v18 = vpop.f32.mrf.mxu0  ;;  %v18352_v23 = vld [vmem:[#allocation5 + $0x1364] ss:$16 sps:$4 sm:$0xff]   ;;  %v21113_v44 = vld [vmem:[%s19821_s30 + $0x2b0] ss:$16 sps:$4 sm:$0xff]  }
 0x287   : > { %v4546_v59 = vpop.f32.mrf.mxu1  ;;  %7586 = vmatpush2.bf16.msra.mxu0 %v18329_v25  ;;  %v18349_v25 = vld [vmem:[#allocation5 + $0x1164] ss:$16 sps:$4 sm:$0xff]  }
 0x288   : > { %23321 = vst [vmem:[#allocation61_spill] sm:$0xff] %v20916_v26  ;;  %v20921_v56 = vadd.f32 %v4545_v46, %v23324_v32  ;;  %v4547_v37 = vadd.f32 %v4546_v59, %v4433_v18  ;;  %7699 = vmatpush2.bf16.msra.mxu1 %v18332_v58  ;;  %v4435_v60 = vpop.f32.mrf.mxu0  ;;  %7587 = vmatprep.subr.bf16.mxu0 %v18337_v13  ;;  %v23332_v58 = vld [vmem:[#allocation45_spill] sm:$0xff]  ;;  %v23334_v13 = vld [vmem:[#allocation42_spill] sm:$0xff] }
 0x289   : > { %v4548_v49 = vpop.f32.mrf.mxu1  ;;  %7700 = vmatprep.subr.bf16.mxu1 %v18340_v30  ;;  %v23335_v30 = vld [vmem:[#allocation43_spill] sm:$0xff]  ;;  %v23336_v7 = vld [vmem:[#allocation14_spill] sm:$0xff] }
 0x28a   : > { %23325 = vst [vmem:[#allocation62_spill] sm:$0xff] %v20921_v56  ;;  %v20924_v34 = vadd.f32 %v4547_v37, %v23326_v8  ;;  %v4549_v27 = vadd.f32 %v4548_v49, %v4435_v60  ;;  %v4439_v55 = vpop.f32.mrf.mxu0  ;;  %6270 = vmatmul.mubr.bf16.gmra.mxu0 %v23328_v54  ;;  %v18358_v60 = vld [vmem:[#allocation5 + $0x1344] ss:$16 sps:$4 sm:$0xff]   ;;  %v21102_v26 = vld [vmem:[%s19821_s30 + $0x2bc] ss:$16 sps:$4 sm:$0xff]  }
 0x28b   : > { %v4552_v6 = vpop.f32.mrf.mxu1  ;;  %6383 = vmatmul.mubr.bf16.gmra.mxu1 %v23329_v52  ;;  %7588 = vmatpush2.bf16.msra.mxu0 %v18335_v61  ;;  %v18350_v61 = vld [vmem:[#allocation5 + $0x1360] ss:$16 sps:$4 sm:$0xff]   ;;  %v23338_v49 = vld [vmem:[#allocation15_spill] sm:$0xff] }
 0x28c   : > { %23327 = vst [vmem:[#allocation34_spill] sm:$0xff] %v20924_v34  ;;  %v20929_v0 = vadd.f32 %v4549_v27, %v23330_v41  ;;  %v4553_v20 = vadd.f32 %v4552_v6, %v4439_v55  ;;  %7701 = vmatpush2.bf16.msra.mxu1 %v18338_v57  ;;  %v4441_v43 = vpop.f32.mrf.mxu0  ;;  %7589 = vmatprep.subr.bf16.mxu0 %v18343_v40  ;;  %v18355_v57 = vld [vmem:[#allocation5 + $0x1144] ss:$16 sps:$4 sm:$0xff]   ;;  %v18353_v6 = vld [vmem:[#allocation5 + $0x1140] ss:$16 sps:$4 sm:$0xff]  }
 0x28d   : > { %v4554_v21 = vpop.f32.mrf.mxu1  ;;  %7702 = vmatprep.subr.bf16.mxu1 %v18346_v12  ;;  %6279 = vmatprep.mubr.bf16.mxu0 %v23334_v13  ;;  %v23340_v55 = vld [vmem:[#allocation50_spill] sm:$0xff]  ;;  %v23341_v54 = vld [vmem:[#allocation48_spill] sm:$0xff] }
 0x28e   : > { %23331 = vst [vmem:[#allocation35_spill] sm:$0xff] %v20929_v0  ;;  %v20932_v4 = vadd.f32 %v4553_v20, %v23332_v58  ;;  %v4555_v48 = vadd.f32 %v4554_v21, %v4441_v43  ;;  %6392 = vmatprep.mubr.bf16.mxu1 %v23335_v30  ;;  %v4443_v62 = vpop.f32.mrf.mxu0  ;;  %v18356_v41 = vld [vmem:[#allocation5 + $0x1340] ss:$16 sps:$4 sm:$0xff]   ;;  %v18361_v43 = vld [vmem:[#allocation5 + $0x1124] ss:$16 sps:$4 sm:$0xff]  }
 0x28f   : > { %v4556_v46 = vpop.f32.mrf.mxu1  ;;  %7590 = vmatpush2.bf16.msra.mxu0 %v18341_v1  ;;  %v18364_v21 = vld [vmem:[#allocation5 + $0x1324] ss:$16 sps:$4 sm:$0xff]   ;;  %v18359_v30 = vld [vmem:[#allocation5 + $0x1120] ss:$16 sps:$4 sm:$0xff]  }
 0x290   : > { %23333 = vst [vmem:[#allocation63_spill] sm:$0xff] %v20932_v4  ;;  %v20937_v18 = vadd.f32 %v4555_v48, %v23336_v7  ;;  %v4557_v59 = vadd.f32 %v4556_v46, %v4443_v62  ;;  %7703 = vmatpush2.bf16.msra.mxu1 %v18344_v50  ;;  %v4445_v32 = vpop.f32.mrf.mxu0  ;;  %7591 = vmatprep.subr.bf16.mxu0 %v18349_v25  ;;  %v23343_v25 = vld [vmem:[#allocation49_spill] sm:$0xff]  ;;  %v23345_v58 = vld [vmem:[#allocation55_spill] sm:$0xff]  ;;  %v23346_v62 = vld [vmem:[#allocation16_spill] sm:$0xff] }
 0x291   : > { %v4558_v37 = vpop.f32.mrf.mxu1  ;;  %7704 = vmatprep.subr.bf16.mxu1 %v18352_v23  ;;  %v18362_v7 = vld [vmem:[#allocation5 + $0x1320] ss:$16 sps:$4 sm:$0xff]   ;;  %v21074_v4 = vld [vmem:[%s19821_s30 + $0x29c] ss:$16 sps:$4 sm:$0xff]   ;;  %v21099_v56 = vld [vmem:[%s19821_s30 + $0x2b4] ss:$16 sps:$4 sm:$0xff]  }
 0x292   : > { %23337 = vst [vmem:[#allocation13_spill] sm:$0xff] %v20937_v18  ;;  %v20940_v40 = vadd.f32 %v4557_v59, %v23338_v49  ;;  %v4559_v12 = vadd.f32 %v4558_v37, %v4445_v32  ;;  %v4449_v8 = vpop.f32.mrf.mxu0  ;;  %6280 = vmatmul.mubr.bf16.gmra.mxu0 %v20789_v17  ;;  %v18367_v32 = vld [vmem:[#allocation5 + $0x1104] ss:$16 sps:$4 sm:$0xff]   ;;  %v21085_v0 = vld [vmem:[%s19821_s30 + $0x290] ss:$16 sps:$4 sm:$0xff]  }
 0x293   : > { %v4562_v27 = vpop.f32.mrf.mxu1  ;;  %6393 = vmatmul.mubr.bf16.gmra.mxu1 %v23340_v55  ;;  %7592 = vmatpush2.bf16.msra.mxu0 %v18347_v16  ;;  %v23348_v37 = vld [vmem:[#allocation17_spill] sm:$0xff]  ;;  %v18365_v55 = vld [vmem:[#allocation5 + $0x1100] ss:$16 sps:$4 sm:$0xff]  }
 0x294   : > { %23339 = vst [vmem:[#allocation38_spill] sm:$0xff] %v20940_v40  ;;  %v20945_v52 = vadd.f32 %v4559_v12, %v23341_v54  ;;  %v4563_v1 = vadd.f32 %v4562_v27, %v4449_v8  ;;  %7705 = vmatpush2.bf16.msra.mxu1 %v18350_v61  ;;  %v4451_v20 = vpop.f32.mrf.mxu0  ;;  %7593 = vmatprep.subr.bf16.mxu0 %v18355_v57  ;;  %v20959_v49 = vld [vmem:[%s19821_s30 + $0xb4] ss:$16 sps:$4 sm:$0xff]   ;;  %v20962_v12 = vld [vmem:[%s19821_s30 + $0xbc] ss:$16 sps:$4 sm:$0xff]  }
 0x295   : > { %v4564_v50 = vpop.f32.mrf.mxu1  ;;  %7706 = vmatprep.subr.bf16.mxu1 %v18358_v60  ;;  %6289 = vmatprep.mubr.bf16.mxu0 %v20803_v22  ;;  %v18370_v22 = vld [vmem:[#allocation5 + $0x1304] ss:$16 sps:$4 sm:$0xff]  }
 0x296   : > { %23342 = vst [vmem:[#allocation39_spill] sm:$0xff] %v20945_v52  ;;  %v20948_v23 = vadd.f32 %v4563_v1, %v23343_v25  ;;  %v4565_v17 = vadd.f32 %v4564_v50, %v4451_v20  ;;  %6402 = vmatprep.mubr.bf16.mxu1 %v23345_v58  ;;  %v4453_v48 = vpop.f32.mrf.mxu0  ;;  %v23352_v25 = vld [vmem:[#allocation53_spill] sm:$0xff]  ;;  %v21057_v52 = vld [vmem:[%s19821_s30 + $0x110] ss:$16 sps:$4 sm:$0xff]  }
 0x297   : > { %v4566_v13 = vpop.f32.mrf.mxu1  ;;  %7594 = vmatpush2.bf16.msra.mxu0 %v18353_v6  ;;  %v23350_v6 = vld [vmem:[#allocation52_spill] sm:$0xff]  ;;  %v20977_v58 = vld [vmem:[%s19821_s30 + $0xb8] ss:$16 sps:$4 sm:$0xff]  }
 0x298   : > { %23344 = vst [vmem:[#allocation44_spill] sm:$0xff] %v20948_v23  ;;  %v20953_v46 = vadd.f32 %v4565_v17, %v23346_v62  ;;  %v4567_v16 = vadd.f32 %v4566_v13, %v4453_v48  ;;  %7707 = vmatpush2.bf16.msra.mxu1 %v18356_v41  ;;  %v4455_v59 = vpop.f32.mrf.mxu0  ;;  %7595 = vmatprep.subr.bf16.mxu0 %v18361_v43  ;;  %v18368_v41 = vld [vmem:[#allocation5 + $0x1300] ss:$16 sps:$4 sm:$0xff]   ;;  %v18379_v43 = vld [vmem:[#allocation5 + $0x10ec] ss:$16 sps:$4 sm:$0xff]  }
 0x299   : > { %v4568_v61 = vpop.f32.mrf.mxu1  ;;  %7708 = vmatprep.subr.bf16.mxu1 %v18364_v21  ;;  %v18382_v21 = vld [vmem:[#allocation5 + $0x12ec] ss:$16 sps:$4 sm:$0xff]   ;;  %v21071_v18 = vld [vmem:[%s19821_s30 + $0x294] ss:$16 sps:$4 sm:$0xff]  }
 0x29a   : > { %23347 = vst [vmem:[#allocation45_spill] sm:$0xff] %v20953_v46  ;;  %v20956_v57 = vadd.f32 %v4567_v16, %v23348_v37  ;;  %v4569_v60 = vadd.f32 %v4568_v61, %v4455_v59  ;;  %v4459_v8 = vpop.f32.mrf.mxu0  ;;  %6290 = vmatmul.mubr.bf16.gmra.mxu0 %v20817_v10  ;;  %v23354_v62 = vld [vmem:[#allocation18_spill] sm:$0xff]  ;;  %v18380_v59 = vld [vmem:[#allocation5 + $0x12e8] ss:$16 sps:$4 sm:$0xff]  }
 0x29b   : > { %v4572_v27 = vpop.f32.mrf.mxu1  ;;  %6403 = vmatmul.mubr.bf16.gmra.mxu1 %v20821_v3  ;;  %7596 = vmatpush2.bf16.msra.mxu0 %v18359_v30  ;;  %v20973_v3 = vld [vmem:[%s19821_s30 + $0xb0] ss:$16 sps:$4 sm:$0xff]   ;;  %v18377_v30 = vld [vmem:[#allocation5 + $0x10e8] ss:$16 sps:$4 sm:$0xff]   ;;  %v18388_v37 = vld [vmem:[#allocation5 + $0x12cc] ss:$16 sps:$4 sm:$0xff]  }
 0x29c   : > { %23349 = vst [vmem:[#allocation42_spill] sm:$0xff] %v20956_v57  ;;  %v20967_v54 = vadd.f32 %v4569_v60, %v23350_v6  ;;  %v4573_v1 = vadd.f32 %v4572_v27, %v4459_v8  ;;  %7709 = vmatpush2.bf16.msra.mxu1 %v18362_v7  ;;  %v4461_v20 = vpop.f32.mrf.mxu0  ;;  %7597 = vmatprep.subr.bf16.mxu0 %v18367_v32  ;;  %v23356_v60 = vld [vmem:[#allocation19_spill] sm:$0xff] }
 0x29d   : > { %v4574_v50 = vpop.f32.mrf.mxu1  ;;  %7710 = vmatprep.subr.bf16.mxu1 %v18370_v22  ;;  %7599 = vmatprep.mubr.bf16.mxu0 %v20959_v49  ;;  %v18385_v22 = vld [vmem:[#allocation5 + $0x10cc] ss:$16 sps:$4 sm:$0xff]   ;;  %v20987_v6 = vld [vmem:[%s19821_s30 + $0xd4] ss:$16 sps:$4 sm:$0xff]  }
 0x29e   : > { %23351 = vst [vmem:[#allocation43_spill] sm:$0xff] %v20967_v54  ;;  %v20970_v10 = vadd.f32 %v4573_v1, %v23352_v25  ;;  %v4575_v17 = vadd.f32 %v4574_v50, %v4461_v20  ;;  %7712 = vmatprep.mubr.bf16.mxu1 %v20962_v12  ;;  %v4463_v48 = vpop.f32.mrf.mxu0  ;;  %v20990_v1 = vld [vmem:[%s19821_s30 + $0xdc] ss:$16 sps:$4 sm:$0xff]   ;;  %v18386_v25 = vld [vmem:[#allocation5 + $0x12c8] ss:$16 sps:$4 sm:$0xff]  }
 0x29f   : > { %v4576_v13 = vpop.f32.mrf.mxu1  ;;  %7598 = vmatpush2.bf16.msra.mxu0 %v18365_v55  ;;  %v18383_v55 = vld [vmem:[#allocation5 + $0x10c8] ss:$16 sps:$4 sm:$0xff]   ;;  %v21029_v54 = vld [vmem:[%s19821_s30 + $0xf0] ss:$16 sps:$4 sm:$0xff]   ;;  %v21043_v46 = vld [vmem:[%s19821_s30 + $0x114] ss:$16 sps:$4 sm:$0xff]  }
 0x2a0   : > { %23353 = vst [vmem:[#allocation14_spill] sm:$0xff] %v20970_v10  ;;  %v20981_v16 = vadd.f32 %v4575_v17, %v23354_v62  ;;  %v4577_v7 = vadd.f32 %v4576_v13, %v4463_v48  ;;  %7711 = vmatpush2.bf16.msra.mxu1 %v18368_v41  ;;  %v4465_v61 = vpop.f32.mrf.mxu0  ;;  %7793 = vmatprep.subr.bf16.mxu0 %v18379_v43  ;;  %v23358_v41 = vld [vmem:[#allocation56_spill] sm:$0xff] }
 0x2a1   : > { %v4578_v32 = vpop.f32.mrf.mxu1  ;;  %7906 = vmatprep.subr.bf16.mxu1 %v18382_v21  ;;  %v18397_v13 = vld [vmem:[#allocation5 + $0x10ac] ss:$16 sps:$4 sm:$0xff]  }
 0x2a2   : > { %23355 = vst [vmem:[#allocation15_spill] sm:$0xff] %v20981_v16  ;;  %v20984_v8 = vadd.f32 %v4577_v7, %v23356_v60  ;;  %v4579_v27 = vadd.f32 %v4578_v32, %v4465_v61  ;;  %v4615_v20 = vpop.f32.mrf.mxu0  ;;  %7600 = vmatmul.mubr.bf16.vlgmr.msra.gmra.mxu0 %v20973_v3  ;;  %v18400_v62 = vld [vmem:[#allocation5 + $0x12ac] ss:$16 sps:$4 sm:$0xff]   ;;  %v21001_v60 = vld [vmem:[%s19821_s30 + $0xd0] ss:$16 sps:$4 sm:$0xff]  }
 0x2a3   : > { %v4728_v50 = vpop.f32.mrf.mxu1  ;;  %7713 = vmatmul.mubr.bf16.vlgmr.msra.gmra.mxu1 %v20977_v58  ;;  %7794 = vmatpush1.bf16.msra.mxu0 %v18377_v30  ;;  %v23360_v7 = vld [vmem:[#allocation57_spill] sm:$0xff] }
 0x2a4   : > { %23357 = vst [vmem:[#allocation50_spill] sm:$0xff] %v20984_v8  ;;  %v20995_v43 = vadd.f32 %v4579_v27, %v23358_v41  ;;  %v4729_v21 = vadd.f32 %v4728_v50, %v4615_v20  ;;  %7907 = vmatpush1.bf16.msra.mxu1 %v18380_v59  ;;  %v4617_v17 = vpop.f32.mrf.mxu0  ;;  %7795 = vmatprep.subr.bf16.mxu0 %v18385_v22  ;;  %v21005_v27 = vld [vmem:[%s19821_s30 + $0xd8] ss:$16 sps:$4 sm:$0xff]   ;;  %v21015_v16 = vld [vmem:[%s19821_s30 + $0xf4] ss:$16 sps:$4 sm:$0xff]  }
 0x2a5   : > { %v4730_v48 = vpop.f32.mrf.mxu1  ;;  %7908 = vmatprep.subr.bf16.mxu1 %v18388_v37  ;;  %7609 = vmatprep.mubr.bf16.mxu0 %v20987_v6  ;;  %v18395_v22 = vld [vmem:[#allocation5 + $0x10a8] ss:$16 sps:$4 sm:$0xff]   ;;  %v23362_v37 = vld [vmem:[#allocation20_spill] sm:$0xff] }
 0x2a6   : > { %23359 = vst [vmem:[#allocation48_spill] sm:$0xff] %v20995_v43  ;;  %v20998_v61 = vadd.f32 %v4729_v21, %v23360_v7  ;;  %v4731_v32 = vadd.f32 %v4730_v48, %v4617_v17  ;;  %7722 = vmatprep.mubr.bf16.mxu1 %v20990_v1  ;;  %v4619_v30 = vpop.f32.mrf.mxu0  ;;  %v18398_v41 = vld [vmem:[#allocation5 + $0x12a8] ss:$16 sps:$4 sm:$0xff]   ;;  %v18403_v48 = vld [vmem:[#allocation5 + $0x108c] ss:$16 sps:$4 sm:$0xff]  }
 0x2a7   : > { %v4732_v59 = vpop.f32.mrf.mxu1  ;;  %7796 = vmatpush1.bf16.msra.mxu0 %v18383_v55  ;;  %v18406_v7 = vld [vmem:[#allocation5 + $0x128c] ss:$16 sps:$4 sm:$0xff]   ;;  %v18401_v55 = vld [vmem:[#allocation5 + $0x1088] ss:$16 sps:$4 sm:$0xff]  }
 0x2a8   : > { %23361 = vst [vmem:[#allocation49_spill] sm:$0xff] %v20998_v61  ;;  %v21009_v20 = vadd.f32 %v4731_v32, %v23362_v37  ;;  %v4733_v50 = vadd.f32 %v4732_v59, %v4619_v30  ;;  %7909 = vmatpush1.bf16.msra.mxu1 %v18386_v25  ;;  %v4621_v21 = vpop.f32.mrf.mxu0  ;;  %7797 = vmatprep.subr.bf16.mxu0 %v18397_v13  ;;  %v23364_v61 = vld [vmem:[#allocation21_spill] sm:$0xff]  ;;  %v23366_v25 = vld [vmem:[#allocation22_spill] sm:$0xff] }
 0x2a9   : > { %v4734_v17 = vpop.f32.mrf.mxu1  ;;  %7910 = vmatprep.subr.bf16.mxu1 %v18400_v62  ;;  %v21018_v10 = vld [vmem:[%s19821_s30 + $0xfc] ss:$16 sps:$4 sm:$0xff]  }
 0x2aa   : > { %23363 = vst [vmem:[#allocation55_spill] sm:$0xff] %v21009_v20  ;;  %v21012_v43 = vadd.f32 %v4733_v50, %v23364_v61  ;;  %v4735_v8 = vadd.f32 %v4734_v17, %v4621_v21  ;;  %v4625_v32 = vpop.f32.mrf.mxu0  ;;  %7610 = vmatmul.mubr.bf16.gmra.mxu0 %v21001_v60  ;;  %v18404_v61 = vld [vmem:[#allocation5 + $0x1288] ss:$16 sps:$4 sm:$0xff]   ;;  %v18415_v50 = vld [vmem:[#allocation5 + $0x106c] ss:$16 sps:$4 sm:$0xff]  }
 0x2ab   : > { %v4738_v37 = vpop.f32.mrf.mxu1  ;;  %7723 = vmatmul.mubr.bf16.gmra.mxu1 %v21005_v27  ;;  %7798 = vmatpush1.bf16.msra.mxu0 %v18395_v22  ;;  %v18418_v21 = vld [vmem:[#allocation5 + $0x126c] ss:$16 sps:$4 sm:$0xff]  }
 0x2ac   : > { %23365 = vst [vmem:[#allocation16_spill] sm:$0xff] %v21012_v43  ;;  %v21023_v13 = vadd.f32 %v4735_v8, %v23366_v25  ;;  %v4739_v62 = vadd.f32 %v4738_v37, %v4625_v32  ;;  %7911 = vmatpush1.bf16.msra.mxu1 %v18398_v41  ;;  %v4627_v30 = vpop.f32.mrf.mxu0  ;;  %7799 = vmatprep.subr.bf16.mxu0 %v18403_v48  ;;  %v23368_v17 = vld [vmem:[#allocation23_spill] sm:$0xff] }
 0x2ad   : > { %v4740_v59 = vpop.f32.mrf.mxu1  ;;  %7912 = vmatprep.subr.bf16.mxu1 %v18406_v7  ;;  %7619 = vmatprep.mubr.bf16.mxu0 %v21015_v16  ;;  %v21033_v8 = vld [vmem:[%s19821_s30 + $0xf8] ss:$16 sps:$4 sm:$0xff]   ;;  %v23370_v7 = vld [vmem:[#allocation24_spill] sm:$0xff] }
 0x2ae   : > { %23367 = vst [vmem:[#allocation17_spill] sm:$0xff] %v21023_v13  ;;  %v21026_v43 = vadd.f32 %v4739_v62, %v23368_v17  ;;  %v4741_v20 = vadd.f32 %v4740_v59, %v4627_v30  ;;  %7732 = vmatprep.mubr.bf16.mxu1 %v21018_v10  ;;  %v4629_v22 = vpop.f32.mrf.mxu0  ;;  %v18413_v48 = vld [vmem:[#allocation5 + $0x1068] ss:$16 sps:$4 sm:$0xff]   ;;  %v18421_v59 = vld [vmem:[#allocation5 + $0x104c] ss:$16 sps:$4 sm:$0xff]  }
 0x2af   : > { %v4742_v41 = vpop.f32.mrf.mxu1  ;;  %7800 = vmatpush1.bf16.msra.mxu0 %v18401_v55  ;;  %v18416_v25 = vld [vmem:[#allocation5 + $0x1268] ss:$16 sps:$4 sm:$0xff]   ;;  %v18424_v17 = vld [vmem:[#allocation5 + $0x124c] ss:$16 sps:$4 sm:$0xff]  }
 0x2b0   : > { %23369 = vst [vmem:[#allocation52_spill] sm:$0xff] %v21026_v43  ;;  %v21037_v32 = vadd.f32 %v4741_v20, %v23370_v7  ;;  %v4743_v37 = vadd.f32 %v4742_v41, %v4629_v22  ;;  %7913 = vmatpush1.bf16.msra.mxu1 %v18404_v61  ;;  %v4631_v62 = vpop.f32.mrf.mxu0  ;;  %7801 = vmatprep.subr.bf16.mxu0 %v18415_v50  ;;  %v23372_v43 = vld [vmem:[#allocation25_spill] sm:$0xff]  ;;  %v23374_v61 = vld [vmem:[#allocation26_spill] sm:$0xff] }
 0x2b1   : > { %v4744_v30 = vpop.f32.mrf.mxu1  ;;  %7914 = vmatprep.subr.bf16.mxu1 %v18418_v21  ;;  %v21046_v23 = vld [vmem:[%s19821_s30 + $0x11c] ss:$16 sps:$4 sm:$0xff]   ;;  %v18419_v55 = vld [vmem:[#allocation5 + $0x1048] ss:$16 sps:$4 sm:$0xff]   ;;  %23391 = vst [vmem:[#allocation26_spill] sm:$0xff] %v21099_v56 }
 0x2b2   : > { %23371 = vst [vmem:[#allocation53_spill] sm:$0xff] %v21037_v32  ;;  %v21040_v13 = vadd.f32 %v4743_v37, %v23372_v43  ;;  %v4745_v57 = vadd.f32 %v4744_v30, %v4631_v62  ;;  %v4635_v20 = vpop.f32.mrf.mxu0  ;;  %7620 = vmatmul.mubr.bf16.gmra.mxu0 %v21029_v54  ;;  %v18422_v43 = vld [vmem:[#allocation5 + $0x1248] ss:$16 sps:$4 sm:$0xff]   ;;  %v18433_v37 = vld [vmem:[#allocation5 + $0x102c] ss:$16 sps:$4 sm:$0xff]  }
 0x2b3   : > { %v4748_v7 = vpop.f32.mrf.mxu1  ;;  %7733 = vmatmul.mubr.bf16.gmra.mxu1 %v21033_v8  ;;  %7802 = vmatpush1.bf16.msra.mxu0 %v18413_v48  ;;  %v18436_v62 = vld [vmem:[#allocation5 + $0x122c] ss:$16 sps:$4 sm:$0xff]  }
 0x2b4   : > { %23373 = vst [vmem:[#allocation18_spill] sm:$0xff] %v21040_v13  ;;  %v21051_v50 = vadd.f32 %v4745_v57, %v23374_v61  ;;  %v4749_v21 = vadd.f32 %v4748_v7, %v4635_v20  ;;  %7915 = vmatpush1.bf16.msra.mxu1 %v18416_v25  ;;  %v4637_v22 = vpop.f32.mrf.mxu0  ;;  %7803 = vmatprep.subr.bf16.mxu0 %v18421_v59  ;;  %v23376_v30 = vld [vmem:[#allocation27_spill] sm:$0xff] }
 0x2b5   : > { %v4750_v41 = vpop.f32.mrf.mxu1  ;;  %7916 = vmatprep.subr.bf16.mxu1 %v18424_v17  ;;  %7629 = vmatprep.mubr.bf16.mxu0 %v21043_v46  ;;  %v21061_v57 = vld [vmem:[%s19821_s30 + $0x118] ss:$16 sps:$4 sm:$0xff]   ;;  %v23378_v17 = vld [vmem:[#allocation28_spill] sm:$0xff]  ;;  %23392 = vst [vmem:[#allocation27_spill] sm:$0xff] %v21102_v26 }
 0x2b6   : > { %23375 = vst [vmem:[#allocation19_spill] sm:$0xff] %v21051_v50  ;;  %v21054_v13 = vadd.f32 %v4749_v21, %v23376_v30  ;;  %v4751_v32 = vadd.f32 %v4750_v41, %v4637_v22  ;;  %7742 = vmatprep.mubr.bf16.mxu1 %v21046_v23  ;;  %v4639_v48 = vpop.f32.mrf.mxu0  ;;  %v18431_v59 = vld [vmem:[#allocation5 + $0x1028] ss:$16 sps:$4 sm:$0xff]   ;;  %v18439_v41 = vld [vmem:[#allocation5 + $0x100c] ss:$16 sps:$4 sm:$0xff]  }
 0x2b7   : > { %v4752_v25 = vpop.f32.mrf.mxu1  ;;  %7804 = vmatpush1.bf16.msra.mxu0 %v18419_v55  ;;  %v18434_v61 = vld [vmem:[#allocation5 + $0x1228] ss:$16 sps:$4 sm:$0xff]   ;;  %v18442_v30 = vld [vmem:[#allocation5 + $0x120c] ss:$16 sps:$4 sm:$0xff]  }
 0x2b8   : > { %23377 = vst [vmem:[#allocation56_spill] sm:$0xff] %v21054_v13  ;;  %v21065_v20 = vadd.f32 %v4751_v32, %v23378_v17  ;;  %v4753_v7 = vadd.f32 %v4752_v25, %v4639_v48  ;;  %7917 = vmatpush1.bf16.msra.mxu1 %v18422_v43  ;;  %v4641_v21 = vpop.f32.mrf.mxu0  ;;  %7805 = vmatprep.subr.bf16.mxu0 %v18433_v37  ;;  %v23380_v13 = vld [vmem:[#allocation29_spill] sm:$0xff]  ;;  %v23382_v43 = vld [vmem:[#allocation30_spill] sm:$0xff] }
 0x2b9   : > { %v4754_v22 = vpop.f32.mrf.mxu1  ;;  %7918 = vmatprep.subr.bf16.mxu1 %v18436_v62  ;;  %v18437_v55 = vld [vmem:[#allocation5 + $0x1008] ss:$16 sps:$4 sm:$0xff]   ;;  %23397 = vst [vmem:[#allocation30_spill] sm:$0xff] %v21113_v44 }
 0x2ba   : > { %23379 = vst [vmem:[#allocation57_spill] sm:$0xff] %v21065_v20  ;;  %v21068_v50 = vadd.f32 %v4753_v7, %v23380_v13  ;;  %v4755_v40 = vadd.f32 %v4754_v22, %v4641_v21  ;;  %v4645_v32 = vpop.f32.mrf.mxu0  ;;  %7630 = vmatmul.mubr.bf16.gmra.mxu0 %v21057_v52  ;;  %v18440_v13 = vld [vmem:[#allocation5 + $0x1208] ss:$16 sps:$4 sm:$0xff]   ;;  %v18451_v7 = vld [vmem:[#allocation5 + $0x11ec] ss:$16 sps:$4 sm:$0xff]  }
 0x2bb   : > { %v4758_v17 = vpop.f32.mrf.mxu1  ;;  %7743 = vmatmul.mubr.bf16.gmra.mxu1 %v21061_v57  ;;  %7806 = vmatpush1.bf16.msra.mxu0 %v18431_v59  ;;  %v18454_v21 = vld [vmem:[#allocation5 + $0x13ec] ss:$16 sps:$4 sm:$0xff]  }
 0x2bc   : > { %23381 = vst [vmem:[#allocation20_spill] sm:$0xff] %v21068_v50  ;;  %v21079_v37 = vadd.f32 %v4755_v40, %v23382_v43  ;;  %v4759_v62 = vadd.f32 %v4758_v17, %v4645_v32  ;;  %7919 = vmatpush1.bf16.msra.mxu1 %v18434_v61  ;;  %v4647_v48 = vpop.f32.mrf.mxu0  ;;  %7807 = vmatprep.subr.bf16.mxu0 %v18439_v41  ;;  %v23384_v22 = vld [vmem:[#allocation31_spill] sm:$0xff] }
 0x2bd   : > { %v4760_v25 = vpop.f32.mrf.mxu1  ;;  %7920 = vmatprep.subr.bf16.mxu1 %v18442_v30  ;;  %7639 = vmatprep.mubr.bf16.mxu0 %v21071_v18  ;;  %v21089_v40 = vld [vmem:[%s19821_s30 + $0x298] ss:$16 sps:$4 sm:$0xff]   ;;  %v23387_v30 = vld [vmem:[#allocation32_spill] sm:$0xff] }
 0x2be   : > { %23383 = vst [vmem:[#allocation21_spill] sm:$0xff] %v21079_v37  ;;  %v21082_v50 = vadd.f32 %v4759_v62, %v23384_v22  ;;  %v4761_v20 = vadd.f32 %v4760_v25, %v4647_v48  ;;  %23386 = vst [vmem:[#allocation23_spill] sm:$0xff] %v21089_v40  ;;  %7752 = vmatprep.mubr.bf16.mxu1 %v21074_v4  ;;  %v4649_v59 = vpop.f32.mrf.mxu0  ;;  %v18449_v41 = vld [vmem:[#allocation5 + $0x11e8] ss:$16 sps:$4 sm:$0xff]   ;;  %v18457_v25 = vld [vmem:[#allocation5 + $0x11cc] ss:$16 sps:$4 sm:$0xff]  }
 0x2bf   : > { %v4762_v61 = vpop.f32.mrf.mxu1  ;;  %7808 = vmatpush1.bf16.msra.mxu0 %v18437_v55  ;;  %v18452_v43 = vld [vmem:[#allocation5 + $0x13e8] ss:$16 sps:$4 sm:$0xff]   ;;  %v18460_v22 = vld [vmem:[#allocation5 + $0x13cc] ss:$16 sps:$4 sm:$0xff]  }
 0x2c0   : > { %23385 = vst [vmem:[#allocation22_spill] sm:$0xff] %v21082_v50  ;;  %v21093_v32 = vadd.f32 %v4761_v20, %v23387_v30  ;;  %v4763_v17 = vadd.f32 %v4762_v61, %v4649_v59  ;;  %7921 = vmatpush1.bf16.msra.mxu1 %v18440_v13  ;;  %v4651_v62 = vpop.f32.mrf.mxu0  ;;  %7809 = vmatprep.subr.bf16.mxu0 %v18451_v7  ;;  %v23389_v50 = vld [vmem:[#allocation33_spill] sm:$0xff]  ;;  %v23393_v13 = vld [vmem:[#allocation36_spill] sm:$0xff] }
 0x2c1   : > { %v4764_v48 = vpop.f32.mrf.mxu1  ;;  %7922 = vmatprep.subr.bf16.mxu1 %v18454_v21  ;;  %v18455_v55 = vld [vmem:[#allocation5 + $0x11c8] ss:$16 sps:$4 sm:$0xff]  }
 0x2c2   : > { %23388 = vst [vmem:[#allocation24_spill] sm:$0xff] %v21093_v32  ;;  %v21096_v37 = vadd.f32 %v4763_v17, %v23389_v50  ;;  %v4765_v34 = vadd.f32 %v4764_v48, %v4651_v62  ;;  %v4655_v20 = vpop.f32.mrf.mxu0  ;;  %7640 = vmatmul.mubr.bf16.gmra.mxu0 %v21085_v0  ;;  %v18458_v50 = vld [vmem:[#allocation5 + $0x13c8] ss:$16 sps:$4 sm:$0xff]   ;;  %v18469_v17 = vld [vmem:[#allocation5 + $0x11ac] ss:$16 sps:$4 sm:$0xff]  }
 0x2c3   : > { %v4768_v30 = vpop.f32.mrf.mxu1  ;;  %7753 = vmatmul.mubr.bf16.gmra.mxu1 %v21089_v40  ;;  %7810 = vmatpush2.bf16.msra.mxu0 %v18449_v41  ;;  %v18472_v62 = vld [vmem:[#allocation5 + $0x13ac] ss:$16 sps:$4 sm:$0xff]  }
 0x2c4   : > { %23390 = vst [vmem:[#allocation25_spill] sm:$0xff] %v21096_v37  ;;  %v21107_v7 = vadd.f32 %v4765_v34, %v23393_v13  ;;  %v4769_v21 = vadd.f32 %v4768_v30, %v4655_v20  ;;  %7923 = vmatpush2.bf16.msra.mxu1 %v18452_v43  ;;  %v4657_v59 = vpop.f32.mrf.mxu0  ;;  %7811 = vmatprep.subr.bf16.mxu0 %v18457_v25  ;;  %v23395_v48 = vld [vmem:[#allocation37_spill] sm:$0xff] }
 0x2c5   : > { %v4770_v61 = vpop.f32.mrf.mxu1  ;;  %7924 = vmatprep.subr.bf16.mxu1 %v18460_v22  ;;  %7649 = vmatprep.mubr.bf16.mxu0 %v21099_v56  ;;  %v21117_v34 = vld [vmem:[%s19821_s30 + $0x2b8] ss:$16 sps:$4 sm:$0xff]   ;;  %v23399_v22 = vld [vmem:[#allocation40_spill] sm:$0xff] }
 0x2c6   : > { %23394 = vst [vmem:[#allocation28_spill] sm:$0xff] %v21107_v7  ;;  %v21110_v37 = vadd.f32 %v4769_v21, %v23395_v48  ;;  %v4771_v32 = vadd.f32 %v4770_v61, %v4657_v59  ;;  %23398 = vst [vmem:[#allocation31_spill] sm:$0xff] %v21117_v34  ;;  %7762 = vmatprep.mubr.bf16.mxu1 %v21102_v26  ;;  %v4659_v41 = vpop.f32.mrf.mxu0  ;;  %v18467_v25 = vld [vmem:[#allocation5 + $0x11a8] ss:$16 sps:$4 sm:$0xff]   ;;  %v18475_v61 = vld [vmem:[#allocation5 + $0x118c] ss:$16 sps:$4 sm:$0xff]  }
 0x2c7   : > { %v4772_v43 = vpop.f32.mrf.mxu1  ;;  %7812 = vmatpush2.bf16.msra.mxu0 %v18455_v55  ;;  %v18470_v13 = vld [vmem:[#allocation5 + $0x13a8] ss:$16 sps:$4 sm:$0xff]   ;;  %v18478_v48 = vld [vmem:[#allocation5 + $0x138c] ss:$16 sps:$4 sm:$0xff]   ;;  %v21127_v56 = vld [vmem:[%s19821_s30 + $0x2d4] ss:$16 sps:$4 sm:$0xff]  }
 0x2c8   : > { %23396 = vst [vmem:[#allocation29_spill] sm:$0xff] %v21110_v37  ;;  %v21121_v20 = vadd.f32 %v4771_v32, %v23399_v22  ;;  %v4773_v30 = vadd.f32 %v4772_v43, %v4659_v41  ;;  %7925 = vmatpush2.bf16.msra.mxu1 %v18458_v50  ;;  %v4661_v21 = vpop.f32.mrf.mxu0  ;;  %7813 = vmatprep.subr.bf16.mxu0 %v18469_v17  ;;  %v23401_v37 = vld [vmem:[#allocation41_spill] sm:$0xff]  ;;  %23403 = vst [vmem:[#allocation36_spill] sm:$0xff] %v21127_v56  ;;  %v23405_v50 = vld [vmem:[#allocation46_spill] sm:$0xff] }
 0x2c9   : > { %v4774_v59 = vpop.f32.mrf.mxu1  ;;  %7926 = vmatprep.subr.bf16.mxu1 %v18472_v62  ;;  %v21130_v40 = vld [vmem:[%s19821_s30 + $0x2dc] ss:$16 sps:$4 sm:$0xff]   ;;  %v18473_v55 = vld [vmem:[#allocation5 + $0x1188] ss:$16 sps:$4 sm:$0xff]  }
 0x2ca   : > { %23400 = vst [vmem:[#allocation32_spill] sm:$0xff] %v21121_v20  ;;  %v21124_v7 = vadd.f32 %v4773_v30, %v23401_v37  ;;  %v4775_v26 = vadd.f32 %v4774_v59, %v4661_v21  ;;  %23404 = vst [vmem:[#allocation37_spill] sm:$0xff] %v21130_v40  ;;  %v4665_v32 = vpop.f32.mrf.mxu0  ;;  %7650 = vmatmul.mubr.bf16.gmra.mxu0 %v21113_v44  ;;  %v18476_v37 = vld [vmem:[#allocation5 + $0x1388] ss:$16 sps:$4 sm:$0xff]   ;;  %v18487_v30 = vld [vmem:[#allocation5 + $0x116c] ss:$16 sps:$4 sm:$0xff]  }
 0x2cb   : > { %v4778_v22 = vpop.f32.mrf.mxu1  ;;  %7763 = vmatmul.mubr.bf16.gmra.mxu1 %v21117_v34  ;;  %7814 = vmatpush2.bf16.msra.mxu0 %v18467_v25  ;;  %v18490_v21 = vld [vmem:[#allocation5 + $0x136c] ss:$16 sps:$4 sm:$0xff]   ;;  %v21141_v34 = vld [vmem:[%s19821_s30 + $0x2d0] ss:$16 sps:$4 sm:$0xff]  }
 0x2cc   : > { %23402 = vst [vmem:[#allocation33_spill] sm:$0xff] %v21124_v7  ;;  %v21135_v17 = vadd.f32 %v4775_v26, %v23405_v50  ;;  %v4779_v62 = vadd.f32 %v4778_v22, %v4665_v32  ;;  %7927 = vmatpush2.bf16.msra.mxu1 %v18470_v13  ;;  %v4667_v41 = vpop.f32.mrf.mxu0  ;;  %7815 = vmatprep.subr.bf16.mxu0 %v18475_v61  ;;  %v23407_v59 = vld [vmem:[#allocation47_spill] sm:$0xff] }
 0x2cd   : > { %v4780_v43 = vpop.f32.mrf.mxu1  ;;  %7928 = vmatprep.subr.bf16.mxu1 %v18478_v48  ;;  %7659 = vmatprep.mubr.bf16.mxu0 %v21127_v56  ;;  %v21145_v26 = vld [vmem:[%s19821_s30 + $0x2d8] ss:$16 sps:$4 sm:$0xff]   ;;  %v21155_v56 = vld [vmem:[%s19821_s30 + $0x2f4] ss:$16 sps:$4 sm:$0xff]   ;;  %v21158_v44 = vld [vmem:[%s19821_s30 + $0x2fc] ss:$16 sps:$4 sm:$0xff]  }
 0x2ce   : > { %23406 = vst [vmem:[#allocation40_spill] sm:$0xff] %v21135_v17  ;;  %v21138_v7 = vadd.f32 %v4779_v62, %v23407_v59  ;;  %v4781_v20 = vadd.f32 %v4780_v43, %v4667_v41  ;;  %23409 = vst [vmem:[#allocation46_spill] sm:$0xff] %v21145_v26  ;;  %7772 = vmatprep.mubr.bf16.mxu1 %v21130_v40  ;;  %v4669_v25 = vpop.f32.mrf.mxu0  ;;  %v18485_v61 = vld [vmem:[#allocation5 + $0x1168] ss:$16 sps:$4 sm:$0xff]   ;;  %v18493_v43 = vld [vmem:[#allocation5 + $0x114c] ss:$16 sps:$4 sm:$0xff]  }
 0x2cf   : > { %v4782_v13 = vpop.f32.mrf.mxu1  ;;  %v23410_v48 = vld [vmem:[#allocation51_spill] sm:$0xff]  ;;  %7816 = vmatpush2.bf16.msra.mxu0 %v18473_v55 }
 0x2d0   : > { %23408 = vst [vmem:[#allocation41_spill] sm:$0xff] %v21138_v7  ;;  %v21149_v32 = vadd.f32 %v4781_v20, %v23410_v48  ;;  %v4783_v22 = vadd.f32 %v4782_v13, %v4669_v25  ;;  %7929 = vmatpush2.bf16.msra.mxu1 %v18476_v37  ;;  %v18488_v50 = vld [vmem:[#allocation5 + $0x1368] ss:$16 sps:$4 sm:$0xff]   ;;  %v4671_v62 = vpop.f32.mrf.mxu0  ;;  %7817 = vmatprep.subr.bf16.mxu0 %v18487_v30  ;;  %v18496_v59 = vld [vmem:[#allocation5 + $0x134c] ss:$16 sps:$4 sm:$0xff]  }
 0x2d1   : > { %v4784_v41 = vpop.f32.mrf.mxu1  ;;  %7930 = vmatprep.subr.bf16.mxu1 %v18490_v21  ;;  %v23412_v7 = vld [vmem:[#allocation54_spill] sm:$0xff]  ;;  %v18491_v55 = vld [vmem:[#allocation5 + $0x1148] ss:$16 sps:$4 sm:$0xff]  }
 0x2d2   : > { %23411 = vst [vmem:[#allocation47_spill] sm:$0xff] %v21149_v32  ;;  %v21152_v17 = vadd.f32 %v4783_v22, %v23412_v7  ;;  %v4785_v40 = vadd.f32 %v4784_v41, %v4671_v62  ;;  %23414 = vst [vmem:[#allocation54_spill] sm:$0xff] %v21158_v44  ;;  %v4675_v20 = vpop.f32.mrf.mxu0  ;;  %7660 = vmatmul.mubr.bf16.gmra.mxu0 %v21141_v34  ;;  %v23415_v37 = vld [vmem:[#allocation58_spill] sm:$0xff]  ;;  %v18494_v7 = vld [vmem:[#allocation5 + $0x1348] ss:$16 sps:$4 sm:$0xff]  }
 0x2d3   : > { %v4788_v48 = vpop.f32.mrf.mxu1  ;;  %7773 = vmatmul.mubr.bf16.gmra.mxu1 %v21145_v26  ;;  %7818 = vmatpush2.bf16.msra.mxu0 %v18485_v61  ;;  %v18505_v22 = vld [vmem:[#allocation5 + $0x112c] ss:$16 sps:$4 sm:$0xff]   ;;  %v21169_v26 = vld [vmem:[%s19821_s30 + $0x2f0] ss:$16 sps:$4 sm:$0xff]  }
 0x2d4   : > { %23413 = vst [vmem:[#allocation51_spill] sm:$0xff] %v21152_v17  ;;  %v21163_v30 = vadd.f32 %v4785_v40, %v23415_v37  ;;  %v4789_v21 = vadd.f32 %v4788_v48, %v4675_v20  ;;  %7931 = vmatpush2.bf16.msra.mxu1 %v18488_v50  ;;  %v4677_v25 = vpop.f32.mrf.mxu0  ;;  %7819 = vmatprep.subr.bf16.mxu0 %v18493_v43  ;;  %v18508_v62 = vld [vmem:[#allocation5 + $0x132c] ss:$16 sps:$4 sm:$0xff]   ;;  %v21173_v40 = vld [vmem:[%s19821_s30 + $0x2f8] ss:$16 sps:$4 sm:$0xff]  }
 0x2d5   : > { %v4790_v13 = vpop.f32.mrf.mxu1  ;;  %7932 = vmatprep.subr.bf16.mxu1 %v18496_v59  ;;  %v23417_v41 = vld [vmem:[#allocation59_spill] sm:$0xff]  ;;  %7669 = vmatprep.mubr.bf16.mxu0 %v21155_v56 }
 0x2d6   : > { %23416 = vst [vmem:[#allocation58_spill] sm:$0xff] %v21163_v30  ;;  %v21166_v17 = vadd.f32 %v4789_v21, %v23417_v41  ;;  %v4791_v32 = vadd.f32 %v4790_v13, %v4677_v25  ;;  %7782 = vmatprep.mubr.bf16.mxu1 %v21158_v44  ;;  %v4679_v61 = vpop.f32.mrf.mxu0  ;;  %v18503_v20 = vld [vmem:[#allocation5 + $0x1128] ss:$16 sps:$4 sm:$0xff]   ;;  %v18511_v25 = vld [vmem:[#allocation5 + $0x110c] ss:$16 sps:$4 sm:$0xff]  }
 0x2d7   : > { %v4792_v50 = vpop.f32.mrf.mxu1  ;;  %7820 = vmatpush2.bf16.msra.mxu0 %v18491_v55  ;;  %v18506_v48 = vld [vmem:[#allocation5 + $0x1328] ss:$16 sps:$4 sm:$0xff]   ;;  %v18514_v13 = vld [vmem:[#allocation5 + $0x130c] ss:$16 sps:$4 sm:$0xff]  }
 0x2d8   : > { %23418 = vst [vmem:[#allocation59_spill] sm:$0xff] %v21166_v17  ;;  %v21177_v43 = vadd.f32 %v4791_v32, %v20825_v29  ;;  %v4793_v59 = vadd.f32 %v4792_v50, %v4679_v61  ;;  %7933 = vmatpush2.bf16.msra.mxu1 %v18494_v7  ;;  %v4681_v37 = vpop.f32.mrf.mxu0  ;;  %7821 = vmatprep.subr.bf16.mxu0 %v18505_v22  ;;  %v18509_v29 = vld [vmem:[#allocation5 + $0x1108] ss:$16 sps:$4 sm:$0xff]   ;;  %v18520_v61 = vld [vmem:[#allocation5 + $0x16e4] ss:$16 sps:$4 sm:$0xff]  }
 0x2d9   : > { %v4794_v21 = vpop.f32.mrf.mxu1  ;;  %7934 = vmatprep.subr.bf16.mxu1 %v18508_v62  ;;  %v18512_v7 = vld [vmem:[#allocation5 + $0x1308] ss:$16 sps:$4 sm:$0xff]  }
 0x2da   : > { %v21180_v41 = vadd.f32 %v4793_v59, %v20828_v45  ;;  %v4795_v17 = vadd.f32 %v4794_v21, %v4681_v37  ;;  %v4685_v30 = vpop.f32.mrf.mxu0  ;;  %7670 = vmatmul.mubr.bf16.gmra.mxu0 %v21169_v26  ;;  %v18517_v45 = vld [vmem:[#allocation5 + $0x14e4] ss:$16 sps:$4 sm:$0xff]  }
 0x2db   : > { %v4798_v44 = vpop.f32.mrf.mxu1  ;;  %7783 = vmatmul.mubr.bf16.gmra.mxu1 %v21173_v40  ;;  %7822 = vmatpush2.bf16.msra.mxu0 %v18503_v20  ;;  %v18523_v37 = vld [vmem:[#allocation5 + $0x14c4] ss:$16 sps:$4 sm:$0xff]  }
 0x2dc   : > { %v21185_v32 = vadd.f32 %v4795_v17, %v20833_v35  ;;  %v4799_v55 = vadd.f32 %v4798_v44, %v4685_v30  ;;  %7935 = vmatpush2.bf16.msra.mxu1 %v18506_v48  ;;  %v4687_v22 = vpop.f32.mrf.mxu0  ;;  %7823 = vmatprep.subr.bf16.mxu0 %v18511_v25  ;;  %v18515_v35 = vld [vmem:[#allocation5 + $0x14e0] ss:$16 sps:$4 sm:$0xff]  }
 0x2dd   : > { %v4800_v62 = vpop.f32.mrf.mxu1  ;;  %7936 = vmatprep.subr.bf16.mxu1 %v18514_v13  ;;  %7825 = vmatprep.mubr.bf16.mxu0 %v20959_v49  ;;  %v18518_v30 = vld [vmem:[#allocation5 + $0x16e0] ss:$16 sps:$4 sm:$0xff]  }
 0x2de   : > { %v21188_v50 = vadd.f32 %v4799_v55, %v20836_v24  ;;  %v4801_v59 = vadd.f32 %v4800_v62, %v4687_v22  ;;  %7938 = vmatprep.mubr.bf16.mxu1 %v20962_v12  ;;  %v4689_v17 = vpop.f32.mrf.mxu0  ;;  %v18526_v24 = vld [vmem:[#allocation5 + $0x16c4] ss:$16 sps:$4 sm:$0xff]   ;;  %v18521_v13 = vld [vmem:[#allocation5 + $0x14c0] ss:$16 sps:$4 sm:$0xff]  }
 0x2df   : > { %v4802_v44 = vpop.f32.mrf.mxu1  ;;  %7824 = vmatpush2.bf16.msra.mxu0 %v18509_v29  ;;  %v18524_v55 = vld [vmem:[#allocation5 + $0x16c0] ss:$16 sps:$4 sm:$0xff]  }
 0x2e0   : > { %v21193_v20 = vadd.f32 %v4801_v59, %v20841_v63  ;;  %v4803_v48 = vadd.f32 %v4802_v44, %v4689_v17  ;;  %7937 = vmatpush2.bf16.msra.mxu1 %v18512_v7  ;;  %v4691_v21 = vpop.f32.mrf.mxu0  ;;  %9173 = vmatprep.subr.bf16.mxu0 %v18517_v45 }
 0x2e1   : > { %v4804_v25 = vpop.f32.mrf.mxu1  ;;  %9286 = vmatprep.subr.bf16.mxu1 %v18520_v61  ;;  %v18532_v61 = vld [vmem:[#allocation5 + $0x16a4] ss:$16 sps:$4 sm:$0xff]  }
 0x2e2   : > { %v21196_v49 = vadd.f32 %v4803_v48, %v20844_v33  ;;  %v4805_v12 = vadd.f32 %v4804_v25, %v4691_v21  ;;  %v5995_v22 = vpop.f32.mrf.mxu0  ;;  %7826 = vmatmul.mubr.bf16.vlgmr.msra.gmra.mxu0 %v20973_v3  ;;  %v18529_v33 = vld [vmem:[#allocation5 + $0x14a4] ss:$16 sps:$4 sm:$0xff]   ;;  %v18527_v3 = vld [vmem:[#allocation5 + $0x14a0] ss:$16 sps:$4 sm:$0xff]  }
 0x2e3   : > { %v6108_v62 = vpop.f32.mrf.mxu1  ;;  %7939 = vmatmul.mubr.bf16.vlgmr.msra.gmra.mxu1 %v20977_v58  ;;  %9174 = vmatpush1.bf16.msra.mxu0 %v18515_v35  ;;  %v18538_v21 = vld [vmem:[#allocation5 + $0x1684] ss:$16 sps:$4 sm:$0xff]   ;;  %v18533_v25 = vld [vmem:[#allocation5 + $0x1480] ss:$16 sps:$4 sm:$0xff]  }
 0x2e4   : > { %v21201_v63 = vadd.f32 %v4805_v12, %v20849_v38  ;;  %v6109_v29 = vadd.f32 %v6108_v62, %v5995_v22  ;;  %9287 = vmatpush1.bf16.msra.mxu1 %v18518_v30  ;;  %v5997_v7 = vpop.f32.mrf.mxu0  ;;  %9175 = vmatprep.subr.bf16.mxu0 %v18523_v37  ;;  %v18530_v38 = vld [vmem:[#allocation5 + $0x16a0] ss:$16 sps:$4 sm:$0xff]  }
 0x2e5   : > { %v6110_v45 = vpop.f32.mrf.mxu1  ;;  %9288 = vmatprep.subr.bf16.mxu1 %v18526_v24  ;;  %7835 = vmatprep.mubr.bf16.mxu0 %v20987_v6  ;;  %v18536_v24 = vld [vmem:[#allocation5 + $0x1680] ss:$16 sps:$4 sm:$0xff]  }
 0x2e6   : > { %v21204_v59 = vadd.f32 %v6109_v29, %v20852_v19  ;;  %v6111_v17 = vadd.f32 %v6110_v45, %v5997_v7  ;;  %7948 = vmatprep.mubr.bf16.mxu1 %v20990_v1  ;;  %v5999_v58 = vpop.f32.mrf.mxu0  ;;  %v18535_v19 = vld [vmem:[#allocation5 + $0x1484] ss:$16 sps:$4 sm:$0xff]  }
 0x2e7   : > { %v6112_v44 = vpop.f32.mrf.mxu1  ;;  %9176 = vmatpush1.bf16.msra.mxu0 %v18521_v13  ;;  %v18544_v29 = vld [vmem:[#allocation5 + $0x1664] ss:$16 sps:$4 sm:$0xff]  }
 0x2e8   : > { %v21209_v35 = vadd.f32 %v6111_v17, %v20857_v51  ;;  %v6113_v30 = vadd.f32 %v6112_v44, %v5999_v58  ;;  %9289 = vmatpush1.bf16.msra.mxu1 %v18524_v55  ;;  %v6001_v48 = vpop.f32.mrf.mxu0  ;;  %9177 = vmatprep.subr.bf16.mxu0 %v18529_v33  ;;  %v18550_v58 = vld [vmem:[#allocation5 + $0x1644] ss:$16 sps:$4 sm:$0xff]   ;;  %v18545_v44 = vld [vmem:[#allocation5 + $0x1440] ss:$16 sps:$4 sm:$0xff]  }
 0x2e9   : > { %v6114_v37 = vpop.f32.mrf.mxu1  ;;  %9290 = vmatprep.subr.bf16.mxu1 %v18532_v61 }
 0x2ea   : > { %v21212_v6 = vadd.f32 %v6113_v30, %v20860_v47  ;;  %v6115_v1 = vadd.f32 %v6114_v37, %v6001_v48  ;;  %v6005_v12 = vpop.f32.mrf.mxu0  ;;  %7836 = vmatmul.mubr.bf16.gmra.mxu0 %v21001_v60  ;;  %v18541_v47 = vld [vmem:[#allocation5 + $0x1464] ss:$16 sps:$4 sm:$0xff]   ;;  %v18539_v60 = vld [vmem:[#allocation5 + $0x1460] ss:$16 sps:$4 sm:$0xff]  }
 0x2eb   : > { %v6118_v22 = vpop.f32.mrf.mxu1  ;;  %7949 = vmatmul.mubr.bf16.gmra.mxu1 %v21005_v27  ;;  %9178 = vmatpush1.bf16.msra.mxu0 %v18527_v3  ;;  %v18548_v30 = vld [vmem:[#allocation5 + $0x1640] ss:$16 sps:$4 sm:$0xff]  }
 0x2ec   : > { %v21217_v51 = vadd.f32 %v6115_v1, %v20865_v2  ;;  %v6119_v13 = vadd.f32 %v6118_v22, %v6005_v12  ;;  %9291 = vmatpush1.bf16.msra.mxu1 %v18530_v38  ;;  %v6007_v55 = vpop.f32.mrf.mxu0  ;;  %9179 = vmatprep.subr.bf16.mxu0 %v18535_v19  ;;  %v18542_v2 = vld [vmem:[#allocation5 + $0x1660] ss:$16 sps:$4 sm:$0xff]  }
 0x2ed   : > { %v6120_v62 = vpop.f32.mrf.mxu1  ;;  %9292 = vmatprep.subr.bf16.mxu1 %v18538_v21  ;;  %7845 = vmatprep.mubr.bf16.mxu0 %v21015_v16 }
 0x2ee   : > { %v21220_v7 = vadd.f32 %v6119_v13, %v20868_v31  ;;  %v6121_v45 = vadd.f32 %v6120_v62, %v6007_v55  ;;  %7958 = vmatprep.mubr.bf16.mxu1 %v21018_v10  ;;  %v6009_v27 = vpop.f32.mrf.mxu0  ;;  %v18547_v31 = vld [vmem:[#allocation5 + $0x1444] ss:$16 sps:$4 sm:$0xff]  }
 0x2ef   : > { %v6122_v33 = vpop.f32.mrf.mxu1  ;;  %9180 = vmatpush1.bf16.msra.mxu0 %v18533_v25  ;;  %v18556_v25 = vld [vmem:[#allocation5 + $0x1624] ss:$16 sps:$4 sm:$0xff]  }
 0x2f0   : > { %v21225_v61 = vadd.f32 %v6121_v45, %v20873_v36  ;;  %v6123_v17 = vadd.f32 %v6122_v33, %v6009_v27  ;;  %9293 = vmatpush1.bf16.msra.mxu1 %v18536_v24  ;;  %v6011_v3 = vpop.f32.mrf.mxu0  ;;  %9181 = vmatprep.subr.bf16.mxu0 %v18541_v47  ;;  %v18557_v45 = vld [vmem:[#allocation5 + $0x1400] ss:$16 sps:$4 sm:$0xff]  }
 0x2f1   : > { %v6124_v38 = vpop.f32.mrf.mxu1  ;;  %9294 = vmatprep.subr.bf16.mxu1 %v18544_v29  ;;  %v18562_v29 = vld [vmem:[#allocation5 + $0x1604] ss:$16 sps:$4 sm:$0xff]  }
 0x2f2   : > { %v21228_v16 = vadd.f32 %v6123_v17, %v20876_v39  ;;  %v6125_v10 = vadd.f32 %v6124_v38, %v6011_v3  ;;  %v6015_v48 = vpop.f32.mrf.mxu0  ;;  %7846 = vmatmul.mubr.bf16.gmra.mxu0 %v21029_v54  ;;  %v18553_v39 = vld [vmem:[#allocation5 + $0x1424] ss:$16 sps:$4 sm:$0xff]   ;;  %v18551_v54 = vld [vmem:[#allocation5 + $0x1420] ss:$16 sps:$4 sm:$0xff]  }
 0x2f3   : > { %v6128_v37 = vpop.f32.mrf.mxu1  ;;  %7959 = vmatmul.mubr.bf16.gmra.mxu1 %v21033_v8  ;;  %9182 = vmatpush1.bf16.msra.mxu0 %v18539_v60  ;;  %v18560_v60 = vld [vmem:[#allocation5 + $0x1600] ss:$16 sps:$4 sm:$0xff]   ;;  %v18568_v38 = vld [vmem:[#allocation5 + $0x17e4] ss:$16 sps:$4 sm:$0xff]  }
 0x2f4   : > { %v21233_v36 = vadd.f32 %v6125_v10, %v20881_v42  ;;  %v6129_v19 = vadd.f32 %v6128_v37, %v6015_v48  ;;  %9295 = vmatpush1.bf16.msra.mxu1 %v18542_v2  ;;  %v6017_v21 = vpop.f32.mrf.mxu0  ;;  %9183 = vmatprep.subr.bf16.mxu0 %v18547_v31  ;;  %v18554_v42 = vld [vmem:[#allocation5 + $0x1620] ss:$16 sps:$4 sm:$0xff]  }
 0x2f5   : > { %v6130_v1 = vpop.f32.mrf.mxu1  ;;  %9296 = vmatprep.subr.bf16.mxu1 %v18550_v58  ;;  %7855 = vmatprep.mubr.bf16.mxu0 %v21043_v46 }
 0x2f6   : > { %v21236_v24 = vadd.f32 %v6129_v19, %v20884_v9  ;;  %v6131_v12 = vadd.f32 %v6130_v1, %v6017_v21  ;;  %7968 = vmatprep.mubr.bf16.mxu1 %v21046_v23  ;;  %v6019_v8 = vpop.f32.mrf.mxu0  ;;  %v18559_v9 = vld [vmem:[#allocation5 + $0x1404] ss:$16 sps:$4 sm:$0xff]   ;;  %v18569_v21 = vld [vmem:[#allocation5 + $0x15c0] ss:$16 sps:$4 sm:$0xff]  }
 0x2f7   : > { %v6132_v22 = vpop.f32.mrf.mxu1  ;;  %9184 = vmatpush1.bf16.msra.mxu0 %v18545_v44  ;;  %v18574_v19 = vld [vmem:[#allocation5 + $0x17c4] ss:$16 sps:$4 sm:$0xff]   ;;  %v18572_v1 = vld [vmem:[#allocation5 + $0x17c0] ss:$16 sps:$4 sm:$0xff]  }
 0x2f8   : > { %v21241_v13 = vadd.f32 %v6131_v12, %v20889_v53  ;;  %v6133_v55 = vadd.f32 %v6132_v22, %v6019_v8  ;;  %9297 = vmatpush1.bf16.msra.mxu1 %v18548_v30  ;;  %v6021_v62 = vpop.f32.mrf.mxu0  ;;  %9185 = vmatprep.subr.bf16.mxu0 %v18553_v39  ;;  %v23420_v12 = vld [vmem:[#allocation60_spill] sm:$0xff] }
 0x2f9   : > { %v6134_v47 = vpop.f32.mrf.mxu1  ;;  %9298 = vmatprep.subr.bf16.mxu1 %v18556_v25 }
 0x2fa   : > { %v21244_v46 = vadd.f32 %v6133_v55, %v20892_v5  ;;  %v6135_v23 = vadd.f32 %v6134_v47, %v6021_v62  ;;  %v6025_v2 = vpop.f32.mrf.mxu0  ;;  %7856 = vmatmul.mubr.bf16.gmra.mxu0 %v21057_v52  ;;  %v18565_v5 = vld [vmem:[#allocation5 + $0x15e4] ss:$16 sps:$4 sm:$0xff]   ;;  %v18563_v52 = vld [vmem:[#allocation5 + $0x15e0] ss:$16 sps:$4 sm:$0xff]  }
 0x2fb   : > { %v6138_v27 = vpop.f32.mrf.mxu1  ;;  %7969 = vmatmul.mubr.bf16.gmra.mxu1 %v21061_v57  ;;  %9186 = vmatpush1.bf16.msra.mxu0 %v18551_v54  ;;  %v18580_v55 = vld [vmem:[#allocation5 + $0x17a4] ss:$16 sps:$4 sm:$0xff]  }
 0x2fc   : > { %v21249_v53 = vadd.f32 %v6135_v23, %v20897_v14  ;;  %v6139_v33 = vadd.f32 %v6138_v27, %v6025_v2  ;;  %9299 = vmatpush1.bf16.msra.mxu1 %v18554_v42  ;;  %v6027_v17 = vpop.f32.mrf.mxu0  ;;  %9187 = vmatprep.subr.bf16.mxu0 %v18559_v9  ;;  %v18566_v14 = vld [vmem:[#allocation5 + $0x17e0] ss:$16 sps:$4 sm:$0xff]   ;;  %v23422_v62 = vld [vmem:[#allocation61_spill] sm:$0xff] }
 0x2fd   : > { %v6140_v3 = vpop.f32.mrf.mxu1  ;;  %9300 = vmatprep.subr.bf16.mxu1 %v18562_v29  ;;  %7865 = vmatprep.mubr.bf16.mxu0 %v21071_v18  ;;  %v23424_v29 = vld [vmem:[#allocation26_spill] sm:$0xff] }
 0x2fe   : > { %v21252_v31 = vadd.f32 %v6139_v33, %v20900_v15  ;;  %v6141_v58 = vadd.f32 %v6140_v3, %v6027_v17  ;;  %7978 = vmatprep.mubr.bf16.mxu1 %v21074_v4  ;;  %v6029_v57 = vpop.f32.mrf.mxu0  ;;  %v18571_v15 = vld [vmem:[#allocation5 + $0x15c4] ss:$16 sps:$4 sm:$0xff]   ;;  %v18575_v23 = vld [vmem:[#allocation5 + $0x15a0] ss:$16 sps:$4 sm:$0xff]  }
 0x2ff   : > { %v6142_v10 = vpop.f32.mrf.mxu1  ;;  %9188 = vmatpush1.bf16.msra.mxu0 %v18557_v45  ;;  %v18578_v45 = vld [vmem:[#allocation5 + $0x17a0] ss:$16 sps:$4 sm:$0xff]  }
 0x300   : > { %v21257_v44 = vadd.f32 %v6141_v58, %v20905_v11  ;;  %v6143_v30 = vadd.f32 %v6142_v10, %v6029_v57  ;;  %9301 = vmatpush1.bf16.msra.mxu1 %v18560_v60  ;;  %v6031_v48 = vpop.f32.mrf.mxu0  ;;  %9189 = vmatprep.subr.bf16.mxu0 %v18565_v5  ;;  %v23419_v11 = vld [vmem:[#allocation23_spill] sm:$0xff]  ;;  %v23426_v27 = vld [vmem:[#allocation62_spill] sm:$0xff] }
 0x301   : > { %v6144_v37 = vpop.f32.mrf.mxu1  ;;  %9302 = vmatprep.subr.bf16.mxu1 %v18568_v38  ;;  %v18583_v38 = vld [vmem:[#allocation5 + $0x1584] ss:$16 sps:$4 sm:$0xff]   ;;  %v18581_v10 = vld [vmem:[#allocation5 + $0x1580] ss:$16 sps:$4 sm:$0xff]  }
 0x302   : > { %v21260_v18 = vadd.f32 %v6143_v30, %v20908_v28  ;;  %v6145_v4 = vadd.f32 %v6144_v37, %v6031_v48  ;;  %v6035_v39 = vpop.f32.mrf.mxu0  ;;  %7866 = vmatmul.mubr.bf16.gmra.mxu0 %v21085_v0  ;;  %v18577_v28 = vld [vmem:[#allocation5 + $0x15a4] ss:$16 sps:$4 sm:$0xff]   ;;  %v18584_v30 = vld [vmem:[#allocation5 + $0x1780] ss:$16 sps:$4 sm:$0xff]  }
 0x303   : > { %v6148_v25 = vpop.f32.mrf.mxu1  ;;  %7979 = vmatmul.mubr.bf16.gmra.mxu1 %v23419_v11  ;;  %9190 = vmatpush2.bf16.msra.mxu0 %v18563_v52  ;;  %v23425_v0 = vld [vmem:[#allocation27_spill] sm:$0xff]  ;;  %v23428_v52 = vld [vmem:[#allocation34_spill] sm:$0xff] }
 0x304   : > { %v21265_v54 = vadd.f32 %v6145_v4, %v23420_v12  ;;  %v6149_v42 = vadd.f32 %v6148_v25, %v6035_v39  ;;  %9303 = vmatpush2.bf16.msra.mxu1 %v18566_v14  ;;  %v6037_v8 = vpop.f32.mrf.mxu0  ;;  %9191 = vmatprep.subr.bf16.mxu0 %v18571_v15  ;;  %v18586_v58 = vld [vmem:[#allocation5 + $0x1784] ss:$16 sps:$4 sm:$0xff]  }
 0x305   : > { %v6150_v22 = vpop.f32.mrf.mxu1  ;;  %9304 = vmatprep.subr.bf16.mxu1 %v18574_v19  ;;  %7875 = vmatprep.mubr.bf16.mxu0 %v23424_v29  ;;  %v23430_v15 = vld [vmem:[#allocation30_spill] sm:$0xff]  ;;  %v23431_v19 = vld [vmem:[#allocation31_spill] sm:$0xff] }
 0x306   : > { %23421 = vst [vmem:[#allocation23_spill] sm:$0xff] %v21265_v54  ;;  %v21268_v47 = vadd.f32 %v6149_v42, %v23422_v62  ;;  %v6151_v9 = vadd.f32 %v6150_v22, %v6037_v8  ;;  %7988 = vmatprep.mubr.bf16.mxu1 %v23425_v0  ;;  %v6039_v60 = vpop.f32.mrf.mxu0  ;;  %v23432_v4 = vld [vmem:[#allocation35_spill] sm:$0xff]  ;;  %v18587_v62 = vld [vmem:[#allocation5 + $0x1560] ss:$16 sps:$4 sm:$0xff]  }
 0x307   : > { %v6152_v2 = vpop.f32.mrf.mxu1  ;;  %9192 = vmatpush2.bf16.msra.mxu0 %v18569_v21  ;;  %v18589_v11 = vld [vmem:[#allocation5 + $0x1564] ss:$16 sps:$4 sm:$0xff]   ;;  %v21465_v54 = vld [vmem:[%s19821_s30 + $0x350] ss:$16 sps:$4 sm:$0xff]  }
 0x308   : > { %23423 = vst [vmem:[#allocation60_spill] sm:$0xff] %v21268_v47  ;;  %v21273_v33 = vadd.f32 %v6151_v9, %v23426_v27  ;;  %v6153_v17 = vadd.f32 %v6152_v2, %v6039_v60  ;;  %9305 = vmatpush2.bf16.msra.mxu1 %v18572_v1  ;;  %v6041_v3 = vpop.f32.mrf.mxu0  ;;  %9193 = vmatprep.subr.bf16.mxu0 %v18577_v28  ;;  %v18592_v12 = vld [vmem:[#allocation5 + $0x1764] ss:$16 sps:$4 sm:$0xff]   ;;  %v18590_v9 = vld [vmem:[#allocation5 + $0x1760] ss:$16 sps:$4 sm:$0xff]  }
 0x309   : > { %v6154_v5 = vpop.f32.mrf.mxu1  ;;  %9306 = vmatprep.subr.bf16.mxu1 %v18580_v55  ;;  %v23434_v42 = vld [vmem:[#allocation63_spill] sm:$0xff]  ;;  %v23436_v28 = vld [vmem:[#allocation36_spill] sm:$0xff]  ;;  %v23437_v55 = vld [vmem:[#allocation37_spill] sm:$0xff] }
 0x30a   : > { %23427 = vst [vmem:[#allocation61_spill] sm:$0xff] %v21273_v33  ;;  %v21276_v14 = vadd.f32 %v6153_v17, %v23428_v52  ;;  %v6155_v57 = vadd.f32 %v6154_v5, %v6041_v3  ;;  %v6045_v48 = vpop.f32.mrf.mxu0  ;;  %7876 = vmatmul.mubr.bf16.gmra.mxu0 %v23430_v15  ;;  %v18595_v17 = vld [vmem:[#allocation5 + $0x1544] ss:$16 sps:$4 sm:$0xff]   ;;  %v18593_v52 = vld [vmem:[#allocation5 + $0x1540] ss:$16 sps:$4 sm:$0xff]  }
 0x30b   : > { %v6158_v37 = vpop.f32.mrf.mxu1  ;;  %7989 = vmatmul.mubr.bf16.gmra.mxu1 %v23431_v19  ;;  %9194 = vmatpush2.bf16.msra.mxu0 %v18575_v23  ;;  %v23438_v23 = vld [vmem:[#allocation13_spill] sm:$0xff]  ;;  %v23440_v5 = vld [vmem:[#allocation38_spill] sm:$0xff] }
 0x30c   : > { %23429 = vst [vmem:[#allocation26_spill] sm:$0xff] %v21276_v14  ;;  %v21281_v21 = vadd.f32 %v6155_v57, %v23432_v4  ;;  %v6159_v1 = vadd.f32 %v6158_v37, %v6045_v48  ;;  %9307 = vmatpush2.bf16.msra.mxu1 %v18578_v45  ;;  %v6047_v39 = vpop.f32.mrf.mxu0  ;;  %9195 = vmatprep.subr.bf16.mxu0 %v18583_v38  ;;  %v18598_v3 = vld [vmem:[#allocation5 + $0x1744] ss:$16 sps:$4 sm:$0xff]   ;;  %v18596_v57 = vld [vmem:[#allocation5 + $0x1740] ss:$16 sps:$4 sm:$0xff]  }
 0x30d   : > { %v6160_v25 = vpop.f32.mrf.mxu1  ;;  %9308 = vmatprep.subr.bf16.mxu1 %v18586_v58  ;;  %7885 = vmatprep.mubr.bf16.mxu0 %v23436_v28  ;;  %v23442_v15 = vld [vmem:[#allocation46_spill] sm:$0xff]  ;;  %v21441_v14 = vld [vmem:[%s19821_s30 + $0x338] ss:$16 sps:$4 sm:$0xff]  }
 0x30e   : > { %23433 = vst [vmem:[#allocation27_spill] sm:$0xff] %v21281_v21  ;;  %v21284_v8 = vadd.f32 %v6159_v1, %v23434_v42  ;;  %v6161_v22 = vadd.f32 %v6160_v25, %v6047_v39  ;;  %7998 = vmatprep.mubr.bf16.mxu1 %v23437_v55  ;;  %v6049_v29 = vpop.f32.mrf.mxu0  ;;  %v18601_v39 = vld [vmem:[#allocation5 + $0x1524] ss:$16 sps:$4 sm:$0xff]   ;;  %v18602_v28 = vld [vmem:[#allocation5 + $0x1720] ss:$16 sps:$4 sm:$0xff]  }
 0x30f   : > { %v6162_v0 = vpop.f32.mrf.mxu1  ;;  %9196 = vmatpush2.bf16.msra.mxu0 %v18581_v10  ;;  %v23443_v10 = vld [vmem:[#allocation39_spill] sm:$0xff]  ;;  %v21437_v21 = vld [vmem:[%s19821_s30 + $0x330] ss:$16 sps:$4 sm:$0xff]  }
 0x310   : > { %23435 = vst [vmem:[#allocation62_spill] sm:$0xff] %v21284_v8  ;;  %v21289_v45 = vadd.f32 %v6161_v22, %v23438_v23  ;;  %v6163_v60 = vadd.f32 %v6162_v0, %v6049_v29  ;;  %9309 = vmatpush2.bf16.msra.mxu1 %v18584_v30  ;;  %v6051_v2 = vpop.f32.mrf.mxu0  ;;  %9197 = vmatprep.subr.bf16.mxu0 %v18589_v11  ;;  %v18604_v25 = vld [vmem:[#allocation5 + $0x1724] ss:$16 sps:$4 sm:$0xff]   ;;  %v18599_v22 = vld [vmem:[#allocation5 + $0x1520] ss:$16 sps:$4 sm:$0xff]  }
 0x311   : > { %v6164_v27 = vpop.f32.mrf.mxu1  ;;  %9310 = vmatprep.subr.bf16.mxu1 %v18592_v12  ;;  %v23445_v11 = vld [vmem:[#allocation44_spill] sm:$0xff]  ;;  %v18695_v33 = vld [vmem:[#allocation5 + $0x15c8] ss:$16 sps:$4 sm:$0xff]  }
 0x312   : > { %23439 = vst [vmem:[#allocation34_spill] sm:$0xff] %v21289_v45  ;;  %v21292_v38 = vadd.f32 %v6163_v60, %v23440_v5  ;;  %v6165_v58 = vadd.f32 %v6164_v27, %v6051_v2  ;;  %v6055_v48 = vpop.f32.mrf.mxu0  ;;  %7886 = vmatmul.mubr.bf16.gmra.mxu0 %v21141_v34  ;;  %v23447_v34 = vld [vmem:[#allocation54_spill] sm:$0xff]  ;;  %v18677_v45 = vld [vmem:[#allocation5 + $0x1408] ss:$16 sps:$4 sm:$0xff]  }
 0x313   : > { %v6168_v37 = vpop.f32.mrf.mxu1  ;;  %7999 = vmatmul.mubr.bf16.gmra.mxu1 %v23442_v15  ;;  %9198 = vmatpush2.bf16.msra.mxu0 %v18587_v62  ;;  %v18607_v2 = vld [vmem:[#allocation5 + $0x1504] ss:$16 sps:$4 sm:$0xff]   ;;  %v18605_v5 = vld [vmem:[#allocation5 + $0x1500] ss:$16 sps:$4 sm:$0xff]  }
 0x314   : > { %23441 = vst [vmem:[#allocation30_spill] sm:$0xff] %v21292_v38  ;;  %v21297_v30 = vadd.f32 %v6165_v58, %v23443_v10  ;;  %v6169_v19 = vadd.f32 %v6168_v37, %v6055_v48  ;;  %9311 = vmatpush2.bf16.msra.mxu1 %v18590_v9  ;;  %v6057_v4 = vpop.f32.mrf.mxu0  ;;  %9199 = vmatprep.subr.bf16.mxu0 %v18595_v17  ;;  %v23448_v9 = vld [vmem:[#allocation45_spill] sm:$0xff]  ;;  %v23450_v27 = vld [vmem:[#allocation42_spill] sm:$0xff] }
 0x315   : > { %v6170_v1 = vpop.f32.mrf.mxu1  ;;  %9312 = vmatprep.subr.bf16.mxu1 %v18598_v3  ;;  %7895 = vmatprep.mubr.bf16.mxu0 %v21155_v56  ;;  %v18610_v56 = vld [vmem:[#allocation5 + $0x1704] ss:$16 sps:$4 sm:$0xff]   ;;  %v18608_v58 = vld [vmem:[#allocation5 + $0x1700] ss:$16 sps:$4 sm:$0xff]   ;;  %v21314_v37 = vld [vmem:[%s19821_s30 + $0x15c] ss:$16 sps:$4 sm:$0xff]  }
 0x316   : > { %23444 = vst [vmem:[#allocation31_spill] sm:$0xff] %v21297_v30  ;;  %v21300_v12 = vadd.f32 %v6169_v19, %v23445_v11  ;;  %v6171_v42 = vadd.f32 %v6170_v1, %v6057_v4  ;;  %8008 = vmatprep.mubr.bf16.mxu1 %v23447_v34  ;;  %v6059_v55 = vpop.f32.mrf.mxu0  ;;  %v21311_v48 = vld [vmem:[%s19821_s30 + $0x154] ss:$16 sps:$4 sm:$0xff]   ;;  %v21409_v30 = vld [vmem:[%s19821_s30 + $0x1b0] ss:$16 sps:$4 sm:$0xff]  }
 0x317   : > { %v6172_v62 = vpop.f32.mrf.mxu1  ;;  %9200 = vmatpush2.bf16.msra.mxu0 %v18593_v52  ;;  %v23454_v11 = vld [vmem:[#allocation14_spill] sm:$0xff]  ;;  %v21413_v38 = vld [vmem:[%s19821_s30 + $0x1b8] ss:$16 sps:$4 sm:$0xff]  }
 0x318   : > { %23446 = vst [vmem:[#allocation35_spill] sm:$0xff] %v21300_v12  ;;  %v21305_v29 = vadd.f32 %v6171_v42, %v23448_v9  ;;  %v6173_v0 = vadd.f32 %v6172_v62, %v6059_v55  ;;  %9313 = vmatpush2.bf16.msra.mxu1 %v18596_v57  ;;  %v6061_v23 = vpop.f32.mrf.mxu0  ;;  %9201 = vmatprep.subr.bf16.mxu0 %v18601_v39  ;;  %v23452_v57 = vld [vmem:[#allocation43_spill] sm:$0xff] }
 0x319   : > { %v6174_v60 = vpop.f32.mrf.mxu1  ;;  %9314 = vmatprep.subr.bf16.mxu1 %v18604_v25  ;;  %v18619_v39 = vld [vmem:[#allocation5 + $0x14ec] ss:$16 sps:$4 sm:$0xff]  }
 0x31a   : > { %23449 = vst [vmem:[#allocation63_spill] sm:$0xff] %v21305_v29  ;;  %v21308_v17 = vadd.f32 %v6173_v0, %v23450_v27  ;;  %v6175_v3 = vadd.f32 %v6174_v60, %v6061_v23  ;;  %v6065_v15 = vpop.f32.mrf.mxu0  ;;  %7896 = vmatmul.mubr.bf16.gmra.mxu0 %v21169_v26  ;;  %v18622_v25 = vld [vmem:[#allocation5 + $0x16ec] ss:$16 sps:$4 sm:$0xff]   ;;  %v21325_v26 = vld [vmem:[%s19821_s30 + $0x150] ss:$16 sps:$4 sm:$0xff]  }
 0x31b   : > { %v6178_v52 = vpop.f32.mrf.mxu1  ;;  %8009 = vmatmul.mubr.bf16.gmra.mxu1 %v21173_v40  ;;  %9202 = vmatpush2.bf16.msra.mxu0 %v18599_v22  ;;  %v21329_v40 = vld [vmem:[%s19821_s30 + $0x158] ss:$16 sps:$4 sm:$0xff]   ;;  %v18628_v27 = vld [vmem:[#allocation5 + $0x16cc] ss:$16 sps:$4 sm:$0xff]  }
 0x31c   : > { %23451 = vst [vmem:[#allocation36_spill] sm:$0xff] %v21308_v17  ;;  %v21319_v10 = vadd.f32 %v6175_v3, %v23452_v57  ;;  %v6179_v19 = vadd.f32 %v6178_v52, %v6065_v15  ;;  %9315 = vmatpush2.bf16.msra.mxu1 %v18602_v28  ;;  %v6067_v4 = vpop.f32.mrf.mxu0  ;;  %9203 = vmatprep.subr.bf16.mxu0 %v18607_v2  ;;  %v23456_v55 = vld [vmem:[#allocation15_spill] sm:$0xff]  ;;  %v23458_v3 = vld [vmem:[#allocation50_spill] sm:$0xff] }
 0x31d   : > { %v6180_v1 = vpop.f32.mrf.mxu1  ;;  %9316 = vmatprep.subr.bf16.mxu1 %v18610_v56  ;;  %9205 = vmatprep.mubr.bf16.mxu0 %v21311_v48  ;;  %v18617_v0 = vld [vmem:[#allocation5 + $0x14e8] ss:$16 sps:$4 sm:$0xff]   ;;  %v18625_v56 = vld [vmem:[#allocation5 + $0x14cc] ss:$16 sps:$4 sm:$0xff]  }
 0x31e   : > { %23453 = vst [vmem:[#allocation37_spill] sm:$0xff] %v21319_v10  ;;  %v21322_v42 = vadd.f32 %v6179_v19, %v23454_v11  ;;  %v6181_v34 = vadd.f32 %v6180_v1, %v6067_v4  ;;  %9318 = vmatprep.mubr.bf16.mxu1 %v21314_v37  ;;  %v6069_v22 = vpop.f32.mrf.mxu0  ;;  %v18620_v23 = vld [vmem:[#allocation5 + $0x16e8] ss:$16 sps:$4 sm:$0xff]   ;;  %v21339_v4 = vld [vmem:[%s19821_s30 + $0x174] ss:$16 sps:$4 sm:$0xff]  }
 0x31f   : > { %v6182_v28 = vpop.f32.mrf.mxu1  ;;  %9204 = vmatpush2.bf16.msra.mxu0 %v18605_v5  ;;  %v18623_v57 = vld [vmem:[#allocation5 + $0x14c8] ss:$16 sps:$4 sm:$0xff]   ;;  %v21342_v1 = vld [vmem:[%s19821_s30 + $0x17c] ss:$16 sps:$4 sm:$0xff]   ;;  %v21381_v10 = vld [vmem:[%s19821_s30 + $0x190] ss:$16 sps:$4 sm:$0xff]  }
 0x320   : > { %23455 = vst [vmem:[#allocation13_spill] sm:$0xff] %v21322_v42  ;;  %v21333_v62 = vadd.f32 %v6181_v34, %v23456_v55  ;;  %v6183_v9 = vadd.f32 %v6182_v28, %v6069_v22  ;;  %9317 = vmatpush2.bf16.msra.mxu1 %v18608_v58  ;;  %v6071_v60 = vpop.f32.mrf.mxu0  ;;  %9399 = vmatprep.subr.bf16.mxu0 %v18619_v39  ;;  %v18626_v19 = vld [vmem:[#allocation5 + $0x16c8] ss:$16 sps:$4 sm:$0xff]   ;;  %v23460_v39 = vld [vmem:[#allocation48_spill] sm:$0xff] }
 0x321   : > { %v6184_v2 = vpop.f32.mrf.mxu1  ;;  %9512 = vmatprep.subr.bf16.mxu1 %v18622_v25  ;;  %v18637_v28 = vld [vmem:[#allocation5 + $0x14ac] ss:$16 sps:$4 sm:$0xff]   ;;  %v21385_v17 = vld [vmem:[%s19821_s30 + $0x198] ss:$16 sps:$4 sm:$0xff]  }
 0x322   : > { %23457 = vst [vmem:[#allocation38_spill] sm:$0xff] %v21333_v62  ;;  %v21336_v15 = vadd.f32 %v6183_v9, %v23458_v3  ;;  %v6185_v52 = vadd.f32 %v6184_v2, %v6071_v60  ;;  %v6221_v5 = vpop.f32.mrf.mxu0  ;;  %9206 = vmatmul.mubr.bf16.vlgmr.msra.gmra.mxu0 %v21325_v26  ;;  %v18640_v55 = vld [vmem:[#allocation5 + $0x16ac] ss:$16 sps:$4 sm:$0xff]   ;;  %v21353_v3 = vld [vmem:[%s19821_s30 + $0x170] ss:$16 sps:$4 sm:$0xff]  }
 0x323   : > { %v6334_v58 = vpop.f32.mrf.mxu1  ;;  %9319 = vmatmul.mubr.bf16.vlgmr.msra.gmra.mxu1 %v21329_v40  ;;  %9400 = vmatpush1.bf16.msra.mxu0 %v18617_v0  ;;  %v23462_v9 = vld [vmem:[#allocation49_spill] sm:$0xff] }
 0x324   : > { %23459 = vst [vmem:[#allocation46_spill] sm:$0xff] %v21336_v15  ;;  %v21347_v25 = vadd.f32 %v6185_v52, %v23460_v39  ;;  %v6335_v11 = vadd.f32 %v6334_v58, %v6221_v5  ;;  %9513 = vmatpush1.bf16.msra.mxu1 %v18620_v23  ;;  %v6223_v34 = vpop.f32.mrf.mxu0  ;;  %9401 = vmatprep.subr.bf16.mxu0 %v18625_v56  ;;  %v21357_v15 = vld [vmem:[%s19821_s30 + $0x178] ss:$16 sps:$4 sm:$0xff]  }
 0x325   : > { %v6336_v22 = vpop.f32.mrf.mxu1  ;;  %9514 = vmatprep.subr.bf16.mxu1 %v18628_v27  ;;  %9215 = vmatprep.mubr.bf16.mxu0 %v21339_v4  ;;  %v23464_v52 = vld [vmem:[#allocation55_spill] sm:$0xff] }
 0x326   : > { %23461 = vst [vmem:[#allocation39_spill] sm:$0xff] %v21347_v25  ;;  %v21350_v60 = vadd.f32 %v6335_v11, %v23462_v9  ;;  %v6337_v2 = vadd.f32 %v6336_v22, %v6223_v34  ;;  %9328 = vmatprep.mubr.bf16.mxu1 %v21342_v1  ;;  %v6225_v0 = vpop.f32.mrf.mxu0  ;;  %v18635_v27 = vld [vmem:[#allocation5 + $0x14a8] ss:$16 sps:$4 sm:$0xff]   ;;  %v18643_v34 = vld [vmem:[#allocation5 + $0x148c] ss:$16 sps:$4 sm:$0xff]  }
 0x327   : > { %v6338_v23 = vpop.f32.mrf.mxu1  ;;  %9402 = vmatpush1.bf16.msra.mxu0 %v18623_v57  ;;  %v18638_v58 = vld [vmem:[#allocation5 + $0x16a8] ss:$16 sps:$4 sm:$0xff]   ;;  %v18646_v22 = vld [vmem:[#allocation5 + $0x168c] ss:$16 sps:$4 sm:$0xff]  }
 0x328   : > { %23463 = vst [vmem:[#allocation44_spill] sm:$0xff] %v21350_v60  ;;  %v21361_v5 = vadd.f32 %v6337_v2, %v23464_v52  ;;  %v6339_v56 = vadd.f32 %v6338_v23, %v6225_v0  ;;  %9515 = vmatpush1.bf16.msra.mxu1 %v18626_v19  ;;  %v6227_v39 = vpop.f32.mrf.mxu0  ;;  %9403 = vmatprep.subr.bf16.mxu0 %v18637_v28  ;;  %v23466_v9 = vld [vmem:[#allocation16_spill] sm:$0xff]  ;;  %v18641_v62 = vld [vmem:[#allocation5 + $0x1488] ss:$16 sps:$4 sm:$0xff]  }
 0x329   : > { %v6340_v11 = vpop.f32.mrf.mxu1  ;;  %9516 = vmatprep.subr.bf16.mxu1 %v18640_v55  ;;  %v18644_v2 = vld [vmem:[#allocation5 + $0x1688] ss:$16 sps:$4 sm:$0xff]   ;;  %v21367_v52 = vld [vmem:[%s19821_s30 + $0x194] ss:$16 sps:$4 sm:$0xff]   ;;  %v21370_v0 = vld [vmem:[%s19821_s30 + $0x19c] ss:$16 sps:$4 sm:$0xff]  }
 0x32a   : > { %23465 = vst [vmem:[#allocation54_spill] sm:$0xff] %v21361_v5  ;;  %v21364_v60 = vadd.f32 %v6339_v56, %v23466_v9  ;;  %v6341_v25 = vadd.f32 %v6340_v11, %v6227_v39  ;;  %v6231_v57 = vpop.f32.mrf.mxu0  ;;  %9216 = vmatmul.mubr.bf16.gmra.mxu0 %v21353_v3  ;;  %v23468_v28 = vld [vmem:[#allocation17_spill] sm:$0xff] }
 0x32b   : > { %v6344_v19 = vpop.f32.mrf.mxu1  ;;  %9329 = vmatmul.mubr.bf16.gmra.mxu1 %v21357_v15  ;;  %9404 = vmatpush1.bf16.msra.mxu0 %v18635_v27  ;;  %v18655_v11 = vld [vmem:[#allocation5 + $0x146c] ss:$16 sps:$4 sm:$0xff]   ;;  %v18659_v29 = vld [vmem:[#allocation5 + $0x1448] ss:$16 sps:$4 sm:$0xff]  }
 0x32c   : > { %23467 = vst [vmem:[#allocation45_spill] sm:$0xff] %v21364_v60  ;;  %v21375_v55 = vadd.f32 %v6341_v25, %v23468_v28  ;;  %v6345_v23 = vadd.f32 %v6344_v19, %v6231_v57  ;;  %9517 = vmatpush1.bf16.msra.mxu1 %v18638_v58  ;;  %v6233_v56 = vpop.f32.mrf.mxu0  ;;  %9405 = vmatprep.subr.bf16.mxu0 %v18643_v34  ;;  %v18658_v9 = vld [vmem:[#allocation5 + $0x166c] ss:$16 sps:$4 sm:$0xff]  }
 0x32d   : > { %v6346_v39 = vpop.f32.mrf.mxu1  ;;  %9518 = vmatprep.subr.bf16.mxu1 %v18646_v22  ;;  %v23470_v60 = vld [vmem:[#allocation52_spill] sm:$0xff]  ;;  %9225 = vmatprep.mubr.bf16.mxu0 %v21367_v52  ;;  %v23472_v58 = vld [vmem:[#allocation53_spill] sm:$0xff] }
 0x32e   : > { %23469 = vst [vmem:[#allocation42_spill] sm:$0xff] %v21375_v55  ;;  %v21378_v5 = vadd.f32 %v6345_v23, %v23470_v60  ;;  %v6347_v42 = vadd.f32 %v6346_v39, %v6233_v56  ;;  %9338 = vmatprep.mubr.bf16.mxu1 %v21370_v0  ;;  %v6235_v25 = vpop.f32.mrf.mxu0  ;;  %v18653_v60 = vld [vmem:[#allocation5 + $0x1468] ss:$16 sps:$4 sm:$0xff]   ;;  %v18661_v23 = vld [vmem:[#allocation5 + $0x144c] ss:$16 sps:$4 sm:$0xff]   ;;  %23488 = vst [vmem:[#allocation52_spill] sm:$0xff] %v21441_v14 }
 0x32f   : > { %v6348_v27 = vpop.f32.mrf.mxu1  ;;  %9406 = vmatpush1.bf16.msra.mxu0 %v18641_v62  ;;  %v18656_v22 = vld [vmem:[#allocation5 + $0x1668] ss:$16 sps:$4 sm:$0xff]   ;;  %v18664_v56 = vld [vmem:[#allocation5 + $0x164c] ss:$16 sps:$4 sm:$0xff]  }
 0x330   : > { %23471 = vst [vmem:[#allocation43_spill] sm:$0xff] %v21378_v5  ;;  %v21389_v57 = vadd.f32 %v6347_v42, %v23472_v58  ;;  %v6349_v34 = vadd.f32 %v6348_v27, %v6235_v25  ;;  %9519 = vmatpush1.bf16.msra.mxu1 %v18644_v2  ;;  %v6237_v19 = vpop.f32.mrf.mxu0  ;;  %9407 = vmatprep.subr.bf16.mxu0 %v18655_v11  ;;  %v23474_v39 = vld [vmem:[#allocation18_spill] sm:$0xff]  ;;  %v18662_v42 = vld [vmem:[#allocation5 + $0x1648] ss:$16 sps:$4 sm:$0xff]  }
 0x331   : > { %v6350_v28 = vpop.f32.mrf.mxu1  ;;  %9520 = vmatprep.subr.bf16.mxu1 %v18658_v9  ;;  %v21395_v58 = vld [vmem:[%s19821_s30 + $0x1b4] ss:$16 sps:$4 sm:$0xff]   ;;  %v21398_v25 = vld [vmem:[%s19821_s30 + $0x1bc] ss:$16 sps:$4 sm:$0xff]  }
 0x332   : > { %23473 = vst [vmem:[#allocation14_spill] sm:$0xff] %v21389_v57  ;;  %v21392_v5 = vadd.f32 %v6349_v34, %v23474_v39  ;;  %v6351_v55 = vadd.f32 %v6350_v28, %v6237_v19  ;;  %v6241_v62 = vpop.f32.mrf.mxu0  ;;  %9226 = vmatmul.mubr.bf16.gmra.mxu0 %v21381_v10  ;;  %v23476_v11 = vld [vmem:[#allocation19_spill] sm:$0xff] }
 0x333   : > { %v6354_v2 = vpop.f32.mrf.mxu1  ;;  %9339 = vmatmul.mubr.bf16.gmra.mxu1 %v21385_v17  ;;  %9408 = vmatpush1.bf16.msra.mxu0 %v18653_v60  ;;  %v18673_v28 = vld [vmem:[#allocation5 + $0x142c] ss:$16 sps:$4 sm:$0xff]  }
 0x334   : > { %23475 = vst [vmem:[#allocation15_spill] sm:$0xff] %v21392_v5  ;;  %v21403_v9 = vadd.f32 %v6351_v55, %v23476_v11  ;;  %v6355_v27 = vadd.f32 %v6354_v2, %v6241_v62  ;;  %9521 = vmatpush1.bf16.msra.mxu1 %v18656_v22  ;;  %v6243_v34 = vpop.f32.mrf.mxu0  ;;  %9409 = vmatprep.subr.bf16.mxu0 %v18661_v23  ;;  %v18676_v39 = vld [vmem:[#allocation5 + $0x162c] ss:$16 sps:$4 sm:$0xff]  }
 0x335   : > { %v6356_v19 = vpop.f32.mrf.mxu1  ;;  %9522 = vmatprep.subr.bf16.mxu1 %v18664_v56  ;;  %v23478_v5 = vld [vmem:[#allocation56_spill] sm:$0xff]  ;;  %9235 = vmatprep.mubr.bf16.mxu0 %v21395_v58  ;;  %v23480_v22 = vld [vmem:[#allocation57_spill] sm:$0xff] }
 0x336   : > { %23477 = vst [vmem:[#allocation50_spill] sm:$0xff] %v21403_v9  ;;  %v21406_v57 = vadd.f32 %v6355_v27, %v23478_v5  ;;  %v6357_v12 = vadd.f32 %v6356_v19, %v6243_v34  ;;  %9348 = vmatprep.mubr.bf16.mxu1 %v21398_v25  ;;  %v6245_v55 = vpop.f32.mrf.mxu0  ;;  %v18671_v5 = vld [vmem:[#allocation5 + $0x1428] ss:$16 sps:$4 sm:$0xff]   ;;  %v18679_v27 = vld [vmem:[#allocation5 + $0x140c] ss:$16 sps:$4 sm:$0xff]  }
 0x337   : > { %v6358_v60 = vpop.f32.mrf.mxu1  ;;  %9410 = vmatpush1.bf16.msra.mxu0 %v18659_v29  ;;  %v18674_v56 = vld [vmem:[#allocation5 + $0x1628] ss:$16 sps:$4 sm:$0xff]   ;;  %v18682_v34 = vld [vmem:[#allocation5 + $0x160c] ss:$16 sps:$4 sm:$0xff]  }
 0x338   : > { %23479 = vst [vmem:[#allocation48_spill] sm:$0xff] %v21406_v57  ;;  %v21417_v62 = vadd.f32 %v6357_v12, %v23480_v22  ;;  %v6359_v23 = vadd.f32 %v6358_v60, %v6245_v55  ;;  %9523 = vmatpush1.bf16.msra.mxu1 %v18662_v42  ;;  %v6247_v2 = vpop.f32.mrf.mxu0  ;;  %9411 = vmatprep.subr.bf16.mxu0 %v18673_v28  ;;  %v23482_v19 = vld [vmem:[#allocation20_spill] sm:$0xff]  ;;  %v18680_v12 = vld [vmem:[#allocation5 + $0x1608] ss:$16 sps:$4 sm:$0xff]  }
 0x339   : > { %v6360_v11 = vpop.f32.mrf.mxu1  ;;  %9524 = vmatprep.subr.bf16.mxu1 %v18676_v39  ;;  %v21423_v22 = vld [vmem:[%s19821_s30 + $0x334] ss:$16 sps:$4 sm:$0xff]   ;;  %v21426_v55 = vld [vmem:[%s19821_s30 + $0x33c] ss:$16 sps:$4 sm:$0xff]  }
 0x33a   : > { %23481 = vst [vmem:[#allocation49_spill] sm:$0xff] %v21417_v62  ;;  %v21420_v57 = vadd.f32 %v6359_v23, %v23482_v19  ;;  %v6361_v9 = vadd.f32 %v6360_v11, %v6247_v2  ;;  %v6251_v29 = vpop.f32.mrf.mxu0  ;;  %9236 = vmatmul.mubr.bf16.gmra.mxu0 %v21409_v30  ;;  %v23484_v28 = vld [vmem:[#allocation21_spill] sm:$0xff] }
 0x33b   : > { %v6364_v42 = vpop.f32.mrf.mxu1  ;;  %9349 = vmatmul.mubr.bf16.gmra.mxu1 %v21413_v38  ;;  %9412 = vmatpush1.bf16.msra.mxu0 %v18671_v5  ;;  %v18691_v11 = vld [vmem:[#allocation5 + $0x15ec] ss:$16 sps:$4 sm:$0xff]   ;;  %23499 = vst [vmem:[#allocation21_spill] sm:$0xff] %v21465_v54 }
 0x33c   : > { %23483 = vst [vmem:[#allocation55_spill] sm:$0xff] %v21420_v57  ;;  %v21431_v39 = vadd.f32 %v6361_v9, %v23484_v28  ;;  %v6365_v60 = vadd.f32 %v6364_v42, %v6251_v29  ;;  %9525 = vmatpush1.bf16.msra.mxu1 %v18674_v56  ;;  %v6253_v23 = vpop.f32.mrf.mxu0  ;;  %9413 = vmatprep.subr.bf16.mxu0 %v18679_v27  ;;  %v18694_v19 = vld [vmem:[#allocation5 + $0x17ec] ss:$16 sps:$4 sm:$0xff]  }
 0x33d   : > { %v6366_v2 = vpop.f32.mrf.mxu1  ;;  %9526 = vmatprep.subr.bf16.mxu1 %v18682_v34  ;;  %v23486_v57 = vld [vmem:[#allocation22_spill] sm:$0xff]  ;;  %9245 = vmatprep.mubr.bf16.mxu0 %v21423_v22  ;;  %v23489_v56 = vld [vmem:[#allocation24_spill] sm:$0xff]  ;;  %v18692_v34 = vld [vmem:[#allocation5 + $0x17e8] ss:$16 sps:$4 sm:$0xff]  }
 0x33e   : > { %23485 = vst [vmem:[#allocation16_spill] sm:$0xff] %v21431_v39  ;;  %v21434_v62 = vadd.f32 %v6365_v60, %v23486_v57  ;;  %v6367_v8 = vadd.f32 %v6366_v2, %v6253_v23  ;;  %9358 = vmatprep.mubr.bf16.mxu1 %v21426_v55  ;;  %v6255_v9 = vpop.f32.mrf.mxu0  ;;  %v18689_v57 = vld [vmem:[#allocation5 + $0x15e8] ss:$16 sps:$4 sm:$0xff]   ;;  %v18697_v60 = vld [vmem:[#allocation5 + $0x15cc] ss:$16 sps:$4 sm:$0xff]  }
 0x33f   : > { %v6368_v5 = vpop.f32.mrf.mxu1  ;;  %9414 = vmatpush1.bf16.msra.mxu0 %v18677_v45  ;;  %v18700_v23 = vld [vmem:[#allocation5 + $0x17cc] ss:$16 sps:$4 sm:$0xff]  }
 0x340   : > { %23487 = vst [vmem:[#allocation17_spill] sm:$0xff] %v21434_v62  ;;  %v21445_v29 = vadd.f32 %v6367_v8, %v23489_v56  ;;  %v6369_v27 = vadd.f32 %v6368_v5, %v6255_v9  ;;  %9527 = vmatpush1.bf16.msra.mxu1 %v18680_v12  ;;  %v6257_v42 = vpop.f32.mrf.mxu0  ;;  %9415 = vmatprep.subr.bf16.mxu0 %v18691_v11  ;;  %v23491_v2 = vld [vmem:[#allocation25_spill] sm:$0xff]  ;;  %v23495_v11 = vld [vmem:[#allocation28_spill] sm:$0xff] }
 0x341   : > { %v6370_v28 = vpop.f32.mrf.mxu1  ;;  %9528 = vmatprep.subr.bf16.mxu1 %v18694_v19  ;;  %v18698_v8 = vld [vmem:[#allocation5 + $0x17c8] ss:$16 sps:$4 sm:$0xff]   ;;  %v21451_v56 = vld [vmem:[%s19821_s30 + $0x354] ss:$16 sps:$4 sm:$0xff]   ;;  %v21454_v9 = vld [vmem:[%s19821_s30 + $0x35c] ss:$16 sps:$4 sm:$0xff]  }
 0x342   : > { %23490 = vst [vmem:[#allocation53_spill] sm:$0xff] %v21445_v29  ;;  %v21448_v62 = vadd.f32 %v6369_v27, %v23491_v2  ;;  %v6371_v39 = vadd.f32 %v6370_v28, %v6257_v42  ;;  %23493 = vst [vmem:[#allocation19_spill] sm:$0xff] %v21451_v56  ;;  %v6261_v45 = vpop.f32.mrf.mxu0  ;;  %9246 = vmatmul.mubr.bf16.gmra.mxu0 %v21437_v21  ;;  %v18709_v28 = vld [vmem:[#allocation5 + $0x15ac] ss:$16 sps:$4 sm:$0xff]  }
 0x343   : > { %23494 = vst [vmem:[#allocation56_spill] sm:$0xff] %v21454_v9  ;;  %v6374_v12 = vpop.f32.mrf.mxu1  ;;  %9359 = vmatmul.mubr.bf16.gmra.mxu1 %v21441_v14  ;;  %9416 = vmatpush2.bf16.msra.mxu0 %v18689_v57  ;;  %v18712_v2 = vld [vmem:[#allocation5 + $0x17ac] ss:$16 sps:$4 sm:$0xff]   ;;  %v21469_v14 = vld [vmem:[%s19821_s30 + $0x358] ss:$16 sps:$4 sm:$0xff]  }
 0x344   : > { %23492 = vst [vmem:[#allocation18_spill] sm:$0xff] %v21448_v62  ;;  %v21459_v19 = vadd.f32 %v6371_v39, %v23495_v11  ;;  %v6375_v5 = vadd.f32 %v6374_v12, %v6261_v45  ;;  %9529 = vmatpush2.bf16.msra.mxu1 %v18692_v34  ;;  %v6263_v27 = vpop.f32.mrf.mxu0  ;;  %9417 = vmatprep.subr.bf16.mxu0 %v18697_v60  ;;  %v23497_v62 = vld [vmem:[#allocation29_spill] sm:$0xff]  ;;  %23500 = vst [vmem:[#allocation22_spill] sm:$0xff] %v21469_v14  ;;  %v23501_v34 = vld [vmem:[#allocation32_spill] sm:$0xff] }
 0x345   : > { %v6376_v42 = vpop.f32.mrf.mxu1  ;;  %9530 = vmatprep.subr.bf16.mxu1 %v18700_v23  ;;  %9255 = vmatprep.mubr.bf16.mxu0 %v21451_v56  ;;  %v18710_v23 = vld [vmem:[#allocation5 + $0x17a8] ss:$16 sps:$4 sm:$0xff]  }
 0x346   : > { %23496 = vst [vmem:[#allocation57_spill] sm:$0xff] %v21459_v19  ;;  %v21462_v29 = vadd.f32 %v6375_v5, %v23497_v62  ;;  %v6377_v47 = vadd.f32 %v6376_v42, %v6263_v27  ;;  %9368 = vmatprep.mubr.bf16.mxu1 %v21454_v9  ;;  %v6265_v39 = vpop.f32.mrf.mxu0  ;;  %v18707_v62 = vld [vmem:[#allocation5 + $0x15a8] ss:$16 sps:$4 sm:$0xff]   ;;  %v18715_v5 = vld [vmem:[#allocation5 + $0x158c] ss:$16 sps:$4 sm:$0xff]  }
 0x347   : > { %v6378_v57 = vpop.f32.mrf.mxu1  ;;  %9418 = vmatpush2.bf16.msra.mxu0 %v18695_v33  ;;  %v18718_v27 = vld [vmem:[#allocation5 + $0x178c] ss:$16 sps:$4 sm:$0xff]   ;;  %v18713_v9 = vld [vmem:[#allocation5 + $0x1588] ss:$16 sps:$4 sm:$0xff]  }
 0x348   : > { %23498 = vst [vmem:[#allocation20_spill] sm:$0xff] %v21462_v29  ;;  %v21473_v45 = vadd.f32 %v6377_v47, %v23501_v34  ;;  %v6379_v60 = vadd.f32 %v6378_v57, %v6265_v39  ;;  %9531 = vmatpush2.bf16.msra.mxu1 %v18698_v8  ;;  %v6267_v12 = vpop.f32.mrf.mxu0  ;;  %9419 = vmatprep.subr.bf16.mxu0 %v18709_v28  ;;  %v23503_v42 = vld [vmem:[#allocation33_spill] sm:$0xff]  ;;  %v23507_v28 = vld [vmem:[#allocation40_spill] sm:$0xff] }
 0x349   : > { %v6380_v11 = vpop.f32.mrf.mxu1  ;;  %9532 = vmatprep.subr.bf16.mxu1 %v18712_v2  ;;  %v18716_v47 = vld [vmem:[#allocation5 + $0x1788] ss:$16 sps:$4 sm:$0xff]   ;;  %v21479_v34 = vld [vmem:[%s19821_s30 + $0x374] ss:$16 sps:$4 sm:$0xff]   ;;  %v21482_v39 = vld [vmem:[%s19821_s30 + $0x37c] ss:$16 sps:$4 sm:$0xff]  }
 0x34a   : > { %23502 = vst [vmem:[#allocation24_spill] sm:$0xff] %v21473_v45  ;;  %v21476_v29 = vadd.f32 %v6379_v60, %v23503_v42  ;;  %v6381_v19 = vadd.f32 %v6380_v11, %v6267_v12  ;;  %23505 = vst [vmem:[#allocation28_spill] sm:$0xff] %v21479_v34  ;;  %v6271_v33 = vpop.f32.mrf.mxu0  ;;  %9256 = vmatmul.mubr.bf16.gmra.mxu0 %v21465_v54  ;;  %v18727_v11 = vld [vmem:[#allocation5 + $0x156c] ss:$16 sps:$4 sm:$0xff]   ;;  %v21493_v54 = vld [vmem:[%s19821_s30 + $0x370] ss:$16 sps:$4 sm:$0xff]  }
 0x34b   : > { %23506 = vst [vmem:[#allocation29_spill] sm:$0xff] %v21482_v39  ;;  %v6384_v8 = vpop.f32.mrf.mxu1  ;;  %9369 = vmatmul.mubr.bf16.gmra.mxu1 %v21469_v14  ;;  %9420 = vmatpush2.bf16.msra.mxu0 %v18707_v62  ;;  %v18730_v42 = vld [vmem:[#allocation5 + $0x176c] ss:$16 sps:$4 sm:$0xff]   ;;  %23511 = vst [vmem:[#allocation40_spill] sm:$0xff] %v21493_v54  ;;  %v21497_v14 = vld [vmem:[%s19821_s30 + $0x378] ss:$16 sps:$4 sm:$0xff]  }
 0x34c   : > { %23504 = vst [vmem:[#allocation25_spill] sm:$0xff] %v21476_v29  ;;  %v21487_v2 = vadd.f32 %v6381_v19, %v23507_v28  ;;  %v6385_v57 = vadd.f32 %v6384_v8, %v6271_v33  ;;  %9533 = vmatpush2.bf16.msra.mxu1 %v18710_v23  ;;  %v6273_v60 = vpop.f32.mrf.mxu0  ;;  %9421 = vmatprep.subr.bf16.mxu0 %v18715_v5  ;;  %v23509_v29 = vld [vmem:[#allocation41_spill] sm:$0xff]  ;;  %v23513_v23 = vld [vmem:[#allocation47_spill] sm:$0xff] }
 0x34d   : > { %v6386_v12 = vpop.f32.mrf.mxu1  ;;  %9534 = vmatprep.subr.bf16.mxu1 %v18718_v27  ;;  %9265 = vmatprep.mubr.bf16.mxu0 %v21479_v34  ;;  %23512 = vst [vmem:[#allocation41_spill] sm:$0xff] %v21497_v14  ;;  %v18728_v27 = vld [vmem:[#allocation5 + $0x1768] ss:$16 sps:$4 sm:$0xff]  }
 0x34e   : > { %23508 = vst [vmem:[#allocation32_spill] sm:$0xff] %v21487_v2  ;;  %v21490_v45 = vadd.f32 %v6385_v57, %v23509_v29  ;;  %v6387_v56 = vadd.f32 %v6386_v12, %v6273_v60  ;;  %9378 = vmatprep.mubr.bf16.mxu1 %v21482_v39  ;;  %v6275_v19 = vpop.f32.mrf.mxu0  ;;  %v18725_v29 = vld [vmem:[#allocation5 + $0x1568] ss:$16 sps:$4 sm:$0xff]   ;;  %v18733_v57 = vld [vmem:[#allocation5 + $0x154c] ss:$16 sps:$4 sm:$0xff]  }
 0x34f   : > { %v6388_v62 = vpop.f32.mrf.mxu1  ;;  %9422 = vmatpush2.bf16.msra.mxu0 %v18713_v9  ;;  %v18736_v60 = vld [vmem:[#allocation5 + $0x174c] ss:$16 sps:$4 sm:$0xff]   ;;  %v18731_v39 = vld [vmem:[#allocation5 + $0x1548] ss:$16 sps:$4 sm:$0xff]  }
 0x350   : > { %23510 = vst [vmem:[#allocation33_spill] sm:$0xff] %v21490_v45  ;;  %v21501_v33 = vadd.f32 %v6387_v56, %v23513_v23  ;;  %v6389_v5 = vadd.f32 %v6388_v62, %v6275_v19  ;;  %9535 = vmatpush2.bf16.msra.mxu1 %v18716_v47  ;;  %v6277_v8 = vpop.f32.mrf.mxu0  ;;  %9423 = vmatprep.subr.bf16.mxu0 %v18727_v11  ;;  %v23515_v12 = vld [vmem:[#allocation51_spill] sm:$0xff]  ;;  %v23518_v11 = vld [vmem:[#allocation58_spill] sm:$0xff] }
 0x351   : > { %v6390_v28 = vpop.f32.mrf.mxu1  ;;  %9536 = vmatprep.subr.bf16.mxu1 %v18730_v42  ;;  %v18734_v56 = vld [vmem:[#allocation5 + $0x1748] ss:$16 sps:$4 sm:$0xff]   ;;  %v21507_v23 = vld [vmem:[%s19821_s30 + $0x394] ss:$16 sps:$4 sm:$0xff]   ;;  %v21510_v19 = vld [vmem:[%s19821_s30 + $0x39c] ss:$16 sps:$4 sm:$0xff]  }
 0x352   : > { %23514 = vst [vmem:[#allocation47_spill] sm:$0xff] %v21501_v33  ;;  %v21504_v45 = vadd.f32 %v6389_v5, %v23515_v12  ;;  %v6391_v2 = vadd.f32 %v6390_v28, %v6277_v8  ;;  %23517 = vst [vmem:[#allocation64_spill] sm:$0xff] %v21510_v19  ;;  %v6281_v9 = vpop.f32.mrf.mxu0  ;;  %9266 = vmatmul.mubr.bf16.gmra.mxu0 %v21493_v54  ;;  %v18745_v28 = vld [vmem:[#allocation5 + $0x152c] ss:$16 sps:$4 sm:$0xff]   ;;  %v21521_v54 = vld [vmem:[%s19821_s30 + $0x390] ss:$16 sps:$4 sm:$0xff]  }
 0x353   : > { %v6394_v47 = vpop.f32.mrf.mxu1  ;;  %9379 = vmatmul.mubr.bf16.gmra.mxu1 %v21497_v14  ;;  %9424 = vmatpush2.bf16.msra.mxu0 %v18725_v29  ;;  %v18748_v12 = vld [vmem:[#allocation5 + $0x172c] ss:$16 sps:$4 sm:$0xff]   ;;  %v21525_v14 = vld [vmem:[%s19821_s30 + $0x398] ss:$16 sps:$4 sm:$0xff]  }
 0x354   : > { %23516 = vst [vmem:[#allocation51_spill] sm:$0xff] %v21504_v45  ;;  %v21515_v42 = vadd.f32 %v6391_v2, %v23518_v11  ;;  %v6395_v62 = vadd.f32 %v6394_v47, %v6281_v9  ;;  %9537 = vmatpush2.bf16.msra.mxu1 %v18728_v27  ;;  %v6283_v5 = vpop.f32.mrf.mxu0  ;;  %9425 = vmatprep.subr.bf16.mxu0 %v18733_v57  ;;  %v23520_v45 = vld [vmem:[#allocation59_spill] sm:$0xff] }
 0x355   : > { %v6396_v8 = vpop.f32.mrf.mxu1  ;;  %9538 = vmatprep.subr.bf16.mxu1 %v18736_v60  ;;  %9275 = vmatprep.mubr.bf16.mxu0 %v21507_v23  ;;  %v18743_v60 = vld [vmem:[#allocation5 + $0x1528] ss:$16 sps:$4 sm:$0xff]   ;;  %v18751_v11 = vld [vmem:[#allocation5 + $0x150c] ss:$16 sps:$4 sm:$0xff]  }
 0x356   : > { %23519 = vst [vmem:[#allocation58_spill] sm:$0xff] %v21515_v42  ;;  %v21518_v33 = vadd.f32 %v6395_v62, %v23520_v45  ;;  %v6397_v34 = vadd.f32 %v6396_v8, %v6283_v5  ;;  %9388 = vmatprep.mubr.bf16.mxu1 %v21510_v19  ;;  %v6285_v2 = vpop.f32.mrf.mxu0  ;;  %v18746_v45 = vld [vmem:[#allocation5 + $0x1728] ss:$16 sps:$4 sm:$0xff]   ;;  %v18754_v62 = vld [vmem:[#allocation5 + $0x170c] ss:$16 sps:$4 sm:$0xff]  }
 0x357   : > { %v6398_v29 = vpop.f32.mrf.mxu1  ;;  %9426 = vmatpush2.bf16.msra.mxu0 %v18731_v39  ;;  %v18752_v42 = vld [vmem:[#allocation5 + $0x1708] ss:$16 sps:$4 sm:$0xff]  }
 0x358   : > { %23521 = vst [vmem:[#allocation59_spill] sm:$0xff] %v21518_v33  ;;  %v21529_v27 = vadd.f32 %v6397_v34, %v21177_v43  ;;  %v6399_v57 = vadd.f32 %v6398_v29, %v6285_v2  ;;  %9539 = vmatpush2.bf16.msra.mxu1 %v18734_v56  ;;  %v6287_v9 = vpop.f32.mrf.mxu0  ;;  %9427 = vmatprep.subr.bf16.mxu0 %v18745_v28  ;;  %v18749_v33 = vld [vmem:[#allocation5 + $0x1508] ss:$16 sps:$4 sm:$0xff]  }
 0x359   : > { %v6400_v47 = vpop.f32.mrf.mxu1  ;;  %9540 = vmatprep.subr.bf16.mxu1 %v18748_v12  ;;  %v18760_v12 = vld [vmem:[#allocation5 + $0x1ae4] ss:$16 sps:$4 sm:$0xff]  }
 0x35a   : > { %v21532_v5 = vadd.f32 %v6399_v57, %v21180_v41  ;;  %v6401_v8 = vadd.f32 %v6400_v47, %v6287_v9  ;;  %v6291_v19 = vpop.f32.mrf.mxu0  ;;  %9276 = vmatmul.mubr.bf16.gmra.mxu0 %v21521_v54  ;;  %v18757_v41 = vld [vmem:[#allocation5 + $0x18e4] ss:$16 sps:$4 sm:$0xff]   ;;  %v18755_v57 = vld [vmem:[#allocation5 + $0x18e0] ss:$16 sps:$4 sm:$0xff]  }
 0x35b   : > { %v6404_v43 = vpop.f32.mrf.mxu1  ;;  %9389 = vmatmul.mubr.bf16.gmra.mxu1 %v21525_v14  ;;  %9428 = vmatpush2.bf16.msra.mxu0 %v18743_v60 }
 0x35c   : > { %v21537_v34 = vadd.f32 %v6401_v8, %v21185_v32  ;;  %v6405_v39 = vadd.f32 %v6404_v43, %v6291_v19  ;;  %9541 = vmatpush2.bf16.msra.mxu1 %v18746_v45  ;;  %v6293_v56 = vpop.f32.mrf.mxu0  ;;  %9429 = vmatprep.subr.bf16.mxu0 %v18751_v11  ;;  %v18758_v32 = vld [vmem:[#allocation5 + $0x1ae0] ss:$16 sps:$4 sm:$0xff]  }
 0x35d   : > { %v6406_v28 = vpop.f32.mrf.mxu1  ;;  %9542 = vmatprep.subr.bf16.mxu1 %v18754_v62  ;;  %9431 = vmatprep.mubr.bf16.mxu0 %v21311_v48  ;;  %v18766_v62 = vld [vmem:[#allocation5 + $0x1ac4] ss:$16 sps:$4 sm:$0xff]   ;;  %v18761_v8 = vld [vmem:[#allocation5 + $0x18c0] ss:$16 sps:$4 sm:$0xff]  }
 0x35e   : > { %v21540_v2 = vadd.f32 %v6405_v39, %v21188_v50  ;;  %v6407_v29 = vadd.f32 %v6406_v28, %v6293_v56  ;;  %9544 = vmatprep.mubr.bf16.mxu1 %v21314_v37  ;;  %v6295_v9 = vpop.f32.mrf.mxu0  ;;  %v18763_v50 = vld [vmem:[#allocation5 + $0x18c4] ss:$16 sps:$4 sm:$0xff]   ;;  %v18764_v43 = vld [vmem:[#allocation5 + $0x1ac0] ss:$16 sps:$4 sm:$0xff]  }
 0x35f   : > { %v6408_v19 = vpop.f32.mrf.mxu1  ;;  %9430 = vmatpush2.bf16.msra.mxu0 %v18749_v33 }
 0x360   : > { %v21545_v60 = vadd.f32 %v6407_v29, %v21193_v20  ;;  %v6409_v45 = vadd.f32 %v6408_v19, %v6295_v9  ;;  %9543 = vmatpush2.bf16.msra.mxu1 %v18752_v42  ;;  %v6297_v47 = vpop.f32.mrf.mxu0  ;;  %10779 = vmatprep.subr.bf16.mxu0 %v18757_v41  ;;  %v18772_v41 = vld [vmem:[#allocation5 + $0x1aa4] ss:$16 sps:$4 sm:$0xff]  }
 0x361   : > { %v6410_v11 = vpop.f32.mrf.mxu1  ;;  %10892 = vmatprep.subr.bf16.mxu1 %v18760_v12 }
 0x362   : > { %v21548_v48 = vadd.f32 %v6409_v45, %v21196_v49  ;;  %v6411_v37 = vadd.f32 %v6410_v11, %v6297_v47  ;;  %v7601_v39 = vpop.f32.mrf.mxu0  ;;  %9432 = vmatmul.mubr.bf16.vlgmr.msra.gmra.mxu0 %v21325_v26  ;;  %v18769_v49 = vld [vmem:[#allocation5 + $0x18a4] ss:$16 sps:$4 sm:$0xff]   ;;  %v18767_v26 = vld [vmem:[#allocation5 + $0x18a0] ss:$16 sps:$4 sm:$0xff]  }
 0x363   : > { %v7714_v56 = vpop.f32.mrf.mxu1  ;;  %9545 = vmatmul.mubr.bf16.vlgmr.msra.gmra.mxu1 %v21329_v40  ;;  %10780 = vmatpush1.bf16.msra.mxu0 %v18755_v57  ;;  %v18778_v47 = vld [vmem:[#allocation5 + $0x1a84] ss:$16 sps:$4 sm:$0xff]   ;;  %v18773_v11 = vld [vmem:[#allocation5 + $0x1880] ss:$16 sps:$4 sm:$0xff]  }
 0x364   : > { %v21553_v20 = vadd.f32 %v6411_v37, %v21201_v63  ;;  %v7715_v33 = vadd.f32 %v7714_v56, %v7601_v39  ;;  %10893 = vmatpush1.bf16.msra.mxu1 %v18758_v32  ;;  %v7603_v42 = vpop.f32.mrf.mxu0  ;;  %10781 = vmatprep.subr.bf16.mxu0 %v18763_v50  ;;  %v18770_v63 = vld [vmem:[#allocation5 + $0x1aa0] ss:$16 sps:$4 sm:$0xff]   ;;  %v18784_v56 = vld [vmem:[#allocation5 + $0x1a64] ss:$16 sps:$4 sm:$0xff]  }
 0x365   : > { %v7716_v28 = vpop.f32.mrf.mxu1  ;;  %10894 = vmatprep.subr.bf16.mxu1 %v18766_v62  ;;  %9441 = vmatprep.mubr.bf16.mxu0 %v21339_v4  ;;  %v18776_v50 = vld [vmem:[#allocation5 + $0x1a80] ss:$16 sps:$4 sm:$0xff]  }
 0x366   : > { %v21556_v12 = vadd.f32 %v7715_v33, %v21204_v59  ;;  %v7717_v29 = vadd.f32 %v7716_v28, %v7603_v42  ;;  %9554 = vmatprep.mubr.bf16.mxu1 %v21342_v1  ;;  %v7605_v40 = vpop.f32.mrf.mxu0  ;;  %v18775_v59 = vld [vmem:[#allocation5 + $0x1884] ss:$16 sps:$4 sm:$0xff]  }
 0x367   : > { %v7718_v9 = vpop.f32.mrf.mxu1  ;;  %10782 = vmatpush1.bf16.msra.mxu0 %v18761_v8 }
 0x368   : > { %v21561_v57 = vadd.f32 %v7717_v29, %v21209_v35  ;;  %v7719_v32 = vadd.f32 %v7718_v9, %v7605_v40  ;;  %10895 = vmatpush1.bf16.msra.mxu1 %v18764_v43  ;;  %v7607_v19 = vpop.f32.mrf.mxu0  ;;  %10783 = vmatprep.subr.bf16.mxu0 %v18769_v49  ;;  %v18785_v40 = vld [vmem:[#allocation5 + $0x1840] ss:$16 sps:$4 sm:$0xff]  }
 0x369   : > { %v7720_v45 = vpop.f32.mrf.mxu1  ;;  %10896 = vmatprep.subr.bf16.mxu1 %v18772_v41  ;;  %v18788_v9 = vld [vmem:[#allocation5 + $0x1a40] ss:$16 sps:$4 sm:$0xff]  }
 0x36a   : > { %v21564_v4 = vadd.f32 %v7719_v32, %v21212_v6  ;;  %v7721_v1 = vadd.f32 %v7720_v45, %v7607_v19  ;;  %v7611_v62 = vpop.f32.mrf.mxu0  ;;  %9442 = vmatmul.mubr.bf16.gmra.mxu0 %v21353_v3  ;;  %v18781_v6 = vld [vmem:[#allocation5 + $0x1864] ss:$16 sps:$4 sm:$0xff]  }
 0x36b   : > { %v7724_v37 = vpop.f32.mrf.mxu1  ;;  %9555 = vmatmul.mubr.bf16.gmra.mxu1 %v21357_v15  ;;  %10784 = vmatpush1.bf16.msra.mxu0 %v18767_v26  ;;  %v18779_v15 = vld [vmem:[#allocation5 + $0x1860] ss:$16 sps:$4 sm:$0xff]  }
 0x36c   : > { %v21569_v35 = vadd.f32 %v7721_v1, %v21217_v51  ;;  %v7725_v8 = vadd.f32 %v7724_v37, %v7611_v62  ;;  %10897 = vmatpush1.bf16.msra.mxu1 %v18770_v63  ;;  %v7613_v43 = vpop.f32.mrf.mxu0  ;;  %10785 = vmatprep.subr.bf16.mxu0 %v18775_v59  ;;  %v18782_v51 = vld [vmem:[#allocation5 + $0x1a60] ss:$16 sps:$4 sm:$0xff]   ;;  %v18790_v63 = vld [vmem:[#allocation5 + $0x1a44] ss:$16 sps:$4 sm:$0xff]  }
 0x36d   : > { %v7726_v39 = vpop.f32.mrf.mxu1  ;;  %10898 = vmatprep.subr.bf16.mxu1 %v18778_v47  ;;  %9451 = vmatprep.mubr.bf16.mxu0 %v21367_v52  ;;  %v18796_v1 = vld [vmem:[#allocation5 + $0x1a24] ss:$16 sps:$4 sm:$0xff]  }
 0x36e   : > { %v21572_v33 = vadd.f32 %v7725_v8, %v21220_v7  ;;  %v7727_v42 = vadd.f32 %v7726_v39, %v7613_v43  ;;  %9564 = vmatprep.mubr.bf16.mxu1 %v21370_v0  ;;  %v7615_v3 = vpop.f32.mrf.mxu0  ;;  %v18787_v7 = vld [vmem:[#allocation5 + $0x1844] ss:$16 sps:$4 sm:$0xff]  }
 0x36f   : > { %v7728_v28 = vpop.f32.mrf.mxu1  ;;  %10786 = vmatpush1.bf16.msra.mxu0 %v18773_v11 }
 0x370   : > { %v21577_v49 = vadd.f32 %v7727_v42, %v21225_v61  ;;  %v7729_v41 = vadd.f32 %v7728_v28, %v7615_v3  ;;  %10899 = vmatpush1.bf16.msra.mxu1 %v18776_v50  ;;  %v7617_v29 = vpop.f32.mrf.mxu0  ;;  %10787 = vmatprep.subr.bf16.mxu0 %v18781_v6  ;;  %v18802_v6 = vld [vmem:[#allocation5 + $0x1a04] ss:$16 sps:$4 sm:$0xff]   ;;  %v18800_v42 = vld [vmem:[#allocation5 + $0x1a00] ss:$16 sps:$4 sm:$0xff]  }
 0x371   : > { %v7730_v26 = vpop.f32.mrf.mxu1  ;;  %10900 = vmatprep.subr.bf16.mxu1 %v18784_v56  ;;  %v18797_v56 = vld [vmem:[#allocation5 + $0x1800] ss:$16 sps:$4 sm:$0xff]  }
 0x372   : > { %v21580_v52 = vadd.f32 %v7729_v41, %v21228_v16  ;;  %v7731_v0 = vadd.f32 %v7730_v26, %v7617_v29  ;;  %v7621_v32 = vpop.f32.mrf.mxu0  ;;  %9452 = vmatmul.mubr.bf16.gmra.mxu0 %v21381_v10  ;;  %v18793_v16 = vld [vmem:[#allocation5 + $0x1824] ss:$16 sps:$4 sm:$0xff]  }
 0x373   : > { %v7734_v19 = vpop.f32.mrf.mxu1  ;;  %9565 = vmatmul.mubr.bf16.gmra.mxu1 %v21385_v17  ;;  %10788 = vmatpush1.bf16.msra.mxu0 %v18779_v15  ;;  %v18791_v17 = vld [vmem:[#allocation5 + $0x1820] ss:$16 sps:$4 sm:$0xff]   ;;  %v18808_v29 = vld [vmem:[#allocation5 + $0x1be4] ss:$16 sps:$4 sm:$0xff]  }
 0x374   : > { %v21585_v61 = vadd.f32 %v7731_v0, %v21233_v36  ;;  %v7735_v45 = vadd.f32 %v7734_v19, %v7621_v32  ;;  %10901 = vmatpush1.bf16.msra.mxu1 %v18782_v51  ;;  %v7623_v59 = vpop.f32.mrf.mxu0  ;;  %10789 = vmatprep.subr.bf16.mxu0 %v18787_v7  ;;  %v18794_v36 = vld [vmem:[#allocation5 + $0x1a20] ss:$16 sps:$4 sm:$0xff]   ;;  %v18814_v19 = vld [vmem:[#allocation5 + $0x1bc4] ss:$16 sps:$4 sm:$0xff]  }
 0x375   : > { %v7736_v47 = vpop.f32.mrf.mxu1  ;;  %10902 = vmatprep.subr.bf16.mxu1 %v18790_v63  ;;  %9461 = vmatprep.mubr.bf16.mxu0 %v21395_v58 }
 0x376   : > { %v21588_v11 = vadd.f32 %v7735_v45, %v21236_v24  ;;  %v7737_v50 = vadd.f32 %v7736_v47, %v7623_v59  ;;  %9574 = vmatprep.mubr.bf16.mxu1 %v21398_v25  ;;  %v7625_v10 = vpop.f32.mrf.mxu0  ;;  %v18799_v24 = vld [vmem:[#allocation5 + $0x1804] ss:$16 sps:$4 sm:$0xff]   ;;  %v18809_v45 = vld [vmem:[#allocation5 + $0x19c0] ss:$16 sps:$4 sm:$0xff]  }
 0x377   : > { %v7738_v62 = vpop.f32.mrf.mxu1  ;;  %10790 = vmatpush1.bf16.msra.mxu0 %v18785_v40  ;;  %v18812_v59 = vld [vmem:[#allocation5 + $0x1bc0] ss:$16 sps:$4 sm:$0xff]  }
 0x378   : > { %v21593_v37 = vadd.f32 %v7737_v50, %v21241_v13  ;;  %v7739_v8 = vadd.f32 %v7738_v62, %v7625_v10  ;;  %10903 = vmatpush1.bf16.msra.mxu1 %v18788_v9  ;;  %v7627_v43 = vpop.f32.mrf.mxu0  ;;  %10791 = vmatprep.subr.bf16.mxu0 %v18793_v16  ;;  %v18820_v62 = vld [vmem:[#allocation5 + $0x1ba4] ss:$16 sps:$4 sm:$0xff]  }
 0x379   : > { %v7740_v39 = vpop.f32.mrf.mxu1  ;;  %10904 = vmatprep.subr.bf16.mxu1 %v18796_v1  ;;  %v23523_v1 = vld [vmem:[#allocation23_spill] sm:$0xff] }
 0x37a   : > { %v21596_v58 = vadd.f32 %v7739_v8, %v21244_v46  ;;  %v7741_v25 = vadd.f32 %v7740_v39, %v7627_v43  ;;  %v7631_v15 = vpop.f32.mrf.mxu0  ;;  %9462 = vmatmul.mubr.bf16.gmra.mxu0 %v21409_v30  ;;  %v18805_v46 = vld [vmem:[#allocation5 + $0x19e4] ss:$16 sps:$4 sm:$0xff]  }
 0x37b   : > { %v7744_v51 = vpop.f32.mrf.mxu1  ;;  %9575 = vmatmul.mubr.bf16.gmra.mxu1 %v21413_v38  ;;  %10792 = vmatpush1.bf16.msra.mxu0 %v18791_v17  ;;  %v18803_v38 = vld [vmem:[#allocation5 + $0x19e0] ss:$16 sps:$4 sm:$0xff]  }
 0x37c   : > { %v21601_v13 = vadd.f32 %v7741_v25, %v21249_v53  ;;  %v7745_v3 = vadd.f32 %v7744_v51, %v7631_v15  ;;  %10905 = vmatpush1.bf16.msra.mxu1 %v18794_v36  ;;  %v7633_v28 = vpop.f32.mrf.mxu0  ;;  %10793 = vmatprep.subr.bf16.mxu0 %v18799_v24  ;;  %v18806_v53 = vld [vmem:[#allocation5 + $0x1be0] ss:$16 sps:$4 sm:$0xff]   ;;  %v23527_v24 = vld [vmem:[#allocation19_spill] sm:$0xff]  ;;  %v23529_v15 = vld [vmem:[#allocation61_spill] sm:$0xff] }
 0x37d   : > { %v7746_v41 = vpop.f32.mrf.mxu1  ;;  %10906 = vmatprep.subr.bf16.mxu1 %v18802_v6  ;;  %9471 = vmatprep.mubr.bf16.mxu0 %v21423_v22  ;;  %v23525_v8 = vld [vmem:[#allocation60_spill] sm:$0xff] }
 0x37e   : > { %v21604_v26 = vadd.f32 %v7745_v3, %v21252_v31  ;;  %v7747_v7 = vadd.f32 %v7746_v41, %v7633_v28  ;;  %9584 = vmatprep.mubr.bf16.mxu1 %v21426_v55  ;;  %v7635_v30 = vpop.f32.mrf.mxu0  ;;  %v18811_v31 = vld [vmem:[#allocation5 + $0x19c4] ss:$16 sps:$4 sm:$0xff]   ;;  %v18815_v6 = vld [vmem:[#allocation5 + $0x19a0] ss:$16 sps:$4 sm:$0xff]  }
 0x37f   : > { %v7748_v63 = vpop.f32.mrf.mxu1  ;;  %10794 = vmatpush1.bf16.msra.mxu0 %v18797_v56  ;;  %v18818_v25 = vld [vmem:[#allocation5 + $0x1ba0] ss:$16 sps:$4 sm:$0xff]  }
 0x380   : > { %v21609_v0 = vadd.f32 %v7747_v7, %v21257_v44  ;;  %v7749_v40 = vadd.f32 %v7748_v63, %v7635_v30  ;;  %10907 = vmatpush1.bf16.msra.mxu1 %v18800_v42  ;;  %v7637_v9 = vpop.f32.mrf.mxu0  ;;  %10795 = vmatprep.subr.bf16.mxu0 %v18805_v46  ;;  %v23522_v44 = vld [vmem:[#allocation52_spill] sm:$0xff]  ;;  %v23531_v7 = vld [vmem:[#allocation26_spill] sm:$0xff] }
 0x381   : > { %v7750_v32 = vpop.f32.mrf.mxu1  ;;  %10908 = vmatprep.subr.bf16.mxu1 %v18808_v29  ;;  %v18823_v46 = vld [vmem:[#allocation5 + $0x1984] ss:$16 sps:$4 sm:$0xff]   ;;  %v18821_v30 = vld [vmem:[#allocation5 + $0x1980] ss:$16 sps:$4 sm:$0xff]  }
 0x382   : > { %v21612_v22 = vadd.f32 %v7749_v40, %v21260_v18  ;;  %v7751_v55 = vadd.f32 %v7750_v32, %v7637_v9  ;;  %v7641_v47 = vpop.f32.mrf.mxu0  ;;  %9472 = vmatmul.mubr.bf16.gmra.mxu0 %v21437_v21  ;;  %v18817_v18 = vld [vmem:[#allocation5 + $0x19a4] ss:$16 sps:$4 sm:$0xff]   ;;  %v18824_v63 = vld [vmem:[#allocation5 + $0x1b80] ss:$16 sps:$4 sm:$0xff]  }
 0x383   : > { %v7754_v16 = vpop.f32.mrf.mxu1  ;;  %9585 = vmatmul.mubr.bf16.gmra.mxu1 %v23522_v44  ;;  %10796 = vmatpush2.bf16.msra.mxu0 %v18803_v38  ;;  %v23528_v21 = vld [vmem:[#allocation56_spill] sm:$0xff]  ;;  %v23533_v32 = vld [vmem:[#allocation21_spill] sm:$0xff] }
 0x384   : > { %v21617_v50 = vadd.f32 %v7751_v55, %v23523_v1  ;;  %v7755_v17 = vadd.f32 %v7754_v16, %v7641_v47  ;;  %10909 = vmatpush2.bf16.msra.mxu1 %v18806_v53  ;;  %v7643_v36 = vpop.f32.mrf.mxu0  ;;  %10797 = vmatprep.subr.bf16.mxu0 %v18811_v31  ;;  %v18826_v29 = vld [vmem:[#allocation5 + $0x1b84] ss:$16 sps:$4 sm:$0xff]  }
 0x385   : > { %v7756_v10 = vpop.f32.mrf.mxu1  ;;  %10910 = vmatprep.subr.bf16.mxu1 %v18814_v19  ;;  %9481 = vmatprep.mubr.bf16.mxu0 %v23527_v24  ;;  %v23534_v31 = vld [vmem:[#allocation22_spill] sm:$0xff]  ;;  %v23535_v19 = vld [vmem:[#allocation27_spill] sm:$0xff] }
 0x386   : > { %23524 = vst [vmem:[#allocation52_spill] sm:$0xff] %v21617_v50  ;;  %v21620_v43 = vadd.f32 %v7755_v17, %v23525_v8  ;;  %v7757_v39 = vadd.f32 %v7756_v10, %v7643_v36  ;;  %9594 = vmatprep.mubr.bf16.mxu1 %v23528_v21  ;;  %v7645_v56 = vpop.f32.mrf.mxu0  ;;  %v18829_v16 = vld [vmem:[#allocation5 + $0x1964] ss:$16 sps:$4 sm:$0xff]   ;;  %v18830_v8 = vld [vmem:[#allocation5 + $0x1b60] ss:$16 sps:$4 sm:$0xff]  }
 0x387   : > { %v7758_v42 = vpop.f32.mrf.mxu1  ;;  %10798 = vmatpush2.bf16.msra.mxu0 %v18809_v45  ;;  %v18832_v44 = vld [vmem:[#allocation5 + $0x1b64] ss:$16 sps:$4 sm:$0xff]   ;;  %v21817_v50 = vld [vmem:[%s19821_s30 + $0x220] ss:$16 sps:$4 sm:$0xff]  }
 0x388   : > { %23526 = vst [vmem:[#allocation23_spill] sm:$0xff] %v21620_v43  ;;  %v21625_v51 = vadd.f32 %v7757_v39, %v23529_v15  ;;  %v7759_v3 = vadd.f32 %v7758_v42, %v7645_v56  ;;  %10911 = vmatpush2.bf16.msra.mxu1 %v18812_v59  ;;  %v7647_v28 = vpop.f32.mrf.mxu0  ;;  %10799 = vmatprep.subr.bf16.mxu0 %v18817_v18  ;;  %v23537_v1 = vld [vmem:[#allocation62_spill] sm:$0xff]  ;;  %v23539_v10 = vld [vmem:[#allocation28_spill] sm:$0xff]  ;;  %v23540_v18 = vld [vmem:[#allocation29_spill] sm:$0xff] }
 0x389   : > { %v7760_v41 = vpop.f32.mrf.mxu1  ;;  %10912 = vmatprep.subr.bf16.mxu1 %v18820_v62  ;;  %v18827_v62 = vld [vmem:[#allocation5 + $0x1960] ss:$16 sps:$4 sm:$0xff]   ;;  %v18835_v15 = vld [vmem:[#allocation5 + $0x1944] ss:$16 sps:$4 sm:$0xff]  }
 0x38a   : > { %23530 = vst [vmem:[#allocation60_spill] sm:$0xff] %v21625_v51  ;;  %v21628_v38 = vadd.f32 %v7759_v3, %v23531_v7  ;;  %v7761_v53 = vadd.f32 %v7760_v41, %v7647_v28  ;;  %v7651_v40 = vpop.f32.mrf.mxu0  ;;  %9482 = vmatmul.mubr.bf16.gmra.mxu0 %v23533_v32  ;;  %v23541_v21 = vld [vmem:[#allocation34_spill] sm:$0xff]  ;;  %v23546_v32 = vld [vmem:[#allocation41_spill] sm:$0xff] }
 0x38b   : > { %v7764_v9 = vpop.f32.mrf.mxu1  ;;  %9595 = vmatmul.mubr.bf16.gmra.mxu1 %v23534_v31  ;;  %10800 = vmatpush2.bf16.msra.mxu0 %v18815_v6  ;;  %v18838_v3 = vld [vmem:[#allocation5 + $0x1b44] ss:$16 sps:$4 sm:$0xff]   ;;  %v18836_v7 = vld [vmem:[#allocation5 + $0x1b40] ss:$16 sps:$4 sm:$0xff]   ;;  %v18935_v51 = vld [vmem:[#allocation5 + $0x19c8] ss:$16 sps:$4 sm:$0xff]  }
 0x38c   : > { %23532 = vst [vmem:[#allocation19_spill] sm:$0xff] %v21628_v38  ;;  %v21633_v55 = vadd.f32 %v7761_v53, %v23535_v19  ;;  %v7765_v45 = vadd.f32 %v7764_v9, %v7651_v40  ;;  %10913 = vmatpush2.bf16.msra.mxu1 %v18818_v25  ;;  %v7653_v59 = vpop.f32.mrf.mxu0  ;;  %10801 = vmatprep.subr.bf16.mxu0 %v18823_v46  ;;  %v23543_v28 = vld [vmem:[#allocation30_spill] sm:$0xff]  ;;  %v23545_v9 = vld [vmem:[#allocation40_spill] sm:$0xff]  ;;  %v21793_v38 = vld [vmem:[%s19821_s30 + $0x208] ss:$16 sps:$4 sm:$0xff]  }
 0x38d   : > { %v7766_v47 = vpop.f32.mrf.mxu1  ;;  %10914 = vmatprep.subr.bf16.mxu1 %v18826_v29  ;;  %9491 = vmatprep.mubr.bf16.mxu0 %v23539_v10  ;;  %v18833_v29 = vld [vmem:[#allocation5 + $0x1940] ss:$16 sps:$4 sm:$0xff]  }
 0x38e   : > { %23536 = vst [vmem:[#allocation56_spill] sm:$0xff] %v21633_v55  ;;  %v21636_v17 = vadd.f32 %v7765_v45, %v23537_v1  ;;  %v7767_v36 = vadd.f32 %v7766_v47, %v7653_v59  ;;  %9604 = vmatprep.mubr.bf16.mxu1 %v23540_v18  ;;  %v7655_v39 = vpop.f32.mrf.mxu0  ;;  %v18841_v59 = vld [vmem:[#allocation5 + $0x1924] ss:$16 sps:$4 sm:$0xff]   ;;  %v18839_v10 = vld [vmem:[#allocation5 + $0x1920] ss:$16 sps:$4 sm:$0xff]  }
 0x38f   : > { %v7768_v24 = vpop.f32.mrf.mxu1  ;;  %10802 = vmatpush2.bf16.msra.mxu0 %v18821_v30  ;;  %v23547_v30 = vld [vmem:[#allocation31_spill] sm:$0xff]  ;;  %v18842_v18 = vld [vmem:[#allocation5 + $0x1b20] ss:$16 sps:$4 sm:$0xff]  }
 0x390   : > { %23538 = vst [vmem:[#allocation61_spill] sm:$0xff] %v21636_v17  ;;  %v21641_v6 = vadd.f32 %v7767_v36, %v23541_v21  ;;  %v7769_v25 = vadd.f32 %v7768_v24, %v7655_v39  ;;  %10915 = vmatpush2.bf16.msra.mxu1 %v18824_v63  ;;  %v7657_v56 = vpop.f32.mrf.mxu0  ;;  %10803 = vmatprep.subr.bf16.mxu0 %v18829_v16  ;;  %v18844_v47 = vld [vmem:[#allocation5 + $0x1b24] ss:$16 sps:$4 sm:$0xff]   ;;  %v21789_v55 = vld [vmem:[%s19821_s30 + $0x200] ss:$16 sps:$4 sm:$0xff]  }
 0x391   : > { %v7770_v42 = vpop.f32.mrf.mxu1  ;;  %10916 = vmatprep.subr.bf16.mxu1 %v18832_v44  ;;  %v23549_v16 = vld [vmem:[#allocation35_spill] sm:$0xff]  ;;  %v23551_v36 = vld [vmem:[#allocation64_spill] sm:$0xff] }
 0x392   : > { %23542 = vst [vmem:[#allocation26_spill] sm:$0xff] %v21641_v6  ;;  %v21644_v41 = vadd.f32 %v7769_v25, %v23543_v28  ;;  %v7771_v46 = vadd.f32 %v7770_v42, %v7657_v56  ;;  %v7661_v53 = vpop.f32.mrf.mxu0  ;;  %9492 = vmatmul.mubr.bf16.gmra.mxu0 %v23545_v9  ;;  %v18847_v42 = vld [vmem:[#allocation5 + $0x1904] ss:$16 sps:$4 sm:$0xff]   ;;  %v21666_v9 = vld [vmem:[%s19821_s30 + $0x2c] ss:$16 sps:$4 sm:$0xff]  }
 0x393   : > { %v7774_v40 = vpop.f32.mrf.mxu1  ;;  %9605 = vmatmul.mubr.bf16.gmra.mxu1 %v23546_v32  ;;  %10804 = vmatpush2.bf16.msra.mxu0 %v18827_v62  ;;  %v18917_v6 = vld [vmem:[#allocation5 + $0x1808] ss:$16 sps:$4 sm:$0xff]  }
 0x394   : > { %23544 = vst [vmem:[#allocation21_spill] sm:$0xff] %v21644_v41  ;;  %v21649_v63 = vadd.f32 %v7771_v46, %v23547_v30  ;;  %v7775_v31 = vadd.f32 %v7774_v40, %v7661_v53  ;;  %10917 = vmatpush2.bf16.msra.mxu1 %v18830_v8  ;;  %v7663_v19 = vpop.f32.mrf.mxu0  ;;  %10805 = vmatprep.subr.bf16.mxu0 %v18835_v15  ;;  %v23552_v8 = vld [vmem:[#allocation63_spill] sm:$0xff]  ;;  %v23554_v15 = vld [vmem:[#allocation36_spill] sm:$0xff] }
 0x395   : > { %v7776_v45 = vpop.f32.mrf.mxu1  ;;  %10918 = vmatprep.subr.bf16.mxu1 %v18838_v3  ;;  %9501 = vmatprep.mubr.bf16.mxu0 %v21507_v23  ;;  %v18850_v23 = vld [vmem:[#allocation5 + $0x1b04] ss:$16 sps:$4 sm:$0xff]   ;;  %v18845_v46 = vld [vmem:[#allocation5 + $0x1900] ss:$16 sps:$4 sm:$0xff]   ;;  %v21765_v41 = vld [vmem:[%s19821_s30 + $0x88] ss:$16 sps:$4 sm:$0xff]  }
 0x396   : > { %23548 = vst [vmem:[#allocation22_spill] sm:$0xff] %v21649_v63  ;;  %v21652_v44 = vadd.f32 %v7775_v31, %v23549_v16  ;;  %v7777_v1 = vadd.f32 %v7776_v45, %v7663_v19  ;;  %9614 = vmatprep.mubr.bf16.mxu1 %v23551_v36  ;;  %v7665_v39 = vpop.f32.mrf.mxu0  ;;  %v18848_v53 = vld [vmem:[#allocation5 + $0x1b00] ss:$16 sps:$4 sm:$0xff]   ;;  %v21663_v40 = vld [vmem:[%s19821_s30 + $0x24] ss:$16 sps:$4 sm:$0xff]  }
 0x397   : > { %v7778_v62 = vpop.f32.mrf.mxu1  ;;  %10806 = vmatpush2.bf16.msra.mxu0 %v18833_v29  ;;  %v23558_v16 = vld [vmem:[#allocation13_spill] sm:$0xff]  ;;  %v21761_v63 = vld [vmem:[%s19821_s30 + $0x80] ss:$16 sps:$4 sm:$0xff]  }
 0x398   : > { %23550 = vst [vmem:[#allocation27_spill] sm:$0xff] %v21652_v44  ;;  %v21657_v24 = vadd.f32 %v7777_v1, %v23552_v8  ;;  %v7779_v21 = vadd.f32 %v7778_v62, %v7665_v39  ;;  %10919 = vmatpush2.bf16.msra.mxu1 %v18836_v7  ;;  %v7667_v25 = vpop.f32.mrf.mxu0  ;;  %10807 = vmatprep.subr.bf16.mxu0 %v18841_v59  ;;  %v23556_v7 = vld [vmem:[#allocation37_spill] sm:$0xff]  ;;  %v23560_v39 = vld [vmem:[#allocation38_spill] sm:$0xff] }
 0x399   : > { %v7780_v56 = vpop.f32.mrf.mxu1  ;;  %10920 = vmatprep.subr.bf16.mxu1 %v18844_v47  ;;  %v18859_v59 = vld [vmem:[#allocation5 + $0x18ec] ss:$16 sps:$4 sm:$0xff]  }
 0x39a   : > { %23553 = vst [vmem:[#allocation62_spill] sm:$0xff] %v21657_v24  ;;  %v21660_v3 = vadd.f32 %v7779_v21, %v23554_v15  ;;  %v7781_v28 = vadd.f32 %v7780_v56, %v7667_v25  ;;  %v7671_v32 = vpop.f32.mrf.mxu0  ;;  %9502 = vmatmul.mubr.bf16.gmra.mxu0 %v21521_v54  ;;  %v18862_v47 = vld [vmem:[#allocation5 + $0x1aec] ss:$16 sps:$4 sm:$0xff]   ;;  %v21677_v54 = vld [vmem:[%s19821_s30 + $0x20] ss:$16 sps:$4 sm:$0xff]  }
 0x39b   : > { %v7784_v29 = vpop.f32.mrf.mxu1  ;;  %9615 = vmatmul.mubr.bf16.gmra.mxu1 %v21525_v14  ;;  %10808 = vmatpush2.bf16.msra.mxu0 %v18839_v10  ;;  %v21681_v14 = vld [vmem:[%s19821_s30 + $0x28] ss:$16 sps:$4 sm:$0xff]   ;;  %v18868_v15 = vld [vmem:[#allocation5 + $0x1acc] ss:$16 sps:$4 sm:$0xff]  }
 0x39c   : > { %23555 = vst [vmem:[#allocation28_spill] sm:$0xff] %v21660_v3  ;;  %v21671_v30 = vadd.f32 %v7781_v28, %v23556_v7  ;;  %v7785_v31 = vadd.f32 %v7784_v29, %v7671_v32  ;;  %10921 = vmatpush2.bf16.msra.mxu1 %v18842_v18  ;;  %v7673_v19 = vpop.f32.mrf.mxu0  ;;  %10809 = vmatprep.subr.bf16.mxu0 %v18847_v42  ;;  %v18857_v21 = vld [vmem:[#allocation5 + $0x18e8] ss:$16 sps:$4 sm:$0xff]   ;;  %v23562_v28 = vld [vmem:[#allocation46_spill] sm:$0xff] }
 0x39d   : > { %v7786_v45 = vpop.f32.mrf.mxu1  ;;  %10922 = vmatprep.subr.bf16.mxu1 %v18850_v23  ;;  %10811 = vmatprep.mubr.bf16.mxu0 %v21663_v40  ;;  %v18860_v25 = vld [vmem:[#allocation5 + $0x1ae8] ss:$16 sps:$4 sm:$0xff]   ;;  %v18865_v23 = vld [vmem:[#allocation5 + $0x18cc] ss:$16 sps:$4 sm:$0xff]  }
 0x39e   : > { %23557 = vst [vmem:[#allocation29_spill] sm:$0xff] %v21671_v30  ;;  %v21674_v1 = vadd.f32 %v7785_v31, %v23558_v16  ;;  %v7787_v36 = vadd.f32 %v7786_v45, %v7673_v19  ;;  %10924 = vmatprep.mubr.bf16.mxu1 %v21666_v9  ;;  %v7675_v10 = vpop.f32.mrf.mxu0  ;;  %v18863_v7 = vld [vmem:[#allocation5 + $0x18c8] ss:$16 sps:$4 sm:$0xff]   ;;  %v21691_v19 = vld [vmem:[%s19821_s30 + $0x44] ss:$16 sps:$4 sm:$0xff]  }
 0x39f   : > { %v7788_v18 = vpop.f32.mrf.mxu1  ;;  %10810 = vmatpush2.bf16.msra.mxu0 %v18845_v46  ;;  %v18866_v31 = vld [vmem:[#allocation5 + $0x1ac8] ss:$16 sps:$4 sm:$0xff]   ;;  %v21694_v45 = vld [vmem:[%s19821_s30 + $0x4c] ss:$16 sps:$4 sm:$0xff]   ;;  %v21733_v30 = vld [vmem:[%s19821_s30 + $0x60] ss:$16 sps:$4 sm:$0xff]  }
 0x3a0   : > { %23559 = vst [vmem:[#allocation34_spill] sm:$0xff] %v21674_v1  ;;  %v21685_v62 = vadd.f32 %v7787_v36, %v23560_v39  ;;  %v7789_v8 = vadd.f32 %v7788_v18, %v7675_v10  ;;  %10923 = vmatpush2.bf16.msra.mxu1 %v18848_v53  ;;  %v7677_v56 = vpop.f32.mrf.mxu0  ;;  %11005 = vmatprep.subr.bf16.mxu0 %v18859_v59  ;;  %v23564_v59 = vld [vmem:[#allocation39_spill] sm:$0xff] }
 0x3a1   : > { %v7790_v42 = vpop.f32.mrf.mxu1  ;;  %11118 = vmatprep.subr.bf16.mxu1 %v18862_v47  ;;  %v18877_v18 = vld [vmem:[#allocation5 + $0x18ac] ss:$16 sps:$4 sm:$0xff]   ;;  %v21737_v3 = vld [vmem:[%s19821_s30 + $0x68] ss:$16 sps:$4 sm:$0xff]  }
 0x3a2   : > { %23561 = vst [vmem:[#allocation30_spill] sm:$0xff] %v21685_v62  ;;  %v21688_v32 = vadd.f32 %v7789_v8, %v23562_v28  ;;  %v7791_v29 = vadd.f32 %v7790_v42, %v7677_v56  ;;  %v7827_v46 = vpop.f32.mrf.mxu0  ;;  %10812 = vmatmul.mubr.bf16.vlgmr.msra.gmra.mxu0 %v21677_v54  ;;  %v18880_v39 = vld [vmem:[#allocation5 + $0x1aac] ss:$16 sps:$4 sm:$0xff]   ;;  %v21705_v28 = vld [vmem:[%s19821_s30 + $0x40] ss:$16 sps:$4 sm:$0xff]  }
 0x3a3   : > { %v7940_v53 = vpop.f32.mrf.mxu1  ;;  %10925 = vmatmul.mubr.bf16.vlgmr.msra.gmra.mxu1 %v21681_v14  ;;  %11006 = vmatpush1.bf16.msra.mxu0 %v18857_v21  ;;  %v23566_v8 = vld [vmem:[#allocation44_spill] sm:$0xff]  ;;  %v18881_v62 = vld [vmem:[#allocation5 + $0x1888] ss:$16 sps:$4 sm:$0xff]  }
 0x3a4   : > { %23563 = vst [vmem:[#allocation40_spill] sm:$0xff] %v21688_v32  ;;  %v21699_v47 = vadd.f32 %v7791_v29, %v23564_v59  ;;  %v7941_v16 = vadd.f32 %v7940_v53, %v7827_v46  ;;  %11119 = vmatpush1.bf16.msra.mxu1 %v18860_v25  ;;  %v7829_v36 = vpop.f32.mrf.mxu0  ;;  %11007 = vmatprep.subr.bf16.mxu0 %v18865_v23  ;;  %v21709_v32 = vld [vmem:[%s19821_s30 + $0x48] ss:$16 sps:$4 sm:$0xff]   ;;  %v23568_v29 = vld [vmem:[#allocation54_spill] sm:$0xff] }
 0x3a5   : > { %v7942_v10 = vpop.f32.mrf.mxu1  ;;  %11120 = vmatprep.subr.bf16.mxu1 %v18868_v15  ;;  %10821 = vmatprep.mubr.bf16.mxu0 %v21691_v19  ;;  %v18875_v15 = vld [vmem:[#allocation5 + $0x18a8] ss:$16 sps:$4 sm:$0xff]  }
 0x3a6   : > { %23565 = vst [vmem:[#allocation41_spill] sm:$0xff] %v21699_v47  ;;  %v21702_v56 = vadd.f32 %v7941_v16, %v23566_v8  ;;  %v7943_v42 = vadd.f32 %v7942_v10, %v7829_v36  ;;  %10934 = vmatprep.mubr.bf16.mxu1 %v21694_v45  ;;  %v7831_v21 = vpop.f32.mrf.mxu0  ;;  %v18878_v53 = vld [vmem:[#allocation5 + $0x1aa8] ss:$16 sps:$4 sm:$0xff]   ;;  %v18883_v36 = vld [vmem:[#allocation5 + $0x188c] ss:$16 sps:$4 sm:$0xff]  }
 0x3a7   : > { %v7944_v25 = vpop.f32.mrf.mxu1  ;;  %11008 = vmatpush1.bf16.msra.mxu0 %v18863_v7  ;;  %v18886_v10 = vld [vmem:[#allocation5 + $0x1a8c] ss:$16 sps:$4 sm:$0xff]   ;;  %v18899_v24 = vld [vmem:[#allocation5 + $0x1848] ss:$16 sps:$4 sm:$0xff]  }
 0x3a8   : > { %23567 = vst [vmem:[#allocation31_spill] sm:$0xff] %v21702_v56  ;;  %v21713_v46 = vadd.f32 %v7943_v42, %v23568_v29  ;;  %v7945_v23 = vadd.f32 %v7944_v25, %v7831_v21  ;;  %11121 = vmatpush1.bf16.msra.mxu1 %v18866_v31  ;;  %v7833_v59 = vpop.f32.mrf.mxu0  ;;  %11009 = vmatprep.subr.bf16.mxu0 %v18877_v18  ;;  %v23570_v8 = vld [vmem:[#allocation45_spill] sm:$0xff]  ;;  %v23572_v18 = vld [vmem:[#allocation42_spill] sm:$0xff] }
 0x3a9   : > { %v7946_v16 = vpop.f32.mrf.mxu1  ;;  %11122 = vmatprep.subr.bf16.mxu1 %v18880_v39  ;;  %v18884_v42 = vld [vmem:[#allocation5 + $0x1a88] ss:$16 sps:$4 sm:$0xff]   ;;  %v21719_v29 = vld [vmem:[%s19821_s30 + $0x64] ss:$16 sps:$4 sm:$0xff]   ;;  %v21722_v21 = vld [vmem:[%s19821_s30 + $0x6c] ss:$16 sps:$4 sm:$0xff]  }
 0x3aa   : > { %23569 = vst [vmem:[#allocation35_spill] sm:$0xff] %v21713_v46  ;;  %v21716_v56 = vadd.f32 %v7945_v23, %v23570_v8  ;;  %v7947_v47 = vadd.f32 %v7946_v16, %v7833_v59  ;;  %v7837_v7 = vpop.f32.mrf.mxu0  ;;  %10822 = vmatmul.mubr.bf16.gmra.mxu0 %v21705_v28  ;;  %v18895_v16 = vld [vmem:[#allocation5 + $0x186c] ss:$16 sps:$4 sm:$0xff]   ;;  %23592 = vst [vmem:[#allocation42_spill] sm:$0xff] %v21793_v38 }
 0x3ab   : > { %v7950_v31 = vpop.f32.mrf.mxu1  ;;  %10935 = vmatmul.mubr.bf16.gmra.mxu1 %v21709_v32  ;;  %11010 = vmatpush1.bf16.msra.mxu0 %v18875_v15  ;;  %v18898_v8 = vld [vmem:[#allocation5 + $0x1a6c] ss:$16 sps:$4 sm:$0xff]  }
 0x3ac   : > { %23571 = vst [vmem:[#allocation64_spill] sm:$0xff] %v21716_v56  ;;  %v21727_v39 = vadd.f32 %v7947_v47, %v23572_v18  ;;  %v7951_v25 = vadd.f32 %v7950_v31, %v7837_v7  ;;  %11123 = vmatpush1.bf16.msra.mxu1 %v18878_v53  ;;  %v7839_v23 = vpop.f32.mrf.mxu0  ;;  %11011 = vmatprep.subr.bf16.mxu0 %v18883_v36  ;;  %v23574_v56 = vld [vmem:[#allocation43_spill] sm:$0xff]  ;;  %v23576_v53 = vld [vmem:[#allocation14_spill] sm:$0xff] }
 0x3ad   : > { %v7952_v59 = vpop.f32.mrf.mxu1  ;;  %11124 = vmatprep.subr.bf16.mxu1 %v18886_v10  ;;  %10831 = vmatprep.mubr.bf16.mxu0 %v21719_v29  ;;  %v18896_v10 = vld [vmem:[#allocation5 + $0x1a68] ss:$16 sps:$4 sm:$0xff]  }
 0x3ae   : > { %23573 = vst [vmem:[#allocation63_spill] sm:$0xff] %v21727_v39  ;;  %v21730_v46 = vadd.f32 %v7951_v25, %v23574_v56  ;;  %v7953_v1 = vadd.f32 %v7952_v59, %v7839_v23  ;;  %10944 = vmatprep.mubr.bf16.mxu1 %v21722_v21  ;;  %v7841_v47 = vpop.f32.mrf.mxu0  ;;  %v18893_v56 = vld [vmem:[#allocation5 + $0x1868] ss:$16 sps:$4 sm:$0xff]   ;;  %v18901_v25 = vld [vmem:[#allocation5 + $0x184c] ss:$16 sps:$4 sm:$0xff]  }
 0x3af   : > { %v7954_v15 = vpop.f32.mrf.mxu1  ;;  %11012 = vmatpush1.bf16.msra.mxu0 %v18881_v62  ;;  %v18904_v23 = vld [vmem:[#allocation5 + $0x1a4c] ss:$16 sps:$4 sm:$0xff]  }
 0x3b0   : > { %23575 = vst [vmem:[#allocation36_spill] sm:$0xff] %v21730_v46  ;;  %v21741_v7 = vadd.f32 %v7953_v1, %v23576_v53  ;;  %v7955_v36 = vadd.f32 %v7954_v15, %v7841_v47  ;;  %11125 = vmatpush1.bf16.msra.mxu1 %v18884_v42  ;;  %v7843_v31 = vpop.f32.mrf.mxu0  ;;  %11013 = vmatprep.subr.bf16.mxu0 %v18895_v16  ;;  %v23578_v59 = vld [vmem:[#allocation15_spill] sm:$0xff]  ;;  %v23580_v16 = vld [vmem:[#allocation50_spill] sm:$0xff] }
 0x3b1   : > { %v7956_v18 = vpop.f32.mrf.mxu1  ;;  %11126 = vmatprep.subr.bf16.mxu1 %v18898_v8  ;;  %v18902_v1 = vld [vmem:[#allocation5 + $0x1a48] ss:$16 sps:$4 sm:$0xff]   ;;  %v21747_v53 = vld [vmem:[%s19821_s30 + $0x84] ss:$16 sps:$4 sm:$0xff]   ;;  %v21750_v47 = vld [vmem:[%s19821_s30 + $0x8c] ss:$16 sps:$4 sm:$0xff]  }
 0x3b2   : > { %23577 = vst [vmem:[#allocation37_spill] sm:$0xff] %v21741_v7  ;;  %v21744_v46 = vadd.f32 %v7955_v36, %v23578_v59  ;;  %v7957_v39 = vadd.f32 %v7956_v18, %v7843_v31  ;;  %v7847_v62 = vpop.f32.mrf.mxu0  ;;  %10832 = vmatmul.mubr.bf16.gmra.mxu0 %v21733_v30  ;;  %v18913_v18 = vld [vmem:[#allocation5 + $0x182c] ss:$16 sps:$4 sm:$0xff]  }
 0x3b3   : > { %v7960_v42 = vpop.f32.mrf.mxu1  ;;  %10945 = vmatmul.mubr.bf16.gmra.mxu1 %v21737_v3  ;;  %11014 = vmatpush1.bf16.msra.mxu0 %v18893_v56  ;;  %v18916_v59 = vld [vmem:[#allocation5 + $0x1a2c] ss:$16 sps:$4 sm:$0xff]  }
 0x3b4   : > { %23579 = vst [vmem:[#allocation13_spill] sm:$0xff] %v21744_v46  ;;  %v21755_v8 = vadd.f32 %v7957_v39, %v23580_v16  ;;  %v7961_v15 = vadd.f32 %v7960_v42, %v7847_v62  ;;  %11127 = vmatpush1.bf16.msra.mxu1 %v18896_v10  ;;  %v7849_v36 = vpop.f32.mrf.mxu0  ;;  %11015 = vmatprep.subr.bf16.mxu0 %v18901_v25  ;;  %v23582_v46 = vld [vmem:[#allocation48_spill] sm:$0xff]  ;;  %v23584_v10 = vld [vmem:[#allocation49_spill] sm:$0xff] }
 0x3b5   : > { %v7962_v31 = vpop.f32.mrf.mxu1  ;;  %11128 = vmatprep.subr.bf16.mxu1 %v18904_v23  ;;  %10841 = vmatprep.mubr.bf16.mxu0 %v21747_v53  ;;  %v18914_v23 = vld [vmem:[#allocation5 + $0x1a28] ss:$16 sps:$4 sm:$0xff]  }
 0x3b6   : > { %23581 = vst [vmem:[#allocation38_spill] sm:$0xff] %v21755_v8  ;;  %v21758_v7 = vadd.f32 %v7961_v15, %v23582_v46  ;;  %v7963_v44 = vadd.f32 %v7962_v31, %v7849_v36  ;;  %10954 = vmatprep.mubr.bf16.mxu1 %v21750_v47  ;;  %v7851_v39 = vpop.f32.mrf.mxu0  ;;  %v18911_v46 = vld [vmem:[#allocation5 + $0x1828] ss:$16 sps:$4 sm:$0xff]   ;;  %v18919_v15 = vld [vmem:[#allocation5 + $0x180c] ss:$16 sps:$4 sm:$0xff]  }
 0x3b7   : > { %v7964_v56 = vpop.f32.mrf.mxu1  ;;  %11016 = vmatpush1.bf16.msra.mxu0 %v18899_v24  ;;  %v18922_v36 = vld [vmem:[#allocation5 + $0x1a0c] ss:$16 sps:$4 sm:$0xff]  }
 0x3b8   : > { %23583 = vst [vmem:[#allocation46_spill] sm:$0xff] %v21758_v7  ;;  %v21769_v62 = vadd.f32 %v7963_v44, %v23584_v10  ;;  %v7965_v25 = vadd.f32 %v7964_v56, %v7851_v39  ;;  %11129 = vmatpush1.bf16.msra.mxu1 %v18902_v1  ;;  %v7853_v42 = vpop.f32.mrf.mxu0  ;;  %11017 = vmatprep.subr.bf16.mxu0 %v18913_v18  ;;  %v23586_v31 = vld [vmem:[#allocation55_spill] sm:$0xff]  ;;  %v23588_v18 = vld [vmem:[#allocation16_spill] sm:$0xff] }
 0x3b9   : > { %v7966_v16 = vpop.f32.mrf.mxu1  ;;  %11130 = vmatprep.subr.bf16.mxu1 %v18916_v59  ;;  %v18920_v44 = vld [vmem:[#allocation5 + $0x1a08] ss:$16 sps:$4 sm:$0xff]   ;;  %v21775_v10 = vld [vmem:[%s19821_s30 + $0x204] ss:$16 sps:$4 sm:$0xff]   ;;  %v21778_v39 = vld [vmem:[%s19821_s30 + $0x20c] ss:$16 sps:$4 sm:$0xff]  }
 0x3ba   : > { %23585 = vst [vmem:[#allocation39_spill] sm:$0xff] %v21769_v62  ;;  %v21772_v7 = vadd.f32 %v7965_v25, %v23586_v31  ;;  %v7967_v8 = vadd.f32 %v7966_v16, %v7853_v42  ;;  %v7857_v24 = vpop.f32.mrf.mxu0  ;;  %10842 = vmatmul.mubr.bf16.gmra.mxu0 %v21761_v63  ;;  %v18931_v16 = vld [vmem:[#allocation5 + $0x19ec] ss:$16 sps:$4 sm:$0xff]   ;;  %23603 = vst [vmem:[#allocation55_spill] sm:$0xff] %v21817_v50 }
 0x3bb   : > { %v7970_v1 = vpop.f32.mrf.mxu1  ;;  %10955 = vmatmul.mubr.bf16.gmra.mxu1 %v21765_v41  ;;  %11018 = vmatpush1.bf16.msra.mxu0 %v18911_v46  ;;  %v18934_v31 = vld [vmem:[#allocation5 + $0x1bec] ss:$16 sps:$4 sm:$0xff]  }
 0x3bc   : > { %23587 = vst [vmem:[#allocation44_spill] sm:$0xff] %v21772_v7  ;;  %v21783_v59 = vadd.f32 %v7967_v8, %v23588_v18  ;;  %v7971_v56 = vadd.f32 %v7970_v1, %v7857_v24  ;;  %11131 = vmatpush1.bf16.msra.mxu1 %v18914_v23  ;;  %v7859_v25 = vpop.f32.mrf.mxu0  ;;  %11019 = vmatprep.subr.bf16.mxu0 %v18919_v15  ;;  %v23590_v7 = vld [vmem:[#allocation17_spill] sm:$0xff] }
 0x3bd   : > { %v7972_v42 = vpop.f32.mrf.mxu1  ;;  %11132 = vmatprep.subr.bf16.mxu1 %v18922_v36  ;;  %10851 = vmatprep.mubr.bf16.mxu0 %v21775_v10  ;;  %v23593_v23 = vld [vmem:[#allocation53_spill] sm:$0xff] }
 0x3be   : > { %23589 = vst [vmem:[#allocation54_spill] sm:$0xff] %v21783_v59  ;;  %v21786_v62 = vadd.f32 %v7971_v56, %v23590_v7  ;;  %v7973_v17 = vadd.f32 %v7972_v42, %v7859_v25  ;;  %10964 = vmatprep.mubr.bf16.mxu1 %v21778_v39  ;;  %v7861_v8 = vpop.f32.mrf.mxu0  ;;  %v18929_v7 = vld [vmem:[#allocation5 + $0x19e8] ss:$16 sps:$4 sm:$0xff]   ;;  %v18937_v56 = vld [vmem:[#allocation5 + $0x19cc] ss:$16 sps:$4 sm:$0xff]  }
 0x3bf   : > { %v7974_v46 = vpop.f32.mrf.mxu1  ;;  %11020 = vmatpush1.bf16.msra.mxu0 %v18917_v6  ;;  %v18932_v36 = vld [vmem:[#allocation5 + $0x1be8] ss:$16 sps:$4 sm:$0xff]   ;;  %v18940_v25 = vld [vmem:[#allocation5 + $0x1bcc] ss:$16 sps:$4 sm:$0xff]  }
 0x3c0   : > { %23591 = vst [vmem:[#allocation45_spill] sm:$0xff] %v21786_v62  ;;  %v21797_v24 = vadd.f32 %v7973_v17, %v23593_v23  ;;  %v7975_v15 = vadd.f32 %v7974_v46, %v7861_v8  ;;  %11133 = vmatpush1.bf16.msra.mxu1 %v18920_v44  ;;  %v7863_v1 = vpop.f32.mrf.mxu0  ;;  %11021 = vmatprep.subr.bf16.mxu0 %v18931_v16  ;;  %v23595_v42 = vld [vmem:[#allocation18_spill] sm:$0xff]  ;;  %v18938_v17 = vld [vmem:[#allocation5 + $0x1bc8] ss:$16 sps:$4 sm:$0xff]  }
 0x3c1   : > { %v7976_v18 = vpop.f32.mrf.mxu1  ;;  %11134 = vmatprep.subr.bf16.mxu1 %v18934_v31  ;;  %v21803_v23 = vld [vmem:[%s19821_s30 + $0x224] ss:$16 sps:$4 sm:$0xff]   ;;  %v21806_v8 = vld [vmem:[%s19821_s30 + $0x22c] ss:$16 sps:$4 sm:$0xff]  }
 0x3c2   : > { %23594 = vst [vmem:[#allocation43_spill] sm:$0xff] %v21797_v24  ;;  %v21800_v62 = vadd.f32 %v7975_v15, %v23595_v42  ;;  %v7977_v59 = vadd.f32 %v7976_v18, %v7863_v1  ;;  %23597 = vst [vmem:[#allocation15_spill] sm:$0xff] %v21803_v23  ;;  %v7867_v6 = vpop.f32.mrf.mxu0  ;;  %10852 = vmatmul.mubr.bf16.gmra.mxu0 %v21789_v55  ;;  %v23599_v16 = vld [vmem:[#allocation57_spill] sm:$0xff] }
 0x3c3   : > { %23598 = vst [vmem:[#allocation50_spill] sm:$0xff] %v21806_v8  ;;  %v7980_v44 = vpop.f32.mrf.mxu1  ;;  %10965 = vmatmul.mubr.bf16.gmra.mxu1 %v21793_v38  ;;  %11022 = vmatpush2.bf16.msra.mxu0 %v18929_v7  ;;  %v18949_v18 = vld [vmem:[#allocation5 + $0x19ac] ss:$16 sps:$4 sm:$0xff]   ;;  %v21821_v38 = vld [vmem:[%s19821_s30 + $0x228] ss:$16 sps:$4 sm:$0xff]  }
 0x3c4   : > { %23596 = vst [vmem:[#allocation14_spill] sm:$0xff] %v21800_v62  ;;  %v21811_v31 = vadd.f32 %v7977_v59, %v23599_v16  ;;  %v7981_v46 = vadd.f32 %v7980_v44, %v7867_v6  ;;  %11135 = vmatpush2.bf16.msra.mxu1 %v18932_v36  ;;  %v7869_v15 = vpop.f32.mrf.mxu0  ;;  %11023 = vmatprep.subr.bf16.mxu0 %v18937_v56  ;;  %v18952_v42 = vld [vmem:[#allocation5 + $0x1bac] ss:$16 sps:$4 sm:$0xff]   ;;  %23604 = vst [vmem:[#allocation16_spill] sm:$0xff] %v21821_v38 }
 0x3c5   : > { %v7982_v1 = vpop.f32.mrf.mxu1  ;;  %11136 = vmatprep.subr.bf16.mxu1 %v18940_v25  ;;  %v23601_v62 = vld [vmem:[#allocation20_spill] sm:$0xff]  ;;  %10861 = vmatprep.mubr.bf16.mxu0 %v21803_v23  ;;  %v18950_v25 = vld [vmem:[#allocation5 + $0x1ba8] ss:$16 sps:$4 sm:$0xff]  }
 0x3c6   : > { %23600 = vst [vmem:[#allocation48_spill] sm:$0xff] %v21811_v31  ;;  %v21814_v24 = vadd.f32 %v7981_v46, %v23601_v62  ;;  %v7983_v43 = vadd.f32 %v7982_v1, %v7869_v15  ;;  %10974 = vmatprep.mubr.bf16.mxu1 %v21806_v8  ;;  %v7871_v59 = vpop.f32.mrf.mxu0  ;;  %v23605_v36 = vld [vmem:[#allocation24_spill] sm:$0xff]  ;;  %v18947_v62 = vld [vmem:[#allocation5 + $0x19a8] ss:$16 sps:$4 sm:$0xff]  }
 0x3c7   : > { %v7984_v7 = vpop.f32.mrf.mxu1  ;;  %11024 = vmatpush2.bf16.msra.mxu0 %v18935_v51  ;;  %v18955_v46 = vld [vmem:[#allocation5 + $0x198c] ss:$16 sps:$4 sm:$0xff]   ;;  %v18953_v8 = vld [vmem:[#allocation5 + $0x1988] ss:$16 sps:$4 sm:$0xff]  }
 0x3c8   : > { %23602 = vst [vmem:[#allocation49_spill] sm:$0xff] %v21814_v24  ;;  %v21825_v6 = vadd.f32 %v7983_v43, %v23605_v36  ;;  %v7985_v56 = vadd.f32 %v7984_v7, %v7871_v59  ;;  %11137 = vmatpush2.bf16.msra.mxu1 %v18938_v17  ;;  %v7873_v44 = vpop.f32.mrf.mxu0  ;;  %11025 = vmatprep.subr.bf16.mxu0 %v18949_v18  ;;  %v18958_v15 = vld [vmem:[#allocation5 + $0x1b8c] ss:$16 sps:$4 sm:$0xff]   ;;  %v18956_v43 = vld [vmem:[#allocation5 + $0x1b88] ss:$16 sps:$4 sm:$0xff]  }
 0x3c9   : > { %v7986_v16 = vpop.f32.mrf.mxu1  ;;  %11138 = vmatprep.subr.bf16.mxu1 %v18952_v42  ;;  %v23607_v1 = vld [vmem:[#allocation25_spill] sm:$0xff]  ;;  %v23611_v18 = vld [vmem:[#allocation32_spill] sm:$0xff] }
 0x3ca   : > { %23606 = vst [vmem:[#allocation17_spill] sm:$0xff] %v21825_v6  ;;  %v21828_v24 = vadd.f32 %v7985_v56, %v23607_v1  ;;  %v7987_v31 = vadd.f32 %v7986_v16, %v7873_v44  ;;  %v21831_v36 = vld [vmem:[%s19821_s30 + $0x244] ss:$16 sps:$4 sm:$0xff]   ;;  %v21834_v59 = vld [vmem:[%s19821_s30 + $0x24c] ss:$16 sps:$4 sm:$0xff]   ;;  %v7877_v51 = vpop.f32.mrf.mxu0  ;;  %10862 = vmatmul.mubr.bf16.gmra.mxu0 %v21817_v50 }
 0x3cb   : > { %23609 = vst [vmem:[#allocation18_spill] sm:$0xff] %v21831_v36  ;;  %23610 = vst [vmem:[#allocation57_spill] sm:$0xff] %v21834_v59  ;;  %v7990_v17 = vpop.f32.mrf.mxu1  ;;  %10975 = vmatmul.mubr.bf16.gmra.mxu1 %v21821_v38  ;;  %11026 = vmatpush2.bf16.msra.mxu0 %v18947_v62  ;;  %v18967_v16 = vld [vmem:[#allocation5 + $0x196c] ss:$16 sps:$4 sm:$0xff]   ;;  %v21845_v50 = vld [vmem:[%s19821_s30 + $0x240] ss:$16 sps:$4 sm:$0xff]  }
 0x3cc   : > { %23608 = vst [vmem:[#allocation53_spill] sm:$0xff] %v21828_v24  ;;  %v21839_v42 = vadd.f32 %v7987_v31, %v23611_v18  ;;  %v7991_v7 = vadd.f32 %v7990_v17, %v7877_v51  ;;  %11139 = vmatpush2.bf16.msra.mxu1 %v18950_v25  ;;  %v7879_v56 = vpop.f32.mrf.mxu0  ;;  %11027 = vmatprep.subr.bf16.mxu0 %v18955_v46  ;;  %v18970_v1 = vld [vmem:[#allocation5 + $0x1b6c] ss:$16 sps:$4 sm:$0xff]   ;;  %23615 = vst [vmem:[#allocation25_spill] sm:$0xff] %v21845_v50  ;;  %v21849_v38 = vld [vmem:[%s19821_s30 + $0x248] ss:$16 sps:$4 sm:$0xff]  }
 0x3cd   : > { %v7992_v44 = vpop.f32.mrf.mxu1  ;;  %11140 = vmatprep.subr.bf16.mxu1 %v18958_v15  ;;  %v23613_v24 = vld [vmem:[#allocation33_spill] sm:$0xff]  ;;  %10871 = vmatprep.mubr.bf16.mxu0 %v21831_v36  ;;  %23616 = vst [vmem:[#allocation32_spill] sm:$0xff] %v21849_v38  ;;  %v23617_v25 = vld [vmem:[#allocation47_spill] sm:$0xff] }
 0x3ce   : > { %23612 = vst [vmem:[#allocation20_spill] sm:$0xff] %v21839_v42  ;;  %v21842_v6 = vadd.f32 %v7991_v7, %v23613_v24  ;;  %v7993_v23 = vadd.f32 %v7992_v44, %v7879_v56  ;;  %10984 = vmatprep.mubr.bf16.mxu1 %v21834_v59  ;;  %v7881_v31 = vpop.f32.mrf.mxu0  ;;  %v18965_v24 = vld [vmem:[#allocation5 + $0x1968] ss:$16 sps:$4 sm:$0xff]   ;;  %v18973_v7 = vld [vmem:[#allocation5 + $0x194c] ss:$16 sps:$4 sm:$0xff]  }
 0x3cf   : > { %v7994_v62 = vpop.f32.mrf.mxu1  ;;  %11028 = vmatpush2.bf16.msra.mxu0 %v18953_v8  ;;  %v18968_v15 = vld [vmem:[#allocation5 + $0x1b68] ss:$16 sps:$4 sm:$0xff]   ;;  %v18976_v56 = vld [vmem:[#allocation5 + $0x1b4c] ss:$16 sps:$4 sm:$0xff]  }
 0x3d0   : > { %23614 = vst [vmem:[#allocation24_spill] sm:$0xff] %v21842_v6  ;;  %v21853_v51 = vadd.f32 %v7993_v23, %v23617_v25  ;;  %v7995_v46 = vadd.f32 %v7994_v62, %v7881_v31  ;;  %11141 = vmatpush2.bf16.msra.mxu1 %v18956_v43  ;;  %v7883_v17 = vpop.f32.mrf.mxu0  ;;  %11029 = vmatprep.subr.bf16.mxu0 %v18967_v16  ;;  %v23619_v44 = vld [vmem:[#allocation51_spill] sm:$0xff]  ;;  %v23622_v16 = vld [vmem:[#allocation58_spill] sm:$0xff] }
 0x3d1   : > { %v7996_v18 = vpop.f32.mrf.mxu1  ;;  %11142 = vmatprep.subr.bf16.mxu1 %v18970_v1  ;;  %v18971_v59 = vld [vmem:[#allocation5 + $0x1948] ss:$16 sps:$4 sm:$0xff]   ;;  %v21859_v25 = vld [vmem:[%s19821_s30 + $0x264] ss:$16 sps:$4 sm:$0xff]   ;;  %v21862_v31 = vld [vmem:[%s19821_s30 + $0x26c] ss:$16 sps:$4 sm:$0xff]  }
 0x3d2   : > { %23618 = vst [vmem:[#allocation33_spill] sm:$0xff] %v21853_v51  ;;  %v21856_v6 = vadd.f32 %v7995_v46, %v23619_v44  ;;  %v7997_v42 = vadd.f32 %v7996_v18, %v7883_v17  ;;  %v18974_v23 = vld [vmem:[#allocation5 + $0x1b48] ss:$16 sps:$4 sm:$0xff]   ;;  %23621 = vst [vmem:[#allocation51_spill] sm:$0xff] %v21862_v31  ;;  %v7887_v8 = vpop.f32.mrf.mxu0  ;;  %10872 = vmatmul.mubr.bf16.gmra.mxu0 %v21845_v50  ;;  %v18985_v18 = vld [vmem:[#allocation5 + $0x192c] ss:$16 sps:$4 sm:$0xff]  }
 0x3d3   : > { %v8000_v43 = vpop.f32.mrf.mxu1  ;;  %10985 = vmatmul.mubr.bf16.gmra.mxu1 %v21849_v38  ;;  %11030 = vmatpush2.bf16.msra.mxu0 %v18965_v24  ;;  %v18988_v44 = vld [vmem:[#allocation5 + $0x1b2c] ss:$16 sps:$4 sm:$0xff]   ;;  %v21873_v50 = vld [vmem:[%s19821_s30 + $0x260] ss:$16 sps:$4 sm:$0xff]   ;;  %v21877_v38 = vld [vmem:[%s19821_s30 + $0x268] ss:$16 sps:$4 sm:$0xff]  }
 0x3d4   : > { %23620 = vst [vmem:[#allocation47_spill] sm:$0xff] %v21856_v6  ;;  %v21867_v1 = vadd.f32 %v7997_v42, %v23622_v16  ;;  %v8001_v62 = vadd.f32 %v8000_v43, %v7887_v8  ;;  %11143 = vmatpush2.bf16.msra.mxu1 %v18968_v15  ;;  %v7889_v46 = vpop.f32.mrf.mxu0  ;;  %11031 = vmatprep.subr.bf16.mxu0 %v18973_v7  ;;  %v23624_v6 = vld [vmem:[#allocation59_spill] sm:$0xff] }
 0x3d5   : > { %v8002_v17 = vpop.f32.mrf.mxu1  ;;  %11144 = vmatprep.subr.bf16.mxu1 %v18976_v56  ;;  %10881 = vmatprep.mubr.bf16.mxu0 %v21859_v25  ;;  %v18983_v56 = vld [vmem:[#allocation5 + $0x1928] ss:$16 sps:$4 sm:$0xff]   ;;  %v18991_v16 = vld [vmem:[#allocation5 + $0x190c] ss:$16 sps:$4 sm:$0xff]  }
 0x3d6   : > { %23623 = vst [vmem:[#allocation58_spill] sm:$0xff] %v21867_v1  ;;  %v21870_v51 = vadd.f32 %v8001_v62, %v23624_v6  ;;  %v8003_v36 = vadd.f32 %v8002_v17, %v7889_v46  ;;  %10994 = vmatprep.mubr.bf16.mxu1 %v21862_v31  ;;  %v7891_v42 = vpop.f32.mrf.mxu0  ;;  %v18986_v6 = vld [vmem:[#allocation5 + $0x1b28] ss:$16 sps:$4 sm:$0xff]   ;;  %v18994_v62 = vld [vmem:[#allocation5 + $0x1b0c] ss:$16 sps:$4 sm:$0xff]  }
 0x3d7   : > { %v8004_v24 = vpop.f32.mrf.mxu1  ;;  %11032 = vmatpush2.bf16.msra.mxu0 %v18971_v59  ;;  %v18992_v1 = vld [vmem:[#allocation5 + $0x1b08] ss:$16 sps:$4 sm:$0xff]  }
 0x3d8   : > { %23625 = vst [vmem:[#allocation59_spill] sm:$0xff] %v21870_v51  ;;  %v21881_v15 = vadd.f32 %v8003_v36, %v21529_v27  ;;  %v8005_v7 = vadd.f32 %v8004_v24, %v7891_v42  ;;  %11145 = vmatpush2.bf16.msra.mxu1 %v18974_v23  ;;  %v7893_v8 = vpop.f32.mrf.mxu0  ;;  %11033 = vmatprep.subr.bf16.mxu0 %v18985_v18  ;;  %v18989_v51 = vld [vmem:[#allocation5 + $0x1908] ss:$16 sps:$4 sm:$0xff]  }
 0x3d9   : > { %v8006_v43 = vpop.f32.mrf.mxu1  ;;  %11146 = vmatprep.subr.bf16.mxu1 %v18988_v44  ;;  %v19000_v44 = vld [vmem:[#allocation5 + $0x1ee4] ss:$16 sps:$4 sm:$0xff]  }
 0x3da   : > { %v21884_v46 = vadd.f32 %v8005_v7, %v21532_v5  ;;  %v8007_v17 = vadd.f32 %v8006_v43, %v7893_v8  ;;  %v7897_v31 = vpop.f32.mrf.mxu0  ;;  %10882 = vmatmul.mubr.bf16.gmra.mxu0 %v21873_v50  ;;  %v18997_v5 = vld [vmem:[#allocation5 + $0x1ce4] ss:$16 sps:$4 sm:$0xff]   ;;  %v18995_v7 = vld [vmem:[#allocation5 + $0x1ce0] ss:$16 sps:$4 sm:$0xff]  }
 0x3db   : > { %v8010_v27 = vpop.f32.mrf.mxu1  ;;  %10995 = vmatmul.mubr.bf16.gmra.mxu1 %v21877_v38  ;;  %11034 = vmatpush2.bf16.msra.mxu0 %v18983_v56 }
 0x3dc   : > { %v21889_v36 = vadd.f32 %v8007_v17, %v21537_v34  ;;  %v8011_v59 = vadd.f32 %v8010_v27, %v7897_v31  ;;  %11147 = vmatpush2.bf16.msra.mxu1 %v18986_v6  ;;  %v7899_v23 = vpop.f32.mrf.mxu0  ;;  %11035 = vmatprep.subr.bf16.mxu0 %v18991_v16  ;;  %v18998_v34 = vld [vmem:[#allocation5 + $0x1ee0] ss:$16 sps:$4 sm:$0xff]  }
 0x3dd   : > { %v8012_v18 = vpop.f32.mrf.mxu1  ;;  %11148 = vmatprep.subr.bf16.mxu1 %v18994_v62  ;;  %11037 = vmatprep.mubr.bf16.mxu0 %v21663_v40  ;;  %v19006_v62 = vld [vmem:[#allocation5 + $0x1ec4] ss:$16 sps:$4 sm:$0xff]   ;;  %v19001_v17 = vld [vmem:[#allocation5 + $0x1cc0] ss:$16 sps:$4 sm:$0xff]  }
 0x3de   : > { %v21892_v42 = vadd.f32 %v8011_v59, %v21540_v2  ;;  %v8013_v24 = vadd.f32 %v8012_v18, %v7899_v23  ;;  %11150 = vmatprep.mubr.bf16.mxu1 %v21666_v9  ;;  %v7901_v8 = vpop.f32.mrf.mxu0  ;;  %v19003_v2 = vld [vmem:[#allocation5 + $0x1cc4] ss:$16 sps:$4 sm:$0xff]   ;;  %v19004_v27 = vld [vmem:[#allocation5 + $0x1ec0] ss:$16 sps:$4 sm:$0xff]  }
 0x3df   : > { %v8014_v31 = vpop.f32.mrf.mxu1  ;;  %11036 = vmatpush2.bf16.msra.mxu0 %v18989_v51 }
 0x3e0   : > { %v21897_v56 = vadd.f32 %v8013_v24, %v21545_v60  ;;  %v8015_v6 = vadd.f32 %v8014_v31, %v7901_v8  ;;  %11149 = vmatpush2.bf16.msra.mxu1 %v18992_v1  ;;  %v7903_v43 = vpop.f32.mrf.mxu0  ;;  %12385 = vmatprep.subr.bf16.mxu0 %v18997_v5  ;;  %v19012_v5 = vld [vmem:[#allocation5 + $0x1ea4] ss:$16 sps:$4 sm:$0xff]  }
 0x3e1   : > { %v8016_v16 = vpop.f32.mrf.mxu1  ;;  %12498 = vmatprep.subr.bf16.mxu1 %v19000_v44 }
 0x3e2   : > { %v21900_v40 = vadd.f32 %v8015_v6, %v21548_v48  ;;  %v8017_v9 = vadd.f32 %v8016_v16, %v7903_v43  ;;  %v9207_v59 = vpop.f32.mrf.mxu0  ;;  %11038 = vmatmul.mubr.bf16.vlgmr.msra.gmra.mxu0 %v21677_v54  ;;  %v19009_v48 = vld [vmem:[#allocation5 + $0x1ca4] ss:$16 sps:$4 sm:$0xff]   ;;  %v19007_v54 = vld [vmem:[#allocation5 + $0x1ca0] ss:$16 sps:$4 sm:$0xff]  }
 0x3e3   : > { %v9320_v23 = vpop.f32.mrf.mxu1  ;;  %11151 = vmatmul.mubr.bf16.vlgmr.msra.gmra.mxu1 %v21681_v14  ;;  %12386 = vmatpush1.bf16.msra.mxu0 %v18995_v7  ;;  %v19018_v43 = vld [vmem:[#allocation5 + $0x1e84] ss:$16 sps:$4 sm:$0xff]   ;;  %v19013_v16 = vld [vmem:[#allocation5 + $0x1c80] ss:$16 sps:$4 sm:$0xff]  }
 0x3e4   : > { %v21905_v60 = vadd.f32 %v8017_v9, %v21553_v20  ;;  %v9321_v51 = vadd.f32 %v9320_v23, %v9207_v59  ;;  %12499 = vmatpush1.bf16.msra.mxu1 %v18998_v34  ;;  %v9209_v1 = vpop.f32.mrf.mxu0  ;;  %12387 = vmatprep.subr.bf16.mxu0 %v19003_v2  ;;  %v19010_v20 = vld [vmem:[#allocation5 + $0x1ea0] ss:$16 sps:$4 sm:$0xff]   ;;  %v19024_v23 = vld [vmem:[#allocation5 + $0x1e64] ss:$16 sps:$4 sm:$0xff]  }
 0x3e5   : > { %v9322_v18 = vpop.f32.mrf.mxu1  ;;  %12500 = vmatprep.subr.bf16.mxu1 %v19006_v62  ;;  %11047 = vmatprep.mubr.bf16.mxu0 %v21691_v19  ;;  %v19016_v2 = vld [vmem:[#allocation5 + $0x1e80] ss:$16 sps:$4 sm:$0xff]  }
 0x3e6   : > { %v21908_v44 = vadd.f32 %v9321_v51, %v21556_v12  ;;  %v9323_v24 = vadd.f32 %v9322_v18, %v9209_v1  ;;  %11160 = vmatprep.mubr.bf16.mxu1 %v21694_v45  ;;  %v9211_v14 = vpop.f32.mrf.mxu0  ;;  %v19015_v12 = vld [vmem:[#allocation5 + $0x1c84] ss:$16 sps:$4 sm:$0xff]  }
 0x3e7   : > { %v9324_v8 = vpop.f32.mrf.mxu1  ;;  %12388 = vmatpush1.bf16.msra.mxu0 %v19001_v17 }
 0x3e8   : > { %v21913_v7 = vadd.f32 %v9323_v24, %v21561_v57  ;;  %v9325_v34 = vadd.f32 %v9324_v8, %v9211_v14  ;;  %12501 = vmatpush1.bf16.msra.mxu1 %v19004_v27  ;;  %v9213_v31 = vpop.f32.mrf.mxu0  ;;  %12389 = vmatprep.subr.bf16.mxu0 %v19009_v48  ;;  %v19025_v14 = vld [vmem:[#allocation5 + $0x1c40] ss:$16 sps:$4 sm:$0xff]  }
 0x3e9   : > { %v9326_v6 = vpop.f32.mrf.mxu1  ;;  %12502 = vmatprep.subr.bf16.mxu1 %v19012_v5  ;;  %v19028_v8 = vld [vmem:[#allocation5 + $0x1e40] ss:$16 sps:$4 sm:$0xff]  }
 0x3ea   : > { %v21916_v19 = vadd.f32 %v9325_v34, %v21564_v4  ;;  %v9327_v45 = vadd.f32 %v9326_v6, %v9213_v31  ;;  %v9217_v62 = vpop.f32.mrf.mxu0  ;;  %11048 = vmatmul.mubr.bf16.gmra.mxu0 %v21705_v28  ;;  %v19021_v4 = vld [vmem:[#allocation5 + $0x1c64] ss:$16 sps:$4 sm:$0xff]  }
 0x3eb   : > { %v9330_v9 = vpop.f32.mrf.mxu1  ;;  %11161 = vmatmul.mubr.bf16.gmra.mxu1 %v21709_v32  ;;  %12390 = vmatpush1.bf16.msra.mxu0 %v19007_v54  ;;  %v19019_v32 = vld [vmem:[#allocation5 + $0x1c60] ss:$16 sps:$4 sm:$0xff]  }
 0x3ec   : > { %v21921_v57 = vadd.f32 %v9327_v45, %v21569_v35  ;;  %v9331_v17 = vadd.f32 %v9330_v9, %v9217_v62  ;;  %12503 = vmatpush1.bf16.msra.mxu1 %v19010_v20  ;;  %v9219_v27 = vpop.f32.mrf.mxu0  ;;  %12391 = vmatprep.subr.bf16.mxu0 %v19015_v12  ;;  %v19022_v35 = vld [vmem:[#allocation5 + $0x1e60] ss:$16 sps:$4 sm:$0xff]   ;;  %v19030_v20 = vld [vmem:[#allocation5 + $0x1e44] ss:$16 sps:$4 sm:$0xff]  }
 0x3ed   : > { %v9332_v59 = vpop.f32.mrf.mxu1  ;;  %12504 = vmatprep.subr.bf16.mxu1 %v19018_v43  ;;  %11057 = vmatprep.mubr.bf16.mxu0 %v21719_v29  ;;  %v19036_v45 = vld [vmem:[#allocation5 + $0x1e24] ss:$16 sps:$4 sm:$0xff]  }
 0x3ee   : > { %v21924_v51 = vadd.f32 %v9331_v17, %v21572_v33  ;;  %v9333_v1 = vadd.f32 %v9332_v59, %v9219_v27  ;;  %11170 = vmatprep.mubr.bf16.mxu1 %v21722_v21  ;;  %v9221_v28 = vpop.f32.mrf.mxu0  ;;  %v19027_v33 = vld [vmem:[#allocation5 + $0x1c44] ss:$16 sps:$4 sm:$0xff]  }
 0x3ef   : > { %v9334_v18 = vpop.f32.mrf.mxu1  ;;  %12392 = vmatpush1.bf16.msra.mxu0 %v19013_v16 }
 0x3f0   : > { %v21929_v48 = vadd.f32 %v9333_v1, %v21577_v49  ;;  %v9335_v5 = vadd.f32 %v9334_v18, %v9221_v28  ;;  %12505 = vmatpush1.bf16.msra.mxu1 %v19016_v2  ;;  %v9223_v24 = vpop.f32.mrf.mxu0  ;;  %12393 = vmatprep.subr.bf16.mxu0 %v19021_v4  ;;  %v19042_v4 = vld [vmem:[#allocation5 + $0x1e04] ss:$16 sps:$4 sm:$0xff]   ;;  %v19040_v1 = vld [vmem:[#allocation5 + $0x1e00] ss:$16 sps:$4 sm:$0xff]  }
 0x3f1   : > { %v9336_v54 = vpop.f32.mrf.mxu1  ;;  %12506 = vmatprep.subr.bf16.mxu1 %v19024_v23  ;;  %v19037_v23 = vld [vmem:[#allocation5 + $0x1c00] ss:$16 sps:$4 sm:$0xff]  }
 0x3f2   : > { %v21932_v29 = vadd.f32 %v9335_v5, %v21580_v52  ;;  %v9337_v21 = vadd.f32 %v9336_v54, %v9223_v24  ;;  %v9227_v34 = vpop.f32.mrf.mxu0  ;;  %11058 = vmatmul.mubr.bf16.gmra.mxu0 %v21733_v30  ;;  %v19033_v52 = vld [vmem:[#allocation5 + $0x1c24] ss:$16 sps:$4 sm:$0xff]  }
 0x3f3   : > { %v9340_v31 = vpop.f32.mrf.mxu1  ;;  %11171 = vmatmul.mubr.bf16.gmra.mxu1 %v21737_v3  ;;  %12394 = vmatpush1.bf16.msra.mxu0 %v19019_v32  ;;  %v19031_v3 = vld [vmem:[#allocation5 + $0x1c20] ss:$16 sps:$4 sm:$0xff]   ;;  %v19048_v24 = vld [vmem:[#allocation5 + $0x1fe4] ss:$16 sps:$4 sm:$0xff]  }
 0x3f4   : > { %v21937_v49 = vadd.f32 %v9337_v21, %v21585_v61  ;;  %v9341_v6 = vadd.f32 %v9340_v31, %v9227_v34  ;;  %12507 = vmatpush1.bf16.msra.mxu1 %v19022_v35  ;;  %v9229_v12 = vpop.f32.mrf.mxu0  ;;  %12395 = vmatprep.subr.bf16.mxu0 %v19027_v33  ;;  %v19034_v61 = vld [vmem:[#allocation5 + $0x1e20] ss:$16 sps:$4 sm:$0xff]   ;;  %v19054_v31 = vld [vmem:[#allocation5 + $0x1fc4] ss:$16 sps:$4 sm:$0xff]  }
 0x3f5   : > { %v9342_v43 = vpop.f32.mrf.mxu1  ;;  %12508 = vmatprep.subr.bf16.mxu1 %v19030_v20  ;;  %11067 = vmatprep.mubr.bf16.mxu0 %v21747_v53 }
 0x3f6   : > { %v21940_v16 = vadd.f32 %v9341_v6, %v21588_v11  ;;  %v9343_v2 = vadd.f32 %v9342_v43, %v9229_v12  ;;  %11180 = vmatprep.mubr.bf16.mxu1 %v21750_v47  ;;  %v9231_v30 = vpop.f32.mrf.mxu0  ;;  %v19039_v11 = vld [vmem:[#allocation5 + $0x1c04] ss:$16 sps:$4 sm:$0xff]   ;;  %v19049_v6 = vld [vmem:[#allocation5 + $0x1dc0] ss:$16 sps:$4 sm:$0xff]  }
 0x3f7   : > { %v9344_v62 = vpop.f32.mrf.mxu1  ;;  %12396 = vmatpush1.bf16.msra.mxu0 %v19025_v14  ;;  %v19052_v12 = vld [vmem:[#allocation5 + $0x1fc0] ss:$16 sps:$4 sm:$0xff]  }
 0x3f8   : > { %v21945_v9 = vadd.f32 %v9343_v2, %v21593_v37  ;;  %v9345_v17 = vadd.f32 %v9344_v62, %v9231_v30  ;;  %12509 = vmatpush1.bf16.msra.mxu1 %v19028_v8  ;;  %v9233_v27 = vpop.f32.mrf.mxu0  ;;  %12397 = vmatprep.subr.bf16.mxu0 %v19033_v52  ;;  %v19060_v62 = vld [vmem:[#allocation5 + $0x1fa4] ss:$16 sps:$4 sm:$0xff]  }
 0x3f9   : > { %v9346_v59 = vpop.f32.mrf.mxu1  ;;  %12510 = vmatprep.subr.bf16.mxu1 %v19036_v45  ;;  %v23627_v45 = vld [vmem:[#allocation52_spill] sm:$0xff] }
 0x3fa   : > { %v21948_v53 = vadd.f32 %v9345_v17, %v21596_v58  ;;  %v9347_v47 = vadd.f32 %v9346_v59, %v9233_v27  ;;  %v9237_v32 = vpop.f32.mrf.mxu0  ;;  %11068 = vmatmul.mubr.bf16.gmra.mxu0 %v21761_v63  ;;  %v19045_v58 = vld [vmem:[#allocation5 + $0x1de4] ss:$16 sps:$4 sm:$0xff]  }
 0x3fb   : > { %v9350_v35 = vpop.f32.mrf.mxu1  ;;  %11181 = vmatmul.mubr.bf16.gmra.mxu1 %v21765_v41  ;;  %12398 = vmatpush1.bf16.msra.mxu0 %v19031_v3  ;;  %v19043_v41 = vld [vmem:[#allocation5 + $0x1de0] ss:$16 sps:$4 sm:$0xff]   ;;  %v23629_v17 = vld [vmem:[#allocation23_spill] sm:$0xff] }
 0x3fc   : > { %v21953_v37 = vadd.f32 %v9347_v47, %v21601_v13  ;;  %v9351_v28 = vadd.f32 %v9350_v35, %v9237_v32  ;;  %12511 = vmatpush1.bf16.msra.mxu1 %v19034_v61  ;;  %v9239_v18 = vpop.f32.mrf.mxu0  ;;  %12399 = vmatprep.subr.bf16.mxu0 %v19039_v11  ;;  %v19046_v13 = vld [vmem:[#allocation5 + $0x1fe0] ss:$16 sps:$4 sm:$0xff]   ;;  %v23631_v11 = vld [vmem:[#allocation15_spill] sm:$0xff] }
 0x3fd   : > { %v9352_v5 = vpop.f32.mrf.mxu1  ;;  %12512 = vmatprep.subr.bf16.mxu1 %v19042_v4  ;;  %11077 = vmatprep.mubr.bf16.mxu0 %v21775_v10  ;;  %v19055_v4 = vld [vmem:[#allocation5 + $0x1da0] ss:$16 sps:$4 sm:$0xff]  }
 0x3fe   : > { %v21956_v54 = vadd.f32 %v9351_v28, %v21604_v26  ;;  %v9353_v33 = vadd.f32 %v9352_v5, %v9239_v18  ;;  %11190 = vmatprep.mubr.bf16.mxu1 %v21778_v39  ;;  %v9241_v63 = vpop.f32.mrf.mxu0  ;;  %v19051_v26 = vld [vmem:[#allocation5 + $0x1dc4] ss:$16 sps:$4 sm:$0xff]   ;;  %v19058_v47 = vld [vmem:[#allocation5 + $0x1fa0] ss:$16 sps:$4 sm:$0xff]  }
 0x3ff   : > { %v9354_v20 = vpop.f32.mrf.mxu1  ;;  %12400 = vmatpush1.bf16.msra.mxu0 %v19037_v23  ;;  %v23633_v32 = vld [vmem:[#allocation60_spill] sm:$0xff] }
 0x400   : > { %v21961_v21 = vadd.f32 %v9353_v33, %v21609_v0  ;;  %v9355_v14 = vadd.f32 %v9354_v20, %v9241_v63  ;;  %12513 = vmatpush1.bf16.msra.mxu1 %v19040_v1  ;;  %v9243_v8 = vpop.f32.mrf.mxu0  ;;  %12401 = vmatprep.subr.bf16.mxu0 %v19045_v58  ;;  %v23626_v0 = vld [vmem:[#allocation42_spill] sm:$0xff]  ;;  %v23635_v33 = vld [vmem:[#allocation19_spill] sm:$0xff] }
 0x401   : > { %v9356_v34 = vpop.f32.mrf.mxu1  ;;  %12514 = vmatprep.subr.bf16.mxu1 %v19048_v24  ;;  %v19063_v58 = vld [vmem:[#allocation5 + $0x1d84] ss:$16 sps:$4 sm:$0xff]   ;;  %v19061_v63 = vld [vmem:[#allocation5 + $0x1d80] ss:$16 sps:$4 sm:$0xff]  }
 0x402   : > { %v21964_v10 = vadd.f32 %v9355_v14, %v21612_v22  ;;  %v9357_v39 = vadd.f32 %v9356_v34, %v9243_v8  ;;  %v9247_v43 = vpop.f32.mrf.mxu0  ;;  %11078 = vmatmul.mubr.bf16.gmra.mxu0 %v21789_v55  ;;  %v19057_v22 = vld [vmem:[#allocation5 + $0x1da4] ss:$16 sps:$4 sm:$0xff]   ;;  %v19064_v20 = vld [vmem:[#allocation5 + $0x1f80] ss:$16 sps:$4 sm:$0xff]  }
 0x403   : > { %v9360_v52 = vpop.f32.mrf.mxu1  ;;  %11191 = vmatmul.mubr.bf16.gmra.mxu1 %v23626_v0  ;;  %12402 = vmatpush2.bf16.msra.mxu0 %v19043_v41  ;;  %v23632_v55 = vld [vmem:[#allocation50_spill] sm:$0xff]  ;;  %v23637_v34 = vld [vmem:[#allocation55_spill] sm:$0xff] }
 0x404   : > { %v21969_v2 = vadd.f32 %v9357_v39, %v23627_v45  ;;  %v9361_v3 = vadd.f32 %v9360_v52, %v9247_v43  ;;  %12515 = vmatpush2.bf16.msra.mxu1 %v19046_v13  ;;  %v9249_v61 = vpop.f32.mrf.mxu0  ;;  %12403 = vmatprep.subr.bf16.mxu0 %v19051_v26  ;;  %v19066_v24 = vld [vmem:[#allocation5 + $0x1f84] ss:$16 sps:$4 sm:$0xff]  }
 0x405   : > { %v9362_v30 = vpop.f32.mrf.mxu1  ;;  %12516 = vmatprep.subr.bf16.mxu1 %v19054_v31  ;;  %11087 = vmatprep.mubr.bf16.mxu0 %v23631_v11  ;;  %v23638_v26 = vld [vmem:[#allocation16_spill] sm:$0xff]  ;;  %v23641_v45 = vld [vmem:[#allocation61_spill] sm:$0xff] }
 0x406   : > { %23628 = vst [vmem:[#allocation42_spill] sm:$0xff] %v21969_v2  ;;  %v21972_v27 = vadd.f32 %v9361_v3, %v23629_v17  ;;  %v9363_v59 = vadd.f32 %v9362_v30, %v9249_v61  ;;  %11200 = vmatprep.mubr.bf16.mxu1 %v23632_v55  ;;  %v9251_v23 = vpop.f32.mrf.mxu0  ;;  %v23639_v31 = vld [vmem:[#allocation56_spill] sm:$0xff]  ;;  %v23643_v30 = vld [vmem:[#allocation18_spill] sm:$0xff] }
 0x407   : > { %v9364_v1 = vpop.f32.mrf.mxu1  ;;  %12404 = vmatpush2.bf16.msra.mxu0 %v19049_v6  ;;  %v19069_v52 = vld [vmem:[#allocation5 + $0x1d64] ss:$16 sps:$4 sm:$0xff]  }
 0x408   : > { %23630 = vst [vmem:[#allocation52_spill] sm:$0xff] %v21972_v27  ;;  %v21977_v35 = vadd.f32 %v9363_v59, %v23633_v32  ;;  %v9365_v28 = vadd.f32 %v9364_v1, %v9251_v23  ;;  %12517 = vmatpush2.bf16.msra.mxu1 %v19052_v12  ;;  %v9253_v18 = vpop.f32.mrf.mxu0  ;;  %12405 = vmatprep.subr.bf16.mxu0 %v19057_v22  ;;  %v19072_v0 = vld [vmem:[#allocation5 + $0x1f64] ss:$16 sps:$4 sm:$0xff]   ;;  %v22158_v27 = vld [vmem:[%s19821_s30 + $0x2cc] ss:$16 sps:$4 sm:$0xff]  }
 0x409   : > { %v9366_v5 = vpop.f32.mrf.mxu1  ;;  %12518 = vmatprep.subr.bf16.mxu1 %v19060_v62  ;;  %v23644_v22 = vld [vmem:[#allocation57_spill] sm:$0xff]  ;;  %v23645_v59 = vld [vmem:[#allocation26_spill] sm:$0xff] }
 0x40a   : > { %23634 = vst [vmem:[#allocation23_spill] sm:$0xff] %v21977_v35  ;;  %v21980_v41 = vadd.f32 %v9365_v28, %v23635_v33  ;;  %v9367_v13 = vadd.f32 %v9366_v5, %v9253_v18  ;;  %v9257_v14 = vpop.f32.mrf.mxu0  ;;  %11088 = vmatmul.mubr.bf16.gmra.mxu0 %v23637_v34  ;;  %v19075_v32 = vld [vmem:[#allocation5 + $0x1d44] ss:$16 sps:$4 sm:$0xff]   ;;  %v19073_v34 = vld [vmem:[#allocation5 + $0x1d40] ss:$16 sps:$4 sm:$0xff]  }
 0x40b   : > { %v9370_v8 = vpop.f32.mrf.mxu1  ;;  %11201 = vmatmul.mubr.bf16.gmra.mxu1 %v23638_v26  ;;  %12406 = vmatpush2.bf16.msra.mxu0 %v19055_v4  ;;  %v19067_v4 = vld [vmem:[#allocation5 + $0x1d60] ss:$16 sps:$4 sm:$0xff]   ;;  %v19078_v28 = vld [vmem:[#allocation5 + $0x1f44] ss:$16 sps:$4 sm:$0xff]  }
 0x40c   : > { %23636 = vst [vmem:[#allocation15_spill] sm:$0xff] %v21980_v41  ;;  %v21985_v39 = vadd.f32 %v9367_v13, %v23639_v31  ;;  %v9371_v6 = vadd.f32 %v9370_v8, %v9257_v14  ;;  %12519 = vmatpush2.bf16.msra.mxu1 %v19058_v47  ;;  %v9259_v12 = vpop.f32.mrf.mxu0  ;;  %12407 = vmatprep.subr.bf16.mxu0 %v19063_v58  ;;  %v19070_v47 = vld [vmem:[#allocation5 + $0x1f60] ss:$16 sps:$4 sm:$0xff]   ;;  %v23647_v18 = vld [vmem:[#allocation21_spill] sm:$0xff] }
 0x40d   : > { %v9372_v43 = vpop.f32.mrf.mxu1  ;;  %12520 = vmatprep.subr.bf16.mxu1 %v19066_v24  ;;  %11097 = vmatprep.mubr.bf16.mxu0 %v23643_v30  ;;  %v23649_v13 = vld [vmem:[#allocation25_spill] sm:$0xff]  ;;  %v23650_v14 = vld [vmem:[#allocation32_spill] sm:$0xff] }
 0x40e   : > { %23640 = vst [vmem:[#allocation50_spill] sm:$0xff] %v21985_v39  ;;  %v21988_v3 = vadd.f32 %v9371_v6, %v23641_v45  ;;  %v9373_v61 = vadd.f32 %v9372_v43, %v9259_v12  ;;  %11210 = vmatprep.mubr.bf16.mxu1 %v23644_v22  ;;  %v9261_v62 = vpop.f32.mrf.mxu0  ;;  %v19076_v26 = vld [vmem:[#allocation5 + $0x1f40] ss:$16 sps:$4 sm:$0xff]   ;;  %v19081_v12 = vld [vmem:[#allocation5 + $0x1d24] ss:$16 sps:$4 sm:$0xff]  }
 0x40f   : > { %v9374_v17 = vpop.f32.mrf.mxu1  ;;  %12408 = vmatpush2.bf16.msra.mxu0 %v19061_v63  ;;  %v23651_v63 = vld [vmem:[#allocation22_spill] sm:$0xff] }
 0x410   : > { %23642 = vst [vmem:[#allocation60_spill] sm:$0xff] %v21988_v3  ;;  %v21993_v11 = vadd.f32 %v9373_v61, %v23645_v59  ;;  %v9375_v55 = vadd.f32 %v9374_v17, %v9261_v62  ;;  %12521 = vmatpush2.bf16.msra.mxu1 %v19064_v20  ;;  %v9263_v23 = vpop.f32.mrf.mxu0  ;;  %12409 = vmatprep.subr.bf16.mxu0 %v19069_v52  ;;  %v19084_v43 = vld [vmem:[#allocation5 + $0x1f24] ss:$16 sps:$4 sm:$0xff]   ;;  %v22130_v3 = vld [vmem:[%s19821_s30 + $0x2ac] ss:$16 sps:$4 sm:$0xff]  }
 0x411   : > { %v9376_v1 = vpop.f32.mrf.mxu1  ;;  %12522 = vmatprep.subr.bf16.mxu1 %v19072_v0  ;;  %v23653_v52 = vld [vmem:[#allocation27_spill] sm:$0xff]  ;;  %v23656_v62 = vld [vmem:[#allocation62_spill] sm:$0xff] }
 0x412   : > { %23646 = vst [vmem:[#allocation19_spill] sm:$0xff] %v21993_v11  ;;  %v21996_v5 = vadd.f32 %v9375_v55, %v23647_v18  ;;  %v9377_v58 = vadd.f32 %v9376_v1, %v9263_v23  ;;  %v9267_v24 = vpop.f32.mrf.mxu0  ;;  %11098 = vmatmul.mubr.bf16.gmra.mxu0 %v23649_v13  ;;  %v23655_v61 = vld [vmem:[#allocation51_spill] sm:$0xff]  ;;  %v19079_v55 = vld [vmem:[#allocation5 + $0x1d20] ss:$16 sps:$4 sm:$0xff]  }
 0x413   : > { %v9380_v33 = vpop.f32.mrf.mxu1  ;;  %11211 = vmatmul.mubr.bf16.gmra.mxu1 %v23650_v14  ;;  %12410 = vmatpush2.bf16.msra.mxu0 %v19067_v4  ;;  %v19082_v4 = vld [vmem:[#allocation5 + $0x1f20] ss:$16 sps:$4 sm:$0xff]   ;;  %v19087_v1 = vld [vmem:[#allocation5 + $0x1d04] ss:$16 sps:$4 sm:$0xff]  }
 0x414   : > { %23648 = vst [vmem:[#allocation55_spill] sm:$0xff] %v21996_v5  ;;  %v22001_v20 = vadd.f32 %v9377_v58, %v23651_v63  ;;  %v9381_v8 = vadd.f32 %v9380_v33, %v9267_v24  ;;  %12523 = vmatpush2.bf16.msra.mxu1 %v19070_v47  ;;  %v9269_v31 = vpop.f32.mrf.mxu0  ;;  %12411 = vmatprep.subr.bf16.mxu0 %v19075_v32  ;;  %v23658_v32 = vld [vmem:[#allocation28_spill] sm:$0xff]  ;;  %v23660_v14 = vld [vmem:[#allocation29_spill] sm:$0xff] }
 0x415   : > { %v9382_v6 = vpop.f32.mrf.mxu1  ;;  %12524 = vmatprep.subr.bf16.mxu1 %v19078_v28  ;;  %11107 = vmatprep.mubr.bf16.mxu0 %v21859_v25  ;;  %v19090_v25 = vld [vmem:[#allocation5 + $0x1f04] ss:$16 sps:$4 sm:$0xff]   ;;  %v22018_v24 = vld [vmem:[%s19821_s30 + $0xcc] ss:$16 sps:$4 sm:$0xff]  }
 0x416   : > { %23652 = vst [vmem:[#allocation16_spill] sm:$0xff] %v22001_v20  ;;  %v22004_v0 = vadd.f32 %v9381_v8, %v23653_v52  ;;  %v9383_v45 = vadd.f32 %v9382_v6, %v9269_v31  ;;  %11220 = vmatprep.mubr.bf16.mxu1 %v23655_v61  ;;  %v9271_v30 = vpop.f32.mrf.mxu0  ;;  %v22015_v58 = vld [vmem:[%s19821_s30 + $0xc4] ss:$16 sps:$4 sm:$0xff]  }
 0x417   : > { %v9384_v22 = vpop.f32.mrf.mxu1  ;;  %12412 = vmatpush2.bf16.msra.mxu0 %v19073_v34  ;;  %v19085_v34 = vld [vmem:[#allocation5 + $0x1d00] ss:$16 sps:$4 sm:$0xff]   ;;  %v22127_v11 = vld [vmem:[%s19821_s30 + $0x2a4] ss:$16 sps:$4 sm:$0xff]  }
 0x418   : > { %23654 = vst [vmem:[#allocation56_spill] sm:$0xff] %v22004_v0  ;;  %v22009_v17 = vadd.f32 %v9383_v45, %v23656_v62  ;;  %v9385_v59 = vadd.f32 %v9384_v22, %v9271_v30  ;;  %12525 = vmatpush2.bf16.msra.mxu1 %v19076_v26  ;;  %v9273_v47 = vpop.f32.mrf.mxu0  ;;  %12413 = vmatprep.subr.bf16.mxu0 %v19081_v12  ;;  %v19088_v26 = vld [vmem:[#allocation5 + $0x1f00] ss:$16 sps:$4 sm:$0xff]   ;;  %v19099_v12 = vld [vmem:[#allocation5 + $0x1cec] ss:$16 sps:$4 sm:$0xff]  }
 0x419   : > { %v9386_v23 = vpop.f32.mrf.mxu1  ;;  %12526 = vmatprep.subr.bf16.mxu1 %v19084_v43  ;;  %v19102_v43 = vld [vmem:[#allocation5 + $0x1eec] ss:$16 sps:$4 sm:$0xff]   ;;  %v22031_v30 = vld [vmem:[%s19821_s30 + $0xc0] ss:$16 sps:$4 sm:$0xff]   ;;  %v22034_v22 = vld [vmem:[%s19821_s30 + $0xc8] ss:$16 sps:$4 sm:$0xff]  }
 0x41a   : > { %23657 = vst [vmem:[#allocation61_spill] sm:$0xff] %v22009_v17  ;;  %v22012_v28 = vadd.f32 %v9385_v59, %v23658_v32  ;;  %v9387_v18 = vadd.f32 %v9386_v23, %v9273_v47  ;;  %v9277_v33 = vpop.f32.mrf.mxu0  ;;  %11108 = vmatmul.mubr.bf16.gmra.mxu0 %v21873_v50  ;;  %v23662_v52 = vld [vmem:[#allocation34_spill] sm:$0xff]  ;;  %v19100_v47 = vld [vmem:[#allocation5 + $0x1ee8] ss:$16 sps:$4 sm:$0xff]  }
 0x41b   : > { %v9390_v13 = vpop.f32.mrf.mxu1  ;;  %11221 = vmatmul.mubr.bf16.gmra.mxu1 %v21877_v38  ;;  %12414 = vmatpush2.bf16.msra.mxu0 %v19079_v55  ;;  %v23664_v62 = vld [vmem:[#allocation30_spill] sm:$0xff] }
 0x41c   : > { %23659 = vst [vmem:[#allocation18_spill] sm:$0xff] %v22012_v28  ;;  %v22023_v63 = vadd.f32 %v9387_v18, %v23660_v14  ;;  %v9391_v8 = vadd.f32 %v9390_v13, %v9277_v33  ;;  %12527 = vmatpush2.bf16.msra.mxu1 %v19082_v4  ;;  %v9279_v31 = vpop.f32.mrf.mxu0  ;;  %12415 = vmatprep.subr.bf16.mxu0 %v19087_v1  ;;  %v19097_v4 = vld [vmem:[#allocation5 + $0x1ce8] ss:$16 sps:$4 sm:$0xff]   ;;  %v19108_v32 = vld [vmem:[#allocation5 + $0x1ecc] ss:$16 sps:$4 sm:$0xff]  }
 0x41d   : > { %v9392_v6 = vpop.f32.mrf.mxu1  ;;  %12528 = vmatprep.subr.bf16.mxu1 %v19090_v25  ;;  %12417 = vmatprep.mubr.bf16.mxu0 %v22015_v58  ;;  %v19105_v25 = vld [vmem:[#allocation5 + $0x1ccc] ss:$16 sps:$4 sm:$0xff]   ;;  %v22043_v14 = vld [vmem:[%s19821_s30 + $0xe4] ss:$16 sps:$4 sm:$0xff]  }
 0x41e   : > { %23661 = vst [vmem:[#allocation57_spill] sm:$0xff] %v22023_v63  ;;  %v22026_v50 = vadd.f32 %v9391_v8, %v23662_v52  ;;  %v9393_v38 = vadd.f32 %v9392_v6, %v9279_v31  ;;  %12530 = vmatprep.mubr.bf16.mxu1 %v22018_v24  ;;  %v9281_v45 = vpop.f32.mrf.mxu0  ;;  %v23666_v18 = vld [vmem:[#allocation40_spill] sm:$0xff]  ;;  %v19106_v52 = vld [vmem:[#allocation5 + $0x1ec8] ss:$16 sps:$4 sm:$0xff]  }
 0x41f   : > { %v9394_v61 = vpop.f32.mrf.mxu1  ;;  %12416 = vmatpush2.bf16.msra.mxu0 %v19085_v34  ;;  %v22046_v8 = vld [vmem:[%s19821_s30 + $0xec] ss:$16 sps:$4 sm:$0xff]   ;;  %v22099_v17 = vld [vmem:[%s19821_s30 + $0x124] ss:$16 sps:$4 sm:$0xff]  }
 0x420   : > { %23663 = vst [vmem:[#allocation26_spill] sm:$0xff] %v22026_v50  ;;  %v22037_v59 = vadd.f32 %v9393_v38, %v23664_v62  ;;  %v9395_v55 = vadd.f32 %v9394_v61, %v9281_v45  ;;  %12529 = vmatpush2.bf16.msra.mxu1 %v19088_v26  ;;  %v9283_v23 = vpop.f32.mrf.mxu0  ;;  %12611 = vmatprep.subr.bf16.mxu0 %v19099_v12  ;;  %v23668_v34 = vld [vmem:[#allocation41_spill] sm:$0xff] }
 0x421   : > { %v9396_v1 = vpop.f32.mrf.mxu1  ;;  %12724 = vmatprep.subr.bf16.mxu1 %v19102_v43  ;;  %v19103_v43 = vld [vmem:[#allocation5 + $0x1cc8] ss:$16 sps:$4 sm:$0xff]   ;;  %v19117_v61 = vld [vmem:[#allocation5 + $0x1cac] ss:$16 sps:$4 sm:$0xff]   ;;  %v22155_v35 = vld [vmem:[%s19821_s30 + $0x2c4] ss:$16 sps:$4 sm:$0xff]  }
 0x422   : > { %23665 = vst [vmem:[#allocation21_spill] sm:$0xff] %v22037_v59  ;;  %v22040_v33 = vadd.f32 %v9395_v55, %v23666_v18  ;;  %v9397_v13 = vadd.f32 %v9396_v1, %v9283_v23  ;;  %v9433_v31 = vpop.f32.mrf.mxu0  ;;  %12418 = vmatmul.mubr.bf16.vlgmr.msra.gmra.mxu0 %v22031_v30  ;;  %v19120_v62 = vld [vmem:[#allocation5 + $0x1eac] ss:$16 sps:$4 sm:$0xff]   ;;  %v22071_v59 = vld [vmem:[%s19821_s30 + $0x104] ss:$16 sps:$4 sm:$0xff]  }
 0x423   : > { %v9546_v6 = vpop.f32.mrf.mxu1  ;;  %12531 = vmatmul.mubr.bf16.vlgmr.msra.gmra.mxu1 %v22034_v22  ;;  %12612 = vmatpush1.bf16.msra.mxu0 %v19097_v4  ;;  %v23670_v55 = vld [vmem:[#allocation31_spill] sm:$0xff] }
 0x424   : > { %23667 = vst [vmem:[#allocation25_spill] sm:$0xff] %v22040_v33  ;;  %v22051_v26 = vadd.f32 %v9397_v13, %v23668_v34  ;;  %v9547_v12 = vadd.f32 %v9546_v6, %v9433_v31  ;;  %12725 = vmatpush1.bf16.msra.mxu1 %v19100_v47  ;;  %v9435_v38 = vpop.f32.mrf.mxu0  ;;  %12613 = vmatprep.subr.bf16.mxu0 %v19105_v25  ;;  %v22059_v47 = vld [vmem:[%s19821_s30 + $0xe0] ss:$16 sps:$4 sm:$0xff]   ;;  %v22062_v13 = vld [vmem:[%s19821_s30 + $0xe8] ss:$16 sps:$4 sm:$0xff]  }
 0x425   : > { %v9548_v45 = vpop.f32.mrf.mxu1  ;;  %12726 = vmatprep.subr.bf16.mxu1 %v19108_v32  ;;  %12427 = vmatprep.mubr.bf16.mxu0 %v22043_v14  ;;  %v23672_v31 = vld [vmem:[#allocation35_spill] sm:$0xff] }
 0x426   : > { %23669 = vst [vmem:[#allocation32_spill] sm:$0xff] %v22051_v26  ;;  %v22054_v23 = vadd.f32 %v9547_v12, %v23670_v55  ;;  %v9549_v1 = vadd.f32 %v9548_v45, %v9435_v38  ;;  %12540 = vmatprep.mubr.bf16.mxu1 %v22046_v8  ;;  %v9437_v4 = vpop.f32.mrf.mxu0  ;;  %v19115_v6 = vld [vmem:[#allocation5 + $0x1ca8] ss:$16 sps:$4 sm:$0xff]   ;;  %v19123_v45 = vld [vmem:[#allocation5 + $0x1c8c] ss:$16 sps:$4 sm:$0xff]  }
 0x427   : > { %v9550_v18 = vpop.f32.mrf.mxu1  ;;  %12614 = vmatpush1.bf16.msra.mxu0 %v19103_v43  ;;  %v19118_v34 = vld [vmem:[#allocation5 + $0x1ea8] ss:$16 sps:$4 sm:$0xff]   ;;  %v19126_v55 = vld [vmem:[#allocation5 + $0x1e8c] ss:$16 sps:$4 sm:$0xff]   ;;  %v22183_v2 = vld [vmem:[%s19821_s30 + $0x2e4] ss:$16 sps:$4 sm:$0xff]  }
 0x428   : > { %23671 = vst [vmem:[#allocation22_spill] sm:$0xff] %v22054_v23  ;;  %v22065_v25 = vadd.f32 %v9549_v1, %v23672_v31  ;;  %v9551_v32 = vadd.f32 %v9550_v18, %v9437_v4  ;;  %12727 = vmatpush1.bf16.msra.mxu1 %v19106_v52  ;;  %v9439_v12 = vpop.f32.mrf.mxu0  ;;  %12615 = vmatprep.subr.bf16.mxu0 %v19117_v61  ;;  %v23674_v23 = vld [vmem:[#allocation64_spill] sm:$0xff]  ;;  %v23676_v43 = vld [vmem:[#allocation63_spill] sm:$0xff] }
 0x429   : > { %v9552_v38 = vpop.f32.mrf.mxu1  ;;  %12728 = vmatprep.subr.bf16.mxu1 %v19120_v62  ;;  %v22074_v50 = vld [vmem:[%s19821_s30 + $0x10c] ss:$16 sps:$4 sm:$0xff]   ;;  %v19121_v62 = vld [vmem:[#allocation5 + $0x1c88] ss:$16 sps:$4 sm:$0xff]  }
 0x42a   : > { %23673 = vst [vmem:[#allocation27_spill] sm:$0xff] %v22065_v25  ;;  %v22068_v26 = vadd.f32 %v9551_v32, %v23674_v23  ;;  %v9553_v33 = vadd.f32 %v9552_v38, %v9439_v12  ;;  %v9443_v1 = vpop.f32.mrf.mxu0  ;;  %12428 = vmatmul.mubr.bf16.gmra.mxu0 %v22059_v47  ;;  %v19124_v23 = vld [vmem:[#allocation5 + $0x1e88] ss:$16 sps:$4 sm:$0xff]   ;;  %v19135_v32 = vld [vmem:[#allocation5 + $0x1c6c] ss:$16 sps:$4 sm:$0xff]  }
 0x42b   : > { %v9556_v4 = vpop.f32.mrf.mxu1  ;;  %12541 = vmatmul.mubr.bf16.gmra.mxu1 %v22062_v13  ;;  %12616 = vmatpush1.bf16.msra.mxu0 %v19115_v6  ;;  %v19138_v12 = vld [vmem:[#allocation5 + $0x1e6c] ss:$16 sps:$4 sm:$0xff]  }
 0x42c   : > { %23675 = vst [vmem:[#allocation51_spill] sm:$0xff] %v22068_v26  ;;  %v22079_v52 = vadd.f32 %v9553_v33, %v23676_v43  ;;  %v9557_v61 = vadd.f32 %v9556_v4, %v9443_v1  ;;  %12729 = vmatpush1.bf16.msra.mxu1 %v19118_v34  ;;  %v9445_v18 = vpop.f32.mrf.mxu0  ;;  %12617 = vmatprep.subr.bf16.mxu0 %v19123_v45  ;;  %v23678_v38 = vld [vmem:[#allocation36_spill] sm:$0xff]  ;;  %v22090_v1 = vld [vmem:[%s19821_s30 + $0x108] ss:$16 sps:$4 sm:$0xff]  }
 0x42d   : > { %v9558_v31 = vpop.f32.mrf.mxu1  ;;  %12730 = vmatprep.subr.bf16.mxu1 %v19126_v55  ;;  %12437 = vmatprep.mubr.bf16.mxu0 %v22071_v59  ;;  %v22087_v34 = vld [vmem:[%s19821_s30 + $0x100] ss:$16 sps:$4 sm:$0xff]   ;;  %v23680_v4 = vld [vmem:[#allocation37_spill] sm:$0xff] }
 0x42e   : > { %23677 = vst [vmem:[#allocation62_spill] sm:$0xff] %v22079_v52  ;;  %v22082_v26 = vadd.f32 %v9557_v61, %v23678_v38  ;;  %v9559_v25 = vadd.f32 %v9558_v31, %v9445_v18  ;;  %12550 = vmatprep.mubr.bf16.mxu1 %v22074_v50  ;;  %v9447_v33 = vpop.f32.mrf.mxu0  ;;  %v19133_v43 = vld [vmem:[#allocation5 + $0x1c68] ss:$16 sps:$4 sm:$0xff]   ;;  %v19141_v38 = vld [vmem:[#allocation5 + $0x1c4c] ss:$16 sps:$4 sm:$0xff]  }
 0x42f   : > { %v9560_v6 = vpop.f32.mrf.mxu1  ;;  %12618 = vmatpush1.bf16.msra.mxu0 %v19121_v62  ;;  %v19136_v61 = vld [vmem:[#allocation5 + $0x1e68] ss:$16 sps:$4 sm:$0xff]   ;;  %v22102_v0 = vld [vmem:[%s19821_s30 + $0x12c] ss:$16 sps:$4 sm:$0xff]  }
 0x430   : > { %23679 = vst [vmem:[#allocation28_spill] sm:$0xff] %v22082_v26  ;;  %v22093_v45 = vadd.f32 %v9559_v25, %v23680_v4  ;;  %v9561_v55 = vadd.f32 %v9560_v6, %v9447_v33  ;;  %12731 = vmatpush1.bf16.msra.mxu1 %v19124_v23  ;;  %v9449_v18 = vpop.f32.mrf.mxu0  ;;  %12619 = vmatprep.subr.bf16.mxu0 %v19135_v32  ;;  %v19144_v26 = vld [vmem:[#allocation5 + $0x1e4c] ss:$16 sps:$4 sm:$0xff]  }
 0x431   : > { %v9562_v31 = vpop.f32.mrf.mxu1  ;;  %12732 = vmatprep.subr.bf16.mxu1 %v19138_v12  ;;  %v23682_v52 = vld [vmem:[#allocation13_spill] sm:$0xff]  ;;  %v23684_v62 = vld [vmem:[#allocation38_spill] sm:$0xff] }
 0x432   : > { %23681 = vst [vmem:[#allocation29_spill] sm:$0xff] %v22093_v45  ;;  %v22096_v63 = vadd.f32 %v9561_v55, %v23682_v52  ;;  %v9563_v28 = vadd.f32 %v9562_v31, %v9449_v18  ;;  %v9453_v25 = vpop.f32.mrf.mxu0  ;;  %12438 = vmatmul.mubr.bf16.gmra.mxu0 %v22087_v34  ;;  %v19139_v52 = vld [vmem:[#allocation5 + $0x1c48] ss:$16 sps:$4 sm:$0xff]   ;;  %v19153_v55 = vld [vmem:[#allocation5 + $0x1c2c] ss:$16 sps:$4 sm:$0xff]   ;;  %23701 = vst [vmem:[#allocation13_spill] sm:$0xff] %v22155_v35 }
 0x433   : > { %v9566_v33 = vpop.f32.mrf.mxu1  ;;  %12551 = vmatmul.mubr.bf16.gmra.mxu1 %v22090_v1  ;;  %12620 = vmatpush1.bf16.msra.mxu0 %v19133_v43  ;;  %v19142_v12 = vld [vmem:[#allocation5 + $0x1e48] ss:$16 sps:$4 sm:$0xff]   ;;  %v19156_v18 = vld [vmem:[#allocation5 + $0x1e2c] ss:$16 sps:$4 sm:$0xff]   ;;  %23702 = vst [vmem:[#allocation38_spill] sm:$0xff] %v22158_v27 }
 0x434   : > { %23683 = vst [vmem:[#allocation34_spill] sm:$0xff] %v22096_v63  ;;  %v22107_v23 = vadd.f32 %v9563_v28, %v23684_v62  ;;  %v9567_v32 = vadd.f32 %v9566_v33, %v9453_v25  ;;  %12733 = vmatpush1.bf16.msra.mxu1 %v19136_v61  ;;  %v9455_v6 = vpop.f32.mrf.mxu0  ;;  %12621 = vmatprep.subr.bf16.mxu0 %v19141_v38  ;;  %v23686_v31 = vld [vmem:[#allocation46_spill] sm:$0xff]  ;;  %v22118_v25 = vld [vmem:[%s19821_s30 + $0x128] ss:$16 sps:$4 sm:$0xff]  }
 0x435   : > { %v9568_v4 = vpop.f32.mrf.mxu1  ;;  %12734 = vmatprep.subr.bf16.mxu1 %v19144_v26  ;;  %12447 = vmatprep.mubr.bf16.mxu0 %v22099_v17  ;;  %v22115_v61 = vld [vmem:[%s19821_s30 + $0x120] ss:$16 sps:$4 sm:$0xff]   ;;  %v23688_v33 = vld [vmem:[#allocation39_spill] sm:$0xff] }
 0x436   : > { %23685 = vst [vmem:[#allocation30_spill] sm:$0xff] %v22107_v23  ;;  %v22110_v63 = vadd.f32 %v9567_v32, %v23686_v31  ;;  %v9569_v45 = vadd.f32 %v9568_v4, %v9455_v6  ;;  %12560 = vmatprep.mubr.bf16.mxu1 %v22102_v0  ;;  %v9457_v28 = vpop.f32.mrf.mxu0  ;;  %v19151_v62 = vld [vmem:[#allocation5 + $0x1c28] ss:$16 sps:$4 sm:$0xff]   ;;  %v19159_v31 = vld [vmem:[#allocation5 + $0x1c0c] ss:$16 sps:$4 sm:$0xff]  }
 0x437   : > { %v9570_v43 = vpop.f32.mrf.mxu1  ;;  %12622 = vmatpush1.bf16.msra.mxu0 %v19139_v52  ;;  %v19154_v32 = vld [vmem:[#allocation5 + $0x1e28] ss:$16 sps:$4 sm:$0xff]   ;;  %v23690_v23 = vld [vmem:[#allocation44_spill] sm:$0xff]  ;;  %v23692_v52 = vld [vmem:[#allocation54_spill] sm:$0xff] }
 0x438   : > { %23687 = vst [vmem:[#allocation40_spill] sm:$0xff] %v22110_v63  ;;  %v22121_v26 = vadd.f32 %v9569_v45, %v23688_v33  ;;  %v9571_v38 = vadd.f32 %v9570_v43, %v9457_v28  ;;  %12735 = vmatpush1.bf16.msra.mxu1 %v19142_v12  ;;  %v9459_v6 = vpop.f32.mrf.mxu0  ;;  %12623 = vmatprep.subr.bf16.mxu0 %v19153_v55  ;;  %v19162_v63 = vld [vmem:[#allocation5 + $0x1e0c] ss:$16 sps:$4 sm:$0xff]  }
 0x439   : > { %v9572_v4 = vpop.f32.mrf.mxu1  ;;  %12736 = vmatprep.subr.bf16.mxu1 %v19156_v18  ;;  %v19160_v18 = vld [vmem:[#allocation5 + $0x1e08] ss:$16 sps:$4 sm:$0xff]  }
 0x43a   : > { %23689 = vst [vmem:[#allocation41_spill] sm:$0xff] %v22121_v26  ;;  %v22124_v20 = vadd.f32 %v9571_v38, %v23690_v23  ;;  %v9573_v5 = vadd.f32 %v9572_v4, %v9459_v6  ;;  %v9463_v45 = vpop.f32.mrf.mxu0  ;;  %12448 = vmatmul.mubr.bf16.gmra.mxu0 %v22115_v61  ;;  %v19157_v23 = vld [vmem:[#allocation5 + $0x1c08] ss:$16 sps:$4 sm:$0xff]   ;;  %v19171_v38 = vld [vmem:[#allocation5 + $0x1dec] ss:$16 sps:$4 sm:$0xff]  }
 0x43b   : > { %v9576_v28 = vpop.f32.mrf.mxu1  ;;  %12561 = vmatmul.mubr.bf16.gmra.mxu1 %v22118_v25  ;;  %12624 = vmatpush1.bf16.msra.mxu0 %v19151_v62  ;;  %v19174_v6 = vld [vmem:[#allocation5 + $0x1fec] ss:$16 sps:$4 sm:$0xff]  }
 0x43c   : > { %23691 = vst [vmem:[#allocation31_spill] sm:$0xff] %v22124_v20  ;;  %v22135_v12 = vadd.f32 %v9573_v5, %v23692_v52  ;;  %v9577_v55 = vadd.f32 %v9576_v28, %v9463_v45  ;;  %12737 = vmatpush1.bf16.msra.mxu1 %v19154_v32  ;;  %v9465_v43 = vpop.f32.mrf.mxu0  ;;  %12625 = vmatprep.subr.bf16.mxu0 %v19159_v31  ;;  %v23694_v4 = vld [vmem:[#allocation45_spill] sm:$0xff]  ;;  %v22143_v32 = vld [vmem:[%s19821_s30 + $0x2a0] ss:$16 sps:$4 sm:$0xff]   ;;  %v23697_v28 = vld [vmem:[#allocation43_spill] sm:$0xff] }
 0x43d   : > { %v9578_v33 = vpop.f32.mrf.mxu1  ;;  %12738 = vmatprep.subr.bf16.mxu1 %v19162_v63  ;;  %12457 = vmatprep.mubr.bf16.mxu0 %v22127_v11  ;;  %v22146_v45 = vld [vmem:[%s19821_s30 + $0x2a8] ss:$16 sps:$4 sm:$0xff]  }
 0x43e   : > { %23693 = vst [vmem:[#allocation35_spill] sm:$0xff] %v22135_v12  ;;  %v22138_v20 = vadd.f32 %v9577_v55, %v23694_v4  ;;  %v9579_v26 = vadd.f32 %v9578_v33, %v9465_v43  ;;  %12570 = vmatprep.mubr.bf16.mxu1 %v22130_v3  ;;  %v9467_v5 = vpop.f32.mrf.mxu0  ;;  %23696 = vst [vmem:[#allocation63_spill] sm:$0xff] %v22146_v45  ;;  %v19169_v52 = vld [vmem:[#allocation5 + $0x1de8] ss:$16 sps:$4 sm:$0xff]   ;;  %v19177_v4 = vld [vmem:[#allocation5 + $0x1dcc] ss:$16 sps:$4 sm:$0xff]  }
 0x43f   : > { %v9580_v62 = vpop.f32.mrf.mxu1  ;;  %12626 = vmatpush1.bf16.msra.mxu0 %v19157_v23  ;;  %v19172_v55 = vld [vmem:[#allocation5 + $0x1fe8] ss:$16 sps:$4 sm:$0xff]   ;;  %v23699_v12 = vld [vmem:[#allocation14_spill] sm:$0xff]  ;;  %v23703_v23 = vld [vmem:[#allocation48_spill] sm:$0xff] }
 0x440   : > { %23695 = vst [vmem:[#allocation64_spill] sm:$0xff] %v22138_v20  ;;  %v22149_v63 = vadd.f32 %v9579_v26, %v23697_v28  ;;  %v9581_v31 = vadd.f32 %v9580_v62, %v9467_v5  ;;  %12739 = vmatpush1.bf16.msra.mxu1 %v19160_v18  ;;  %v9469_v43 = vpop.f32.mrf.mxu0  ;;  %12627 = vmatprep.subr.bf16.mxu0 %v19171_v38  ;;  %v19180_v20 = vld [vmem:[#allocation5 + $0x1fcc] ss:$16 sps:$4 sm:$0xff]   ;;  %23713 = vst [vmem:[#allocation14_spill] sm:$0xff] %v22183_v2 }
 0x441   : > { %v9582_v33 = vpop.f32.mrf.mxu1  ;;  %12740 = vmatprep.subr.bf16.mxu1 %v19174_v6  ;;  %v19178_v6 = vld [vmem:[#allocation5 + $0x1fc8] ss:$16 sps:$4 sm:$0xff]  }
 0x442   : > { %23698 = vst [vmem:[#allocation36_spill] sm:$0xff] %v22149_v63  ;;  %v22152_v39 = vadd.f32 %v9581_v31, %v23699_v12  ;;  %v9583_v41 = vadd.f32 %v9582_v33, %v9469_v43  ;;  %v9473_v26 = vpop.f32.mrf.mxu0  ;;  %12458 = vmatmul.mubr.bf16.gmra.mxu0 %v22143_v32  ;;  %v19175_v12 = vld [vmem:[#allocation5 + $0x1dc8] ss:$16 sps:$4 sm:$0xff]   ;;  %v19189_v31 = vld [vmem:[#allocation5 + $0x1dac] ss:$16 sps:$4 sm:$0xff]  }
 0x443   : > { %v9586_v5 = vpop.f32.mrf.mxu1  ;;  %12571 = vmatmul.mubr.bf16.gmra.mxu1 %v22146_v45  ;;  %12628 = vmatpush2.bf16.msra.mxu0 %v19169_v52  ;;  %v19192_v43 = vld [vmem:[#allocation5 + $0x1fac] ss:$16 sps:$4 sm:$0xff]  }
 0x444   : > { %23700 = vst [vmem:[#allocation37_spill] sm:$0xff] %v22152_v39  ;;  %v22163_v18 = vadd.f32 %v9583_v41, %v23703_v23  ;;  %v9587_v38 = vadd.f32 %v9586_v5, %v9473_v26  ;;  %12741 = vmatpush2.bf16.msra.mxu1 %v19172_v55  ;;  %v9475_v62 = vpop.f32.mrf.mxu0  ;;  %12629 = vmatprep.subr.bf16.mxu0 %v19177_v4  ;;  %v23705_v33 = vld [vmem:[#allocation49_spill] sm:$0xff]  ;;  %v22171_v55 = vld [vmem:[%s19821_s30 + $0x2c0] ss:$16 sps:$4 sm:$0xff]  }
 0x445   : > { %v9588_v28 = vpop.f32.mrf.mxu1  ;;  %12742 = vmatprep.subr.bf16.mxu1 %v19180_v20  ;;  %12467 = vmatprep.mubr.bf16.mxu0 %v22155_v35  ;;  %23707 = vst [vmem:[#allocation44_spill] sm:$0xff] %v22171_v55  ;;  %v22174_v26 = vld [vmem:[%s19821_s30 + $0x2c8] ss:$16 sps:$4 sm:$0xff]   ;;  %v22186_v45 = vld [vmem:[%s19821_s30 + $0x2ec] ss:$16 sps:$4 sm:$0xff]  }
 0x446   : > { %23704 = vst [vmem:[#allocation46_spill] sm:$0xff] %v22163_v18  ;;  %v22166_v39 = vadd.f32 %v9587_v38, %v23705_v33  ;;  %v9589_v63 = vadd.f32 %v9588_v28, %v9475_v62  ;;  %12580 = vmatprep.mubr.bf16.mxu1 %v22158_v27  ;;  %v9477_v41 = vpop.f32.mrf.mxu0  ;;  %23708 = vst [vmem:[#allocation54_spill] sm:$0xff] %v22174_v26  ;;  %v23709_v5 = vld [vmem:[#allocation17_spill] sm:$0xff] }
 0x447   : > { %v9590_v52 = vpop.f32.mrf.mxu1  ;;  %12630 = vmatpush2.bf16.msra.mxu0 %v19175_v12  ;;  %v19187_v23 = vld [vmem:[#allocation5 + $0x1da8] ss:$16 sps:$4 sm:$0xff]   ;;  %v19195_v33 = vld [vmem:[#allocation5 + $0x1d8c] ss:$16 sps:$4 sm:$0xff]   ;;  %23714 = vst [vmem:[#allocation48_spill] sm:$0xff] %v22186_v45 }
 0x448   : > { %23706 = vst [vmem:[#allocation39_spill] sm:$0xff] %v22166_v39  ;;  %v22177_v20 = vadd.f32 %v9589_v63, %v23709_v5  ;;  %v9591_v4 = vadd.f32 %v9590_v52, %v9477_v41  ;;  %12743 = vmatpush2.bf16.msra.mxu1 %v19178_v6  ;;  %v19190_v38 = vld [vmem:[#allocation5 + $0x1fa8] ss:$16 sps:$4 sm:$0xff]   ;;  %v9479_v62 = vpop.f32.mrf.mxu0  ;;  %12631 = vmatprep.subr.bf16.mxu0 %v19189_v31  ;;  %v19198_v39 = vld [vmem:[#allocation5 + $0x1f8c] ss:$16 sps:$4 sm:$0xff]  }
 0x449   : > { %v9592_v28 = vpop.f32.mrf.mxu1  ;;  %12744 = vmatprep.subr.bf16.mxu1 %v19192_v43  ;;  %v23711_v18 = vld [vmem:[#allocation53_spill] sm:$0xff]  ;;  %v23715_v12 = vld [vmem:[#allocation20_spill] sm:$0xff] }
 0x44a   : > { %23710 = vst [vmem:[#allocation45_spill] sm:$0xff] %v22177_v20  ;;  %v22180_v27 = vadd.f32 %v9591_v4, %v23711_v18  ;;  %v9593_v35 = vadd.f32 %v9592_v28, %v9479_v62  ;;  %v9483_v63 = vpop.f32.mrf.mxu0  ;;  %12468 = vmatmul.mubr.bf16.gmra.mxu0 %v22171_v55  ;;  %v19193_v18 = vld [vmem:[#allocation5 + $0x1d88] ss:$16 sps:$4 sm:$0xff]   ;;  %v19207_v4 = vld [vmem:[#allocation5 + $0x1d6c] ss:$16 sps:$4 sm:$0xff]  }
 0x44b   : > { %v9596_v41 = vpop.f32.mrf.mxu1  ;;  %12581 = vmatmul.mubr.bf16.gmra.mxu1 %v22174_v26  ;;  %12632 = vmatpush2.bf16.msra.mxu0 %v19187_v23  ;;  %v19196_v43 = vld [vmem:[#allocation5 + $0x1f88] ss:$16 sps:$4 sm:$0xff]   ;;  %v19210_v62 = vld [vmem:[#allocation5 + $0x1f6c] ss:$16 sps:$4 sm:$0xff]   ;;  %v22211_v26 = vld [vmem:[%s19821_s30 + $0x304] ss:$16 sps:$4 sm:$0xff]  }
 0x44c   : > { %23712 = vst [vmem:[#allocation43_spill] sm:$0xff] %v22180_v27  ;;  %v22191_v6 = vadd.f32 %v9593_v35, %v23715_v12  ;;  %v9597_v31 = vadd.f32 %v9596_v41, %v9483_v63  ;;  %12745 = vmatpush2.bf16.msra.mxu1 %v19190_v38  ;;  %v9485_v52 = vpop.f32.mrf.mxu0  ;;  %12633 = vmatprep.subr.bf16.mxu0 %v19195_v33  ;;  %v23717_v28 = vld [vmem:[#allocation24_spill] sm:$0xff]  ;;  %v22202_v63 = vld [vmem:[%s19821_s30 + $0x2e8] ss:$16 sps:$4 sm:$0xff]  }
 0x44d   : > { %v9598_v5 = vpop.f32.mrf.mxu1  ;;  %12746 = vmatprep.subr.bf16.mxu1 %v19198_v39  ;;  %12477 = vmatprep.mubr.bf16.mxu0 %v22183_v2  ;;  %v22199_v38 = vld [vmem:[%s19821_s30 + $0x2e0] ss:$16 sps:$4 sm:$0xff]   ;;  %v23719_v41 = vld [vmem:[#allocation33_spill] sm:$0xff]  ;;  %23723 = vst [vmem:[#allocation24_spill] sm:$0xff] %v22211_v26 }
 0x44e   : > { %23716 = vst [vmem:[#allocation49_spill] sm:$0xff] %v22191_v6  ;;  %v22194_v27 = vadd.f32 %v9597_v31, %v23717_v28  ;;  %v9599_v20 = vadd.f32 %v9598_v5, %v9485_v52  ;;  %12590 = vmatprep.mubr.bf16.mxu1 %v22186_v45  ;;  %v9487_v35 = vpop.f32.mrf.mxu0  ;;  %v19205_v12 = vld [vmem:[#allocation5 + $0x1d68] ss:$16 sps:$4 sm:$0xff]   ;;  %v19213_v28 = vld [vmem:[#allocation5 + $0x1d4c] ss:$16 sps:$4 sm:$0xff]  }
 0x44f   : > { %v9600_v23 = vpop.f32.mrf.mxu1  ;;  %12634 = vmatpush2.bf16.msra.mxu0 %v19193_v18  ;;  %v19208_v31 = vld [vmem:[#allocation5 + $0x1f68] ss:$16 sps:$4 sm:$0xff]   ;;  %v22214_v55 = vld [vmem:[%s19821_s30 + $0x30c] ss:$16 sps:$4 sm:$0xff]  }
 0x450   : > { %23718 = vst [vmem:[#allocation17_spill] sm:$0xff] %v22194_v27  ;;  %v22205_v39 = vadd.f32 %v9599_v20, %v23719_v41  ;;  %v9601_v33 = vadd.f32 %v9600_v23, %v9487_v35  ;;  %12747 = vmatpush2.bf16.msra.mxu1 %v19196_v43  ;;  %v9489_v52 = vpop.f32.mrf.mxu0  ;;  %12635 = vmatprep.subr.bf16.mxu0 %v19207_v4  ;;  %v19216_v27 = vld [vmem:[#allocation5 + $0x1f4c] ss:$16 sps:$4 sm:$0xff]   ;;  %23724 = vst [vmem:[#allocation33_spill] sm:$0xff] %v22214_v55 }
 0x451   : > { %v9602_v5 = vpop.f32.mrf.mxu1  ;;  %12748 = vmatprep.subr.bf16.mxu1 %v19210_v62  ;;  %v23721_v6 = vld [vmem:[#allocation47_spill] sm:$0xff]  ;;  %v23725_v18 = vld [vmem:[#allocation58_spill] sm:$0xff] }
 0x452   : > { %23720 = vst [vmem:[#allocation53_spill] sm:$0xff] %v22205_v39  ;;  %v22208_v45 = vadd.f32 %v9601_v33, %v23721_v6  ;;  %v9603_v2 = vadd.f32 %v9602_v5, %v9489_v52  ;;  %v9493_v20 = vpop.f32.mrf.mxu0  ;;  %12478 = vmatmul.mubr.bf16.gmra.mxu0 %v22199_v38  ;;  %v19211_v6 = vld [vmem:[#allocation5 + $0x1d48] ss:$16 sps:$4 sm:$0xff]   ;;  %v19225_v33 = vld [vmem:[#allocation5 + $0x1d2c] ss:$16 sps:$4 sm:$0xff]  }
 0x453   : > { %v9606_v35 = vpop.f32.mrf.mxu1  ;;  %12591 = vmatmul.mubr.bf16.gmra.mxu1 %v22202_v63  ;;  %12636 = vmatpush2.bf16.msra.mxu0 %v19205_v12  ;;  %v19214_v62 = vld [vmem:[#allocation5 + $0x1f48] ss:$16 sps:$4 sm:$0xff]   ;;  %v19228_v52 = vld [vmem:[#allocation5 + $0x1f2c] ss:$16 sps:$4 sm:$0xff]  }
 0x454   : > { %23722 = vst [vmem:[#allocation20_spill] sm:$0xff] %v22208_v45  ;;  %v22219_v43 = vadd.f32 %v9603_v2, %v23725_v18  ;;  %v9607_v4 = vadd.f32 %v9606_v35, %v9493_v20  ;;  %12749 = vmatpush2.bf16.msra.mxu1 %v19208_v31  ;;  %v9495_v23 = vpop.f32.mrf.mxu0  ;;  %12637 = vmatprep.subr.bf16.mxu0 %v19213_v28  ;;  %v23727_v5 = vld [vmem:[#allocation59_spill] sm:$0xff]  ;;  %v22227_v31 = vld [vmem:[%s19821_s30 + $0x300] ss:$16 sps:$4 sm:$0xff]  }
 0x455   : > { %v9608_v41 = vpop.f32.mrf.mxu1  ;;  %12750 = vmatprep.subr.bf16.mxu1 %v19216_v27  ;;  %12487 = vmatprep.mubr.bf16.mxu0 %v22211_v26  ;;  %v22230_v20 = vld [vmem:[%s19821_s30 + $0x308] ss:$16 sps:$4 sm:$0xff]  }
 0x456   : > { %23726 = vst [vmem:[#allocation47_spill] sm:$0xff] %v22219_v43  ;;  %v22222_v45 = vadd.f32 %v9607_v4, %v23727_v5  ;;  %v9609_v39 = vadd.f32 %v9608_v41, %v9495_v23  ;;  %12600 = vmatprep.mubr.bf16.mxu1 %v22214_v55  ;;  %v9497_v2 = vpop.f32.mrf.mxu0  ;;  %v19223_v28 = vld [vmem:[#allocation5 + $0x1d28] ss:$16 sps:$4 sm:$0xff]   ;;  %v19231_v41 = vld [vmem:[#allocation5 + $0x1d0c] ss:$16 sps:$4 sm:$0xff]  }
 0x457   : > { %v9610_v12 = vpop.f32.mrf.mxu1  ;;  %12638 = vmatpush2.bf16.msra.mxu0 %v19211_v6  ;;  %v19226_v18 = vld [vmem:[#allocation5 + $0x1f28] ss:$16 sps:$4 sm:$0xff]   ;;  %v19234_v5 = vld [vmem:[#allocation5 + $0x1f0c] ss:$16 sps:$4 sm:$0xff]  }
 0x458   : > { %23728 = vst [vmem:[#allocation58_spill] sm:$0xff] %v22222_v45  ;;  %v22233_v35 = vadd.f32 %v9609_v39, %v21881_v15  ;;  %v9611_v27 = vadd.f32 %v9610_v12, %v9497_v2  ;;  %12751 = vmatpush2.bf16.msra.mxu1 %v19214_v62  ;;  %v9499_v4 = vpop.f32.mrf.mxu0  ;;  %12639 = vmatprep.subr.bf16.mxu0 %v19225_v33  ;;  %v19229_v6 = vld [vmem:[#allocation5 + $0x1d08] ss:$16 sps:$4 sm:$0xff]   ;;  %v19240_v2 = vld [vmem:[#allocation5 + $0x22e4] ss:$16 sps:$4 sm:$0xff]  }
 0x459   : > { %v9612_v23 = vpop.f32.mrf.mxu1  ;;  %12752 = vmatprep.subr.bf16.mxu1 %v19228_v52  ;;  %v19232_v62 = vld [vmem:[#allocation5 + $0x1f08] ss:$16 sps:$4 sm:$0xff]  }
 0x45a   : > { %v22236_v45 = vadd.f32 %v9611_v27, %v21884_v46  ;;  %v9613_v43 = vadd.f32 %v9612_v23, %v9499_v4  ;;  %v9503_v55 = vpop.f32.mrf.mxu0  ;;  %12488 = vmatmul.mubr.bf16.gmra.mxu0 %v22227_v31  ;;  %v19237_v46 = vld [vmem:[#allocation5 + $0x20e4] ss:$16 sps:$4 sm:$0xff]  }
 0x45b   : > { %v9616_v26 = vpop.f32.mrf.mxu1  ;;  %12601 = vmatmul.mubr.bf16.gmra.mxu1 %v22230_v20  ;;  %12640 = vmatpush2.bf16.msra.mxu0 %v19223_v28  ;;  %v19235_v28 = vld [vmem:[#allocation5 + $0x20e0] ss:$16 sps:$4 sm:$0xff]  }
 0x45c   : > { %v22241_v15 = vadd.f32 %v9613_v43, %v21889_v36  ;;  %v9617_v39 = vadd.f32 %v9616_v26, %v9503_v55  ;;  %12753 = vmatpush2.bf16.msra.mxu1 %v19226_v18  ;;  %v9505_v33 = vpop.f32.mrf.mxu0  ;;  %12641 = vmatprep.subr.bf16.mxu0 %v19231_v41  ;;  %v19238_v18 = vld [vmem:[#allocation5 + $0x22e0] ss:$16 sps:$4 sm:$0xff]   ;;  %v19246_v41 = vld [vmem:[#allocation5 + $0x22c4] ss:$16 sps:$4 sm:$0xff]  }
 0x45d   : > { %v9618_v52 = vpop.f32.mrf.mxu1  ;;  %12754 = vmatprep.subr.bf16.mxu1 %v19234_v5  ;;  %12643 = vmatprep.mubr.bf16.mxu0 %v22015_v58 }
 0x45e   : > { %v22244_v12 = vadd.f32 %v9617_v39, %v21892_v42  ;;  %v9619_v27 = vadd.f32 %v9618_v52, %v9505_v33  ;;  %12756 = vmatprep.mubr.bf16.mxu1 %v22018_v24  ;;  %v9507_v36 = vpop.f32.mrf.mxu0  ;;  %v19243_v42 = vld [vmem:[#allocation5 + $0x20c4] ss:$16 sps:$4 sm:$0xff]   ;;  %v19244_v33 = vld [vmem:[#allocation5 + $0x22c0] ss:$16 sps:$4 sm:$0xff]  }
 0x45f   : > { %v9620_v55 = vpop.f32.mrf.mxu1  ;;  %12642 = vmatpush2.bf16.msra.mxu0 %v19229_v6 }
 0x460   : > { %v22249_v26 = vadd.f32 %v9619_v27, %v21897_v56  ;;  %v9621_v43 = vadd.f32 %v9620_v55, %v9507_v36  ;;  %12755 = vmatpush2.bf16.msra.mxu1 %v19232_v62  ;;  %v9509_v4 = vpop.f32.mrf.mxu0  ;;  %13991 = vmatprep.subr.bf16.mxu0 %v19237_v46  ;;  %v19241_v62 = vld [vmem:[#allocation5 + $0x20c0] ss:$16 sps:$4 sm:$0xff]  }
 0x461   : > { %v9622_v23 = vpop.f32.mrf.mxu1  ;;  %14104 = vmatprep.subr.bf16.mxu1 %v19240_v2  ;;  %v19252_v2 = vld [vmem:[#allocation5 + $0x22a4] ss:$16 sps:$4 sm:$0xff]  }
 0x462   : > { %v22252_v58 = vadd.f32 %v9621_v43, %v21900_v40  ;;  %v9623_v24 = vadd.f32 %v9622_v23, %v9509_v4  ;;  %v10813_v5 = vpop.f32.mrf.mxu0  ;;  %12644 = vmatmul.mubr.bf16.vlgmr.msra.gmra.mxu0 %v22031_v30  ;;  %v19249_v40 = vld [vmem:[#allocation5 + $0x20a4] ss:$16 sps:$4 sm:$0xff]   ;;  %v19247_v43 = vld [vmem:[#allocation5 + $0x20a0] ss:$16 sps:$4 sm:$0xff]  }
 0x463   : > { %v10926_v39 = vpop.f32.mrf.mxu1  ;;  %12757 = vmatmul.mubr.bf16.vlgmr.msra.gmra.mxu1 %v22034_v22  ;;  %13992 = vmatpush1.bf16.msra.mxu0 %v19235_v28  ;;  %v19250_v28 = vld [vmem:[#allocation5 + $0x22a0] ss:$16 sps:$4 sm:$0xff]   ;;  %v19258_v23 = vld [vmem:[#allocation5 + $0x2284] ss:$16 sps:$4 sm:$0xff]  }
 0x464   : > { %v22257_v56 = vadd.f32 %v9623_v24, %v21905_v60  ;;  %v10927_v6 = vadd.f32 %v10926_v39, %v10813_v5  ;;  %14105 = vmatpush1.bf16.msra.mxu1 %v19238_v18  ;;  %v10815_v52 = vpop.f32.mrf.mxu0  ;;  %13993 = vmatprep.subr.bf16.mxu0 %v19243_v42  ;;  %v19253_v5 = vld [vmem:[#allocation5 + $0x2080] ss:$16 sps:$4 sm:$0xff]  }
 0x465   : > { %v10928_v46 = vpop.f32.mrf.mxu1  ;;  %14106 = vmatprep.subr.bf16.mxu1 %v19246_v41  ;;  %12653 = vmatprep.mubr.bf16.mxu0 %v22043_v14  ;;  %v19256_v39 = vld [vmem:[#allocation5 + $0x2280] ss:$16 sps:$4 sm:$0xff]  }
 0x466   : > { %v22260_v27 = vadd.f32 %v10927_v6, %v21908_v44  ;;  %v10929_v30 = vadd.f32 %v10928_v46, %v10815_v52  ;;  %12766 = vmatprep.mubr.bf16.mxu1 %v22046_v8  ;;  %v10817_v60 = vpop.f32.mrf.mxu0  ;;  %v19255_v44 = vld [vmem:[#allocation5 + $0x2084] ss:$16 sps:$4 sm:$0xff]  }
 0x467   : > { %v10930_v22 = vpop.f32.mrf.mxu1  ;;  %13994 = vmatpush1.bf16.msra.mxu0 %v19241_v62 }
 0x468   : > { %v22265_v36 = vadd.f32 %v10929_v30, %v21913_v7  ;;  %v10931_v55 = vadd.f32 %v10930_v22, %v10817_v60  ;;  %14107 = vmatpush1.bf16.msra.mxu1 %v19244_v33  ;;  %v10819_v18 = vpop.f32.mrf.mxu0  ;;  %13995 = vmatprep.subr.bf16.mxu0 %v19249_v40  ;;  %v19264_v33 = vld [vmem:[#allocation5 + $0x2264] ss:$16 sps:$4 sm:$0xff]   ;;  %v19262_v30 = vld [vmem:[#allocation5 + $0x2260] ss:$16 sps:$4 sm:$0xff]  }
 0x469   : > { %v10932_v4 = vpop.f32.mrf.mxu1  ;;  %14108 = vmatprep.subr.bf16.mxu1 %v19252_v2  ;;  %v19259_v2 = vld [vmem:[#allocation5 + $0x2060] ss:$16 sps:$4 sm:$0xff]  }
 0x46a   : > { %v22268_v14 = vadd.f32 %v10931_v55, %v21916_v19  ;;  %v10933_v8 = vadd.f32 %v10932_v4, %v10819_v18  ;;  %v10823_v42 = vpop.f32.mrf.mxu0  ;;  %12654 = vmatmul.mubr.bf16.gmra.mxu0 %v22059_v47  ;;  %v19261_v19 = vld [vmem:[#allocation5 + $0x2064] ss:$16 sps:$4 sm:$0xff]   ;;  %v19265_v4 = vld [vmem:[#allocation5 + $0x2040] ss:$16 sps:$4 sm:$0xff]  }
 0x46b   : > { %v10936_v41 = vpop.f32.mrf.mxu1  ;;  %12767 = vmatmul.mubr.bf16.gmra.mxu1 %v22062_v13  ;;  %13996 = vmatpush1.bf16.msra.mxu0 %v19247_v43  ;;  %v19270_v55 = vld [vmem:[#allocation5 + $0x2244] ss:$16 sps:$4 sm:$0xff]  }
 0x46c   : > { %v22273_v7 = vadd.f32 %v10933_v8, %v21921_v57  ;;  %v10937_v24 = vadd.f32 %v10936_v41, %v10823_v42  ;;  %14109 = vmatpush1.bf16.msra.mxu1 %v19250_v28  ;;  %v10825_v6 = vpop.f32.mrf.mxu0  ;;  %13997 = vmatprep.subr.bf16.mxu0 %v19255_v44  ;;  %v19268_v44 = vld [vmem:[#allocation5 + $0x2240] ss:$16 sps:$4 sm:$0xff]   ;;  %v19276_v42 = vld [vmem:[#allocation5 + $0x2224] ss:$16 sps:$4 sm:$0xff]  }
 0x46d   : > { %v10938_v62 = vpop.f32.mrf.mxu1  ;;  %14110 = vmatprep.subr.bf16.mxu1 %v19258_v23  ;;  %12663 = vmatprep.mubr.bf16.mxu0 %v22071_v59 }
 0x46e   : > { %v22276_v52 = vadd.f32 %v10937_v24, %v21924_v51  ;;  %v10939_v47 = vadd.f32 %v10938_v62, %v10825_v6  ;;  %12776 = vmatprep.mubr.bf16.mxu1 %v22074_v50  ;;  %v10827_v57 = vpop.f32.mrf.mxu0  ;;  %v19267_v51 = vld [vmem:[#allocation5 + $0x2044] ss:$16 sps:$4 sm:$0xff]   ;;  %v19274_v6 = vld [vmem:[#allocation5 + $0x2220] ss:$16 sps:$4 sm:$0xff]  }
 0x46f   : > { %v10940_v13 = vpop.f32.mrf.mxu1  ;;  %13998 = vmatpush1.bf16.msra.mxu0 %v19253_v5 }
 0x470   : > { %v22281_v46 = vadd.f32 %v10939_v47, %v21929_v48  ;;  %v10941_v40 = vadd.f32 %v10940_v13, %v10827_v57  ;;  %14111 = vmatpush1.bf16.msra.mxu1 %v19256_v39  ;;  %v10829_v60 = vpop.f32.mrf.mxu0  ;;  %13999 = vmatprep.subr.bf16.mxu0 %v19261_v19  ;;  %v19271_v39 = vld [vmem:[#allocation5 + $0x2020] ss:$16 sps:$4 sm:$0xff]  }
 0x471   : > { %v10942_v22 = vpop.f32.mrf.mxu1  ;;  %14112 = vmatprep.subr.bf16.mxu1 %v19264_v33  ;;  %v19282_v33 = vld [vmem:[#allocation5 + $0x2204] ss:$16 sps:$4 sm:$0xff]  }
 0x472   : > { %v22284_v59 = vadd.f32 %v10941_v40, %v21932_v29  ;;  %v10943_v50 = vadd.f32 %v10942_v22, %v10829_v60  ;;  %v10833_v43 = vpop.f32.mrf.mxu0  ;;  %12664 = vmatmul.mubr.bf16.gmra.mxu0 %v22087_v34  ;;  %v19273_v29 = vld [vmem:[#allocation5 + $0x2024] ss:$16 sps:$4 sm:$0xff]   ;;  %v19277_v40 = vld [vmem:[#allocation5 + $0x2000] ss:$16 sps:$4 sm:$0xff]  }
 0x473   : > { %v10946_v28 = vpop.f32.mrf.mxu1  ;;  %12777 = vmatmul.mubr.bf16.gmra.mxu1 %v22090_v1  ;;  %14000 = vmatpush1.bf16.msra.mxu0 %v19259_v2  ;;  %v19280_v2 = vld [vmem:[#allocation5 + $0x2200] ss:$16 sps:$4 sm:$0xff]   ;;  %v19288_v22 = vld [vmem:[#allocation5 + $0x23e4] ss:$16 sps:$4 sm:$0xff]  }
 0x474   : > { %v22289_v48 = vadd.f32 %v10943_v50, %v21937_v49  ;;  %v10947_v18 = vadd.f32 %v10946_v28, %v10833_v43  ;;  %14113 = vmatpush1.bf16.msra.mxu1 %v19262_v30  ;;  %v10835_v23 = vpop.f32.mrf.mxu0  ;;  %14001 = vmatprep.subr.bf16.mxu0 %v19267_v51  ;;  %v19283_v43 = vld [vmem:[#allocation5 + $0x21e0] ss:$16 sps:$4 sm:$0xff]  }
 0x475   : > { %v10948_v8 = vpop.f32.mrf.mxu1  ;;  %14114 = vmatprep.subr.bf16.mxu1 %v19270_v55  ;;  %12673 = vmatprep.mubr.bf16.mxu0 %v22099_v17  ;;  %v19286_v28 = vld [vmem:[#allocation5 + $0x23e0] ss:$16 sps:$4 sm:$0xff]  }
 0x476   : > { %v22292_v41 = vadd.f32 %v10947_v18, %v21940_v16  ;;  %v10949_v34 = vadd.f32 %v10948_v8, %v10835_v23  ;;  %12786 = vmatprep.mubr.bf16.mxu1 %v22102_v0  ;;  %v10837_v49 = vpop.f32.mrf.mxu0  ;;  %v19279_v16 = vld [vmem:[#allocation5 + $0x2004] ss:$16 sps:$4 sm:$0xff]  }
 0x477   : > { %v10950_v1 = vpop.f32.mrf.mxu1  ;;  %14002 = vmatpush1.bf16.msra.mxu0 %v19265_v4 }
 0x478   : > { %v22297_v24 = vadd.f32 %v10949_v34, %v21945_v9  ;;  %v10951_v5 = vadd.f32 %v10950_v1, %v10837_v49  ;;  %14115 = vmatpush1.bf16.msra.mxu1 %v19268_v44  ;;  %v10839_v62 = vpop.f32.mrf.mxu0  ;;  %14003 = vmatprep.subr.bf16.mxu0 %v19273_v29  ;;  %v19294_v44 = vld [vmem:[#allocation5 + $0x23c4] ss:$16 sps:$4 sm:$0xff]   ;;  %v19289_v49 = vld [vmem:[#allocation5 + $0x21c0] ss:$16 sps:$4 sm:$0xff]  }
 0x479   : > { %v10952_v19 = vpop.f32.mrf.mxu1  ;;  %14116 = vmatprep.subr.bf16.mxu1 %v19276_v42  ;;  %v23730_v29 = vld [vmem:[#allocation42_spill] sm:$0xff] }
 0x47a   : > { %v22300_v17 = vadd.f32 %v10951_v5, %v21948_v53  ;;  %v10953_v0 = vadd.f32 %v10952_v19, %v10839_v62  ;;  %v10843_v47 = vpop.f32.mrf.mxu0  ;;  %12674 = vmatmul.mubr.bf16.gmra.mxu0 %v22115_v61  ;;  %v19285_v53 = vld [vmem:[#allocation5 + $0x21e4] ss:$16 sps:$4 sm:$0xff]   ;;  %v19292_v1 = vld [vmem:[#allocation5 + $0x23c0] ss:$16 sps:$4 sm:$0xff]  }
 0x47b   : > { %v10956_v57 = vpop.f32.mrf.mxu1  ;;  %12787 = vmatmul.mubr.bf16.gmra.mxu1 %v22118_v25  ;;  %14004 = vmatpush1.bf16.msra.mxu0 %v19271_v39  ;;  %v23732_v62 = vld [vmem:[#allocation52_spill] sm:$0xff] }
 0x47c   : > { %v22305_v9 = vadd.f32 %v10953_v0, %v21953_v37  ;;  %v10957_v13 = vadd.f32 %v10956_v57, %v10843_v47  ;;  %14117 = vmatpush1.bf16.msra.mxu1 %v19274_v6  ;;  %v10845_v30 = vpop.f32.mrf.mxu0  ;;  %14005 = vmatprep.subr.bf16.mxu0 %v19279_v16  ;;  %v19300_v6 = vld [vmem:[#allocation5 + $0x23a4] ss:$16 sps:$4 sm:$0xff]  }
 0x47d   : > { %v10958_v60 = vpop.f32.mrf.mxu1  ;;  %14118 = vmatprep.subr.bf16.mxu1 %v19282_v33  ;;  %12683 = vmatprep.mubr.bf16.mxu0 %v22127_v11  ;;  %v23734_v16 = vld [vmem:[#allocation13_spill] sm:$0xff]  ;;  %v23735_v33 = vld [vmem:[#allocation38_spill] sm:$0xff]  ;;  %v23736_v57 = vld [vmem:[#allocation23_spill] sm:$0xff] }
 0x47e   : > { %v22308_v51 = vadd.f32 %v10957_v13, %v21956_v54  ;;  %v10959_v61 = vadd.f32 %v10958_v60, %v10845_v30  ;;  %12796 = vmatprep.mubr.bf16.mxu1 %v22130_v3  ;;  %v10847_v37 = vpop.f32.mrf.mxu0  ;;  %v19291_v54 = vld [vmem:[#allocation5 + $0x21c4] ss:$16 sps:$4 sm:$0xff]   ;;  %v19298_v30 = vld [vmem:[#allocation5 + $0x23a0] ss:$16 sps:$4 sm:$0xff]  }
 0x47f   : > { %v10960_v25 = vpop.f32.mrf.mxu1  ;;  %14006 = vmatpush1.bf16.msra.mxu0 %v19277_v40 }
 0x480   : > { %v22313_v55 = vadd.f32 %v10959_v61, %v21961_v21  ;;  %v10961_v50 = vadd.f32 %v10960_v25, %v10847_v37  ;;  %14119 = vmatpush1.bf16.msra.mxu1 %v19280_v2  ;;  %v10849_v18 = vpop.f32.mrf.mxu0  ;;  %14007 = vmatprep.subr.bf16.mxu0 %v19285_v53  ;;  %v23729_v21 = vld [vmem:[#allocation63_spill] sm:$0xff]  ;;  %v19295_v2 = vld [vmem:[#allocation5 + $0x21a0] ss:$16 sps:$4 sm:$0xff]  }
 0x481   : > { %v10962_v4 = vpop.f32.mrf.mxu1  ;;  %14120 = vmatprep.subr.bf16.mxu1 %v19288_v22  ;;  %v19303_v22 = vld [vmem:[#allocation5 + $0x2184] ss:$16 sps:$4 sm:$0xff]  }
 0x482   : > { %v22316_v11 = vadd.f32 %v10961_v50, %v21964_v10  ;;  %v10963_v3 = vadd.f32 %v10962_v4, %v10849_v18  ;;  %v10853_v23 = vpop.f32.mrf.mxu0  ;;  %12684 = vmatmul.mubr.bf16.gmra.mxu0 %v22143_v32  ;;  %v19297_v10 = vld [vmem:[#allocation5 + $0x21a4] ss:$16 sps:$4 sm:$0xff]  }
 0x483   : > { %v10966_v8 = vpop.f32.mrf.mxu1  ;;  %12797 = vmatmul.mubr.bf16.gmra.mxu1 %v23729_v21  ;;  %14008 = vmatpush2.bf16.msra.mxu0 %v19283_v43  ;;  %v19306_v61 = vld [vmem:[#allocation5 + $0x2384] ss:$16 sps:$4 sm:$0xff]  }
 0x484   : > { %v22321_v42 = vadd.f32 %v10963_v3, %v23730_v29  ;;  %v10967_v34 = vadd.f32 %v10966_v8, %v10853_v23  ;;  %14121 = vmatpush2.bf16.msra.mxu1 %v19286_v28  ;;  %v10855_v5 = vpop.f32.mrf.mxu0  ;;  %14009 = vmatprep.subr.bf16.mxu0 %v19291_v54  ;;  %v23738_v37 = vld [vmem:[#allocation15_spill] sm:$0xff]  ;;  %v23740_v18 = vld [vmem:[#allocation44_spill] sm:$0xff]  ;;  %v23741_v4 = vld [vmem:[#allocation54_spill] sm:$0xff] }
 0x485   : > { %v10968_v39 = vpop.f32.mrf.mxu1  ;;  %14122 = vmatprep.subr.bf16.mxu1 %v19294_v44  ;;  %12693 = vmatprep.mubr.bf16.mxu0 %v23734_v16  ;;  %v23742_v54 = vld [vmem:[#allocation50_spill] sm:$0xff]  ;;  %v23748_v16 = vld [vmem:[#allocation19_spill] sm:$0xff] }
 0x486   : > { %23731 = vst [vmem:[#allocation59_spill] sm:$0xff] %v22321_v42  ;;  %v22324_v19 = vadd.f32 %v10967_v34, %v23732_v62  ;;  %v10969_v32 = vadd.f32 %v10968_v39, %v10855_v5  ;;  %12806 = vmatprep.mubr.bf16.mxu1 %v23735_v33  ;;  %v10857_v0 = vpop.f32.mrf.mxu0  ;;  %v19301_v23 = vld [vmem:[#allocation5 + $0x2180] ss:$16 sps:$4 sm:$0xff]   ;;  %v19309_v34 = vld [vmem:[#allocation5 + $0x2164] ss:$16 sps:$4 sm:$0xff]  }
 0x487   : > { %v10970_v47 = vpop.f32.mrf.mxu1  ;;  %14010 = vmatpush2.bf16.msra.mxu0 %v19289_v49  ;;  %v19304_v8 = vld [vmem:[#allocation5 + $0x2380] ss:$16 sps:$4 sm:$0xff]   ;;  %v19312_v49 = vld [vmem:[#allocation5 + $0x2364] ss:$16 sps:$4 sm:$0xff]  }
 0x488   : > { %23733 = vst [vmem:[#allocation63_spill] sm:$0xff] %v22324_v19  ;;  %v22329_v13 = vadd.f32 %v10969_v32, %v23736_v57  ;;  %v10971_v40 = vadd.f32 %v10970_v47, %v10857_v0  ;;  %14123 = vmatpush2.bf16.msra.mxu1 %v19292_v1  ;;  %v10859_v60 = vpop.f32.mrf.mxu0  ;;  %14011 = vmatprep.subr.bf16.mxu0 %v19297_v10  ;;  %v23744_v1 = vld [vmem:[#allocation60_spill] sm:$0xff]  ;;  %v23746_v10 = vld [vmem:[#allocation14_spill] sm:$0xff] }
 0x489   : > { %v10972_v53 = vpop.f32.mrf.mxu1  ;;  %14124 = vmatprep.subr.bf16.mxu1 %v19300_v6  ;;  %v23747_v6 = vld [vmem:[#allocation48_spill] sm:$0xff] }
 0x48a   : > { %23737 = vst [vmem:[#allocation42_spill] sm:$0xff] %v22329_v13  ;;  %v22332_v25 = vadd.f32 %v10971_v40, %v23738_v37  ;;  %v10973_v50 = vadd.f32 %v10972_v53, %v10859_v60  ;;  %v10863_v43 = vpop.f32.mrf.mxu0  ;;  %12694 = vmatmul.mubr.bf16.gmra.mxu0 %v23740_v18  ;;  %v19307_v47 = vld [vmem:[#allocation5 + $0x2160] ss:$16 sps:$4 sm:$0xff]   ;;  %v19318_v60 = vld [vmem:[#allocation5 + $0x2344] ss:$16 sps:$4 sm:$0xff]  }
 0x48b   : > { %v10976_v28 = vpop.f32.mrf.mxu1  ;;  %12807 = vmatmul.mubr.bf16.gmra.mxu1 %v23741_v4  ;;  %14012 = vmatpush2.bf16.msra.mxu0 %v19295_v2  ;;  %v19310_v57 = vld [vmem:[#allocation5 + $0x2360] ss:$16 sps:$4 sm:$0xff]   ;;  %v23750_v53 = vld [vmem:[#allocation55_spill] sm:$0xff] }
 0x48c   : > { %23739 = vst [vmem:[#allocation52_spill] sm:$0xff] %v22332_v25  ;;  %v22337_v44 = vadd.f32 %v10973_v50, %v23742_v54  ;;  %v10977_v3 = vadd.f32 %v10976_v28, %v10863_v43  ;;  %14125 = vmatpush2.bf16.msra.mxu1 %v19298_v30  ;;  %v10865_v21 = vpop.f32.mrf.mxu0  ;;  %14013 = vmatprep.subr.bf16.mxu0 %v19303_v22  ;;  %v19315_v30 = vld [vmem:[#allocation5 + $0x2144] ss:$16 sps:$4 sm:$0xff]   ;;  %v19313_v4 = vld [vmem:[#allocation5 + $0x2140] ss:$16 sps:$4 sm:$0xff]  }
 0x48d   : > { %v10978_v29 = vpop.f32.mrf.mxu1  ;;  %14126 = vmatprep.subr.bf16.mxu1 %v19306_v61  ;;  %12703 = vmatprep.mubr.bf16.mxu0 %v23746_v10  ;;  %v23752_v43 = vld [vmem:[#allocation16_spill] sm:$0xff]  ;;  %v23758_v10 = vld [vmem:[#allocation61_spill] sm:$0xff] }
 0x48e   : > { %23743 = vst [vmem:[#allocation13_spill] sm:$0xff] %v22337_v44  ;;  %v22340_v5 = vadd.f32 %v10977_v3, %v23744_v1  ;;  %v10979_v39 = vadd.f32 %v10978_v29, %v10865_v21  ;;  %12816 = vmatprep.mubr.bf16.mxu1 %v23747_v6  ;;  %v10867_v62 = vpop.f32.mrf.mxu0  ;;  %v19316_v54 = vld [vmem:[#allocation5 + $0x2340] ss:$16 sps:$4 sm:$0xff]   ;;  %v19324_v21 = vld [vmem:[#allocation5 + $0x2324] ss:$16 sps:$4 sm:$0xff]  }
 0x48f   : > { %v10980_v32 = vpop.f32.mrf.mxu1  ;;  %14014 = vmatpush2.bf16.msra.mxu0 %v19301_v23  ;;  %v23754_v29 = vld [vmem:[#allocation56_spill] sm:$0xff] }
 0x490   : > { %23745 = vst [vmem:[#allocation38_spill] sm:$0xff] %v22340_v5  ;;  %v22345_v33 = vadd.f32 %v10979_v39, %v23748_v16  ;;  %v10981_v0 = vadd.f32 %v10980_v32, %v10867_v62  ;;  %14127 = vmatpush2.bf16.msra.mxu1 %v19304_v8  ;;  %v10869_v40 = vpop.f32.mrf.mxu0  ;;  %14015 = vmatprep.subr.bf16.mxu0 %v19309_v34  ;;  %v19321_v8 = vld [vmem:[#allocation5 + $0x2124] ss:$16 sps:$4 sm:$0xff]   ;;  %v19319_v32 = vld [vmem:[#allocation5 + $0x2120] ss:$16 sps:$4 sm:$0xff]  }
 0x491   : > { %v10982_v2 = vpop.f32.mrf.mxu1  ;;  %14128 = vmatprep.subr.bf16.mxu1 %v19312_v49  ;;  %v23756_v49 = vld [vmem:[#allocation24_spill] sm:$0xff] }
 0x492   : > { %23749 = vst [vmem:[#allocation23_spill] sm:$0xff] %v22345_v33  ;;  %v22348_v22 = vadd.f32 %v10981_v0, %v23750_v53  ;;  %v10983_v61 = vadd.f32 %v10982_v2, %v10869_v40  ;;  %v10873_v37 = vpop.f32.mrf.mxu0  ;;  %12704 = vmatmul.mubr.bf16.gmra.mxu0 %v22199_v38  ;;  %v19322_v16 = vld [vmem:[#allocation5 + $0x2320] ss:$16 sps:$4 sm:$0xff]   ;;  %v19330_v40 = vld [vmem:[#allocation5 + $0x2304] ss:$16 sps:$4 sm:$0xff]  }
 0x493   : > { %v10986_v50 = vpop.f32.mrf.mxu1  ;;  %12817 = vmatmul.mubr.bf16.gmra.mxu1 %v22202_v63  ;;  %14016 = vmatpush2.bf16.msra.mxu0 %v19307_v47  ;;  %v23757_v63 = vld [vmem:[#allocation33_spill] sm:$0xff]  ;;  %v23760_v2 = vld [vmem:[#allocation18_spill] sm:$0xff] }
 0x494   : > { %23751 = vst [vmem:[#allocation15_spill] sm:$0xff] %v22348_v22  ;;  %v22353_v28 = vadd.f32 %v10983_v61, %v23752_v43  ;;  %v10987_v18 = vadd.f32 %v10986_v50, %v10873_v37  ;;  %14129 = vmatpush2.bf16.msra.mxu1 %v19310_v57  ;;  %v10875_v3 = vpop.f32.mrf.mxu0  ;;  %14017 = vmatprep.subr.bf16.mxu0 %v19315_v30  ;;  %v19327_v57 = vld [vmem:[#allocation5 + $0x2104] ss:$16 sps:$4 sm:$0xff]   ;;  %v22370_v61 = vld [vmem:[%s19821_s30 + $0x16c] ss:$16 sps:$4 sm:$0xff]  }
 0x495   : > { %v10988_v23 = vpop.f32.mrf.mxu1  ;;  %14130 = vmatprep.subr.bf16.mxu1 %v19318_v60  ;;  %12713 = vmatprep.mubr.bf16.mxu0 %v23756_v49  ;;  %v22367_v53 = vld [vmem:[%s19821_s30 + $0x164] ss:$16 sps:$4 sm:$0xff]   ;;  %v22482_v33 = vld [vmem:[%s19821_s30 + $0x34c] ss:$16 sps:$4 sm:$0xff]  }
 0x496   : > { %23753 = vst [vmem:[#allocation44_spill] sm:$0xff] %v22353_v28  ;;  %v22356_v34 = vadd.f32 %v10987_v18, %v23754_v29  ;;  %v10989_v38 = vadd.f32 %v10988_v23, %v10875_v3  ;;  %12826 = vmatprep.mubr.bf16.mxu1 %v23757_v63  ;;  %v10877_v1 = vpop.f32.mrf.mxu0  ;;  %v23762_v43 = vld [vmem:[#allocation57_spill] sm:$0xff]  ;;  %v19328_v3 = vld [vmem:[#allocation5 + $0x2300] ss:$16 sps:$4 sm:$0xff]  }
 0x497   : > { %v10990_v39 = vpop.f32.mrf.mxu1  ;;  %14018 = vmatpush2.bf16.msra.mxu0 %v19313_v4  ;;  %v19342_v29 = vld [vmem:[#allocation5 + $0x22ec] ss:$16 sps:$4 sm:$0xff]   ;;  %v22423_v44 = vld [vmem:[%s19821_s30 + $0x1a4] ss:$16 sps:$4 sm:$0xff]  }
 0x498   : > { %23755 = vst [vmem:[#allocation54_spill] sm:$0xff] %v22356_v34  ;;  %v22361_v6 = vadd.f32 %v10989_v38, %v23758_v10  ;;  %v10991_v62 = vadd.f32 %v10990_v39, %v10877_v1  ;;  %14131 = vmatpush2.bf16.msra.mxu1 %v19316_v54  ;;  %v10879_v0 = vpop.f32.mrf.mxu0  ;;  %14019 = vmatprep.subr.bf16.mxu0 %v19321_v8  ;;  %v19325_v54 = vld [vmem:[#allocation5 + $0x2100] ss:$16 sps:$4 sm:$0xff]   ;;  %v22386_v39 = vld [vmem:[%s19821_s30 + $0x168] ss:$16 sps:$4 sm:$0xff]  }
 0x499   : > { %v10992_v47 = vpop.f32.mrf.mxu1  ;;  %14132 = vmatprep.subr.bf16.mxu1 %v19324_v21  ;;  %v19339_v21 = vld [vmem:[#allocation5 + $0x20ec] ss:$16 sps:$4 sm:$0xff]   ;;  %v22383_v1 = vld [vmem:[%s19821_s30 + $0x160] ss:$16 sps:$4 sm:$0xff]   ;;  %v22479_v22 = vld [vmem:[%s19821_s30 + $0x344] ss:$16 sps:$4 sm:$0xff]  }
 0x49a   : > { %23759 = vst [vmem:[#allocation50_spill] sm:$0xff] %v22361_v6  ;;  %v22364_v30 = vadd.f32 %v10991_v62, %v23760_v2  ;;  %v10993_v60 = vadd.f32 %v10992_v47, %v10879_v0  ;;  %v10883_v37 = vpop.f32.mrf.mxu0  ;;  %12714 = vmatmul.mubr.bf16.gmra.mxu0 %v22227_v31  ;;  %v23764_v38 = vld [vmem:[#allocation26_spill] sm:$0xff]  ;;  %v23766_v10 = vld [vmem:[#allocation21_spill] sm:$0xff] }
 0x49b   : > { %v10996_v50 = vpop.f32.mrf.mxu1  ;;  %12827 = vmatmul.mubr.bf16.gmra.mxu1 %v22230_v20  ;;  %14020 = vmatpush2.bf16.msra.mxu0 %v19319_v32  ;;  %v19340_v0 = vld [vmem:[#allocation5 + $0x22e8] ss:$16 sps:$4 sm:$0xff]   ;;  %v19348_v2 = vld [vmem:[#allocation5 + $0x22cc] ss:$16 sps:$4 sm:$0xff]   ;;  %v22507_v13 = vld [vmem:[%s19821_s30 + $0x364] ss:$16 sps:$4 sm:$0xff]  }
 0x49c   : > { %23761 = vst [vmem:[#allocation60_spill] sm:$0xff] %v22364_v30  ;;  %v22375_v18 = vadd.f32 %v10993_v60, %v23762_v43  ;;  %v10997_v4 = vadd.f32 %v10996_v50, %v10883_v37  ;;  %14133 = vmatpush2.bf16.msra.mxu1 %v19322_v16  ;;  %v10885_v23 = vpop.f32.mrf.mxu0  ;;  %14021 = vmatprep.subr.bf16.mxu0 %v19327_v57  ;;  %v19337_v16 = vld [vmem:[#allocation5 + $0x20e8] ss:$16 sps:$4 sm:$0xff]   ;;  %v22395_v43 = vld [vmem:[%s19821_s30 + $0x184] ss:$16 sps:$4 sm:$0xff]  }
 0x49d   : > { %v10998_v8 = vpop.f32.mrf.mxu1  ;;  %14134 = vmatprep.subr.bf16.mxu1 %v19330_v40  ;;  %14023 = vmatprep.mubr.bf16.mxu0 %v22367_v53  ;;  %v19345_v40 = vld [vmem:[#allocation5 + $0x20cc] ss:$16 sps:$4 sm:$0xff]   ;;  %v22535_v42 = vld [vmem:[%s19821_s30 + $0x384] ss:$16 sps:$4 sm:$0xff]  }
 0x49e   : > { %23763 = vst [vmem:[#allocation14_spill] sm:$0xff] %v22375_v18  ;;  %v22378_v31 = vadd.f32 %v10997_v4, %v23764_v38  ;;  %v10999_v20 = vadd.f32 %v10998_v8, %v10885_v23  ;;  %14136 = vmatprep.mubr.bf16.mxu1 %v22370_v61  ;;  %v10887_v49 = vpop.f32.mrf.mxu0  ;;  %v23768_v60 = vld [vmem:[#allocation25_spill] sm:$0xff] }
 0x49f   : > { %v11000_v63 = vpop.f32.mrf.mxu1  ;;  %14022 = vmatpush2.bf16.msra.mxu0 %v19325_v54  ;;  %v22398_v4 = vld [vmem:[%s19821_s30 + $0x18c] ss:$16 sps:$4 sm:$0xff]   ;;  %v19346_v38 = vld [vmem:[#allocation5 + $0x22c8] ss:$16 sps:$4 sm:$0xff]  }
 0x4a0   : > { %23765 = vst [vmem:[#allocation48_spill] sm:$0xff] %v22378_v31  ;;  %v22389_v62 = vadd.f32 %v10999_v20, %v23766_v10  ;;  %v11001_v32 = vadd.f32 %v11000_v63, %v10887_v49  ;;  %14135 = vmatpush2.bf16.msra.mxu1 %v19328_v3  ;;  %v10889_v47 = vpop.f32.mrf.mxu0  ;;  %14217 = vmatprep.subr.bf16.mxu0 %v19339_v21  ;;  %v23770_v54 = vld [vmem:[#allocation32_spill] sm:$0xff] }
 0x4a1   : > { %v11002_v57 = vpop.f32.mrf.mxu1  ;;  %14330 = vmatprep.subr.bf16.mxu1 %v19342_v29  ;;  %v19343_v29 = vld [vmem:[#allocation5 + $0x20c8] ss:$16 sps:$4 sm:$0xff]   ;;  %v19357_v63 = vld [vmem:[#allocation5 + $0x20ac] ss:$16 sps:$4 sm:$0xff]   ;;  %v22451_v31 = vld [vmem:[%s19821_s30 + $0x1c4] ss:$16 sps:$4 sm:$0xff]  }
 0x4a2   : > { %23767 = vst [vmem:[#allocation19_spill] sm:$0xff] %v22389_v62  ;;  %v22392_v37 = vadd.f32 %v11001_v32, %v23768_v60  ;;  %v11003_v50 = vadd.f32 %v11002_v57, %v10889_v47  ;;  %v11039_v23 = vpop.f32.mrf.mxu0  ;;  %14024 = vmatmul.mubr.bf16.vlgmr.msra.gmra.mxu0 %v22383_v1  ;;  %v19360_v10 = vld [vmem:[#allocation5 + $0x22ac] ss:$16 sps:$4 sm:$0xff]  }
 0x4a3   : > { %v11152_v8 = vpop.f32.mrf.mxu1  ;;  %14137 = vmatmul.mubr.bf16.vlgmr.msra.gmra.mxu1 %v22386_v39  ;;  %14218 = vmatpush1.bf16.msra.mxu0 %v19337_v16  ;;  %v23772_v32 = vld [vmem:[#allocation22_spill] sm:$0xff] }
 0x4a4   : > { %23769 = vst [vmem:[#allocation55_spill] sm:$0xff] %v22392_v37  ;;  %v22403_v3 = vadd.f32 %v11003_v50, %v23770_v54  ;;  %v11153_v21 = vadd.f32 %v11152_v8, %v11039_v23  ;;  %14331 = vmatpush1.bf16.msra.mxu1 %v19340_v0  ;;  %v11041_v20 = vpop.f32.mrf.mxu0  ;;  %14219 = vmatprep.subr.bf16.mxu0 %v19345_v40  ;;  %v22411_v0 = vld [vmem:[%s19821_s30 + $0x180] ss:$16 sps:$4 sm:$0xff]   ;;  %v22414_v50 = vld [vmem:[%s19821_s30 + $0x188] ss:$16 sps:$4 sm:$0xff]  }
 0x4a5   : > { %v11154_v49 = vpop.f32.mrf.mxu1  ;;  %14332 = vmatprep.subr.bf16.mxu1 %v19348_v2  ;;  %14033 = vmatprep.mubr.bf16.mxu0 %v22395_v43  ;;  %v23774_v23 = vld [vmem:[#allocation27_spill] sm:$0xff] }
 0x4a6   : > { %23771 = vst [vmem:[#allocation16_spill] sm:$0xff] %v22403_v3  ;;  %v22406_v47 = vadd.f32 %v11153_v21, %v23772_v32  ;;  %v11155_v57 = vadd.f32 %v11154_v49, %v11041_v20  ;;  %14146 = vmatprep.mubr.bf16.mxu1 %v22398_v4  ;;  %v11043_v16 = vpop.f32.mrf.mxu0  ;;  %v19355_v8 = vld [vmem:[#allocation5 + $0x20a8] ss:$16 sps:$4 sm:$0xff]   ;;  %v19363_v49 = vld [vmem:[#allocation5 + $0x208c] ss:$16 sps:$4 sm:$0xff]  }
 0x4a7   : > { %v11156_v60 = vpop.f32.mrf.mxu1  ;;  %14220 = vmatpush1.bf16.msra.mxu0 %v19343_v29  ;;  %v19358_v54 = vld [vmem:[#allocation5 + $0x22a8] ss:$16 sps:$4 sm:$0xff]   ;;  %v19366_v32 = vld [vmem:[#allocation5 + $0x228c] ss:$16 sps:$4 sm:$0xff]  }
 0x4a8   : > { %23773 = vst [vmem:[#allocation56_spill] sm:$0xff] %v22406_v47  ;;  %v22417_v40 = vadd.f32 %v11155_v57, %v23774_v23  ;;  %v11157_v2 = vadd.f32 %v11156_v60, %v11043_v16  ;;  %14333 = vmatpush1.bf16.msra.mxu1 %v19346_v38  ;;  %v11045_v21 = vpop.f32.mrf.mxu0  ;;  %14221 = vmatprep.subr.bf16.mxu0 %v19357_v63  ;;  %v23776_v3 = vld [vmem:[#allocation51_spill] sm:$0xff]  ;;  %v23778_v29 = vld [vmem:[#allocation62_spill] sm:$0xff] }
 0x4a9   : > { %v11158_v20 = vpop.f32.mrf.mxu1  ;;  %14334 = vmatprep.subr.bf16.mxu1 %v19360_v10  ;;  %v22426_v47 = vld [vmem:[%s19821_s30 + $0x1ac] ss:$16 sps:$4 sm:$0xff]   ;;  %v19364_v10 = vld [vmem:[#allocation5 + $0x2288] ss:$16 sps:$4 sm:$0xff]  }
 0x4aa   : > { %23775 = vst [vmem:[#allocation24_spill] sm:$0xff] %v22417_v40  ;;  %v22420_v18 = vadd.f32 %v11157_v2, %v23776_v3  ;;  %v11159_v28 = vadd.f32 %v11158_v20, %v11045_v21  ;;  %v11049_v57 = vpop.f32.mrf.mxu0  ;;  %14034 = vmatmul.mubr.bf16.gmra.mxu0 %v22411_v0  ;;  %v19361_v3 = vld [vmem:[#allocation5 + $0x2088] ss:$16 sps:$4 sm:$0xff]   ;;  %v19375_v2 = vld [vmem:[#allocation5 + $0x206c] ss:$16 sps:$4 sm:$0xff]  }
 0x4ab   : > { %v11162_v16 = vpop.f32.mrf.mxu1  ;;  %14147 = vmatmul.mubr.bf16.gmra.mxu1 %v22414_v50  ;;  %14222 = vmatpush1.bf16.msra.mxu0 %v19355_v8  ;;  %v19378_v21 = vld [vmem:[#allocation5 + $0x226c] ss:$16 sps:$4 sm:$0xff]  }
 0x4ac   : > { %23777 = vst [vmem:[#allocation33_spill] sm:$0xff] %v22420_v18  ;;  %v22431_v38 = vadd.f32 %v11159_v28, %v23778_v29  ;;  %v11163_v63 = vadd.f32 %v11162_v16, %v11049_v57  ;;  %14335 = vmatpush1.bf16.msra.mxu1 %v19358_v54  ;;  %v11051_v60 = vpop.f32.mrf.mxu0  ;;  %14223 = vmatprep.subr.bf16.mxu0 %v19363_v49  ;;  %v23780_v20 = vld [vmem:[#allocation28_spill] sm:$0xff]  ;;  %v22442_v57 = vld [vmem:[%s19821_s30 + $0x1a8] ss:$16 sps:$4 sm:$0xff]  }
 0x4ad   : > { %v11164_v23 = vpop.f32.mrf.mxu1  ;;  %14336 = vmatprep.subr.bf16.mxu1 %v19366_v32  ;;  %14043 = vmatprep.mubr.bf16.mxu0 %v22423_v44  ;;  %v22439_v54 = vld [vmem:[%s19821_s30 + $0x1a0] ss:$16 sps:$4 sm:$0xff]   ;;  %v23782_v16 = vld [vmem:[#allocation29_spill] sm:$0xff] }
 0x4ae   : > { %23779 = vst [vmem:[#allocation61_spill] sm:$0xff] %v22431_v38  ;;  %v22434_v18 = vadd.f32 %v11163_v63, %v23780_v20  ;;  %v11165_v40 = vadd.f32 %v11164_v23, %v11051_v60  ;;  %14156 = vmatprep.mubr.bf16.mxu1 %v22426_v47  ;;  %v11053_v28 = vpop.f32.mrf.mxu0  ;;  %v19373_v29 = vld [vmem:[#allocation5 + $0x2068] ss:$16 sps:$4 sm:$0xff]   ;;  %v19381_v20 = vld [vmem:[#allocation5 + $0x204c] ss:$16 sps:$4 sm:$0xff]  }
 0x4af   : > { %v11166_v8 = vpop.f32.mrf.mxu1  ;;  %14224 = vmatpush1.bf16.msra.mxu0 %v19361_v3  ;;  %v19376_v63 = vld [vmem:[#allocation5 + $0x2268] ss:$16 sps:$4 sm:$0xff]   ;;  %v19384_v38 = vld [vmem:[#allocation5 + $0x224c] ss:$16 sps:$4 sm:$0xff]  }
 0x4b0   : > { %23781 = vst [vmem:[#allocation18_spill] sm:$0xff] %v22434_v18  ;;  %v22445_v49 = vadd.f32 %v11165_v40, %v23782_v16  ;;  %v11167_v32 = vadd.f32 %v11166_v8, %v11053_v28  ;;  %14337 = vmatpush1.bf16.msra.mxu1 %v19364_v10  ;;  %v11055_v60 = vpop.f32.mrf.mxu0  ;;  %14225 = vmatprep.subr.bf16.mxu0 %v19375_v2  ;;  %v23784_v18 = vld [vmem:[#allocation34_spill] sm:$0xff] }
 0x4b1   : > { %v11168_v23 = vpop.f32.mrf.mxu1  ;;  %14338 = vmatprep.subr.bf16.mxu1 %v19378_v21  ;;  %v22454_v30 = vld [vmem:[%s19821_s30 + $0x1cc] ss:$16 sps:$4 sm:$0xff]   ;;  %v19382_v21 = vld [vmem:[#allocation5 + $0x2248] ss:$16 sps:$4 sm:$0xff]   ;;  %23803 = vst [vmem:[#allocation34_spill] sm:$0xff] %v22507_v13 }
 0x4b2   : > { %23783 = vst [vmem:[#allocation57_spill] sm:$0xff] %v22445_v49  ;;  %v22448_v37 = vadd.f32 %v11167_v32, %v23784_v18  ;;  %v11169_v62 = vadd.f32 %v11168_v23, %v11055_v60  ;;  %v11059_v40 = vpop.f32.mrf.mxu0  ;;  %14044 = vmatmul.mubr.bf16.gmra.mxu0 %v22439_v54  ;;  %v23786_v3 = vld [vmem:[#allocation30_spill] sm:$0xff]  ;;  %v19379_v18 = vld [vmem:[#allocation5 + $0x2048] ss:$16 sps:$4 sm:$0xff]   ;;  %v23788_v23 = vld [vmem:[#allocation40_spill] sm:$0xff] }
 0x4b3   : > { %v11172_v28 = vpop.f32.mrf.mxu1  ;;  %14157 = vmatmul.mubr.bf16.gmra.mxu1 %v22442_v57  ;;  %14226 = vmatpush1.bf16.msra.mxu0 %v19373_v29  ;;  %v19393_v32 = vld [vmem:[#allocation5 + $0x202c] ss:$16 sps:$4 sm:$0xff]  }
 0x4b4   : > { %23785 = vst [vmem:[#allocation26_spill] sm:$0xff] %v22448_v37  ;;  %v22459_v10 = vadd.f32 %v11169_v62, %v23786_v3  ;;  %v11173_v2 = vadd.f32 %v11172_v28, %v11059_v40  ;;  %14339 = vmatpush1.bf16.msra.mxu1 %v19376_v63  ;;  %v11061_v8 = vpop.f32.mrf.mxu0  ;;  %14227 = vmatprep.subr.bf16.mxu0 %v19381_v20  ;;  %v19396_v60 = vld [vmem:[#allocation5 + $0x222c] ss:$16 sps:$4 sm:$0xff]   ;;  %v22467_v63 = vld [vmem:[%s19821_s30 + $0x1c0] ss:$16 sps:$4 sm:$0xff]  }
 0x4b5   : > { %v11174_v16 = vpop.f32.mrf.mxu1  ;;  %14340 = vmatprep.subr.bf16.mxu1 %v19384_v38  ;;  %14053 = vmatprep.mubr.bf16.mxu0 %v22451_v31  ;;  %v22470_v40 = vld [vmem:[%s19821_s30 + $0x1c8] ss:$16 sps:$4 sm:$0xff]   ;;  %v22510_v19 = vld [vmem:[%s19821_s30 + $0x36c] ss:$16 sps:$4 sm:$0xff]  }
 0x4b6   : > { %23787 = vst [vmem:[#allocation21_spill] sm:$0xff] %v22459_v10  ;;  %v22462_v37 = vadd.f32 %v11173_v2, %v23788_v23  ;;  %v11175_v49 = vadd.f32 %v11174_v16, %v11061_v8  ;;  %14166 = vmatprep.mubr.bf16.mxu1 %v22454_v30  ;;  %v11063_v62 = vpop.f32.mrf.mxu0  ;;  %v23790_v28 = vld [vmem:[#allocation41_spill] sm:$0xff]  ;;  %23804 = vst [vmem:[#allocation30_spill] sm:$0xff] %v22510_v19 }
 0x4b7   : > { %v11176_v29 = vpop.f32.mrf.mxu1  ;;  %14228 = vmatpush1.bf16.msra.mxu0 %v19379_v18  ;;  %v19391_v3 = vld [vmem:[#allocation5 + $0x2028] ss:$16 sps:$4 sm:$0xff]   ;;  %v19399_v23 = vld [vmem:[#allocation5 + $0x200c] ss:$16 sps:$4 sm:$0xff]  }
 0x4b8   : > { %23789 = vst [vmem:[#allocation25_spill] sm:$0xff] %v22462_v37  ;;  %v22473_v38 = vadd.f32 %v11175_v49, %v23790_v28  ;;  %v11177_v20 = vadd.f32 %v11176_v29, %v11063_v62  ;;  %14341 = vmatpush1.bf16.msra.mxu1 %v19382_v21  ;;  %v19394_v2 = vld [vmem:[#allocation5 + $0x2228] ss:$16 sps:$4 sm:$0xff]   ;;  %v11065_v8 = vpop.f32.mrf.mxu0  ;;  %14229 = vmatprep.subr.bf16.mxu0 %v19393_v32  ;;  %v19402_v10 = vld [vmem:[#allocation5 + $0x220c] ss:$16 sps:$4 sm:$0xff]  }
 0x4b9   : > { %v11178_v16 = vpop.f32.mrf.mxu1  ;;  %14342 = vmatprep.subr.bf16.mxu1 %v19396_v60  ;;  %v23792_v37 = vld [vmem:[#allocation31_spill] sm:$0xff] }
 0x4ba   : > { %23791 = vst [vmem:[#allocation32_spill] sm:$0xff] %v22473_v38  ;;  %v22476_v6 = vadd.f32 %v11177_v20, %v23792_v37  ;;  %v11179_v34 = vadd.f32 %v11178_v16, %v11065_v8  ;;  %v11069_v49 = vpop.f32.mrf.mxu0  ;;  %14054 = vmatmul.mubr.bf16.gmra.mxu0 %v22467_v63  ;;  %v23794_v18 = vld [vmem:[#allocation35_spill] sm:$0xff]  ;;  %v23796_v16 = vld [vmem:[#allocation64_spill] sm:$0xff] }
 0x4bb   : > { %v11182_v62 = vpop.f32.mrf.mxu1  ;;  %14167 = vmatmul.mubr.bf16.gmra.mxu1 %v22470_v40  ;;  %14230 = vmatpush1.bf16.msra.mxu0 %v19391_v3  ;;  %v19397_v37 = vld [vmem:[#allocation5 + $0x2008] ss:$16 sps:$4 sm:$0xff]   ;;  %v19411_v20 = vld [vmem:[#allocation5 + $0x21ec] ss:$16 sps:$4 sm:$0xff]  }
 0x4bc   : > { %23793 = vst [vmem:[#allocation22_spill] sm:$0xff] %v22476_v6  ;;  %v22487_v21 = vadd.f32 %v11179_v34, %v23794_v18  ;;  %v11183_v32 = vadd.f32 %v11182_v62, %v11069_v49  ;;  %14343 = vmatpush1.bf16.msra.mxu1 %v19394_v2  ;;  %v19400_v60 = vld [vmem:[#allocation5 + $0x2208] ss:$16 sps:$4 sm:$0xff]   ;;  %v11071_v29 = vpop.f32.mrf.mxu0  ;;  %14231 = vmatprep.subr.bf16.mxu0 %v19399_v23  ;;  %v19414_v8 = vld [vmem:[#allocation5 + $0x23ec] ss:$16 sps:$4 sm:$0xff]  }
 0x4bd   : > { %v11184_v28 = vpop.f32.mrf.mxu1  ;;  %14344 = vmatprep.subr.bf16.mxu1 %v19402_v10  ;;  %14063 = vmatprep.mubr.bf16.mxu0 %v22479_v22  ;;  %v22495_v2 = vld [vmem:[%s19821_s30 + $0x340] ss:$16 sps:$4 sm:$0xff]   ;;  %v22498_v49 = vld [vmem:[%s19821_s30 + $0x348] ss:$16 sps:$4 sm:$0xff]  }
 0x4be   : > { %23795 = vst [vmem:[#allocation27_spill] sm:$0xff] %v22487_v21  ;;  %v22490_v6 = vadd.f32 %v11183_v32, %v23796_v16  ;;  %v11185_v38 = vadd.f32 %v11184_v28, %v11071_v29  ;;  %14176 = vmatprep.mubr.bf16.mxu1 %v22482_v33  ;;  %v11073_v34 = vpop.f32.mrf.mxu0  ;;  %23798 = vst [vmem:[#allocation62_spill] sm:$0xff] %v22498_v49  ;;  %v23799_v62 = vld [vmem:[#allocation36_spill] sm:$0xff]  ;;  %v19409_v18 = vld [vmem:[#allocation5 + $0x21e8] ss:$16 sps:$4 sm:$0xff]  }
 0x4bf   : > { %v11186_v3 = vpop.f32.mrf.mxu1  ;;  %14232 = vmatpush1.bf16.msra.mxu0 %v19397_v37  ;;  %v19412_v32 = vld [vmem:[#allocation5 + $0x23e8] ss:$16 sps:$4 sm:$0xff]   ;;  %v19417_v16 = vld [vmem:[#allocation5 + $0x21cc] ss:$16 sps:$4 sm:$0xff]  }
 0x4c0   : > { %23797 = vst [vmem:[#allocation51_spill] sm:$0xff] %v22490_v6  ;;  %v22501_v10 = vadd.f32 %v11185_v38, %v23799_v62  ;;  %v11187_v23 = vadd.f32 %v11186_v3, %v11073_v34  ;;  %14345 = vmatpush1.bf16.msra.mxu1 %v19400_v60  ;;  %v11075_v29 = vpop.f32.mrf.mxu0  ;;  %14233 = vmatprep.subr.bf16.mxu0 %v19411_v20  ;;  %v19420_v21 = vld [vmem:[#allocation5 + $0x23cc] ss:$16 sps:$4 sm:$0xff]  }
 0x4c1   : > { %v11188_v28 = vpop.f32.mrf.mxu1  ;;  %14346 = vmatprep.subr.bf16.mxu1 %v19414_v8  ;;  %v23801_v6 = vld [vmem:[#allocation37_spill] sm:$0xff]  ;;  %v23805_v37 = vld [vmem:[#allocation46_spill] sm:$0xff] }
 0x4c2   : > { %23800 = vst [vmem:[#allocation28_spill] sm:$0xff] %v22501_v10  ;;  %v22504_v5 = vadd.f32 %v11187_v23, %v23801_v6  ;;  %v11189_v25 = vadd.f32 %v11188_v28, %v11075_v29  ;;  %v11079_v38 = vpop.f32.mrf.mxu0  ;;  %14064 = vmatmul.mubr.bf16.gmra.mxu0 %v22495_v2  ;;  %v19415_v6 = vld [vmem:[#allocation5 + $0x21c8] ss:$16 sps:$4 sm:$0xff]   ;;  %v19429_v23 = vld [vmem:[#allocation5 + $0x21ac] ss:$16 sps:$4 sm:$0xff]   ;;  %23815 = vst [vmem:[#allocation37_spill] sm:$0xff] %v22535_v42 }
 0x4c3   : > { %v11192_v34 = vpop.f32.mrf.mxu1  ;;  %14177 = vmatmul.mubr.bf16.gmra.mxu1 %v22498_v49  ;;  %14234 = vmatpush2.bf16.msra.mxu0 %v19409_v18  ;;  %v19418_v8 = vld [vmem:[#allocation5 + $0x23c8] ss:$16 sps:$4 sm:$0xff]   ;;  %v19432_v29 = vld [vmem:[#allocation5 + $0x23ac] ss:$16 sps:$4 sm:$0xff]  }
 0x4c4   : > { %23802 = vst [vmem:[#allocation29_spill] sm:$0xff] %v22504_v5  ;;  %v22515_v60 = vadd.f32 %v11189_v25, %v23805_v37  ;;  %v11193_v20 = vadd.f32 %v11192_v34, %v11079_v38  ;;  %14347 = vmatpush2.bf16.msra.mxu1 %v19412_v32  ;;  %v11081_v3 = vpop.f32.mrf.mxu0  ;;  %14235 = vmatprep.subr.bf16.mxu0 %v19417_v16  ;;  %v23807_v28 = vld [vmem:[#allocation39_spill] sm:$0xff]  ;;  %v22523_v32 = vld [vmem:[%s19821_s30 + $0x360] ss:$16 sps:$4 sm:$0xff]   ;;  %v23811_v34 = vld [vmem:[#allocation45_spill] sm:$0xff] }
 0x4c5   : > { %v11194_v62 = vpop.f32.mrf.mxu1  ;;  %14348 = vmatprep.subr.bf16.mxu1 %v19420_v21  ;;  %14073 = vmatprep.mubr.bf16.mxu0 %v22507_v13  ;;  %23809 = vst [vmem:[#allocation31_spill] sm:$0xff] %v22523_v32  ;;  %v22526_v38 = vld [vmem:[%s19821_s30 + $0x368] ss:$16 sps:$4 sm:$0xff]   ;;  %v22538_v49 = vld [vmem:[%s19821_s30 + $0x38c] ss:$16 sps:$4 sm:$0xff]  }
 0x4c6   : > { %23806 = vst [vmem:[#allocation40_spill] sm:$0xff] %v22515_v60  ;;  %v22518_v5 = vadd.f32 %v11193_v20, %v23807_v28  ;;  %v11195_v10 = vadd.f32 %v11194_v62, %v11081_v3  ;;  %14186 = vmatprep.mubr.bf16.mxu1 %v22510_v19  ;;  %v11083_v25 = vpop.f32.mrf.mxu0  ;;  %23810 = vst [vmem:[#allocation35_spill] sm:$0xff] %v22526_v38  ;;  %v19427_v37 = vld [vmem:[#allocation5 + $0x21a8] ss:$16 sps:$4 sm:$0xff]   ;;  %v19435_v28 = vld [vmem:[#allocation5 + $0x218c] ss:$16 sps:$4 sm:$0xff]  }
 0x4c7   : > { %v11196_v18 = vpop.f32.mrf.mxu1  ;;  %14236 = vmatpush2.bf16.msra.mxu0 %v19415_v6  ;;  %v19430_v20 = vld [vmem:[#allocation5 + $0x23a8] ss:$16 sps:$4 sm:$0xff]   ;;  %v19438_v60 = vld [vmem:[#allocation5 + $0x238c] ss:$16 sps:$4 sm:$0xff]   ;;  %23816 = vst [vmem:[#allocation46_spill] sm:$0xff] %v22538_v49 }
 0x4c8   : > { %23808 = vst [vmem:[#allocation41_spill] sm:$0xff] %v22518_v5  ;;  %v22529_v21 = vadd.f32 %v11195_v10, %v23811_v34  ;;  %v11197_v16 = vadd.f32 %v11196_v18, %v11083_v25  ;;  %14349 = vmatpush2.bf16.msra.mxu1 %v19418_v8  ;;  %v11085_v3 = vpop.f32.mrf.mxu0  ;;  %14237 = vmatprep.subr.bf16.mxu0 %v19429_v23  ;;  %v23813_v5 = vld [vmem:[#allocation43_spill] sm:$0xff]  ;;  %v23817_v6 = vld [vmem:[#allocation49_spill] sm:$0xff] }
 0x4c9   : > { %v11198_v62 = vpop.f32.mrf.mxu1  ;;  %14350 = vmatprep.subr.bf16.mxu1 %v19432_v29  ;;  %v19436_v29 = vld [vmem:[#allocation5 + $0x2388] ss:$16 sps:$4 sm:$0xff]  }
 0x4ca   : > { %23812 = vst [vmem:[#allocation64_spill] sm:$0xff] %v22529_v21  ;;  %v22532_v19 = vadd.f32 %v11197_v16, %v23813_v5  ;;  %v11199_v13 = vadd.f32 %v11198_v62, %v11085_v3  ;;  %v11089_v10 = vpop.f32.mrf.mxu0  ;;  %14074 = vmatmul.mubr.bf16.gmra.mxu0 %v22523_v32  ;;  %v19433_v5 = vld [vmem:[#allocation5 + $0x2188] ss:$16 sps:$4 sm:$0xff]   ;;  %v19447_v16 = vld [vmem:[#allocation5 + $0x216c] ss:$16 sps:$4 sm:$0xff]  }
 0x4cb   : > { %v11202_v25 = vpop.f32.mrf.mxu1  ;;  %14187 = vmatmul.mubr.bf16.gmra.mxu1 %v22526_v38  ;;  %14238 = vmatpush2.bf16.msra.mxu0 %v19427_v37  ;;  %v19450_v3 = vld [vmem:[#allocation5 + $0x236c] ss:$16 sps:$4 sm:$0xff]   ;;  %v22563_v38 = vld [vmem:[%s19821_s30 + $0x3a4] ss:$16 sps:$4 sm:$0xff]  }
 0x4cc   : > { %23814 = vst [vmem:[#allocation36_spill] sm:$0xff] %v22532_v19  ;;  %v22543_v8 = vadd.f32 %v11199_v13, %v23817_v6  ;;  %v11203_v23 = vadd.f32 %v11202_v25, %v11089_v10  ;;  %14351 = vmatpush2.bf16.msra.mxu1 %v19430_v20  ;;  %v11091_v18 = vpop.f32.mrf.mxu0  ;;  %14239 = vmatprep.subr.bf16.mxu0 %v19435_v28  ;;  %v23819_v62 = vld [vmem:[#allocation17_spill] sm:$0xff]  ;;  %v22551_v20 = vld [vmem:[%s19821_s30 + $0x380] ss:$16 sps:$4 sm:$0xff]  }
 0x4cd   : > { %v11204_v34 = vpop.f32.mrf.mxu1  ;;  %14352 = vmatprep.subr.bf16.mxu1 %v19438_v60  ;;  %14083 = vmatprep.mubr.bf16.mxu0 %v22535_v42  ;;  %v22554_v10 = vld [vmem:[%s19821_s30 + $0x388] ss:$16 sps:$4 sm:$0xff]   ;;  %23825 = vst [vmem:[#allocation17_spill] sm:$0xff] %v22563_v38  ;;  %v22566_v32 = vld [vmem:[%s19821_s30 + $0x3ac] ss:$16 sps:$4 sm:$0xff]  }
 0x4ce   : > { %23818 = vst [vmem:[#allocation39_spill] sm:$0xff] %v22543_v8  ;;  %v22546_v19 = vadd.f32 %v11203_v23, %v23819_v62  ;;  %v11205_v21 = vadd.f32 %v11204_v34, %v11091_v18  ;;  %14196 = vmatprep.mubr.bf16.mxu1 %v22538_v49  ;;  %v11093_v13 = vpop.f32.mrf.mxu0  ;;  %v23821_v25 = vld [vmem:[#allocation53_spill] sm:$0xff]  ;;  %v23823_v8 = vld [vmem:[#allocation20_spill] sm:$0xff] }
 0x4cf   : > { %v11206_v37 = vpop.f32.mrf.mxu1  ;;  %14240 = vmatpush2.bf16.msra.mxu0 %v19433_v5  ;;  %v19445_v6 = vld [vmem:[#allocation5 + $0x2168] ss:$16 sps:$4 sm:$0xff]   ;;  %v19453_v62 = vld [vmem:[#allocation5 + $0x214c] ss:$16 sps:$4 sm:$0xff]   ;;  %23826 = vst [vmem:[#allocation53_spill] sm:$0xff] %v22566_v32 }
 0x4d0   : > { %23820 = vst [vmem:[#allocation45_spill] sm:$0xff] %v22546_v19  ;;  %v22557_v60 = vadd.f32 %v11205_v21, %v23821_v25  ;;  %v11207_v28 = vadd.f32 %v11206_v37, %v11093_v13  ;;  %14353 = vmatpush2.bf16.msra.mxu1 %v19436_v29  ;;  %v19448_v23 = vld [vmem:[#allocation5 + $0x2368] ss:$16 sps:$4 sm:$0xff]   ;;  %v11095_v18 = vpop.f32.mrf.mxu0  ;;  %14241 = vmatprep.subr.bf16.mxu0 %v19447_v16  ;;  %v19456_v19 = vld [vmem:[#allocation5 + $0x234c] ss:$16 sps:$4 sm:$0xff]  }
 0x4d1   : > { %v11208_v34 = vpop.f32.mrf.mxu1  ;;  %14354 = vmatprep.subr.bf16.mxu1 %v19450_v3  ;;  %v23827_v5 = vld [vmem:[#allocation47_spill] sm:$0xff] }
 0x4d2   : > { %23822 = vst [vmem:[#allocation43_spill] sm:$0xff] %v22557_v60  ;;  %v22560_v49 = vadd.f32 %v11207_v28, %v23823_v8  ;;  %v11209_v42 = vadd.f32 %v11208_v34, %v11095_v18  ;;  %v11099_v21 = vpop.f32.mrf.mxu0  ;;  %14084 = vmatmul.mubr.bf16.gmra.mxu0 %v22551_v20  ;;  %v19451_v8 = vld [vmem:[#allocation5 + $0x2148] ss:$16 sps:$4 sm:$0xff]   ;;  %v19465_v28 = vld [vmem:[#allocation5 + $0x212c] ss:$16 sps:$4 sm:$0xff]  }
 0x4d3   : > { %v11212_v13 = vpop.f32.mrf.mxu1  ;;  %14197 = vmatmul.mubr.bf16.gmra.mxu1 %v22554_v10  ;;  %14242 = vmatpush2.bf16.msra.mxu0 %v19445_v6  ;;  %v19454_v3 = vld [vmem:[#allocation5 + $0x2348] ss:$16 sps:$4 sm:$0xff]   ;;  %v19468_v18 = vld [vmem:[#allocation5 + $0x232c] ss:$16 sps:$4 sm:$0xff]  }
 0x4d4   : > { %23824 = vst [vmem:[#allocation49_spill] sm:$0xff] %v22560_v49  ;;  %v22571_v29 = vadd.f32 %v11209_v42, %v23827_v5  ;;  %v11213_v16 = vadd.f32 %v11212_v13, %v11099_v21  ;;  %14355 = vmatpush2.bf16.msra.mxu1 %v19448_v23  ;;  %v11101_v37 = vpop.f32.mrf.mxu0  ;;  %14243 = vmatprep.subr.bf16.mxu0 %v19453_v62  ;;  %v23829_v34 = vld [vmem:[#allocation58_spill] sm:$0xff]  ;;  %v22582_v21 = vld [vmem:[%s19821_s30 + $0x3a8] ss:$16 sps:$4 sm:$0xff]  }
 0x4d5   : > { %v11214_v25 = vpop.f32.mrf.mxu1  ;;  %14356 = vmatprep.subr.bf16.mxu1 %v19456_v19  ;;  %14093 = vmatprep.mubr.bf16.mxu0 %v22563_v38  ;;  %v22579_v23 = vld [vmem:[%s19821_s30 + $0x3a0] ss:$16 sps:$4 sm:$0xff]   ;;  %v19463_v62 = vld [vmem:[#allocation5 + $0x2128] ss:$16 sps:$4 sm:$0xff]  }
 0x4d6   : > { %23828 = vst [vmem:[#allocation20_spill] sm:$0xff] %v22571_v29  ;;  %v22574_v49 = vadd.f32 %v11213_v16, %v23829_v34  ;;  %v11215_v60 = vadd.f32 %v11214_v25, %v11101_v37  ;;  %14206 = vmatprep.mubr.bf16.mxu1 %v22566_v32  ;;  %v11103_v42 = vpop.f32.mrf.mxu0  ;;  %v19466_v5 = vld [vmem:[#allocation5 + $0x2328] ss:$16 sps:$4 sm:$0xff]   ;;  %v19471_v25 = vld [vmem:[#allocation5 + $0x210c] ss:$16 sps:$4 sm:$0xff]  }
 0x4d7   : > { %v11216_v6 = vpop.f32.mrf.mxu1  ;;  %14244 = vmatpush2.bf16.msra.mxu0 %v19451_v8  ;;  %v19474_v34 = vld [vmem:[#allocation5 + $0x230c] ss:$16 sps:$4 sm:$0xff]   ;;  %v19469_v8 = vld [vmem:[#allocation5 + $0x2108] ss:$16 sps:$4 sm:$0xff]  }
 0x4d8   : > { %23830 = vst [vmem:[#allocation47_spill] sm:$0xff] %v22574_v49  ;;  %v22585_v13 = vadd.f32 %v11215_v60, %v22233_v35  ;;  %v11217_v19 = vadd.f32 %v11216_v6, %v11103_v42  ;;  %14357 = vmatpush2.bf16.msra.mxu1 %v19454_v3  ;;  %v11105_v16 = vpop.f32.mrf.mxu0  ;;  %14245 = vmatprep.subr.bf16.mxu0 %v19465_v28  ;;  %v19472_v3 = vld [vmem:[#allocation5 + $0x2308] ss:$16 sps:$4 sm:$0xff]  }
 0x4d9   : > { %v11218_v37 = vpop.f32.mrf.mxu1  ;;  %14358 = vmatprep.subr.bf16.mxu1 %v19468_v18 }
 0x4da   : > { %v22588_v49 = vadd.f32 %v11217_v19, %v22236_v45  ;;  %v11219_v29 = vadd.f32 %v11218_v37, %v11105_v16  ;;  %v11109_v32 = vpop.f32.mrf.mxu0  ;;  %14094 = vmatmul.mubr.bf16.gmra.mxu0 %v22579_v23  ;;  %v19475_v45 = vld [vmem:[%s23094_s3 + $0x78] sm:$0xff]  }
 0x4db   : > { %v11222_v38 = vpop.f32.mrf.mxu1  ;;  %14207 = vmatmul.mubr.bf16.gmra.mxu1 %v22582_v21  ;;  %14246 = vmatpush2.bf16.msra.mxu0 %v19463_v62 }
 0x4dc   : > { %v22593_v35 = vadd.f32 %v11219_v29, %v22241_v15  ;;  %v11223_v60 = vadd.f32 %v11222_v38, %v11109_v32  ;;  %14359 = vmatpush2.bf16.msra.mxu1 %v19466_v5  ;;  %v11111_v28 = vpop.f32.mrf.mxu0  ;;  %14247 = vmatprep.subr.bf16.mxu0 %v19471_v25 }
 0x4dd   : > { %v11224_v18 = vpop.f32.mrf.mxu1  ;;  %14360 = vmatprep.subr.bf16.mxu1 %v19474_v34  ;;  %14249 = vmatprep.mubr.bf16.mxu0 %v22367_v53 }
 0x4de   : > { %v22599_v42 = vadd.f32 %v11223_v60, %v22244_v12  ;;  %v11225_v6 = vadd.f32 %v11224_v18, %v11111_v28  ;;  %14362 = vmatprep.mubr.bf16.mxu1 %v22370_v61  ;;  %v11113_v15 = vpop.f32.mrf.mxu0  ;;  %v19476_v12 = vld [vmem:[%s23094_s3 + $0x38] sm:$0xff]   ;;  %v19477_v61 = vld [vmem:[%s23094_s3 + $0x70] sm:$0xff]  }
 0x4df   : > { %v11226_v32 = vpop.f32.mrf.mxu1  ;;  %14248 = vmatpush2.bf16.msra.mxu0 %v19469_v8  ;;  %v19478_v60 = vld [vmem:[%s23094_s3 + $0x30] sm:$0xff]  }
 0x4e0   : > { %v22604_v38 = vadd.f32 %v11225_v6, %v22249_v26  ;;  %v11227_v29 = vadd.f32 %v11226_v32, %v11113_v15  ;;  %14361 = vmatpush2.bf16.msra.mxu1 %v19472_v3  ;;  %v11115_v19 = vpop.f32.mrf.mxu0  ;;  %17112 = vmatprep.subr.bf16.mxu0 %v19475_v45  ;;  %v19481_v15 = vld [vmem:[%s23094_s3 + $0x60] sm:$0xff]  }
 0x4e1   : > { %v11228_v62 = vpop.f32.mrf.mxu1 }
 0x4e2   : > { %v22610_v5 = vadd.f32 %v11227_v29, %v22252_v58  ;;  %v11229_v53 = vadd.f32 %v11228_v62, %v11115_v19  ;;  %v12419_v26 = vpop.f32.mrf.mxu0  ;;  %14250 = vmatmul.mubr.bf16.vlgmr.msra.gmra.mxu0 %v22383_v1 }
 0x4e3   : > { %v12532_v16 = vpop.f32.mrf.mxu1  ;;  %14363 = vmatmul.mubr.bf16.vlgmr.msra.gmra.mxu1 %v22386_v39  ;;  %14259 = vmatprep.mubr.bf16.mxu0 %v22395_v43 }
 0x4e4   : > { %v22618_v37 = vadd.f32 %v11229_v53, %v22257_v56  ;;  %v12533_v25 = vadd.f32 %v12532_v16, %v12419_v26  ;;  %14372 = vmatprep.mubr.bf16.mxu1 %v22398_v4  ;;  %v12421_v58 = vpop.f32.mrf.mxu0  ;;  %17113 = vmatpush3.bf16.msra.mxu0 %v19476_v12  ;;  %v19479_v56 = vld [vmem:[%s23094_s3 + $0x68] sm:$0xff]   ;;  %v19482_v12 = vld [vmem:[%s23094_s3 + $0x20] sm:$0xff]  }
 0x4e5   : > { %v12534_v34 = vpop.f32.mrf.mxu1  ;;  %17114 = vmatprep.subr.bf16.mxu0 %v19477_v61 }
 0x4e6   : > { %v22626_v8 = vadd.f32 %v12533_v25, %v22260_v27  ;;  %v12535_v1 = vadd.f32 %v12534_v34, %v12421_v58  ;;  %v12423_v39 = vpop.f32.mrf.mxu0  ;;  %v19480_v27 = vld [vmem:[%s23094_s3 + $0x28] sm:$0xff]   ;;  %v19485_v34 = vld [vmem:[%s23094_s3 + $0x50] sm:$0xff]  }
 0x4e7   : > { %v12536_v43 = vpop.f32.mrf.mxu1 }
 0x4e8   : > { %v22632_v4 = vadd.f32 %v12535_v1, %v22265_v36  ;;  %v12537_v3 = vadd.f32 %v12536_v43, %v12423_v39  ;;  %v12425_v28 = vpop.f32.mrf.mxu0  ;;  %17115 = vmatpush3.bf16.msra.mxu0 %v19478_v60  ;;  %v19486_v43 = vld [vmem:[%s23094_s3 + $0x10] sm:$0xff]  }
 0x4e9   : > { %v12538_v18 = vpop.f32.mrf.mxu1  ;;  %17116 = vmatprep.subr.bf16.mxu0 %v19479_v56 }
 0x4ea   : > { %v22638_v45 = vadd.f32 %v12537_v3, %v22268_v14  ;;  %v12539_v6 = vadd.f32 %v12538_v18, %v12425_v28  ;;  %v12429_v32 = vpop.f32.mrf.mxu0  ;;  %14260 = vmatmul.mubr.bf16.gmra.mxu0 %v22411_v0  ;;  %v19491_v18 = vld [vmem:[%s23094_s3 + $0xf8] sm:$0xff]  }
 0x4eb   : > { %v12542_v36 = vpop.f32.mrf.mxu1  ;;  %14373 = vmatmul.mubr.bf16.gmra.mxu1 %v22414_v50  ;;  %14269 = vmatprep.mubr.bf16.mxu0 %v22423_v44 }
 0x4ec   : > { %v22646_v29 = vadd.f32 %v12539_v6, %v22273_v7  ;;  %v12543_v19 = vadd.f32 %v12542_v36, %v12429_v32  ;;  %14382 = vmatprep.mubr.bf16.mxu1 %v22426_v47  ;;  %v12431_v14 = vpop.f32.mrf.mxu0  ;;  %17117 = vmatpush3.bf16.msra.mxu0 %v19480_v27  ;;  %v19483_v7 = vld [vmem:[%s23094_s3 + $0x58] sm:$0xff]   ;;  %v19489_v36 = vld [vmem:[%s23094_s3 + $0x40] sm:$0xff]  }
 0x4ed   : > { %v12544_v62 = vpop.f32.mrf.mxu1  ;;  %17118 = vmatprep.subr.bf16.mxu0 %v19481_v15  ;;  %v19492_v15 = vld [vmem:[%s23094_s3 + $0xb8] sm:$0xff]   ;;  %17176 = vmatprep.subr.bf16.mxu1 %v19491_v18 }
 0x4ee   : > { %v22654_v53 = vadd.f32 %v12543_v19, %v22276_v52  ;;  %v12545_v0 = vadd.f32 %v12544_v62, %v12431_v14  ;;  %v12433_v50 = vpop.f32.mrf.mxu0  ;;  %v19484_v52 = vld [vmem:[%s23094_s3 + $0x18] sm:$0xff]   ;;  %17177 = vmatpush3.bf16.msra.mxu1 %v19492_v15 }
 0x4ef   : > { %v12546_v44 = vpop.f32.mrf.mxu1 }
 0x4f0   : > { %v22660_v47 = vadd.f32 %v12545_v0, %v22281_v46  ;;  %v12547_v61 = vadd.f32 %v12546_v44, %v12433_v50  ;;  %v12435_v26 = vpop.f32.mrf.mxu0  ;;  %17119 = vmatpush3.bf16.msra.mxu0 %v19482_v12 }
 0x4f1   : > { %v12548_v16 = vpop.f32.mrf.mxu1  ;;  %17120 = vmatprep.subr.bf16.mxu0 %v19483_v7  ;;  %v19490_v7 = vld [vmem:[%s23094_s3] sm:$0xff]  }
 0x4f2   : > { %v22666_v25 = vadd.f32 %v12547_v61, %v22284_v59  ;;  %v12549_v58 = vadd.f32 %v12548_v16, %v12435_v26  ;;  %v12439_v60 = vpop.f32.mrf.mxu0  ;;  %14270 = vmatmul.mubr.bf16.gmra.mxu0 %v22439_v54 }
 0x4f3   : > { %v12552_v46 = vpop.f32.mrf.mxu1  ;;  %14383 = vmatmul.mubr.bf16.gmra.mxu1 %v22442_v57  ;;  %14279 = vmatprep.mubr.bf16.mxu0 %v22451_v31 }
 0x4f4   : > { %v22674_v1 = vadd.f32 %v12549_v58, %v22289_v48  ;;  %v12553_v56 = vadd.f32 %v12552_v46, %v12439_v60  ;;  %14392 = vmatprep.mubr.bf16.mxu1 %v22454_v30  ;;  %v12441_v59 = vpop.f32.mrf.mxu0  ;;  %17121 = vmatpush3.bf16.msra.mxu0 %v19484_v52  ;;  %v19487_v48 = vld [vmem:[%s23094_s3 + $0x48] sm:$0xff]   ;;  %v23832_v60 = vld [vmem:[#allocation59_spill] sm:$0xff] }
 0x4f5   : > { %v12554_v39 = vpop.f32.mrf.mxu1  ;;  %17122 = vmatprep.subr.bf16.mxu0 %v19485_v34  ;;  %v23831_v34 = vld [vmem:[#allocation62_spill] sm:$0xff] }
 0x4f6   : > { %v22682_v3 = vadd.f32 %v12553_v56, %v22292_v41  ;;  %v12555_v54 = vadd.f32 %v12554_v39, %v12441_v59  ;;  %v12443_v57 = vpop.f32.mrf.mxu0  ;;  %v19488_v41 = vld [vmem:[%s23094_s3 + $0x8] sm:$0xff]  }
 0x4f7   : > { %v12556_v31 = vpop.f32.mrf.mxu1  ;;  %v23833_v59 = vld [vmem:[#allocation34_spill] sm:$0xff] }
 0x4f8   : > { %v22688_v30 = vadd.f32 %v12555_v54, %v22297_v24  ;;  %v12557_v28 = vadd.f32 %v12556_v31, %v12443_v57  ;;  %v12445_v27 = vpop.f32.mrf.mxu0  ;;  %17123 = vmatpush3.bf16.msra.mxu0 %v19486_v43  ;;  %v23834_v39 = vld [vmem:[#allocation30_spill] sm:$0xff] }
 0x4f9   : > { %v12558_v6 = vpop.f32.mrf.mxu1  ;;  %17124 = vmatprep.subr.bf16.mxu0 %v19487_v48 }
 0x4fa   : > { %v22700_v32 = vadd.f32 %v12557_v28, %v22300_v17  ;;  %v12559_v24 = vadd.f32 %v12558_v6, %v12445_v27  ;;  %v12449_v19 = vpop.f32.mrf.mxu0  ;;  %14280 = vmatmul.mubr.bf16.gmra.mxu0 %v22467_v63  ;;  %v19495_v6 = vld [vmem:[%s23094_s3 + $0xe8] sm:$0xff]  }
 0x4fb   : > { %v12562_v14 = vpop.f32.mrf.mxu1  ;;  %14393 = vmatmul.mubr.bf16.gmra.mxu1 %v22470_v40  ;;  %14289 = vmatprep.mubr.bf16.mxu0 %v22479_v22 }
 0x4fc   : > { %v22708_v62 = vadd.f32 %v12559_v24, %v22305_v9  ;;  %v12563_v12 = vadd.f32 %v12562_v14, %v12449_v19  ;;  %14402 = vmatprep.mubr.bf16.mxu1 %v22482_v33  ;;  %v12451_v17 = vpop.f32.mrf.mxu0  ;;  %17125 = vmatpush3.bf16.msra.mxu0 %v19488_v41  ;;  %v19493_v33 = vld [vmem:[%s23094_s3 + $0xf0] sm:$0xff]   ;;  %v19496_v24 = vld [vmem:[%s23094_s3 + $0xa8] sm:$0xff]  }
 0x4fd   : > { %v12564_v0 = vpop.f32.mrf.mxu1  ;;  %17126 = vmatprep.subr.bf16.mxu0 %v19489_v36  ;;  %17178 = vmatprep.subr.bf16.mxu1 %v19493_v33  ;;  %v23837_v36 = vld [vmem:[#allocation52_spill] sm:$0xff]  ;;  %v23842_v33 = vld [vmem:[#allocation38_spill] sm:$0xff] }
 0x4fe   : > { %v22716_v63 = vadd.f32 %v12563_v12, %v22308_v51  ;;  %v12565_v40 = vadd.f32 %v12564_v0, %v12451_v17  ;;  %v12453_v9 = vpop.f32.mrf.mxu0  ;;  %v19494_v51 = vld [vmem:[%s23094_s3 + $0xb0] sm:$0xff]  }
 0x4ff   : > { %v12566_v50 = vpop.f32.mrf.mxu1  ;;  %17179 = vmatpush3.bf16.msra.mxu1 %v19494_v51  ;;  %v23838_v17 = vld [vmem:[#allocation31_spill] sm:$0xff] }
 0x500   : > { %v22719_v44 = vadd.f32 %v12565_v40, %v22313_v55  ;;  %v12567_v22 = vadd.f32 %v12566_v50, %v12453_v9  ;;  %v12455_v61 = vpop.f32.mrf.mxu0  ;;  %17127 = vmatpush3.bf16.msra.mxu0 %v19490_v7  ;;  %17180 = vmatprep.subr.bf16.mxu1 %v19495_v6  ;;  %v23839_v0 = vld [vmem:[#allocation35_spill] sm:$0xff]  ;;  %v23840_v40 = vld [vmem:[#allocation37_spill] sm:$0xff]  ;;  %v23841_v9 = vld [vmem:[#allocation46_spill] sm:$0xff] }
 0x501   : > { %v12568_v26 = vpop.f32.mrf.mxu1 }
 0x502   : > { %v22728_v16 = vadd.f32 %v12567_v22, %v22316_v11  ;;  %v12569_v52 = vadd.f32 %v12568_v26, %v12455_v61  ;;  %v12459_v58 = vpop.f32.mrf.mxu0  ;;  %14290 = vmatmul.mubr.bf16.gmra.mxu0 %v22495_v2  ;;  %v23835_v11 = vld [vmem:[#allocation63_spill] sm:$0xff]  ;;  %v23836_v2 = vld [vmem:[#allocation42_spill] sm:$0xff] }
 0x503   : > { %v12572_v55 = vpop.f32.mrf.mxu1  ;;  %14403 = vmatmul.mubr.bf16.gmra.mxu1 %v23831_v34  ;;  %14299 = vmatprep.mubr.bf16.mxu0 %v23833_v59 }
 0x504   : > { %v22733_v46 = vadd.f32 %v12569_v52, %v23832_v60  ;;  %v12573_v56 = vadd.f32 %v12572_v55, %v12459_v58  ;;  %14412 = vmatprep.mubr.bf16.mxu1 %v23834_v39  ;;  %v12461_v43 = vpop.f32.mrf.mxu0  ;;  %17181 = vmatpush3.bf16.msra.mxu1 %v19496_v24  ;;  %v23843_v58 = vld [vmem:[#allocation23_spill] sm:$0xff]  ;;  %v19497_v60 = vld [vmem:[%s23094_s3 + $0xe0] sm:$0xff]   ;;  %v23847_v24 = vld [vmem:[#allocation54_spill] sm:$0xff] }
 0x505   : > { %v12574_v54 = vpop.f32.mrf.mxu1  ;;  %v19498_v39 = vld [vmem:[%s23094_s3 + $0xa0] sm:$0xff]   ;;  %17182 = vmatprep.subr.bf16.mxu1 %v19497_v60 }
 0x506   : > { %v22738_v48 = vadd.f32 %v12573_v56, %v23835_v11  ;;  %v12575_v57 = vadd.f32 %v12574_v54, %v12461_v43  ;;  %v12463_v31 = vpop.f32.mrf.mxu0  ;;  %v23844_v43 = vld [vmem:[#allocation15_spill] sm:$0xff]  ;;  %v23850_v60 = vld [vmem:[#allocation48_spill] sm:$0xff] }
 0x507   : > { %v12576_v28 = vpop.f32.mrf.mxu1 }
 0x508   : > { %v22741_v18 = vadd.f32 %v12575_v57, %v23836_v2  ;;  %v12577_v27 = vadd.f32 %v12576_v28, %v12463_v31  ;;  %v22746_v41 = vpop.f32.mrf.mxu0  ;;  %v23845_v28 = vld [vmem:[#allocation17_spill] sm:$0xff]  ;;  %17183 = vmatpush3.bf16.msra.mxu1 %v19498_v39 }
 0x509   : > { %v22748_v15 = vpop.f32.mrf.mxu1  ;;  %v23846_v2 = vld [vmem:[#allocation53_spill] sm:$0xff] }
 0x50a   : > { %v22754_v19 = vadd.f32 %v12577_v27, %v23837_v36  ;;  %v12469_v14 = vpop.f32.mrf.mxu0  ;;  %14300 = vmatmul.mubr.bf16.gmra.mxu0 %v23838_v17 }
 0x50b   : > { %v12582_v12 = vpop.f32.mrf.mxu1  ;;  %14413 = vmatmul.mubr.bf16.gmra.mxu1 %v23839_v0  ;;  %14309 = vmatprep.mubr.bf16.mxu0 %v23840_v40  ;;  %v23848_v0 = vld [vmem:[#allocation50_spill] sm:$0xff]  ;;  %v19500_v40 = vld [vmem:[%s23094_s3 + $0x98] sm:$0xff]  }
 0x50c   : > { %v12583_v7 = vadd.f32 %v12582_v12, %v12469_v14  ;;  %14422 = vmatprep.mubr.bf16.mxu1 %v23841_v9  ;;  %v12471_v50 = vpop.f32.mrf.mxu0 }
 0x50d   : > { %v12584_v22 = vpop.f32.mrf.mxu1 }
 0x50e   : > { %v22761_v61 = vadd.f32 %v12583_v7, %v23842_v33  ;;  %v12585_v26 = vadd.f32 %v12584_v22, %v12471_v50  ;;  %v12473_v51 = vpop.f32.mrf.mxu0  ;;  %v23849_v22 = vld [vmem:[#allocation60_spill] sm:$0xff] }
 0x50f   : > { %v12586_v52 = vpop.f32.mrf.mxu1 }
 0x510   : > { %v22764_v55 = vadd.f32 %v12585_v26, %v23843_v58  ;;  %v12587_v34 = vadd.f32 %v12586_v52, %v12473_v51  ;;  %v22769_v56 = vpop.f32.mrf.mxu0 }
 0x511   : > { %v22771_v59 = vpop.f32.mrf.mxu1 }
 0x512   : > { %v22777_v54 = vadd.f32 %v12587_v34, %v23844_v43  ;;  %v12479_v11 = vpop.f32.mrf.mxu0  ;;  %14310 = vmatmul.mubr.bf16.gmra.mxu0 %v22551_v20 }
 0x513   : > { %v12592_v57 = vpop.f32.mrf.mxu1  ;;  %14423 = vmatmul.mubr.bf16.gmra.mxu1 %v22554_v10  ;;  %14319 = vmatprep.mubr.bf16.mxu0 %v23845_v28  ;;  %v19499_v10 = vld [vmem:[%s23094_s3 + $0xd8] sm:$0xff]  }
 0x514   : > { %v12593_v31 = vadd.f32 %v12592_v57, %v12479_v11  ;;  %14432 = vmatprep.mubr.bf16.mxu1 %v23846_v2  ;;  %v12481_v27 = vpop.f32.mrf.mxu0  ;;  %17184 = vmatprep.subr.bf16.mxu1 %v19499_v10 }
 0x515   : > { %v12594_v6 = vpop.f32.mrf.mxu1  ;;  %17185 = vmatpush3.bf16.msra.mxu1 %v19500_v40  ;;  %v23853_v40 = vld [vmem:[#allocation56_spill] sm:$0xff] }
 0x516   : > { %v22784_v36 = vadd.f32 %v12593_v31, %v23847_v24  ;;  %v12595_v14 = vadd.f32 %v12594_v6, %v12481_v27  ;;  %v12483_v12 = vpop.f32.mrf.mxu0  ;;  %v23851_v31 = vld [vmem:[#allocation19_spill] sm:$0xff] }
 0x517   : > { %v12596_v17 = vpop.f32.mrf.mxu1  ;;  %v23852_v24 = vld [vmem:[#allocation55_spill] sm:$0xff] }
 0x518   : > { %v22787_v7 = vadd.f32 %v12595_v14, %v23848_v0  ;;  %v12597_v20 = vadd.f32 %v12596_v17, %v12483_v12  ;;  %v22795_v9 = vpop.f32.mrf.mxu0 }
 0x519   : > { %v22797_v50 = vpop.f32.mrf.mxu1 }
 0x51a   : > { %v22800_v33 = vadd.f32 %v12597_v20, %v23849_v22  ;;  %v12489_v26 = vpop.f32.mrf.mxu0  ;;  %14320 = vmatmul.mubr.bf16.gmra.mxu0 %v22579_v23  ;;  %v19501_v23 = vld [vmem:[%s23094_s3 + $0xd0] sm:$0xff]  }
 0x51b   : > { %v12602_v51 = vpop.f32.mrf.mxu1  ;;  %14433 = vmatmul.mubr.bf16.gmra.mxu1 %v22582_v21  ;;  %v19502_v21 = vld [vmem:[%s23094_s3 + $0x90] sm:$0xff]   ;;  %17186 = vmatprep.subr.bf16.mxu1 %v19501_v23 }
 0x51c   : > { %v12603_v52 = vadd.f32 %v12602_v51, %v12489_v26  ;;  %v12491_v58 = vpop.f32.mrf.mxu0  ;;  %17187 = vmatpush3.bf16.msra.mxu1 %v19502_v21 }
 0x51d   : > { %v12604_v34 = vpop.f32.mrf.mxu1 }
 0x51e   : > { %v22805_v39 = vadd.f32 %v12603_v52, %v23850_v60  ;;  %v12605_v43 = vadd.f32 %v12604_v34, %v12491_v58  ;;  %v12493_v11 = vpop.f32.mrf.mxu0  ;;  %v23855_v58 = vld [vmem:[#allocation24_spill] sm:$0xff] }
 0x51f   : > { %v12606_v57 = vpop.f32.mrf.mxu1 }
 0x520   : > { %v22808_v28 = vadd.f32 %v12605_v43, %v23851_v31  ;;  %v12607_v2 = vadd.f32 %v12606_v57, %v12493_v11  ;;  %v22816_v27 = vpop.f32.mrf.mxu0  ;;  %v19503_v43 = vld [vmem:[%s23094_s3 + $0xc8] sm:$0xff]  }
 0x521   : > { %v22818_v6 = vpop.f32.mrf.mxu1  ;;  %v19504_v11 = vld [vmem:[%s23094_s3 + $0x88] sm:$0xff]   ;;  %17188 = vmatprep.subr.bf16.mxu1 %v19503_v43 }
 0x522   : > { %v22821_v14 = vadd.f32 %v12607_v2, %v23852_v24  ;;  %v12645_v12 = vpop.f32.mrf.mxu0  ;;  %v23858_v2 = vld [vmem:[#allocation33_spill] sm:$0xff]  ;;  %17189 = vmatpush3.bf16.msra.mxu1 %v19504_v11 }
 0x523   : > { %v12758_v17 = vpop.f32.mrf.mxu1 }
 0x524   : > { %v12759_v0 = vadd.f32 %v12758_v17, %v12645_v12  ;;  %v12647_v20 = vpop.f32.mrf.mxu0 }
 0x525   : > { %v12760_v10 = vpop.f32.mrf.mxu1 }
 0x526   : > { %v22824_v22 = vadd.f32 %v12759_v0, %v23853_v40  ;;  %v12761_v26 = vadd.f32 %v12760_v10, %v12647_v20  ;;  %v12649_v51 = vpop.f32.mrf.mxu0  ;;  %v19505_v20 = vld [vmem:[%s23094_s3 + $0xc0] sm:$0xff]   ;;  %v23860_v10 = vld [vmem:[#allocation18_spill] sm:$0xff] }
 0x527   : > { %v12762_v52 = vpop.f32.mrf.mxu1  ;;  %17190 = vmatprep.subr.bf16.mxu1 %v19505_v20 }
 0x528   : > { %23854 = vst [vmem:[#allocation58_spill] sm:$0xff] %v22824_v22  ;;  %v22827_v34 = vadd.f32 %v12761_v26, %v23855_v58  ;;  %v12763_v60 = vadd.f32 %v12762_v52, %v12649_v51  ;;  %v22835_v57 = vpop.f32.mrf.mxu0  ;;  %v19506_v51 = vld [vmem:[%s23094_s3 + $0x80] sm:$0xff]  }
 0x529   : > { %v22837_v31 = vpop.f32.mrf.mxu1  ;;  %17191 = vmatpush3.bf16.msra.mxu1 %v19506_v51 }
 0x52a   : > { %23856 = vst [vmem:[#allocation62_spill] sm:$0xff] %v22827_v34  ;;  %23857 = vst [vmem:[#allocation59_spill] sm:$0xff] %v22837_v31  ;;  %v22840_v23 = vadd.f32 %v12763_v60, %v23858_v2  ;;  %v12655_v21 = vpop.f32.mrf.mxu0  ;;  %v23862_v60 = vld [vmem:[#allocation57_spill] sm:$0xff] }
 0x52b   : > { %v12768_v24 = vpop.f32.mrf.mxu1  ;;  %v23868_v34 = vld [vmem:[#allocation25_spill] sm:$0xff] }
 0x52c   : > { %23859 = vst [vmem:[#allocation34_spill] sm:$0xff] %v22840_v23  ;;  %v12769_v12 = vadd.f32 %v12768_v24, %v12655_v21  ;;  %v12657_v17 = vpop.f32.mrf.mxu0  ;;  %v23866_v24 = vld [vmem:[#allocation26_spill] sm:$0xff] }
 0x52d   : > { %v12770_v0 = vpop.f32.mrf.mxu1 }
 0x52e   : > { %v22846_v40 = vadd.f32 %v12769_v12, %v23860_v10  ;;  %v12771_v26 = vadd.f32 %v12770_v0, %v12657_v17  ;;  %v12659_v52 = vpop.f32.mrf.mxu0 }
 0x52f   : > { %v12772_v58 = vpop.f32.mrf.mxu1 }
 0x530   : > { %23861 = vst [vmem:[#allocation30_spill] sm:$0xff] %v22846_v40  ;;  %v22852_v43 = vadd.f32 %v12771_v26, %v23862_v60  ;;  %v12773_v11 = vadd.f32 %v12772_v58, %v12659_v52  ;;  %v22854_v2 = vpop.f32.mrf.mxu0  ;;  %v23870_v52 = vld [vmem:[#allocation32_spill] sm:$0xff] }
 0x531   : > { %23864 = vst [vmem:[#allocation42_spill] sm:$0xff] %v22854_v2  ;;  %v22856_v21 = vpop.f32.mrf.mxu1 }
 0x532   : > { %23863 = vst [vmem:[#allocation63_spill] sm:$0xff] %v22852_v43  ;;  %23865 = vst [vmem:[#allocation52_spill] sm:$0xff] %v22856_v21  ;;  %v22859_v12 = vadd.f32 %v12773_v11, %v23866_v24  ;;  %v12665_v17 = vpop.f32.mrf.mxu0  ;;  %v23874_v11 = vld [vmem:[#allocation22_spill] sm:$0xff] }
 0x533   : > { %v12778_v0 = vpop.f32.mrf.mxu1 }
 0x534   : > { %23867 = vst [vmem:[#allocation31_spill] sm:$0xff] %v22859_v12  ;;  %v12779_v10 = vadd.f32 %v12778_v0, %v12665_v17  ;;  %v12667_v40 = vpop.f32.mrf.mxu0 }
 0x535   : > { %v12780_v23 = vpop.f32.mrf.mxu1 }
 0x536   : > { %v22862_v22 = vadd.f32 %v12779_v10, %v23868_v34  ;;  %v12781_v20 = vadd.f32 %v12780_v23, %v12667_v40  ;;  %v12669_v26 = vpop.f32.mrf.mxu0  ;;  %v23876_v10 = vld [vmem:[#allocation51_spill] sm:$0xff] }
 0x537   : > { %v12782_v60 = vpop.f32.mrf.mxu1 }
 0x538   : > { %23869 = vst [vmem:[#allocation35_spill] sm:$0xff] %v22862_v22  ;;  %v22865_v51 = vadd.f32 %v12781_v20, %v23870_v52  ;;  %v12783_v58 = vadd.f32 %v12782_v60, %v12669_v26  ;;  %v22867_v43 = vpop.f32.mrf.mxu0  ;;  %v23878_v52 = vld [vmem:[#allocation28_spill] sm:$0xff] }
 0x539   : > { %23872 = vst [vmem:[#allocation46_spill] sm:$0xff] %v22867_v43  ;;  %v22869_v21 = vpop.f32.mrf.mxu1 }
 0x53a   : > { %23871 = vst [vmem:[#allocation37_spill] sm:$0xff] %v22865_v51  ;;  %23873 = vst [vmem:[#allocation38_spill] sm:$0xff] %v22869_v21  ;;  %v22872_v24 = vadd.f32 %v12783_v58, %v23874_v11  ;;  %v12675_v17 = vpop.f32.mrf.mxu0  ;;  %v23882_v58 = vld [vmem:[#allocation29_spill] sm:$0xff] }
 0x53b   : > { %v12788_v0 = vpop.f32.mrf.mxu1 }
 0x53c   : > { %23875 = vst [vmem:[#allocation23_spill] sm:$0xff] %v22872_v24  ;;  %v12789_v12 = vadd.f32 %v12788_v0, %v12675_v17  ;;  %v12677_v2 = vpop.f32.mrf.mxu0 }
 0x53d   : > { %v12790_v34 = vpop.f32.mrf.mxu1 }
 0x53e   : > { %v22875_v23 = vadd.f32 %v12789_v12, %v23876_v10  ;;  %v12791_v40 = vadd.f32 %v12790_v34, %v12677_v2  ;;  %v12679_v22 = vpop.f32.mrf.mxu0  ;;  %v23884_v10 = vld [vmem:[#allocation41_spill] sm:$0xff] }
 0x53f   : > { %v12792_v20 = vpop.f32.mrf.mxu1 }
 0x540   : > { %23877 = vst [vmem:[#allocation15_spill] sm:$0xff] %v22875_v23  ;;  %v22878_v26 = vadd.f32 %v12791_v40, %v23878_v52  ;;  %v12793_v60 = vadd.f32 %v12792_v20, %v12679_v22  ;;  %v22880_v51 = vpop.f32.mrf.mxu0  ;;  %v23886_v52 = vld [vmem:[#allocation64_spill] sm:$0xff] }
 0x541   : > { %23880 = vst [vmem:[#allocation53_spill] sm:$0xff] %v22880_v51  ;;  %v22882_v21 = vpop.f32.mrf.mxu1  ;;  %v23888_v51 = vld [vmem:[#allocation36_spill] sm:$0xff] }
 0x542   : > { %23879 = vst [vmem:[#allocation17_spill] sm:$0xff] %v22878_v26  ;;  %23881 = vst [vmem:[#allocation54_spill] sm:$0xff] %v22882_v21  ;;  %v22885_v11 = vadd.f32 %v12793_v60, %v23882_v58  ;;  %v12685_v17 = vpop.f32.mrf.mxu0 }
 0x543   : > { %v12798_v0 = vpop.f32.mrf.mxu1 }
 0x544   : > { %23883 = vst [vmem:[#allocation50_spill] sm:$0xff] %v22885_v11  ;;  %v12799_v24 = vadd.f32 %v12798_v0, %v12685_v17  ;;  %v12687_v43 = vpop.f32.mrf.mxu0  ;;  %v23890_v0 = vld [vmem:[#allocation39_spill] sm:$0xff] }
 0x545   : > { %v12800_v12 = vpop.f32.mrf.mxu1 }
 0x546   : > { %v22888_v2 = vadd.f32 %v12799_v24, %v23884_v10  ;;  %v12801_v34 = vadd.f32 %v12800_v12, %v12687_v43  ;;  %v12689_v23 = vpop.f32.mrf.mxu0  ;;  %v23892_v12 = vld [vmem:[#allocation45_spill] sm:$0xff] }
 0x547   : > { %v12802_v40 = vpop.f32.mrf.mxu1 }
 0x548   : > { %23885 = vst [vmem:[#allocation60_spill] sm:$0xff] %v22888_v2  ;;  %v22891_v22 = vadd.f32 %v12801_v34, %v23886_v52  ;;  %v12803_v20 = vadd.f32 %v12802_v40, %v12689_v23  ;;  %v12691_v26 = vpop.f32.mrf.mxu0  ;;  %v23894_v40 = vld [vmem:[#allocation43_spill] sm:$0xff] }
 0x549   : > { %v12804_v21 = vpop.f32.mrf.mxu1 }
 0x54a   : > { %23887 = vst [vmem:[#allocation48_spill] sm:$0xff] %v22891_v22  ;;  %v22894_v60 = vadd.f32 %v12803_v20, %v23888_v51  ;;  %v12805_v58 = vadd.f32 %v12804_v21, %v12691_v26  ;;  %v12695_v11 = vpop.f32.mrf.mxu0  ;;  %v23895_v26 = vld [vmem:[#allocation49_spill] sm:$0xff] }
 0x54b   : > { %v12808_v17 = vpop.f32.mrf.mxu1 }
 0x54c   : > { %23889 = vst [vmem:[#allocation19_spill] sm:$0xff] %v22894_v60  ;;  %v22897_v31 = vadd.f32 %v12805_v58, %v23890_v0  ;;  %v12809_v24 = vadd.f32 %v12808_v17, %v12695_v11  ;;  %v12697_v10 = vpop.f32.mrf.mxu0  ;;  %v23896_v17 = vld [vmem:[#allocation20_spill] sm:$0xff] }
 0x54d   : > { %v12810_v43 = vpop.f32.mrf.mxu1 }
 0x54e   : > { %23891 = vst [vmem:[#allocation55_spill] sm:$0xff] %v22897_v31  ;;  %v22900_v2 = vadd.f32 %v12809_v24, %v23892_v12  ;;  %v12811_v34 = vadd.f32 %v12810_v43, %v12697_v10  ;;  %v12699_v52 = vpop.f32.mrf.mxu0  ;;  %v23897_v43 = vld [vmem:[#allocation47_spill] sm:$0xff] }
 0x54f   : > { %v12812_v23 = vpop.f32.mrf.mxu1 }
 0x550   : > { %23893 = vst [vmem:[#allocation56_spill] sm:$0xff] %v22900_v2  ;;  %v22903_v22 = vadd.f32 %v12811_v34, %v23894_v40  ;;  %v12813_v51 = vadd.f32 %v12812_v23, %v12699_v52  ;;  %v12701_v20 = vpop.f32.mrf.mxu0 }
 0x551   : > { %v12814_v21 = vpop.f32.mrf.mxu1 }
 0x552   : > { %v22906_v60 = vadd.f32 %v12813_v51, %v23895_v26  ;;  %v12815_v58 = vadd.f32 %v12814_v21, %v12701_v20  ;;  %v12705_v0 = vpop.f32.mrf.mxu0 }
 0x553   : > { %v12818_v11 = vpop.f32.mrf.mxu1 }
 0x554   : > { %v22909_v31 = vadd.f32 %v12815_v58, %v23896_v17  ;;  %v12819_v24 = vadd.f32 %v12818_v11, %v12705_v0  ;;  %v12707_v12 = vpop.f32.mrf.mxu0 }
 0x555   : > { %v12820_v10 = vpop.f32.mrf.mxu1 }
 0x556   : > { %v22912_v2 = vadd.f32 %v12819_v24, %v23897_v43  ;;  %v12821_v34 = vadd.f32 %v12820_v10, %v12707_v12  ;;  %v12709_v40 = vpop.f32.mrf.mxu0 }
 0x557   : > { %v12822_v52 = vpop.f32.mrf.mxu1 }
 0x558   : > { %v22915_v23 = vadd.f32 %v12821_v34, %v22585_v13  ;;  %v12823_v51 = vadd.f32 %v12822_v52, %v12709_v40  ;;  %v12711_v26 = vpop.f32.mrf.mxu0 }
 0x559   : > { %v12824_v20 = vpop.f32.mrf.mxu1 }
 0x55a   : > { %v22918_v21 = vadd.f32 %v12823_v51, %v22588_v49  ;;  %v12825_v58 = vadd.f32 %v12824_v20, %v12711_v26  ;;  %v12715_v17 = vpop.f32.mrf.mxu0 }
 0x55b   : > { %v12828_v0 = vpop.f32.mrf.mxu1 }
 0x55c   : > { %v22921_v11 = vadd.f32 %v12825_v58, %v22593_v35  ;;  %v12829_v24 = vadd.f32 %v12828_v0, %v12715_v17  ;;  %v12717_v43 = vpop.f32.mrf.mxu0 }
 0x55d   : > { %v12830_v12 = vpop.f32.mrf.mxu1 }
 0x55e   : > { %23898 = vst [vmem:[#allocation24_spill] sm:$0xff] %v22921_v11  ;;  %v22924_v10 = vadd.f32 %v12829_v24, %v22599_v42  ;;  %v12831_v13 = vadd.f32 %v12830_v12, %v12717_v43  ;;  %v12719_v34 = vpop.f32.mrf.mxu0 }
 0x55f   : > { %v12832_v40 = vpop.f32.mrf.mxu1 }
 0x560   : > { %23899 = vst [vmem:[#allocation33_spill] sm:$0xff] %v22924_v10  ;;  %v22927_v52 = vadd.f32 %v12831_v13, %v22604_v38  ;;  %v12833_v49 = vadd.f32 %v12832_v40, %v12719_v34  ;;  %v12721_v51 = vpop.f32.mrf.mxu0 }
 0x561   : > { %v12834_v26 = vpop.f32.mrf.mxu1 }
 0x562   : > { %23900 = vst [vmem:[#allocation18_spill] sm:$0xff] %v22927_v52  ;;  %v22930_v20 = vadd.f32 %v12833_v49, %v22610_v5  ;;  %v12835_v35 = vadd.f32 %v12834_v26, %v12721_v51  ;;  %v14025_v58 = vpop.f32.mrf.mxu0 }
 0x563   : > { %v14138_v17 = vpop.f32.mrf.mxu1 }
 0x564   : > { %23901 = vst [vmem:[#allocation57_spill] sm:$0xff] %v22930_v20  ;;  %v22933_v0 = vadd.f32 %v12835_v35, %v22618_v37  ;;  %v14139_v42 = vadd.f32 %v14138_v17, %v14025_v58  ;;  %v14027_v24 = vpop.f32.mrf.mxu0 }
 0x565   : > { %v14140_v43 = vpop.f32.mrf.mxu1 }
 0x566   : > { %23902 = vst [vmem:[#allocation26_spill] sm:$0xff] %v22933_v0  ;;  %v14141_v12 = vadd.f32 %v14140_v43, %v14027_v24  ;;  %v14029_v10 = vpop.f32.mrf.mxu0  ;;  %v14507_v38 = vadd.f32 %v14139_v42, %v22626_v8 }
 0x567   : > { %v14142_v11 = vpop.f32.mrf.mxu1 }
 0x568   : > { %v14143_v13 = vadd.f32 %v14142_v11, %v14029_v10  ;;  %v14031_v34 = vpop.f32.mrf.mxu0  ;;  %v14508_v5 = vadd.f32 %v14141_v12, %v22632_v4  ;;  %v14699_v37 = vmax.f32 %v14507_v38, 0.0 }
 0x569   : > { %v14144_v40 = vpop.f32.mrf.mxu1 }
 0x56a   : > { %v14511_v49 = vadd.f32 %v14143_v13, %v22638_v45  ;;  %v14145_v51 = vadd.f32 %v14144_v40, %v14031_v34  ;;  %v14035_v26 = vpop.f32.mrf.mxu0  ;;  %v14700_v0 = vmax.f32 %v14508_v5, 0.0 }
 0x56b   : > { %v14148_v20 = vpop.f32.mrf.mxu1 }
 0x56c   : > { %v14703_v35 = vmax.f32 %v14511_v49, 0.0  ;;  %v14512_v58 = vadd.f32 %v14145_v51, %v22646_v29  ;;  %v14149_v17 = vadd.f32 %v14148_v20, %v14035_v26  ;;  %v14037_v24 = vpop.f32.mrf.mxu0 }
 0x56d   : > { %v14150_v43 = vpop.f32.mrf.mxu1 }
 0x56e   : > { %v14763_v52 = vpack.c.bf16 %v14703_v35, %v14699_v37  ;;  %v14704_v8 = vmax.f32 %v14512_v58, 0.0  ;;  %v14151_v11 = vadd.f32 %v14150_v43, %v14037_v24  ;;  %v14039_v10 = vpop.f32.mrf.mxu0  ;;  %v14515_v4 = vadd.f32 %v14149_v17, %v22654_v53 }
 0x56f   : > { %v14152_v42 = vpop.f32.mrf.mxu1 }
 0x570   : > { %v14153_v12 = vadd.f32 %v14152_v42, %v14039_v10  ;;  %v14764_v45 = vpack.c.bf16 %v14704_v8, %v14700_v0  ;;  %v14041_v13 = vpop.f32.mrf.mxu0  ;;  %v14516_v38 = vadd.f32 %v14151_v11, %v22660_v47  ;;  %v14707_v5 = vmax.f32 %v14515_v4, 0.0 }
 0x571   : > { %v14154_v34 = vpop.f32.mrf.mxu1 }
 0x572   : > { %v14519_v40 = vadd.f32 %v14153_v12, %v22666_v25  ;;  %v14155_v29 = vadd.f32 %v14154_v34, %v14041_v13  ;;  %15090 = vmatprep.mubr.bf16.mxu0 %v14764_v45  ;;  %v14045_v20 = vpop.f32.mrf.mxu0  ;;  %v14708_v58 = vmax.f32 %v14516_v38, 0.0 }
 0x573   : > { %v14158_v49 = vpop.f32.mrf.mxu1  ;;  %15091 = vmatmul.mubr.bf16.vlgmr.msra.gmra.mxu0 %v14763_v52 }
 0x574   : > { %v14711_v51 = vmax.f32 %v14519_v40, 0.0  ;;  %v14520_v26 = vadd.f32 %v14155_v29, %v22674_v1  ;;  %v14159_v37 = vadd.f32 %v14158_v49, %v14045_v20  ;;  %v14047_v35 = vpop.f32.mrf.mxu0 }
 0x575   : > { %v14160_v53 = vpop.f32.mrf.mxu1 }
 0x576   : > { %v14767_v0 = vpack.c.bf16 %v14711_v51, %v14707_v5  ;;  %v14712_v17 = vmax.f32 %v14520_v26, 0.0  ;;  %v14161_v24 = vadd.f32 %v14160_v53, %v14047_v35  ;;  %v14049_v43 = vpop.f32.mrf.mxu0  ;;  %v14523_v25 = vadd.f32 %v14159_v37, %v22682_v3 }
 0x577   : > { %v14162_v47 = vpop.f32.mrf.mxu1 }
 0x578   : > { %v14163_v8 = vadd.f32 %v14162_v47, %v14049_v43  ;;  %v14768_v11 = vpack.c.bf16 %v14712_v17, %v14708_v58  ;;  %v14051_v10 = vpop.f32.mrf.mxu0  ;;  %v14524_v52 = vadd.f32 %v14161_v24, %v22688_v30  ;;  %v14715_v13 = vmax.f32 %v14523_v25, 0.0 }
 0x579   : > { %v14164_v42 = vpop.f32.mrf.mxu1 }
 0x57a   : > { %v14527_v4 = vadd.f32 %v14163_v8, %v22700_v32  ;;  %v14165_v1 = vadd.f32 %v14164_v42, %v14051_v10  ;;  %15098 = vmatprep.mubr.bf16.mxu0 %v14768_v11  ;;  %v14055_v12 = vpop.f32.mrf.mxu0  ;;  %v14716_v20 = vmax.f32 %v14524_v52, 0.0 }
 0x57b   : > { %v14168_v45 = vpop.f32.mrf.mxu1  ;;  %15099 = vmatmul.mubr.bf16.gmra.mxu0 %v14767_v0 }
 0x57c   : > { %v14719_v34 = vmax.f32 %v14527_v4, 0.0  ;;  %v14528_v38 = vadd.f32 %v14165_v1, %v22708_v62  ;;  %v14169_v40 = vadd.f32 %v14168_v45, %v14055_v12  ;;  %v14057_v29 = vpop.f32.mrf.mxu0 }
 0x57d   : > { %v14170_v3 = vpop.f32.mrf.mxu1 }
 0x57e   : > { %v14771_v49 = vpack.c.bf16 %v14719_v34, %v14715_v13  ;;  %v14720_v5 = vmax.f32 %v14528_v38, 0.0  ;;  %v14171_v51 = vadd.f32 %v14170_v3, %v14057_v29  ;;  %v14059_v26 = vpop.f32.mrf.mxu0  ;;  %v14531_v32 = vadd.f32 %v14169_v40, %v22716_v63  ;;  %v23903_v29 = vld [vmem:[#allocation13_spill] sm:$0xff] }
 0x57f   : > { %v14172_v30 = vpop.f32.mrf.mxu1  ;;  %v12579_v63 = vadd.f32 %v22748_v15, %v22746_v41 }
 0x580   : > { %v14173_v37 = vadd.f32 %v14172_v30, %v14059_v26  ;;  %v14772_v35 = vpack.c.bf16 %v14720_v5, %v14716_v20  ;;  %v14061_v53 = vpop.f32.mrf.mxu0  ;;  %v14532_v0 = vadd.f32 %v14171_v51, %v22719_v44  ;;  %v14723_v47 = vmax.f32 %v14531_v32, 0.0 }
 0x581   : > { %v14174_v58 = vpop.f32.mrf.mxu1 }
 0x582   : > { %v14535_v17 = vadd.f32 %v14173_v37, %v22728_v16  ;;  %v14175_v62 = vadd.f32 %v14174_v58, %v14061_v53  ;;  %15106 = vmatprep.mubr.bf16.mxu0 %v14772_v35  ;;  %v14065_v24 = vpop.f32.mrf.mxu0  ;;  %v14724_v52 = vmax.f32 %v14532_v0, 0.0 }
 0x583   : > { %v14178_v43 = vpop.f32.mrf.mxu1  ;;  %15107 = vmatmul.mubr.bf16.gmra.mxu0 %v14771_v49 }
 0x584   : > { %v14727_v25 = vmax.f32 %v14535_v17, 0.0  ;;  %v14536_v8 = vadd.f32 %v14175_v62, %v22733_v46  ;;  %v14179_v11 = vadd.f32 %v14178_v43, %v14065_v24  ;;  %v14067_v10 = vpop.f32.mrf.mxu0  ;;  %v12938_v46 = vadd.f32 %v12579_v63, %v23903_v29 }
 0x585   : > { %v14180_v42 = vpop.f32.mrf.mxu1 }
 0x586   : > { %v14775_v4 = vpack.c.bf16 %v14727_v25, %v14723_v47  ;;  %v14728_v44 = vmax.f32 %v14536_v8, 0.0  ;;  %v14181_v1 = vadd.f32 %v14180_v42, %v14067_v10  ;;  %v14069_v16 = vpop.f32.mrf.mxu0  ;;  %v14539_v45 = vadd.f32 %v14179_v11, %v22738_v48  ;;  %v23904_v25 = vld [vmem:[#allocation44_spill] sm:$0xff] }
 0x587   : > { %v14182_v12 = vpop.f32.mrf.mxu1  ;;  %v12589_v48 = vadd.f32 %v22771_v59, %v22769_v56 }
 0x588   : > { %v14183_v13 = vadd.f32 %v14182_v12, %v14069_v16  ;;  %v14776_v34 = vpack.c.bf16 %v14728_v44, %v14724_v52  ;;  %v14071_v38 = vpop.f32.mrf.mxu0  ;;  %v14540_v3 = vadd.f32 %v14181_v1, %v22741_v18  ;;  %v14731_v5 = vmax.f32 %v14539_v45, 0.0 }
 0x589   : > { %v14184_v40 = vpop.f32.mrf.mxu1  ;;  %v12946_v8 = vadd.f32 %v12589_v48, %v23904_v25 }
 0x58a   : > { %v14543_v41 = vadd.f32 %v14183_v13, %v22754_v19  ;;  %v14185_v15 = vadd.f32 %v14184_v40, %v14071_v38  ;;  %15114 = vmatprep.mubr.bf16.mxu0 %v14776_v34  ;;  %v14075_v20 = vpop.f32.mrf.mxu0  ;;  %v14732_v35 = vmax.f32 %v14540_v3, 0.0 }
 0x58b   : > { %v14188_v49 = vpop.f32.mrf.mxu1  ;;  %15115 = vmatmul.mubr.bf16.gmra.mxu0 %v14775_v4 }
 0x58c   : > { %v14735_v51 = vmax.f32 %v14543_v41, 0.0  ;;  %v14544_v26 = vadd.f32 %v14185_v15, %v12938_v46  ;;  %v14189_v30 = vadd.f32 %v14188_v49, %v14075_v20  ;;  %v14077_v32 = vpop.f32.mrf.mxu0  ;;  %v23905_v41 = vld [vmem:[#allocation14_spill] sm:$0xff] }
 0x58d   : > { %v14190_v37 = vpop.f32.mrf.mxu1 }
 0x58e   : > { %v14779_v53 = vpack.c.bf16 %v14735_v51, %v14731_v5  ;;  %v14736_v58 = vmax.f32 %v14544_v26, 0.0  ;;  %v14191_v18 = vadd.f32 %v14190_v37, %v14077_v32  ;;  %v14079_v0 = vpop.f32.mrf.mxu0  ;;  %v14547_v17 = vadd.f32 %v14189_v30, %v22761_v61 }
 0x58f   : > { %v14192_v19 = vpop.f32.mrf.mxu1  ;;  %v12599_v61 = vadd.f32 %v22797_v50, %v22795_v9 }
 0x590   : > { %v14193_v62 = vadd.f32 %v14192_v19, %v14079_v0  ;;  %v14780_v24 = vpack.c.bf16 %v14736_v58, %v14732_v35  ;;  %v14081_v43 = vpop.f32.mrf.mxu0  ;;  %v14548_v11 = vadd.f32 %v14191_v18, %v22764_v55  ;;  %v14739_v42 = vmax.f32 %v14547_v17, 0.0 }
 0x591   : > { %v14194_v47 = vpop.f32.mrf.mxu1  ;;  %v12954_v15 = vadd.f32 %v12599_v61, %v23905_v41 }
 0x592   : > { %v14551_v56 = vadd.f32 %v14193_v62, %v22777_v54  ;;  %v14195_v59 = vadd.f32 %v14194_v47, %v14081_v43  ;;  %15122 = vmatprep.mubr.bf16.mxu0 %v14780_v24  ;;  %v14085_v63 = vpop.f32.mrf.mxu0  ;;  %v14740_v12 = vmax.f32 %v14548_v11, 0.0  ;;  %v23906_v43 = vld [vmem:[#allocation16_spill] sm:$0xff] }
 0x593   : > { %v14198_v10 = vpop.f32.mrf.mxu1  ;;  %15123 = vmatmul.mubr.bf16.gmra.mxu0 %v14779_v53 }
 0x594   : > { %v14743_v52 = vmax.f32 %v14551_v56, 0.0  ;;  %v14552_v4 = vadd.f32 %v14195_v59, %v12946_v8  ;;  %v14199_v44 = vadd.f32 %v14198_v10, %v14085_v63  ;;  %v14087_v1 = vpop.f32.mrf.mxu0 }
 0x595   : > { %v14200_v16 = vpop.f32.mrf.mxu1 }
 0x596   : > { %v14783_v45 = vpack.c.bf16 %v14743_v52, %v14739_v42  ;;  %v14744_v13 = vmax.f32 %v14552_v4, 0.0  ;;  %v14201_v55 = vadd.f32 %v14200_v16, %v14087_v1  ;;  %v14089_v34 = vpop.f32.mrf.mxu0  ;;  %v14555_v38 = vadd.f32 %v14199_v44, %v22784_v36 }
 0x597   : > { %v14202_v54 = vpop.f32.mrf.mxu1  ;;  %v12609_v36 = vadd.f32 %v22818_v6, %v22816_v27 }
 0x598   : > { %v14203_v40 = vadd.f32 %v14202_v54, %v14089_v34  ;;  %v14784_v29 = vpack.c.bf16 %v14744_v13, %v14740_v12  ;;  %v14091_v46 = vpop.f32.mrf.mxu0  ;;  %v14556_v20 = vadd.f32 %v14201_v55, %v22787_v7  ;;  %v14747_v51 = vmax.f32 %v14555_v38, 0.0  ;;  %v23908_v12 = vld [vmem:[#allocation58_spill] sm:$0xff]  ;;  %v23909_v38 = vld [vmem:[#allocation61_spill] sm:$0xff] }
 0x599   : > { %v14204_v3 = vpop.f32.mrf.mxu1  ;;  %v12962_v47 = vadd.f32 %v12609_v36, %v23906_v43 }
 0x59a   : > { %v14559_v9 = vadd.f32 %v14203_v40, %v22800_v33  ;;  %v14205_v50 = vadd.f32 %v14204_v3, %v14091_v46  ;;  %15130 = vmatprep.mubr.bf16.mxu0 %v14784_v29  ;;  %v14095_v49 = vpop.f32.mrf.mxu0  ;;  %v14748_v35 = vmax.f32 %v14556_v20, 0.0  ;;  %v23910_v29 = vld [vmem:[#allocation62_spill] sm:$0xff] }
 0x59b   : > { %v14208_v5 = vpop.f32.mrf.mxu1  ;;  %15131 = vmatmul.mubr.bf16.gmra.mxu0 %v14783_v45  ;;  %v23911_v3 = vld [vmem:[#allocation34_spill] sm:$0xff] }
 0x59c   : > { %v14751_v26 = vmax.f32 %v14559_v9, 0.0  ;;  %v14560_v30 = vadd.f32 %v14205_v50, %v12954_v15  ;;  %v14209_v48 = vadd.f32 %v14208_v5, %v14095_v49  ;;  %v14097_v32 = vpop.f32.mrf.mxu0 }
 0x59d   : > { %v14210_v37 = vpop.f32.mrf.mxu1 }
 0x59e   : > { %v14787_v53 = vpack.c.bf16 %v14751_v26, %v14747_v51  ;;  %v14752_v58 = vmax.f32 %v14560_v30, 0.0  ;;  %v14211_v7 = vadd.f32 %v14210_v37, %v14097_v32  ;;  %v14099_v18 = vpop.f32.mrf.mxu0  ;;  %v14563_v0 = vadd.f32 %v14209_v48, %v22805_v39  ;;  %v23907_v39 = vld [vmem:[#allocation59_spill] sm:$0xff]  ;;  %v23912_v51 = vld [vmem:[#allocation42_spill] sm:$0xff]  ;;  %v23913_v26 = vld [vmem:[#allocation52_spill] sm:$0xff] }
 0x59f   : > { %v14212_v33 = vpop.f32.mrf.mxu1  ;;  %v12765_v42 = vadd.f32 %v23907_v39, %v22835_v57  ;;  %v12775_v30 = vadd.f32 %v23913_v26, %v23912_v51 }
 0x5a0   : > { %v14213_v19 = vadd.f32 %v14212_v33, %v14099_v18  ;;  %v14788_v17 = vpack.c.bf16 %v14752_v58, %v14748_v35  ;;  %v14101_v62 = vpop.f32.mrf.mxu0  ;;  %v14564_v25 = vadd.f32 %v14211_v7, %v22808_v28  ;;  %v14755_v56 = vmax.f32 %v14563_v0, 0.0  ;;  %v23914_v18 = vld [vmem:[#allocation30_spill] sm:$0xff] }
 0x5a1   : > { %v14214_v24 = vpop.f32.mrf.mxu1  ;;  %v12908_v40 = vadd.f32 %v12765_v42, %v23909_v38  ;;  %v23918_v42 = vld [vmem:[#allocation46_spill] sm:$0xff] }
 0x5a2   : > { %v14567_v27 = vadd.f32 %v14213_v19, %v22821_v14  ;;  %v14215_v6 = vadd.f32 %v14214_v24, %v14101_v62  ;;  %15138 = vmatprep.mubr.bf16.mxu0 %v14788_v17  ;;  %v14251_v8 = vpop.f32.mrf.mxu0  ;;  %v14756_v44 = vmax.f32 %v14564_v25, 0.0  ;;  %v23915_v24 = vld [vmem:[#allocation21_spill] sm:$0xff] }
 0x5a3   : > { %v14364_v11 = vpop.f32.mrf.mxu1  ;;  %15139 = vmatmul.mubr.bf16.gmra.mxu0 %v14787_v53  ;;  %v12916_v43 = vadd.f32 %v12775_v30, %v23915_v24  ;;  %v23924_v30 = vld [vmem:[#allocation53_spill] sm:$0xff] }
 0x5a4   : > { %v14759_v59 = vmax.f32 %v14567_v27, 0.0  ;;  %v14568_v63 = vadd.f32 %v14215_v6, %v12962_v47  ;;  %v14365_v10 = vadd.f32 %v14364_v11, %v14251_v8  ;;  %v14253_v52 = vpop.f32.mrf.mxu0  ;;  %v23916_v47 = vld [vmem:[#allocation63_spill] sm:$0xff] }
 0x5a5   : > { %v14366_v4 = vpop.f32.mrf.mxu1  ;;  %v23917_v27 = vld [vmem:[#allocation31_spill] sm:$0xff] }
 0x5a6   : > { %v14791_v61 = vpack.c.bf16 %v14759_v59, %v14755_v56  ;;  %v14760_v1 = vmax.f32 %v14568_v63, 0.0  ;;  %v14367_v28 = vadd.f32 %v14366_v4, %v14253_v52  ;;  %v14255_v16 = vpop.f32.mrf.mxu0  ;;  %v14509_v45 = vadd.f32 %v14365_v10, %v23908_v12  ;;  %v23919_v52 = vld [vmem:[#allocation38_spill] sm:$0xff] }
 0x5a7   : > { %v14368_v14 = vpop.f32.mrf.mxu1  ;;  %v12785_v4 = vadd.f32 %v23919_v52, %v23918_v42 }
 0x5a8   : > { %v14369_v13 = vadd.f32 %v14368_v14, %v14255_v16  ;;  %v14792_v55 = vpack.c.bf16 %v14760_v1, %v14756_v44  ;;  %v14257_v34 = vpop.f32.mrf.mxu0  ;;  %v14510_v46 = vadd.f32 %v14367_v28, %v23910_v29  ;;  %v14701_v9 = vmax.f32 %v14509_v45, 0.0  ;;  %v23921_v29 = vld [vmem:[#allocation27_spill] sm:$0xff] }
 0x5a9   : > { %v14370_v54 = vpop.f32.mrf.mxu1 }
 0x5aa   : > { %v14513_v57 = vadd.f32 %v14369_v13, %v23911_v3  ;;  %v14371_v41 = vadd.f32 %v14370_v54, %v14257_v34  ;;  %15146 = vmatprep.mubr.bf16.mxu0 %v14792_v55  ;;  %v14261_v15 = vpop.f32.mrf.mxu0  ;;  %v14702_v32 = vmax.f32 %v14510_v46, 0.0  ;;  %v23920_v13 = vld [vmem:[#allocation35_spill] sm:$0xff]  ;;  %v12924_v46 = vadd.f32 %v12785_v4, %v23921_v29  ;;  %v23922_v3 = vld [vmem:[#allocation37_spill] sm:$0xff] }
 0x5ab   : > { %v14374_v20 = vpop.f32.mrf.mxu1  ;;  %15147 = vmatmul.mubr.bf16.gmra.mxu0 %v14791_v61 }
 0x5ac   : > { %v14705_v50 = vmax.f32 %v14513_v57, 0.0  ;;  %v14514_v49 = vadd.f32 %v14371_v41, %v12908_v40  ;;  %v14375_v5 = vadd.f32 %v14374_v20, %v14261_v15  ;;  %v14263_v48 = vpop.f32.mrf.mxu0  ;;  %v23923_v41 = vld [vmem:[#allocation23_spill] sm:$0xff] }
 0x5ad   : > { %v14376_v36 = vpop.f32.mrf.mxu1 }
 0x5ae   : > { %v14765_v37 = vpack.c.bf16 %v14705_v50, %v14701_v9  ;;  %v14706_v35 = vmax.f32 %v14514_v49, 0.0  ;;  %v14377_v53 = vadd.f32 %v14376_v36, %v14263_v48  ;;  %v14265_v58 = vpop.f32.mrf.mxu0  ;;  %v14517_v33 = vadd.f32 %v14375_v5, %v23914_v18  ;;  %v23925_v48 = vld [vmem:[#allocation54_spill] sm:$0xff] }
 0x5af   : > { %v14378_v7 = vpop.f32.mrf.mxu1  ;;  %v12795_v36 = vadd.f32 %v23925_v48, %v23924_v30 }
 0x5b0   : > { %v14379_v0 = vadd.f32 %v14378_v7, %v14265_v58  ;;  %v14766_v19 = vpack.c.bf16 %v14706_v35, %v14702_v32  ;;  %v14267_v17 = vpop.f32.mrf.mxu0  ;;  %v14518_v25 = vadd.f32 %v14377_v53, %v23916_v47  ;;  %v14709_v59 = vmax.f32 %v14517_v33, 0.0  ;;  %v23927_v47 = vld [vmem:[#allocation40_spill] sm:$0xff] }
 0x5b1   : > { %v14380_v62 = vpop.f32.mrf.mxu1 }
 0x5b2   : > { %v14521_v6 = vadd.f32 %v14379_v0, %v23917_v27  ;;  %v14381_v8 = vadd.f32 %v14380_v62, %v14267_v17  ;;  %15187 = vmatprep.mubr.bf16.mxu1 %v14766_v19  ;;  %v14271_v11 = vpop.f32.mrf.mxu0  ;;  %v14710_v1 = vmax.f32 %v14518_v25, 0.0  ;;  %v23926_v0 = vld [vmem:[#allocation15_spill] sm:$0xff]  ;;  %v12932_v25 = vadd.f32 %v12795_v36, %v23927_v47  ;;  %v23928_v27 = vld [vmem:[#allocation17_spill] sm:$0xff] }
 0x5b3   : > { %v14384_v56 = vpop.f32.mrf.mxu1  ;;  %15188 = vmatmul.mubr.bf16.vlgmr.msra.gmra.mxu1 %v14765_v37 }
 0x5b4   : > { %v14713_v63 = vmax.f32 %v14521_v6, 0.0  ;;  %v14522_v10 = vadd.f32 %v14381_v8, %v12916_v43  ;;  %v14385_v39 = vadd.f32 %v14384_v56, %v14271_v11  ;;  %v14273_v44 = vpop.f32.mrf.mxu0  ;;  %v23929_v8 = vld [vmem:[#allocation50_spill] sm:$0xff] }
 0x5b5   : > { %v14386_v61 = vpop.f32.mrf.mxu1 }
 0x5b6   : > { %v14769_v28 = vpack.c.bf16 %v14713_v63, %v14709_v59  ;;  %v14714_v16 = vmax.f32 %v14522_v10, 0.0  ;;  %v14387_v14 = vadd.f32 %v14386_v61, %v14273_v44  ;;  %v14275_v12 = vpop.f32.mrf.mxu0  ;;  %v14525_v55 = vadd.f32 %v14385_v39, %v23920_v13 }
 0x5b7   : > { %v14388_v45 = vpop.f32.mrf.mxu1 }
 0x5b8   : > { %v14389_v34 = vadd.f32 %v14388_v45, %v14275_v12  ;;  %v14770_v54 = vpack.c.bf16 %v14714_v16, %v14710_v1  ;;  %v14277_v38 = vpop.f32.mrf.mxu0  ;;  %v14526_v57 = vadd.f32 %v14387_v14, %v23922_v3  ;;  %v14717_v49 = vmax.f32 %v14525_v55, 0.0  ;;  %v23930_v45 = vld [vmem:[#allocation60_spill] sm:$0xff] }
 0x5b9   : > { %v14390_v40 = vpop.f32.mrf.mxu1 }
 0x5ba   : > { %v14529_v15 = vadd.f32 %v14389_v34, %v23923_v41  ;;  %v14391_v20 = vadd.f32 %v14390_v40, %v14277_v38  ;;  %15195 = vmatprep.mubr.bf16.mxu1 %v14770_v54  ;;  %v14281_v9 = vpop.f32.mrf.mxu0  ;;  %v14718_v35 = vmax.f32 %v14526_v57, 0.0  ;;  %v23931_v40 = vld [vmem:[#allocation48_spill] sm:$0xff] }
 0x5bb   : > { %v14394_v50 = vpop.f32.mrf.mxu1  ;;  %15196 = vmatmul.mubr.bf16.gmra.mxu1 %v14769_v28 }
 0x5bc   : > { %v14721_v5 = vmax.f32 %v14529_v15, 0.0  ;;  %v14530_v51 = vadd.f32 %v14391_v20, %v12924_v46  ;;  %v14395_v26 = vadd.f32 %v14394_v50, %v14281_v9  ;;  %v14283_v32 = vpop.f32.mrf.mxu0  ;;  %v23932_v46 = vld [vmem:[#allocation19_spill] sm:$0xff] }
 0x5bd   : > { %v14396_v37 = vpop.f32.mrf.mxu1  ;;  %v23933_v50 = vld [vmem:[#allocation55_spill] sm:$0xff] }
 0x5be   : > { %v14773_v53 = vpack.c.bf16 %v14721_v5, %v14717_v49  ;;  %v14722_v58 = vmax.f32 %v14530_v51, 0.0  ;;  %v14397_v7 = vadd.f32 %v14396_v37, %v14283_v32  ;;  %v14285_v18 = vpop.f32.mrf.mxu0  ;;  %v14533_v19 = vadd.f32 %v14395_v26, %v23926_v0 }
 0x5bf   : > { %v14398_v33 = vpop.f32.mrf.mxu1 }
 0x5c0   : > { %v14399_v17 = vadd.f32 %v14398_v33, %v14285_v18  ;;  %v14774_v62 = vpack.c.bf16 %v14722_v58, %v14718_v35  ;;  %v14287_v24 = vpop.f32.mrf.mxu0  ;;  %v14534_v6 = vadd.f32 %v14397_v7, %v23928_v27  ;;  %v14725_v10 = vmax.f32 %v14533_v19, 0.0 }
 0x5c1   : > { %v14400_v43 = vpop.f32.mrf.mxu1 }
 0x5c2   : > { %v14537_v11 = vadd.f32 %v14399_v17, %v23929_v8  ;;  %v14401_v56 = vadd.f32 %v14400_v43, %v14287_v24  ;;  %15203 = vmatprep.mubr.bf16.mxu1 %v14774_v62  ;;  %v14291_v59 = vpop.f32.mrf.mxu0  ;;  %v14726_v61 = vmax.f32 %v14534_v6, 0.0 }
 0x5c3   : > { %v14404_v63 = vpop.f32.mrf.mxu1  ;;  %15204 = vmatmul.mubr.bf16.gmra.mxu1 %v14773_v53  ;;  %v23934_v53 = vld [vmem:[#allocation56_spill] sm:$0xff] }
 0x5c4   : > { %v14729_v39 = vmax.f32 %v14537_v11, 0.0  ;;  %v14538_v42 = vadd.f32 %v14401_v56, %v12932_v25  ;;  %v14405_v52 = vadd.f32 %v14404_v63, %v14291_v59  ;;  %v14293_v4 = vpop.f32.mrf.mxu0 }
 0x5c5   : > { %v14406_v44 = vpop.f32.mrf.mxu1 }
 0x5c6   : > { %v14777_v1 = vpack.c.bf16 %v14729_v39, %v14725_v10  ;;  %v14730_v28 = vmax.f32 %v14538_v42, 0.0  ;;  %v14407_v16 = vadd.f32 %v14406_v44, %v14293_v4  ;;  %v14295_v14 = vpop.f32.mrf.mxu0  ;;  %v14541_v13 = vadd.f32 %v14405_v52, %v23930_v45  ;;  %v23935_v45 = vld [vmem:[#allocation24_spill] sm:$0xff] }
 0x5c7   : > { %v14408_v12 = vpop.f32.mrf.mxu1 }
 0x5c8   : > { %v14409_v55 = vadd.f32 %v14408_v12, %v14295_v14  ;;  %v14778_v34 = vpack.c.bf16 %v14730_v28, %v14726_v61  ;;  %v14297_v54 = vpop.f32.mrf.mxu0  ;;  %v14542_v29 = vadd.f32 %v14407_v16, %v23931_v40  ;;  %v14733_v20 = vmax.f32 %v14541_v13, 0.0 }
 0x5c9   : > { %v14410_v38 = vpop.f32.mrf.mxu1 }
 0x5ca   : > { %v14545_v3 = vadd.f32 %v14409_v55, %v23932_v46  ;;  %v14411_v57 = vadd.f32 %v14410_v38, %v14297_v54  ;;  %15211 = vmatprep.mubr.bf16.mxu1 %v14778_v34  ;;  %v14301_v41 = vpop.f32.mrf.mxu0  ;;  %v14734_v30 = vmax.f32 %v14542_v29, 0.0 }
 0x5cb   : > { %v14414_v15 = vpop.f32.mrf.mxu1  ;;  %15212 = vmatmul.mubr.bf16.gmra.mxu1 %v14777_v1 }
 0x5cc   : > { %v14737_v9 = vmax.f32 %v14545_v3, 0.0  ;;  %v14546_v49 = vadd.f32 %v14411_v57, %v23933_v50  ;;  %v14415_v5 = vadd.f32 %v14414_v15, %v14301_v41  ;;  %v14303_v51 = vpop.f32.mrf.mxu0  ;;  %v23936_v3 = vld [vmem:[#allocation33_spill] sm:$0xff] }
 0x5cd   : > { %v14416_v26 = vpop.f32.mrf.mxu1 }
 0x5ce   : > { %v14781_v48 = vpack.c.bf16 %v14737_v9, %v14733_v20  ;;  %v14738_v36 = vmax.f32 %v14546_v49, 0.0  ;;  %v14417_v32 = vadd.f32 %v14416_v26, %v14303_v51  ;;  %v14305_v37 = vpop.f32.mrf.mxu0  ;;  %v14549_v58 = vadd.f32 %v14415_v5, %v23934_v53  ;;  %v23937_v9 = vld [vmem:[#allocation18_spill] sm:$0xff]  ;;  %v23938_v49 = vld [vmem:[#allocation57_spill] sm:$0xff] }
 0x5cf   : > { %v14418_v35 = vpop.f32.mrf.mxu1 }
 0x5d0   : > { %v14419_v7 = vadd.f32 %v14418_v35, %v14305_v37  ;;  %v14782_v18 = vpack.c.bf16 %v14738_v36, %v14734_v30  ;;  %v14307_v33 = vpop.f32.mrf.mxu0  ;;  %v14550_v19 = vadd.f32 %v14417_v32, %v22903_v22  ;;  %v14741_v47 = vmax.f32 %v14549_v58, 0.0 }
 0x5d1   : > { %v14420_v0 = vpop.f32.mrf.mxu1 }
 0x5d2   : > { %v14553_v17 = vadd.f32 %v14419_v7, %v22906_v60  ;;  %v14421_v62 = vadd.f32 %v14420_v0, %v14307_v33  ;;  %15219 = vmatprep.mubr.bf16.mxu1 %v14782_v18  ;;  %v14311_v24 = vpop.f32.mrf.mxu0  ;;  %v14742_v56 = vmax.f32 %v14550_v19, 0.0 }
 0x5d3   : > { %v14424_v43 = vpop.f32.mrf.mxu1  ;;  %15220 = vmatmul.mubr.bf16.gmra.mxu1 %v14781_v48  ;;  %v23939_v48 = vld [vmem:[#allocation26_spill] sm:$0xff] }
 0x5d4   : > { %v14745_v25 = vmax.f32 %v14553_v17, 0.0  ;;  %v14554_v27 = vadd.f32 %v14421_v62, %v22909_v31  ;;  %v14425_v6 = vadd.f32 %v14424_v43, %v14311_v24  ;;  %v14313_v8 = vpop.f32.mrf.mxu0 }
 0x5d5   : > { %v14426_v11 = vpop.f32.mrf.mxu1 }
 0x5d6   : > { %v14785_v59 = vpack.c.bf16 %v14745_v25, %v14741_v47  ;;  %v14746_v63 = vmax.f32 %v14554_v27, 0.0  ;;  %v14427_v10 = vadd.f32 %v14426_v11, %v14313_v8  ;;  %v14315_v39 = vpop.f32.mrf.mxu0  ;;  %v14557_v60 = vadd.f32 %v14425_v6, %v22912_v2 }
 0x5d7   : > { %v14428_v22 = vpop.f32.mrf.mxu1 }
 0x5d8   : > { %v14429_v42 = vadd.f32 %v14428_v22, %v14315_v39  ;;  %v14786_v52 = vpack.c.bf16 %v14746_v63, %v14742_v56  ;;  %v14317_v4 = vpop.f32.mrf.mxu0  ;;  %v14558_v61 = vadd.f32 %v14427_v10, %v22915_v23  ;;  %v14749_v14 = vmax.f32 %v14557_v60, 0.0  ;;  %v23019_v63 = vld [vmem:[#allocation8] ss:$0 sm:$0xff] }
 0x5d9   : > { %v14430_v44 = vpop.f32.mrf.mxu1 }
 0x5da   : > { %v14561_v1 = vadd.f32 %v14429_v42, %v22918_v21  ;;  %v14431_v31 = vadd.f32 %v14430_v44, %v14317_v4  ;;  %15227 = vmatprep.mubr.bf16.mxu1 %v14786_v52  ;;  %v14321_v28 = vpop.f32.mrf.mxu0  ;;  %v14750_v54 = vmax.f32 %v14558_v61, 0.0 }
 0x5db   : > { %v14434_v16 = vpop.f32.mrf.mxu1  ;;  %15228 = vmatmul.mubr.bf16.gmra.mxu1 %v14785_v59 }
 0x5dc   : > { %v14753_v12 = vmax.f32 %v14561_v1, 0.0  ;;  %v14562_v13 = vadd.f32 %v14431_v31, %v23935_v45  ;;  %v14435_v55 = vadd.f32 %v14434_v16, %v14321_v28  ;;  %v14323_v34 = vpop.f32.mrf.mxu0 }
 0x5dd   : > { %v14436_v2 = vpop.f32.mrf.mxu1 }
 0x5de   : > { %v14789_v38 = vpack.c.bf16 %v14753_v12, %v14749_v14  ;;  %v14754_v40 = vmax.f32 %v14562_v13, 0.0  ;;  %v14437_v29 = vadd.f32 %v14436_v2, %v14323_v34  ;;  %v14325_v46 = vpop.f32.mrf.mxu0  ;;  %v14565_v21 = vadd.f32 %v14435_v55, %v23936_v3 }
 0x5df   : > { %v14438_v23 = vpop.f32.mrf.mxu1 }
 0x5e0   : > { %v14439_v57 = vadd.f32 %v14438_v23, %v14325_v46  ;;  %v14790_v41 = vpack.c.bf16 %v14754_v40, %v14750_v54  ;;  %v14327_v15 = vpop.f32.mrf.mxu0  ;;  %v14566_v50 = vadd.f32 %v14437_v29, %v23937_v9  ;;  %v14757_v26 = vmax.f32 %v14565_v21, 0.0 }
 0x5e1   : > { %v14440_v20 = vpop.f32.mrf.mxu1 }
 0x5e2   : > { %v14569_v5 = vadd.f32 %v14439_v57, %v23938_v49  ;;  %v14441_v51 = vadd.f32 %v14440_v20, %v14327_v15  ;;  %15235 = vmatprep.mubr.bf16.mxu1 %v14790_v41  ;;  %v14758_v32 = vmax.f32 %v14566_v50, 0.0 }
 0x5e3   : > { %15236 = vmatmul.mubr.bf16.gmra.mxu1 %v14789_v38 }
 0x5e4   : > { %v14761_v30 = vmax.f32 %v14569_v5, 0.0  ;;  %v14570_v36 = vadd.f32 %v14441_v51, %v23939_v48 }
 0x5e6   : > { %v14793_v37 = vpack.c.bf16 %v14761_v30, %v14757_v26  ;;  %v14762_v35 = vmax.f32 %v14570_v36, 0.0 }
 0x5e8   : > { %v14794_v53 = vpack.c.bf16 %v14762_v35, %v14758_v32 }
 0x5ea   : > { %15243 = vmatprep.mubr.bf16.mxu1 %v14794_v53 }
 0x5eb   : > { %15244 = vmatmul.mubr.bf16.gmra.mxu1 %v14793_v37 }
 0x633   : > { %v17128_v58 = vpop.f32.mrf.mxu0 }
 0x635   : > { %v17129_v7 = vpop.f32.mrf.mxu0 }
 0x636   : > { %v17130_v59 = vadd.f32 %v17129_v7, %v17128_v58 }
 0x637   : > { %v17131_v18 = vpop.f32.mrf.mxu0 }
 0x638   : > { %v15093_v60 = vadd.f32 %v17130_v59, %v23019_v63 }
 0x639   : > { %v17132_v33 = vpop.f32.mrf.mxu0 }
 0x63a   : > { %v17133_v42 = vadd.f32 %v17132_v33, %v17131_v18 }
 0x63b   : > { %v17134_v0 = vpop.f32.mrf.mxu0 }
 0x63c   : > { %v15096_v31 = vadd.f32 %v17133_v42, %v23019_v63 }
 0x63d   : > { %v17135_v19 = vpop.f32.mrf.mxu0 }
 0x63e   : > { %v17136_v28 = vadd.f32 %v17135_v19, %v17134_v0 }
 0x63f   : > { %v17137_v17 = vpop.f32.mrf.mxu0 }
 0x640   : > { %v15101_v55 = vadd.f32 %v17136_v28, %v23019_v63 }
 0x641   : > { %v17138_v62 = vpop.f32.mrf.mxu0 }
 0x642   : > { %v17139_v34 = vadd.f32 %v17138_v62, %v17137_v17 }
 0x643   : > { %v17140_v24 = vpop.f32.mrf.mxu0 }
 0x644   : > { %v15104_v46 = vadd.f32 %v17139_v34, %v23019_v63 }
 0x645   : > { %v17141_v43 = vpop.f32.mrf.mxu0 }
 0x646   : > { %v17142_v23 = vadd.f32 %v17141_v43, %v17140_v24 }
 0x647   : > { %v17143_v47 = vpop.f32.mrf.mxu0 }
 0x648   : > { %v15109_v20 = vadd.f32 %v17142_v23, %v23019_v63 }
 0x649   : > { %v17144_v25 = vpop.f32.mrf.mxu0 }
 0x64a   : > { %v17145_v9 = vadd.f32 %v17144_v25, %v17143_v47 }
 0x64b   : > { %v17146_v27 = vpop.f32.mrf.mxu0 }
 0x64c   : > { %v15112_v30 = vadd.f32 %v17145_v9, %v23019_v63 }
 0x64d   : > { %v17147_v6 = vpop.f32.mrf.mxu0 }
 0x64e   : > { %v17148_v48 = vadd.f32 %v17147_v6, %v17146_v27 }
 0x64f   : > { %v17149_v8 = vpop.f32.mrf.mxu0 }
 0x650   : > { %v15117_v58 = vadd.f32 %v17148_v48, %v23019_v63 }
 0x651   : > { %v17150_v11 = vpop.f32.mrf.mxu0 }
 0x652   : > { %v17151_v7 = vadd.f32 %v17150_v11, %v17149_v8 }
 0x653   : > { %v23017_v56 = vpop.f32.mrf.mxu0 }
 0x654   : > { %v15120_v62 = vadd.f32 %v17151_v7, %v23019_v63 }
 0x655   : > { %v17153_v10 = vpop.f32.mrf.mxu0 }
 0x656   : > { %v17154_v24 = vadd.f32 %v17153_v10, %v23017_v56 }
 0x657   : > { %v23022_v4 = vpop.f32.mrf.mxu0 }
 0x658   : > { %v15125_v8 = vadd.f32 %v17154_v24, %v23019_v63 }
 0x659   : > { %v17156_v14 = vpop.f32.mrf.mxu0 }
 0x65a   : > { %v17157_v11 = vadd.f32 %v17156_v14, %v23022_v4 }
 0x65b   : > { %v17158_v54 = vpop.f32.mrf.mxu0 }
 0x65c   : > { %v15128_v10 = vadd.f32 %v17157_v11, %v23019_v63 }
 0x65d   : > { %v17159_v21 = vpop.f32.mrf.mxu0 }
 0x65e   : > { %v17160_v42 = vadd.f32 %v17159_v21, %v17158_v54 }
 0x65f   : > { %v17161_v49 = vpop.f32.mrf.mxu0 }
 0x660   : > { %v15133_v4 = vadd.f32 %v17160_v42, %v23019_v63 }
 0x661   : > { %v17162_v32 = vpop.f32.mrf.mxu0 }
 0x662   : > { %v17163_v28 = vadd.f32 %v17162_v32, %v17161_v49 }
 0x663   : > { %v17164_v33 = vpop.f32.mrf.mxu0 }
 0x665   : > { %v17165_v47 = vpop.f32.mrf.mxu0 }
 0x666   : > { %v17166_v34 = vadd.f32 %v17165_v47, %v17164_v33 }
 0x673   : > { %v17192_v39 = vpop.f32.mrf.mxu1 }
 0x675   : > { %v17193_v22 = vpop.f32.mrf.mxu1 }
 0x676   : > { %v17194_v52 = vadd.f32 %v17193_v22, %v17192_v39  ;;  %v17167_v39 = vpop.f32.mrf.mxu0 }
 0x677   : > { %v17195_v44 = vpop.f32.mrf.mxu1 }
 0x678   : > { %v15190_v61 = vadd.f32 %v17194_v52, %v15093_v60 }
 0x679   : > { %v17196_v1 = vpop.f32.mrf.mxu1 }
 0x67a   : > { %15253 = vst.msk [vmem:[%s23027_s11] sm:$0xff] %vm15252_vm0, %v15190_v61  ;;  %v17197_v16 = vadd.f32 %v17196_v1, %v17195_v44  ;;  %v17168_v44 = vpop.f32.mrf.mxu0 }
 0x67b   : > { %v17198_v12 = vpop.f32.mrf.mxu1  ;;  %v17169_v23 = vadd.f32 %v17168_v44, %v17167_v39 }
 0x67c   : > { %v15193_v45 = vadd.f32 %v17197_v16, %v15096_v31  ;;  %v17170_v14 = vpop.f32.mrf.mxu0 }
 0x67d   : > { %v17199_v13 = vpop.f32.mrf.mxu1 }
 0x67e   : > { %15254 = vst.msk [vmem:[%s23027_s11 + $0x8] sm:$0xff] %vm15252_vm0, %v15193_v45  ;;  %v17200_v2 = vadd.f32 %v17199_v13, %v17198_v12  ;;  %v17171_v54 = vpop.f32.mrf.mxu0 }
 0x67f   : > { %v17201_v38 = vpop.f32.mrf.mxu1  ;;  %v17172_v9 = vadd.f32 %v17171_v54, %v17170_v14 }
 0x680   : > { %v15198_v40 = vadd.f32 %v17200_v2, %v15101_v55  ;;  %v15136_v55 = vadd.f32 %v17163_v28, %v23019_v63  ;;  %v17173_v21 = vpop.f32.mrf.mxu0 }
 0x681   : > { %v17202_v29 = vpop.f32.mrf.mxu1 }
 0x682   : > { %15255 = vst.msk [vmem:[%s23027_s11 + $0x10] sm:$0xff] %vm15252_vm0, %v15198_v40  ;;  %v17203_v3 = vadd.f32 %v17202_v29, %v17201_v38  ;;  %v17174_v49 = vpop.f32.mrf.mxu0 }
 0x683   : > { %v17204_v57 = vpop.f32.mrf.mxu1  ;;  %v17175_v48 = vadd.f32 %v17174_v49, %v17173_v21 }
 0x684   : > { %v15201_v41 = vadd.f32 %v17203_v3, %v15104_v46  ;;  %v15141_v46 = vadd.f32 %v17166_v34, %v23019_v63 }
 0x685   : > { %v17205_v15 = vpop.f32.mrf.mxu1 }
 0x686   : > { %15256 = vst.msk [vmem:[%s23027_s11 + $0x18] sm:$0xff] %vm15252_vm0, %v15201_v41  ;;  %v17206_v50 = vadd.f32 %v17205_v15, %v17204_v57 }
 0x687   : > { %v17207_v5 = vpop.f32.mrf.mxu1 }
 0x688   : > { %v15206_v51 = vadd.f32 %v17206_v50, %v15109_v20  ;;  %v15144_v20 = vadd.f32 %v17169_v23, %v23019_v63 }
 0x689   : > { %v17208_v26 = vpop.f32.mrf.mxu1 }
 0x68a   : > { %15257 = vst.msk [vmem:[%s23027_s11 + $0x20] sm:$0xff] %vm15252_vm0, %v15206_v51  ;;  %v17209_v36 = vadd.f32 %v17208_v26, %v17207_v5 }
 0x68b   : > { %v17210_v37 = vpop.f32.mrf.mxu1 }
 0x68c   : > { %v15209_v35 = vadd.f32 %v17209_v36, %v15112_v30  ;;  %v15149_v30 = vadd.f32 %v17172_v9, %v23019_v63 }
 0x68d   : > { %v17211_v53 = vpop.f32.mrf.mxu1 }
 0x68e   : > { %15258 = vst.msk [vmem:[%s23027_s11 + $0x28] sm:$0xff] %vm15252_vm0, %v15209_v35  ;;  %v17212_v18 = vadd.f32 %v17211_v53, %v17210_v37  ;;  %v15152_v53 = vadd.f32 %v17175_v48, %v23019_v63 }
 0x68f   : > { %v17213_v0 = vpop.f32.mrf.mxu1 }
 0x690   : > { %v15214_v19 = vadd.f32 %v17212_v18, %v15117_v58 }
 0x691   : > { %v17214_v17 = vpop.f32.mrf.mxu1 }
 0x692   : > { %15259 = vst.msk [vmem:[%s23027_s11 + $0x30] sm:$0xff] %vm15252_vm0, %v15214_v19  ;;  %v17215_v43 = vadd.f32 %v17214_v17, %v17213_v0 }
 0x693   : > { %v17216_v25 = vpop.f32.mrf.mxu1 }
 0x694   : > { %v15217_v27 = vadd.f32 %v17215_v43, %v15120_v62 }
 0x695   : > { %v17217_v6 = vpop.f32.mrf.mxu1 }
 0x696   : > { %15260 = vst.msk [vmem:[%s23027_s11 + $0x38] sm:$0xff] %vm15252_vm0, %v15217_v27  ;;  %v17218_v59 = vadd.f32 %v17217_v6, %v17216_v25 }
 0x697   : > { %v17219_v22 = vpop.f32.mrf.mxu1 }
 0x698   : > { %v15222_v60 = vadd.f32 %v17218_v59, %v15125_v8 }
 0x699   : > { %v17220_v56 = vpop.f32.mrf.mxu1 }
 0x69a   : > { %15261 = vst.msk [vmem:[%s23027_s11 + $0x40] sm:$0xff] %vm15252_vm0, %v15222_v60  ;;  %v17221_v52 = vadd.f32 %v17220_v56, %v17219_v22 }
 0x69b   : > { %v17222_v61 = vpop.f32.mrf.mxu1 }
 0x69c   : > { %v15225_v1 = vadd.f32 %v17221_v52, %v15128_v10 }
 0x69d   : > { %v17223_v31 = vpop.f32.mrf.mxu1 }
 0x69e   : > { %15262 = vst.msk [vmem:[%s23027_s11 + $0x48] sm:$0xff] %vm15252_vm0, %v15225_v1  ;;  %v17224_v16 = vadd.f32 %v17223_v31, %v17222_v61 }
 0x69f   : > { %v17225_v12 = vpop.f32.mrf.mxu1 }
 0x6a0   : > { %v15230_v45 = vadd.f32 %v17224_v16, %v15133_v4 }
 0x6a1   : > { %v17226_v13 = vpop.f32.mrf.mxu1 }
 0x6a2   : > { %15263 = vst.msk [vmem:[%s23027_s11 + $0x50] sm:$0xff] %vm15252_vm0, %v15230_v45  ;;  %v17227_v2 = vadd.f32 %v17226_v13, %v17225_v12 }
 0x6a3   : > { %v17228_v38 = vpop.f32.mrf.mxu1 }
 0x6a4   : > { %v15233_v40 = vadd.f32 %v17227_v2, %v15136_v55 }
 0x6a5   : > { %v17229_v29 = vpop.f32.mrf.mxu1 }
 0x6a6   : > { %15264 = vst.msk [vmem:[%s23027_s11 + $0x58] sm:$0xff] %vm15252_vm0, %v15233_v40  ;;  %v17230_v3 = vadd.f32 %v17229_v29, %v17228_v38 }
 0x6a7   : > { %v17231_v57 = vpop.f32.mrf.mxu1 }
 0x6a8   : > { %v15238_v41 = vadd.f32 %v17230_v3, %v15141_v46 }
 0x6a9   : > { %v17232_v15 = vpop.f32.mrf.mxu1 }
 0x6aa   : > { %15265 = vst.msk [vmem:[%s23027_s11 + $0x60] sm:$0xff] %vm15252_vm0, %v15238_v41  ;;  %v17233_v50 = vadd.f32 %v17232_v15, %v17231_v57 }
 0x6ab   : > { %v17234_v5 = vpop.f32.mrf.mxu1 }
 0x6ac   : > { %v15241_v51 = vadd.f32 %v17233_v50, %v15144_v20 }
 0x6ad   : > { %v17235_v26 = vpop.f32.mrf.mxu1 }
 0x6ae   : > { %15266 = vst.msk [vmem:[%s23027_s11 + $0x68] sm:$0xff] %vm15252_vm0, %v15241_v51  ;;  %v17236_v36 = vadd.f32 %v17235_v26, %v17234_v5 }
 0x6af   : > { %v17237_v32 = vpop.f32.mrf.mxu1 }
 0x6b0   : > { %v15246_v37 = vadd.f32 %v17236_v36, %v15149_v30 }
 0x6b1   : > { %v17238_v35 = vpop.f32.mrf.mxu1 }
 0x6b2   : > { %15267 = vst.msk [vmem:[%s23027_s11 + $0x70] sm:$0xff] %vm15252_vm0, %v15246_v37  ;;  %v17239_v58 = vadd.f32 %v17238_v35, %v17237_v32 }
 0x6b4   : > { %v15249_v7 = vadd.f32 %v17239_v58, %v15152_v53 }
 0x6b6   : > { %15268 = vst.msk [vmem:[%s23027_s11 + $0x78] sm:$0xff] %vm15252_vm0, %v15249_v7 }
 0x6b7 PF: > { %p17_p6 = scmp.ge.s32.totalorder %s19769_s27, 4   ;;  %s23940_s18 = smov %s19647_s19 }
 0x6b8   : > { %s23941_s19 = smov %s19651_s20  ;;  %s23942_s20 = smov %s19779_s28 }
 0x6b9   : > { %s23943_s21 = smov %s19769_s27  ;;  %19 = sbr.rel (!%p17_p6) target bundleno = 5 (0x5), region = 108 }
 0x6be   :  { %15291 = vsyncpa [#allocation4], 1 }
 0x6bf   :  { %15293 = vsyncpa [#allocation4 + $0x1], 1 }
 0x6c0   :  { %15294 = vsyncpa [#allocation6], 1 }
 0x6c1   :  { %15295 = vsyncpa [#allocation9], 1 }

</bundles_post_ra>
